<compile_context>
chip_gen: v6e
topology: v6e:2x2x1
jax: 0.10.0
libtpu: 0.0.40
codegen_flags: <defaults>
</compile_context>

<pallas_src>
import jax
import jax.numpy as jnp
from jax.experimental import pallas as pl
from jax.experimental.pallas import tpu as pltpu


# -------------------- kernel helpers ----------------------------------------------
def _reflect_pad_into(xp_ref, x):
    """Write reflection-padded (pad=1) copy of x (1,H,W,C) into xp_ref (1,H+2,W+2,C)."""
    H, W = x.shape[1], x.shape[2]
    # interior
    xp_ref[:, 1:H + 1, 1:W + 1, :] = x
    # edges (ReflectionPad2d(1): border reflects to the row/col one step inside)
    xp_ref[:, 0:1, 1:W + 1, :] = x[:, 1:2, :, :]
    xp_ref[:, H + 1:H + 2, 1:W + 1, :] = x[:, H - 2:H - 1, :, :]
    xp_ref[:, 1:H + 1, 0:1, :] = x[:, :, 1:2, :]
    xp_ref[:, 1:H + 1, W + 1:W + 2, :] = x[:, :, W - 2:W - 1, :]
    # corners
    xp_ref[:, 0:1, 0:1, :] = x[:, 1:2, 1:2, :]
    xp_ref[:, 0:1, W + 1:W + 2, :] = x[:, 1:2, W - 2:W - 1, :]
    xp_ref[:, H + 1:H + 2, 0:1, :] = x[:, H - 2:H - 1, 1:2, :]
    xp_ref[:, H + 1:H + 2, W + 1:W + 2, :] = x[:, H - 2:H - 1, W - 2:W - 1, :]


def _conv3x3_im2col(xp_ref, w_ref, b_ref, H, W, C):
    """3x3 VALID conv over the padded bf16 scratch as ONE im2col matmul -> f32 (1,H,W,C)."""
    # 9 shifted views (already bf16), concatenated along the lane axis; every piece
    # is a full 128-lane tile so the concat is tile-aligned.
    cols = [xp_ref[:, dy:dy + H, dx:dx + W, :].reshape(H * W, C)
            for dy in range(3) for dx in range(3)]
    patches = jnp.concatenate(cols, axis=-1)                    # (H*W, 9*C) bf16
    acc = jnp.dot(patches, w_ref[...], preferred_element_type=jnp.float32)
    acc = acc + b_ref[...]                                      # per-channel bias (1, C) f32
    return acc.reshape(1, H, W, C)


def _resnet_block_kernel(x_ref, w1_ref, b1_ref, w2_ref, b2_ref, o_ref, xp_ref):
    _, H, W, C = x_ref.shape
    x = x_ref[...]                                              # (1, H, W, C) f32

    _reflect_pad_into(xp_ref, x.astype(jnp.bfloat16))
    h = jnp.maximum(_conv3x3_im2col(xp_ref, w1_ref, b1_ref, H, W, C), 0.0)  # conv1 + ReLU

    _reflect_pad_into(xp_ref, h.astype(jnp.bfloat16))           # scratch fully overwritten
    y = _conv3x3_im2col(xp_ref, w2_ref, b2_ref, H, W, C)        # conv2

    o_ref[...] = x + y                                          # residual add (f32)


# -------------------- wrapper ------------------------------------------------------
def resnet_block(x_nchw, w1, b1, w2, b2):
    """x_nchw: (N, C, H, W) f32; w*: (9*C, C) bf16; b*: (1, C) f32. Returns NCHW f32."""
    N, C, H, W = x_nchw.shape
    x = jnp.transpose(x_nchw, (0, 2, 3, 1)).astype(jnp.float32)     # NCHW -> NHWC

    out = pl.pallas_call(
        _resnet_block_kernel,
        out_shape=jax.ShapeDtypeStruct((N, H, W, C), jnp.float32),
        grid_spec=pltpu.PrefetchScalarGridSpec(
            num_scalar_prefetch=0,
            grid=(N,),
            in_specs=[
                pl.BlockSpec((1, H, W, C), lambda n: (n, 0, 0, 0)),   # activation block
                pl.BlockSpec((9 * C, C), lambda n: (0, 0)),           # w1 (whole, bf16, resident)
                pl.BlockSpec((1, C), lambda n: (0, 0)),               # b1
                pl.BlockSpec((9 * C, C), lambda n: (0, 0)),           # w2 (whole, bf16, resident)
                pl.BlockSpec((1, C), lambda n: (0, 0)),               # b2
            ],
            out_specs=pl.BlockSpec((1, H, W, C), lambda n: (n, 0, 0, 0)),
            scratch_shapes=[pltpu.VMEM((1, H + 2, W + 2, C), jnp.bfloat16)],  # padded act
        ),
        compiler_params=pltpu.CompilerParams(
            dimension_semantics=("parallel",),            # megacore split over batch (v7x)
            vmem_limit_bytes=32 * 1024 * 1024,            # working set is only a few MiB
        ),
    )(x, w1, b1, w2, b2)

    return jnp.transpose(out, (0, 3, 1, 2))                       # NHWC -> NCHW


# -------------------- parameters ----------------------------------------------------
def init_params(key, dim):
    k1, k2, k3, k4 = jax.random.split(key, 4)
    scale = (2.0 / (9.0 * dim)) ** 0.5
    w1 = jax.random.normal(k1, (3, 3, dim, dim), jnp.float32) * scale    # HWIO
    w2 = jax.random.normal(k2, (3, 3, dim, dim), jnp.float32) * scale
    b1 = jax.random.normal(k3, (dim,), jnp.float32) * 0.01
    b2 = jax.random.normal(k4, (dim,), jnp.float32) * 0.01
    # bf16 weights for the MXU / halved HBM traffic; biases stay f32.
    w1_bf16 = w1.astype(jnp.bfloat16)
    w2_bf16 = w2.astype(jnp.bfloat16)
    # im2col layout: (dy, dx, cin) flattened -> rows of a (9*Cin, Cout) matmul weight.
    w1_mm = w1_bf16.reshape(9 * dim, dim)
    w2_mm = w2_bf16.reshape(9 * dim, dim)
    # f32 copies of the *quantized* weights for the pure-JAX reference.
    w1_ref = w1_bf16.astype(jnp.float32)
    w2_ref = w2_bf16.astype(jnp.float32)
    return (w1_mm, b1.reshape(1, dim), w2_mm, b2.reshape(1, dim), w1_ref, w2_ref)


# -------------------- pure-JAX reference (correctness check) ------------------------
def resnet_block_ref(x_nchw, w1_hwio, b1, w2_hwio, b2):
    x = jnp.transpose(x_nchw, (0, 2, 3, 1)).astype(jnp.float32)

    def conv(h, w, b):
        hp = jnp.pad(h, ((0, 0), (1, 1), (1, 1), (0, 0)), mode="reflect")
        y = jax.lax.conv_general_dilated(
            hp, w, window_strides=(1, 1), padding="VALID",
            dimension_numbers=("NHWC", "HWIO", "NHWC"),
            precision=jax.lax.Precision.HIGHEST)
        return y + b

    h = jnp.maximum(conv(x, w1_hwio, b1), 0.0)
    y = conv(h, w2_hwio, b2)
    return jnp.transpose(x + y, (0, 3, 1, 2))


# -------------------- main -----------------------------------------------------------
if __name__ == "__main__":
    key = jax.random.PRNGKey(0)
    k_x, k_p = jax.random.split(key)

    N, DIM, H, W = 2, 128, 16, 16                 # dim=128 keeps channels lane-aligned
    x = jax.random.normal(k_x, (N, DIM, H, W), jnp.float32)

    w1_mm, b1, w2_mm, b2, w1_hwio, w2_hwio = init_params(k_p, DIM)

    out = jax.block_until_ready(resnet_block(x, w1_mm, b1, w2_mm, b2))
    assert out.shape == (N, DIM, H, W), out.shape
    assert bool(jnp.all(jnp.isfinite(out)))

    ref = jax.block_until_ready(resnet_block_ref(x, w1_hwio, b1, w2_hwio, b2))
    rel_err = float(jnp.max(jnp.abs(out - ref)) / (jnp.max(jnp.abs(ref)) + 1e-6))
    assert rel_err < 5e-2, f"max relative error too large: {rel_err}"

    print("KERNEL_OK")
</pallas_src>

<mosaic_0001>
module attributes {stable_mosaic.version = 11 : i64} {
  func.func @_resnet_block_kernel(%arg0: i32, %arg1: memref<1x16x16x128xf32, #tpu.memory_space<vmem>>, %arg2: memref<1152x128xbf16, #tpu.memory_space<vmem>>, %arg3: memref<1x128xf32, #tpu.memory_space<vmem>>, %arg4: memref<1152x128xbf16, #tpu.memory_space<vmem>>, %arg5: memref<1x128xf32, #tpu.memory_space<vmem>>, %arg6: memref<1x16x16x128xf32, #tpu.memory_space<vmem>>, %arg7: memref<1x18x18x128xbf16, #tpu.memory_space<vmem>>) attributes {dimension_semantics = [#tpu.dimension_semantics<parallel>], iteration_bounds = array<i64: 2>, scalar_prefetch = 0 : i64, scratch_operands = 1 : i64, tpu.core_type = #tpu.core_type<tc>, window_params = [{transform_indices = @transform_0, window_bounds = array<i64: 1, 16, 16, 128>}, {pipeline_mode = #tpu.pipeline_mode<synchronous>, transform_indices = @transform_1, window_bounds = array<i64: 1152, 128>}, {pipeline_mode = #tpu.pipeline_mode<synchronous>, transform_indices = @transform_2, window_bounds = array<i64: 1, 128>}, {pipeline_mode = #tpu.pipeline_mode<synchronous>, transform_indices = @transform_3, window_bounds = array<i64: 1152, 128>}, {pipeline_mode = #tpu.pipeline_mode<synchronous>, transform_indices = @transform_4, window_bounds = array<i64: 1, 128>}, {transform_indices = @transform_5, window_bounds = array<i64: 1, 16, 16, 128>}]} {
    %c0 = arith.constant 0 : index
    %c0_0 = arith.constant 0 : index
    %c0_1 = arith.constant 0 : index
    %c0_2 = arith.constant 0 : index
    %0 = vector.load %arg1[%c0, %c0_0, %c0_1, %c0_2] : memref<1x16x16x128xf32, #tpu.memory_space<vmem>>, vector<1x16x16x128xf32>
    %1 = arith.truncf %0 : vector<1x16x16x128xf32> to vector<1x16x16x128xbf16>
    %c0_3 = arith.constant 0 : index
    %c1 = arith.constant 1 : index
    %c1_4 = arith.constant 1 : index
    %c0_5 = arith.constant 0 : index
    %2 = vector.load %arg7[%c0_3, %c1, %c1_4, %c0_5] : memref<1x18x18x128xbf16, #tpu.memory_space<vmem>>, vector<1x16x16x128xbf16>
    tpu.vector_store %arg7[%c0_3, %c1, %c1_4, %c0_5], %1 {strides = array<i32>} : memref<1x18x18x128xbf16, #tpu.memory_space<vmem>>, vector<1x16x16x128xbf16>,
    %3 = vector.extract_strided_slice %1 {offsets = [0, 1, 0, 0], sizes = [1, 1, 16, 128], strides = [1, 1, 1, 1]} : vector<1x16x16x128xbf16> to vector<1x1x16x128xbf16>
    %c0_6 = arith.constant 0 : index
    %c0_7 = arith.constant 0 : index
    %c1_8 = arith.constant 1 : index
    %c0_9 = arith.constant 0 : index
    %4 = vector.load %arg7[%c0_6, %c0_7, %c1_8, %c0_9] : memref<1x18x18x128xbf16, #tpu.memory_space<vmem>>, vector<1x1x16x128xbf16>
    tpu.vector_store %arg7[%c0_6, %c0_7, %c1_8, %c0_9], %3 {strides = array<i32>} : memref<1x18x18x128xbf16, #tpu.memory_space<vmem>>, vector<1x1x16x128xbf16>,
    %5 = vector.extract_strided_slice %1 {offsets = [0, 14, 0, 0], sizes = [1, 1, 16, 128], strides = [1, 1, 1, 1]} : vector<1x16x16x128xbf16> to vector<1x1x16x128xbf16>
    %c0_10 = arith.constant 0 : index
    %c17 = arith.constant 17 : index
    %c1_11 = arith.constant 1 : index
    %c0_12 = arith.constant 0 : index
    %6 = vector.load %arg7[%c0_10, %c17, %c1_11, %c0_12] : memref<1x18x18x128xbf16, #tpu.memory_space<vmem>>, vector<1x1x16x128xbf16>
    tpu.vector_store %arg7[%c0_10, %c17, %c1_11, %c0_12], %5 {strides = array<i32>} : memref<1x18x18x128xbf16, #tpu.memory_space<vmem>>, vector<1x1x16x128xbf16>,
    %7 = vector.extract_strided_slice %1 {offsets = [0, 0, 1, 0], sizes = [1, 16, 1, 128], strides = [1, 1, 1, 1]} : vector<1x16x16x128xbf16> to vector<1x16x1x128xbf16>
    %c0_13 = arith.constant 0 : index
    %c1_14 = arith.constant 1 : index
    %c0_15 = arith.constant 0 : index
    %c0_16 = arith.constant 0 : index
    %8 = vector.load %arg7[%c0_13, %c1_14, %c0_15, %c0_16] : memref<1x18x18x128xbf16, #tpu.memory_space<vmem>>, vector<1x16x1x128xbf16>
    tpu.vector_store %arg7[%c0_13, %c1_14, %c0_15, %c0_16], %7 {strides = array<i32>} : memref<1x18x18x128xbf16, #tpu.memory_space<vmem>>, vector<1x16x1x128xbf16>,
    %9 = vector.extract_strided_slice %1 {offsets = [0, 0, 14, 0], sizes = [1, 16, 1, 128], strides = [1, 1, 1, 1]} : vector<1x16x16x128xbf16> to vector<1x16x1x128xbf16>
    %c0_17 = arith.constant 0 : index
    %c1_18 = arith.constant 1 : index
    %c17_19 = arith.constant 17 : index
    %c0_20 = arith.constant 0 : index
    %10 = vector.load %arg7[%c0_17, %c1_18, %c17_19, %c0_20] : memref<1x18x18x128xbf16, #tpu.memory_space<vmem>>, vector<1x16x1x128xbf16>
    tpu.vector_store %arg7[%c0_17, %c1_18, %c17_19, %c0_20], %9 {strides = array<i32>} : memref<1x18x18x128xbf16, #tpu.memory_space<vmem>>, vector<1x16x1x128xbf16>,
    %11 = vector.extract_strided_slice %1 {offsets = [0, 1, 1, 0], sizes = [1, 1, 1, 128], strides = [1, 1, 1, 1]} : vector<1x16x16x128xbf16> to vector<1x1x1x128xbf16>
    %c0_21 = arith.constant 0 : index
    %c0_22 = arith.constant 0 : index
    %c0_23 = arith.constant 0 : index
    %c0_24 = arith.constant 0 : index
    %12 = vector.load %arg7[%c0_21, %c0_22, %c0_23, %c0_24] : memref<1x18x18x128xbf16, #tpu.memory_space<vmem>>, vector<1x1x1x128xbf16>
    tpu.vector_store %arg7[%c0_21, %c0_22, %c0_23, %c0_24], %11 {strides = array<i32>} : memref<1x18x18x128xbf16, #tpu.memory_space<vmem>>, vector<1x1x1x128xbf16>,
    %13 = vector.extract_strided_slice %1 {offsets = [0, 1, 14, 0], sizes = [1, 1, 1, 128], strides = [1, 1, 1, 1]} : vector<1x16x16x128xbf16> to vector<1x1x1x128xbf16>
    %c0_25 = arith.constant 0 : index
    %c0_26 = arith.constant 0 : index
    %c17_27 = arith.constant 17 : index
    %c0_28 = arith.constant 0 : index
    %14 = vector.load %arg7[%c0_25, %c0_26, %c17_27, %c0_28] : memref<1x18x18x128xbf16, #tpu.memory_space<vmem>>, vector<1x1x1x128xbf16>
    tpu.vector_store %arg7[%c0_25, %c0_26, %c17_27, %c0_28], %13 {strides = array<i32>} : memref<1x18x18x128xbf16, #tpu.memory_space<vmem>>, vector<1x1x1x128xbf16>,
    %15 = vector.extract_strided_slice %1 {offsets = [0, 14, 1, 0], sizes = [1, 1, 1, 128], strides = [1, 1, 1, 1]} : vector<1x16x16x128xbf16> to vector<1x1x1x128xbf16>
    %c0_29 = arith.constant 0 : index
    %c17_30 = arith.constant 17 : index
    %c0_31 = arith.constant 0 : index
    %c0_32 = arith.constant 0 : index
    %16 = vector.load %arg7[%c0_29, %c17_30, %c0_31, %c0_32] : memref<1x18x18x128xbf16, #tpu.memory_space<vmem>>, vector<1x1x1x128xbf16>
    tpu.vector_store %arg7[%c0_29, %c17_30, %c0_31, %c0_32], %15 {strides = array<i32>} : memref<1x18x18x128xbf16, #tpu.memory_space<vmem>>, vector<1x1x1x128xbf16>,
    %17 = vector.extract_strided_slice %1 {offsets = [0, 14, 14, 0], sizes = [1, 1, 1, 128], strides = [1, 1, 1, 1]} : vector<1x16x16x128xbf16> to vector<1x1x1x128xbf16>
    %c0_33 = arith.constant 0 : index
    %c17_34 = arith.constant 17 : index
    %c17_35 = arith.constant 17 : index
    %c0_36 = arith.constant 0 : index
    %18 = vector.load %arg7[%c0_33, %c17_34, %c17_35, %c0_36] : memref<1x18x18x128xbf16, #tpu.memory_space<vmem>>, vector<1x1x1x128xbf16>
    tpu.vector_store %arg7[%c0_33, %c17_34, %c17_35, %c0_36], %17 {strides = array<i32>} : memref<1x18x18x128xbf16, #tpu.memory_space<vmem>>, vector<1x1x1x128xbf16>,
    %c0_37 = arith.constant 0 : index
    %c0_38 = arith.constant 0 : index
    %c0_39 = arith.constant 0 : index
    %c0_40 = arith.constant 0 : index
    %19 = vector.load %arg7[%c0_37, %c0_38, %c0_39, %c0_40] : memref<1x18x18x128xbf16, #tpu.memory_space<vmem>>, vector<1x16x16x128xbf16>
    %20 = vector.shape_cast %19 : vector<1x16x16x128xbf16> to vector<256x128xbf16>
    %c0_41 = arith.constant 0 : index
    %c0_42 = arith.constant 0 : index
    %c1_43 = arith.constant 1 : index
    %c0_44 = arith.constant 0 : index
    %21 = vector.load %arg7[%c0_41, %c0_42, %c1_43, %c0_44] : memref<1x18x18x128xbf16, #tpu.memory_space<vmem>>, vector<1x16x16x128xbf16>
    %22 = vector.shape_cast %21 : vector<1x16x16x128xbf16> to vector<256x128xbf16>
    %c0_45 = arith.constant 0 : index
    %c0_46 = arith.constant 0 : index
    %c2 = arith.constant 2 : index
    %c0_47 = arith.constant 0 : index
    %23 = vector.load %arg7[%c0_45, %c0_46, %c2, %c0_47] : memref<1x18x18x128xbf16, #tpu.memory_space<vmem>>, vector<1x16x16x128xbf16>
    %24 = vector.shape_cast %23 : vector<1x16x16x128xbf16> to vector<256x128xbf16>
    %c0_48 = arith.constant 0 : index
    %c1_49 = arith.constant 1 : index
    %c0_50 = arith.constant 0 : index
    %c0_51 = arith.constant 0 : index
    %25 = vector.load %arg7[%c0_48, %c1_49, %c0_50, %c0_51] : memref<1x18x18x128xbf16, #tpu.memory_space<vmem>>, vector<1x16x16x128xbf16>
    %26 = vector.shape_cast %25 : vector<1x16x16x128xbf16> to vector<256x128xbf16>
    %c0_52 = arith.constant 0 : index
    %c1_53 = arith.constant 1 : index
    %c1_54 = arith.constant 1 : index
    %c0_55 = arith.constant 0 : index
    %27 = vector.load %arg7[%c0_52, %c1_53, %c1_54, %c0_55] : memref<1x18x18x128xbf16, #tpu.memory_space<vmem>>, vector<1x16x16x128xbf16>
    %28 = vector.shape_cast %27 : vector<1x16x16x128xbf16> to vector<256x128xbf16>
    %c0_56 = arith.constant 0 : index
    %c1_57 = arith.constant 1 : index
    %c2_58 = arith.constant 2 : index
    %c0_59 = arith.constant 0 : index
    %29 = vector.load %arg7[%c0_56, %c1_57, %c2_58, %c0_59] : memref<1x18x18x128xbf16, #tpu.memory_space<vmem>>, vector<1x16x16x128xbf16>
    %30 = vector.shape_cast %29 : vector<1x16x16x128xbf16> to vector<256x128xbf16>
    %c0_60 = arith.constant 0 : index
    %c2_61 = arith.constant 2 : index
    %c0_62 = arith.constant 0 : index
    %c0_63 = arith.constant 0 : index
    %31 = vector.load %arg7[%c0_60, %c2_61, %c0_62, %c0_63] : memref<1x18x18x128xbf16, #tpu.memory_space<vmem>>, vector<1x16x16x128xbf16>
    %32 = vector.shape_cast %31 : vector<1x16x16x128xbf16> to vector<256x128xbf16>
    %c0_64 = arith.constant 0 : index
    %c2_65 = arith.constant 2 : index
    %c1_66 = arith.constant 1 : index
    %c0_67 = arith.constant 0 : index
    %33 = vector.load %arg7[%c0_64, %c2_65, %c1_66, %c0_67] : memref<1x18x18x128xbf16, #tpu.memory_space<vmem>>, vector<1x16x16x128xbf16>
    %34 = vector.shape_cast %33 : vector<1x16x16x128xbf16> to vector<256x128xbf16>
    %c0_68 = arith.constant 0 : index
    %c2_69 = arith.constant 2 : index
    %c2_70 = arith.constant 2 : index
    %c0_71 = arith.constant 0 : index
    %35 = vector.load %arg7[%c0_68, %c2_69, %c2_70, %c0_71] : memref<1x18x18x128xbf16, #tpu.memory_space<vmem>>, vector<1x16x16x128xbf16>
    %36 = vector.shape_cast %35 : vector<1x16x16x128xbf16> to vector<256x128xbf16>
    %37 = tpu.concatenate %20, %22, %24, %26, %28, %30, %32, %34, %36 in 1 : vector<256x128xbf16>, vector<256x128xbf16>, vector<256x128xbf16>, vector<256x128xbf16>, vector<256x128xbf16>, vector<256x128xbf16>, vector<256x128xbf16>, vector<256x128xbf16>, vector<256x128xbf16> -> vector<256x1152xbf16>
    %c0_72 = arith.constant 0 : index
    %c0_73 = arith.constant 0 : index
    %38 = vector.load %arg2[%c0_72, %c0_73] : memref<1152x128xbf16, #tpu.memory_space<vmem>>, vector<1152x128xbf16>
    %cst = arith.constant dense<0.000000e+00> : vector<256x128xf32>
    %39 = tpu.matmul %37, %38, %cst {dimension_numbers = #tpu.dot_dimension_numbers<[1], [0], [0], [1], [0, 0, 1, 1], [], []>} : vector<256x1152xbf16>, vector<1152x128xbf16>, vector<256x128xf32> -> vector<256x128xf32>
    %c0_74 = arith.constant 0 : index
    %c0_75 = arith.constant 0 : index
    %40 = vector.load %arg3[%c0_74, %c0_75] : memref<1x128xf32, #tpu.memory_space<vmem>>, vector<1x128xf32>
    %41 = vector.broadcast %40 : vector<1x128xf32> to vector<256x128xf32>
    %42 = arith.addf %39, %41 : vector<256x128xf32>
    %43 = vector.shape_cast %42 : vector<256x128xf32> to vector<1x16x16x128xf32>
    %cst_76 = arith.constant 0.000000e+00 : f32
    %44 = vector.broadcast %cst_76 : f32 to vector<1x16x16x128xf32>
    %45 = arith.maximumf %43, %44 : vector<1x16x16x128xf32>
    %46 = arith.truncf %45 : vector<1x16x16x128xf32> to vector<1x16x16x128xbf16>
    %c0_77 = arith.constant 0 : index
    %c1_78 = arith.constant 1 : index
    %c1_79 = arith.constant 1 : index
    %c0_80 = arith.constant 0 : index
    %47 = vector.load %arg7[%c0_77, %c1_78, %c1_79, %c0_80] : memref<1x18x18x128xbf16, #tpu.memory_space<vmem>>, vector<1x16x16x128xbf16>
    tpu.vector_store %arg7[%c0_77, %c1_78, %c1_79, %c0_80], %46 {strides = array<i32>} : memref<1x18x18x128xbf16, #tpu.memory_space<vmem>>, vector<1x16x16x128xbf16>,
    %48 = vector.extract_strided_slice %46 {offsets = [0, 1, 0, 0], sizes = [1, 1, 16, 128], strides = [1, 1, 1, 1]} : vector<1x16x16x128xbf16> to vector<1x1x16x128xbf16>
    %c0_81 = arith.constant 0 : index
    %c0_82 = arith.constant 0 : index
    %c1_83 = arith.constant 1 : index
    %c0_84 = arith.constant 0 : index
    %49 = vector.load %arg7[%c0_81, %c0_82, %c1_83, %c0_84] : memref<1x18x18x128xbf16, #tpu.memory_space<vmem>>, vector<1x1x16x128xbf16>
    tpu.vector_store %arg7[%c0_81, %c0_82, %c1_83, %c0_84], %48 {strides = array<i32>} : memref<1x18x18x128xbf16, #tpu.memory_space<vmem>>, vector<1x1x16x128xbf16>,
    %50 = vector.extract_strided_slice %46 {offsets = [0, 14, 0, 0], sizes = [1, 1, 16, 128], strides = [1, 1, 1, 1]} : vector<1x16x16x128xbf16> to vector<1x1x16x128xbf16>
    %c0_85 = arith.constant 0 : index
    %c17_86 = arith.constant 17 : index
    %c1_87 = arith.constant 1 : index
    %c0_88 = arith.constant 0 : index
    %51 = vector.load %arg7[%c0_85, %c17_86, %c1_87, %c0_88] : memref<1x18x18x128xbf16, #tpu.memory_space<vmem>>, vector<1x1x16x128xbf16>
    tpu.vector_store %arg7[%c0_85, %c17_86, %c1_87, %c0_88], %50 {strides = array<i32>} : memref<1x18x18x128xbf16, #tpu.memory_space<vmem>>, vector<1x1x16x128xbf16>,
    %52 = vector.extract_strided_slice %46 {offsets = [0, 0, 1, 0], sizes = [1, 16, 1, 128], strides = [1, 1, 1, 1]} : vector<1x16x16x128xbf16> to vector<1x16x1x128xbf16>
    %c0_89 = arith.constant 0 : index
    %c1_90 = arith.constant 1 : index
    %c0_91 = arith.constant 0 : index
    %c0_92 = arith.constant 0 : index
    %53 = vector.load %arg7[%c0_89, %c1_90, %c0_91, %c0_92] : memref<1x18x18x128xbf16, #tpu.memory_space<vmem>>, vector<1x16x1x128xbf16>
    tpu.vector_store %arg7[%c0_89, %c1_90, %c0_91, %c0_92], %52 {strides = array<i32>} : memref<1x18x18x128xbf16, #tpu.memory_space<vmem>>, vector<1x16x1x128xbf16>,
    %54 = vector.extract_strided_slice %46 {offsets = [0, 0, 14, 0], sizes = [1, 16, 1, 128], strides = [1, 1, 1, 1]} : vector<1x16x16x128xbf16> to vector<1x16x1x128xbf16>
    %c0_93 = arith.constant 0 : index
    %c1_94 = arith.constant 1 : index
    %c17_95 = arith.constant 17 : index
    %c0_96 = arith.constant 0 : index
    %55 = vector.load %arg7[%c0_93, %c1_94, %c17_95, %c0_96] : memref<1x18x18x128xbf16, #tpu.memory_space<vmem>>, vector<1x16x1x128xbf16>
    tpu.vector_store %arg7[%c0_93, %c1_94, %c17_95, %c0_96], %54 {strides = array<i32>} : memref<1x18x18x128xbf16, #tpu.memory_space<vmem>>, vector<1x16x1x128xbf16>,
    %56 = vector.extract_strided_slice %46 {offsets = [0, 1, 1, 0], sizes = [1, 1, 1, 128], strides = [1, 1, 1, 1]} : vector<1x16x16x128xbf16> to vector<1x1x1x128xbf16>
    %c0_97 = arith.constant 0 : index
    %c0_98 = arith.constant 0 : index
    %c0_99 = arith.constant 0 : index
    %c0_100 = arith.constant 0 : index
    %57 = vector.load %arg7[%c0_97, %c0_98, %c0_99, %c0_100] : memref<1x18x18x128xbf16, #tpu.memory_space<vmem>>, vector<1x1x1x128xbf16>
    tpu.vector_store %arg7[%c0_97, %c0_98, %c0_99, %c0_100], %56 {strides = array<i32>} : memref<1x18x18x128xbf16, #tpu.memory_space<vmem>>, vector<1x1x1x128xbf16>,
    %58 = vector.extract_strided_slice %46 {offsets = [0, 1, 14, 0], sizes = [1, 1, 1, 128], strides = [1, 1, 1, 1]} : vector<1x16x16x128xbf16> to vector<1x1x1x128xbf16>
    %c0_101 = arith.constant 0 : index
    %c0_102 = arith.constant 0 : index
    %c17_103 = arith.constant 17 : index
    %c0_104 = arith.constant 0 : index
    %59 = vector.load %arg7[%c0_101, %c0_102, %c17_103, %c0_104] : memref<1x18x18x128xbf16, #tpu.memory_space<vmem>>, vector<1x1x1x128xbf16>
    tpu.vector_store %arg7[%c0_101, %c0_102, %c17_103, %c0_104], %58 {strides = array<i32>} : memref<1x18x18x128xbf16, #tpu.memory_space<vmem>>, vector<1x1x1x128xbf16>,
    %60 = vector.extract_strided_slice %46 {offsets = [0, 14, 1, 0], sizes = [1, 1, 1, 128], strides = [1, 1, 1, 1]} : vector<1x16x16x128xbf16> to vector<1x1x1x128xbf16>
    %c0_105 = arith.constant 0 : index
    %c17_106 = arith.constant 17 : index
    %c0_107 = arith.constant 0 : index
    %c0_108 = arith.constant 0 : index
    %61 = vector.load %arg7[%c0_105, %c17_106, %c0_107, %c0_108] : memref<1x18x18x128xbf16, #tpu.memory_space<vmem>>, vector<1x1x1x128xbf16>
    tpu.vector_store %arg7[%c0_105, %c17_106, %c0_107, %c0_108], %60 {strides = array<i32>} : memref<1x18x18x128xbf16, #tpu.memory_space<vmem>>, vector<1x1x1x128xbf16>,
    %62 = vector.extract_strided_slice %46 {offsets = [0, 14, 14, 0], sizes = [1, 1, 1, 128], strides = [1, 1, 1, 1]} : vector<1x16x16x128xbf16> to vector<1x1x1x128xbf16>
    %c0_109 = arith.constant 0 : index
    %c17_110 = arith.constant 17 : index
    %c17_111 = arith.constant 17 : index
    %c0_112 = arith.constant 0 : index
    %63 = vector.load %arg7[%c0_109, %c17_110, %c17_111, %c0_112] : memref<1x18x18x128xbf16, #tpu.memory_space<vmem>>, vector<1x1x1x128xbf16>
    tpu.vector_store %arg7[%c0_109, %c17_110, %c17_111, %c0_112], %62 {strides = array<i32>} : memref<1x18x18x128xbf16, #tpu.memory_space<vmem>>, vector<1x1x1x128xbf16>,
    %c0_113 = arith.constant 0 : index
    %c0_114 = arith.constant 0 : index
    %c0_115 = arith.constant 0 : index
    %c0_116 = arith.constant 0 : index
    %64 = vector.load %arg7[%c0_113, %c0_114, %c0_115, %c0_116] : memref<1x18x18x128xbf16, #tpu.memory_space<vmem>>, vector<1x16x16x128xbf16>
    %65 = vector.shape_cast %64 : vector<1x16x16x128xbf16> to vector<256x128xbf16>
    %c0_117 = arith.constant 0 : index
    %c0_118 = arith.constant 0 : index
    %c1_119 = arith.constant 1 : index
    %c0_120 = arith.constant 0 : index
    %66 = vector.load %arg7[%c0_117, %c0_118, %c1_119, %c0_120] : memref<1x18x18x128xbf16, #tpu.memory_space<vmem>>, vector<1x16x16x128xbf16>
    %67 = vector.shape_cast %66 : vector<1x16x16x128xbf16> to vector<256x128xbf16>
    %c0_121 = arith.constant 0 : index
    %c0_122 = arith.constant 0 : index
    %c2_123 = arith.constant 2 : index
    %c0_124 = arith.constant 0 : index
    %68 = vector.load %arg7[%c0_121, %c0_122, %c2_123, %c0_124] : memref<1x18x18x128xbf16, #tpu.memory_space<vmem>>, vector<1x16x16x128xbf16>
    %69 = vector.shape_cast %68 : vector<1x16x16x128xbf16> to vector<256x128xbf16>
    %c0_125 = arith.constant 0 : index
    %c1_126 = arith.constant 1 : index
    %c0_127 = arith.constant 0 : index
    %c0_128 = arith.constant 0 : index
    %70 = vector.load %arg7[%c0_125, %c1_126, %c0_127, %c0_128] : memref<1x18x18x128xbf16, #tpu.memory_space<vmem>>, vector<1x16x16x128xbf16>
    %71 = vector.shape_cast %70 : vector<1x16x16x128xbf16> to vector<256x128xbf16>
    %c0_129 = arith.constant 0 : index
    %c1_130 = arith.constant 1 : index
    %c1_131 = arith.constant 1 : index
    %c0_132 = arith.constant 0 : index
    %72 = vector.load %arg7[%c0_129, %c1_130, %c1_131, %c0_132] : memref<1x18x18x128xbf16, #tpu.memory_space<vmem>>, vector<1x16x16x128xbf16>
    %73 = vector.shape_cast %72 : vector<1x16x16x128xbf16> to vector<256x128xbf16>
    %c0_133 = arith.constant 0 : index
    %c1_134 = arith.constant 1 : index
    %c2_135 = arith.constant 2 : index
    %c0_136 = arith.constant 0 : index
    %74 = vector.load %arg7[%c0_133, %c1_134, %c2_135, %c0_136] : memref<1x18x18x128xbf16, #tpu.memory_space<vmem>>, vector<1x16x16x128xbf16>
    %75 = vector.shape_cast %74 : vector<1x16x16x128xbf16> to vector<256x128xbf16>
    %c0_137 = arith.constant 0 : index
    %c2_138 = arith.constant 2 : index
    %c0_139 = arith.constant 0 : index
    %c0_140 = arith.constant 0 : index
    %76 = vector.load %arg7[%c0_137, %c2_138, %c0_139, %c0_140] : memref<1x18x18x128xbf16, #tpu.memory_space<vmem>>, vector<1x16x16x128xbf16>
    %77 = vector.shape_cast %76 : vector<1x16x16x128xbf16> to vector<256x128xbf16>
    %c0_141 = arith.constant 0 : index
    %c2_142 = arith.constant 2 : index
    %c1_143 = arith.constant 1 : index
    %c0_144 = arith.constant 0 : index
    %78 = vector.load %arg7[%c0_141, %c2_142, %c1_143, %c0_144] : memref<1x18x18x128xbf16, #tpu.memory_space<vmem>>, vector<1x16x16x128xbf16>
    %79 = vector.shape_cast %78 : vector<1x16x16x128xbf16> to vector<256x128xbf16>
    %c0_145 = arith.constant 0 : index
    %c2_146 = arith.constant 2 : index
    %c2_147 = arith.constant 2 : index
    %c0_148 = arith.constant 0 : index
    %80 = vector.load %arg7[%c0_145, %c2_146, %c2_147, %c0_148] : memref<1x18x18x128xbf16, #tpu.memory_space<vmem>>, vector<1x16x16x128xbf16>
    %81 = vector.shape_cast %80 : vector<1x16x16x128xbf16> to vector<256x128xbf16>
    %82 = tpu.concatenate %65, %67, %69, %71, %73, %75, %77, %79, %81 in 1 : vector<256x128xbf16>, vector<256x128xbf16>, vector<256x128xbf16>, vector<256x128xbf16>, vector<256x128xbf16>, vector<256x128xbf16>, vector<256x128xbf16>, vector<256x128xbf16>, vector<256x128xbf16> -> vector<256x1152xbf16>
    %c0_149 = arith.constant 0 : index
    %c0_150 = arith.constant 0 : index
    %83 = vector.load %arg4[%c0_149, %c0_150] : memref<1152x128xbf16, #tpu.memory_space<vmem>>, vector<1152x128xbf16>
    %cst_151 = arith.constant dense<0.000000e+00> : vector<256x128xf32>
    %84 = tpu.matmul %82, %83, %cst_151 {dimension_numbers = #tpu.dot_dimension_numbers<[1], [0], [0], [1], [0, 0, 1, 1], [], []>} : vector<256x1152xbf16>, vector<1152x128xbf16>, vector<256x128xf32> -> vector<256x128xf32>
    %c0_152 = arith.constant 0 : index
    %c0_153 = arith.constant 0 : index
    %85 = vector.load %arg5[%c0_152, %c0_153] : memref<1x128xf32, #tpu.memory_space<vmem>>, vector<1x128xf32>
    %86 = vector.broadcast %85 : vector<1x128xf32> to vector<256x128xf32>
    %87 = arith.addf %84, %86 : vector<256x128xf32>
    %88 = vector.shape_cast %87 : vector<256x128xf32> to vector<1x16x16x128xf32>
    %89 = arith.addf %0, %88 : vector<1x16x16x128xf32>
    %c0_154 = arith.constant 0 : index
    %c0_155 = arith.constant 0 : index
    %c0_156 = arith.constant 0 : index
    %c0_157 = arith.constant 0 : index
    %90 = vector.load %arg6[%c0_154, %c0_155, %c0_156, %c0_157] : memref<1x16x16x128xf32, #tpu.memory_space<vmem>>, vector<1x16x16x128xf32>
    tpu.vector_store %arg6[%c0_154, %c0_155, %c0_156, %c0_157], %89 {strides = array<i32>} : memref<1x16x16x128xf32, #tpu.memory_space<vmem>>, vector<1x16x16x128xf32>,
    return
  }
  func.func @transform_0(%arg0: i32) -> (i32, i32, i32, i32) {
    %c0_i32 = arith.constant 0 : i32
    %c0_i32_0 = arith.constant 0 : i32
    %c0_i32_1 = arith.constant 0 : i32
    %c0_i32_2 = arith.constant 0 : i32
    return %arg0, %c0_i32, %c0_i32_0, %c0_i32_1 : i32, i32, i32, i32
  }
  func.func @transform_1(%arg0: i32) -> (i32, i32) {
    %c0_i32 = arith.constant 0 : i32
    %c0_i32_0 = arith.constant 0 : i32
    %c0_i32_1 = arith.constant 0 : i32
    return %c0_i32, %c0_i32_0 : i32, i32
  }
  func.func @transform_2(%arg0: i32) -> (i32, i32) {
    %c0_i32 = arith.constant 0 : i32
    %c0_i32_0 = arith.constant 0 : i32
    %c0_i32_1 = arith.constant 0 : i32
    return %c0_i32, %c0_i32_0 : i32, i32
  }
  func.func @transform_3(%arg0: i32) -> (i32, i32) {
    %c0_i32 = arith.constant 0 : i32
    %c0_i32_0 = arith.constant 0 : i32
    %c0_i32_1 = arith.constant 0 : i32
    return %c0_i32, %c0_i32_0 : i32, i32
  }
  func.func @transform_4(%arg0: i32) -> (i32, i32) {
    %c0_i32 = arith.constant 0 : i32
    %c0_i32_0 = arith.constant 0 : i32
    %c0_i32_1 = arith.constant 0 : i32
    return %c0_i32, %c0_i32_0 : i32, i32
  }
  func.func @transform_5(%arg0: i32) -> (i32, i32, i32, i32) {
    %c0_i32 = arith.constant 0 : i32
    %c0_i32_0 = arith.constant 0 : i32
    %c0_i32_1 = arith.constant 0 : i32
    %c0_i32_2 = arith.constant 0 : i32
    return %arg0, %c0_i32, %c0_i32_0, %c0_i32_1 : i32, i32, i32, i32
  }
}

</mosaic_0001>

<bundles_post_ra>
// kernel: tpu_custom_call.1
= control target key start
LH: loop header
LB: loop body
LE: loop exit
PB: predicated region body
PF: predicated region fallthrough
CT: control target
= control target key end

     0   :  { %10 = vsyncpa [#allocation4], 0  ;;  %s17268_s0 = inlined_call_operand.hbm [shape: f32[2,16,16,128], index: 0, kind: input, shape index: {}]   ;;  %s17269_s1 = inlined_call_operand.hbm [shape: bf16[1152,128], index: 1, kind: input, shape index: {}]   ;;  %s17270_s2 = inlined_call_operand.vmem [shape: f32[1,128], index: 2, kind: input, shape index: {}]   ;;  %s17271_s3 = inlined_call_operand.hbm [shape: bf16[1152,128], index: 3, kind: input, shape index: {}]   ;;  %s17272_s4 = inlined_call_operand.vmem [shape: f32[1,128], index: 4, kind: input, shape index: {}]   ;;  %s17273_s5 = inlined_call_operand.hbm [shape: f32[2,16,16,128], index: 5, kind: output, shape index: {}]  }
   0x1   :  { %12 = vsyncpa [#allocation4 + $0x1], 0 }
   0x2   :  { %13 = vsyncpa [#allocation7], 0 }
   0x3   :  { %14 = vsyncpa [#allocation5], 0 }
   0x4   :  { %16 = vsyncpa [#allocation5 + $0x1], 0  ;;  %s12089_s18 = smov 0   ;;  %s12091_s19 = smov 0  }
   0x5   :  { %s12093_s20 = smov 0   ;;  %s12095_s21 = smov 0  }
   0x6 LB: > { %s12110_s22 = sadd.s32 4294967295, %s12047_s21   ;;  %s9688_s23 = sadd.s32 4294967294, %s12047_s21   ;;  %s12047_s21 = sphi %s12095_s21, %s17700_s21   ;;  %s12043_s20 = sphi %s12093_s20, %s17699_s20   ;;  %s12039_s19 = sphi %s12091_s19, %s17698_s19   ;;  %s12035_s18 = sphi %s12089_s18, %s17697_s18  }
   0x7   : > { %p42_p0 = scmp.ne.s32.totalorder %s12039_s19, %s12035_s18  ;;  %p17274_p1 = scmp.eq.s32.totalorder %s12110_s22, 0 }
   0x8   : > { %p156_p3 = scmp.eq.s32.totalorder %s9688_s23, 1  ;;  %p9689_p5 = scmp.ge.s32.totalorder %s12047_s21, 1 }
   0x9   : > { %p12119_p4 = por %p17274_p1, %p42_p0  ;;  %p163_p7 = scmp.lt.s32.totalorder %s12047_s21, 3 }
   0xa   : > { %p12124_p6 = por %p156_p3, %p42_p0  ;;  %s12049_s27 = smov [#allocation6]  }
   0xb   : > { %s17327_s24 = scalar_select %p12119_p4, 1, 0 }
   0xc   : > { %s17328_s25 = scalar_select %p12124_p6, 1, 0 }
   0xd   : > { %p12129_p8 = pnand %p9689_p5, %p163_p7  ;;  %s175_s28 = sshll.u32 %s12049_s27, 4  ;;  %s176_s28 = int_to_ptr.vmem [resolvable:$true] %s175_s28 }
   0xe   : > { %s12050_s30 = smov [#allocation8]   ;;  %s11910_s7 = scalar_lea.vmem %s176_s28, 9216 }
   0xf   : > { %s17329_s26 = scalar_select %p12129_p8, 1, 0 }
  0x10   : > { %p11474_p9 = pneg %p12129_p8  ;;  %s191_s6 = sshll.u32 %s12050_s30, 4  ;;  %s192_s6 = int_to_ptr.vmem [resolvable:$true] %s191_s6 }
  0x11   : > { %p11911_p13 = scmp.ne.s32.totalorder %s176_s28, %s11910_s7  ;;  %p11918_p5 = scmp.lt.s32.totalorder %s176_s28, %s176_s28 }
  0x12   : > { %p12138_p11 = pnand %p11474_p9, %p17274_p1  ;;  %p11919_p7 = scmp.lt.s32.totalorder %s11910_s7, %s11910_s7 }
  0x14   : > { %p11901_p12 = pneg %p12138_p11  ;;  %p11920_p10 = por %p11919_p7, %p11918_p5 }
  0x16   : > { %p11913_p0 = pnand %p11911_p13, %p11901_p12 }
  0x18   : > { %p11914_p3 = pneg %p11913_p0 }
  0x1a   : > { %p11921_p9 = pnand %p11920_p10, %p11914_p3 }
  0x1c   : > { %11924 = shalt.err (!%p11921_p9)
}
  0x1d   : > { %s12051_s8 = smov 64   ;;  %s12052_s9 = smov 4  }
  0x1e   : > { %11477 = dma.hbm_to_vmem [thread:$0]  (!%p12138_p11), %s17269_s1, 9216, %s176_s28, [#allocation7], %s12051_s8, %s12051_s8, %s12052_s9  }
  0x1f   : > { %s11936_s12 = scalar_lea.vmem %s192_s6, 9216  ;;  %p11944_p2 = scmp.lt.s32.totalorder %s192_s6, %s192_s6 }
  0x20   : > { %p11937_p1 = scmp.ne.s32.totalorder %s192_s6, %s11936_s12  ;;  %p11945_p6 = scmp.lt.s32.totalorder %s11936_s12, %s11936_s12 }
  0x22   : > { %p11939_p13 = pnand %p11937_p1, %p11901_p12  ;;  %p11946_p5 = por %p11945_p6, %p11944_p2 }
  0x24   : > { %p11940_p0 = pneg %p11939_p13 }
  0x26   : > { %p11947_p10 = pnand %p11946_p5, %p11940_p0 }
  0x28   : > { %11950 = shalt.err (!%p11947_p10)
}
  0x29   : > { %11480 = dma.hbm_to_vmem [thread:$0]  (!%p12138_p11), %s17271_s3, 9216, %s192_s6, [#allocation7], %s12051_s8, %s12051_s8, %s12052_s9  }
  0x2a   : > { %s12161_s15 = sadd.s32 1, %s12047_s21   ;;  %s29_s16 = sadd.s32 1, %s12043_s20 }
  0x2b   : > { %s26_s17 = ssub.s32 %s12047_s21, %s12161_s15  ;;  %p36_p1 = scmp.ne.s32.totalorder %s12043_s20, %s12039_s19 }
  0x2c   : > { %p27_p2 = scmp.eq.s32.totalorder %s26_s17, 0  ;;  %p37_p6 = scmp.eq.s32.totalorder %s12047_s21, 0 }
  0x2d   : > { %p17331_p12 = scmp.eq.s32.totalorder %s12110_s22, 1  ;;  %p11491_p7 = scmp.lt.s32.totalorder %s12047_s21, 2 }
  0x2e   : > { %s12177_s27 = scalar_select %p27_p2, %s12043_s20, %s29_s16  }
  0x2f   : > { %p12171_p3 = por %p17331_p12, %p36_p1  ;;  %p38_p9 = por %p37_p6, %p36_p1 }
  0x30   : > { %s208_s28 = sand.u32 1, %s12043_s20   ;;  %s10356_s30 = sshll.u32 %s12047_s21, 12 }
  0x31   : > { %s17332_s23 = scalar_select %p12171_p3, 1, 0 }
  0x32   : > { %s9693_s29 = sshll.u32 %s208_s28, 8  ;;  %s12184_s8 = scalar_lea.hbm %s17268_s0, %s10356_s30 }
  0x33   : > { %s212_s9 = scalar_lea.vmem [#allocation3], %s9693_s29  ;;  %p12188_p11 = pnand %p11491_p7, %p38_p9 }
  0x34   : > { %s219_s10 = sshll.u32 %s212_s9, 4  ;;  %s12192_s12 = scalar_lea.sflag [#allocation4], %s208_s28  ;;  %s12186_s10 = int_to_ptr.vmem [resolvable:$true] %s219_s10 }
  0x35   : > { %s11951_s13 = scalar_lea.hbm %s12184_s8, 4096  ;;  %p11953_p0 = pneg %p12188_p11 }
  0x36   : > { %p11952_p13 = scmp.ne.s32.totalorder %s12184_s8, %s11951_s13  ;;  %s11956_s17 = scalar_lea.hbm %s17268_s0, 8192 }
  0x37   : > { %p11957_p1 = scmp.lt.s32.totalorder %s12184_s8, %s17268_s0  ;;  %p11958_p2 = scmp.lt.s32.totalorder %s11956_s17, %s11951_s13 }
  0x38   : > { %p11954_p5 = pnand %p11953_p0, %p11952_p13 }
  0x39   : > { %p11959_p6 = por %p11958_p2, %p11957_p1 }
  0x3a   : > { %p11955_p10 = pneg %p11954_p5 }
  0x3c   : > { %p11960_p12 = pnand %p11959_p6, %p11955_p10 }
  0x3e   : > { %11963 = shalt.err (!%p11960_p12)
}
  0x3f   : > { %s11964_s28 = scalar_lea.vmem %s12186_s10, 4096  ;;  %s12053_s6 = smov [#allocation3]  }
  0x40   : > { %p11965_p7 = scmp.ne.s32.totalorder %s12186_s10, %s11964_s28  ;;  %s11969_s7 = sshll.u32 %s12053_s6, 4  ;;  %s11970_s7 = int_to_ptr.vmem [resolvable:$false] %s11969_s7 }
  0x41   : > { %s11971_s9 = scalar_lea.vmem %s11970_s7, 8192  ;;  %p11972_p5 = scmp.lt.s32.totalorder %s12186_s10, %s11970_s7 }
  0x42   : > { %p11967_p9 = pnand %p11965_p7, %p11953_p0  ;;  %p11973_p3 = scmp.lt.s32.totalorder %s11971_s9, %s11964_s28 }
  0x44   : > { %p11968_p13 = pneg %p11967_p9  ;;  %p11974_p4 = por %p11973_p3, %p11972_p5 }
  0x46   : > { %p11975_p8 = pnand %p11974_p4, %p11968_p13 }
  0x48   : > { %11978 = shalt.err (!%p11975_p8)
}
  0x49   : > { %s12054_s13 = smov 128   ;;  %s12055_s14 = smov 8  }
  0x4a   : > { %11484 = dma.hbm_to_vmem [thread:$0]  (!%p12188_p11), %s12184_s8, 4096, %s12186_s10, %s12192_s12, %s12054_s13, %s12054_s13, %s12055_s14  }
  0x4b   : > { %p17334_p0 = scmp.ne.s32.totalorder %s17329_s26, 0 }
  0x4d   : > { %231 = sbr.rel (%p17334_p0) target bundleno = 1355 (0x54b), region = 40 }
  0x52   : > { %s12216_s16 = sand.u32 1, %s12039_s19   ;;  %p17335_p4 = scmp.ne.s32.totalorder %s17327_s24, 0 }
  0x53   : > { %s9697_s17 = sshll.u32 %s12216_s16, 8  ;;  %s234_s29 = scalar_lea.sflag [#allocation4], %s12216_s16 }
  0x54   : > { %s12222_s30 = scalar_lea.vmem [#allocation3], %s9697_s17 }
  0x55   : > { %12022 = dma.done.wait (%p17335_p4), %s234_s29, 4096  }
  0x56   : > { %12024 = vsyncadd (%p17335_p4), %s234_s29, 4294963200  ;;  %p17336_p8 = scmp.eq.s32.totalorder %s12110_s22, 0 }
  0x58   : > { %12026 = dma.done.wait (%p17336_p8), [#allocation7], 18432   ;;  %p17337_p3 = pmov %p17336_p8 }
  0x59   : > { %v11535_v0 = vld [vmem:[#allocation6 + $0x78] sm:$0xff]   ;;  %v11538_v3 = vld [vmem:[#allocation6 + $0x70] sm:$0xff]   ;;  %v11542_v7 = vld [vmem:[#allocation6 + $0x68] sm:$0xff]   ;;  %vm401_vm0 = vsmask.f32 256  ;;  %vm725_vm2 = vcmask 1043456  }
  0x5a   : > { %12028 = vsyncadd (%p17337_p3), [#allocation7], 4294948864  ;;  %v11536_v1 = vld [vmem:[#allocation6 + $0x38] sm:$0xff]   ;;  %10422 = vmatprep.subr.bf16.mxu0 %v11535_v0  ;;  %v11540_v5 = vld [vmem:[#allocation6 + $0x30] sm:$0xff]   ;;  %vm402_vm1 = vsmask.f32 4368 }
  0x5b   : > { %v11537_v2 = vld [vmem:[#allocation6 + $0xf8] sm:$0xff]   ;;  %10423 = vmatpush3.bf16.msra.mxu0 %v11536_v1  ;;  %v11541_v6 = vld [vmem:[#allocation6 + $0xf0] sm:$0xff]   ;;  %v11544_v9 = vld [vmem:[#allocation6 + $0x28] sm:$0xff]   ;;  %vm726_vm3 = vsmask.f32 7938  ;;  %vm732_vm4 = vcmask 1040384  }
  0x5c   : > { %10534 = vmatprep.subr.bf16.mxu1 %v11537_v2  ;;  %v11539_v4 = vld [vmem:[#allocation6 + $0xb8] sm:$0xff]   ;;  %10424 = vmatprep.subr.bf16.mxu0 %v11538_v3  ;;  %v11543_v8 = vld [vmem:[#allocation6 + $0xb0] sm:$0xff]   ;;  %v11545_v10 = vld [vmem:[#allocation6 + $0xe8] sm:$0xff]   ;;  %v17338_v36 = vmov 0  ;;  %v17341_v45 = vmov 0  ;;  %v17344_v49 = vmov 0 }
  0x5d   : > { %10535 = vmatpush3.bf16.msra.mxu1 %v11539_v4  ;;  %v11546_v11 = vld [vmem:[#allocation6 + $0x60] sm:$0xff]   ;;  %v11547_v12 = vld [vmem:[#allocation6 + $0xa8] sm:$0xff]   ;;  %v11550_v15 = vld [vmem:[#allocation6 + $0x58] sm:$0xff]   ;;  %vm1561_vm8 = vcmask 1042432   ;;  %vm1562_vm9 = vcmask 1046532   ;;  %s17052_s28 = scalar_lea.vmem [#allocation9], %s9697_s17 }
  0x5e   : > { %10536 = vmatprep.subr.bf16.mxu1 %v11541_v6  ;;  %v11548_v13 = vld [vmem:[#allocation6 + $0x20] sm:$0xff]   ;;  %v11552_v17 = vld [vmem:[#allocation6 + $0x18] sm:$0xff]   ;;  %v11554_v19 = vld [vmem:[#allocation6 + $0x50] sm:$0xff]   ;;  %vm1110_vm11 = vsmask.f32 3328  ;;  %s10421_s6 = sshll.u32 %s12110_s22, 12 }
  0x5f   : > { %10425 = vmatpush3.bf16.msra.mxu0 %v11540_v5  ;;  %v11549_v14 = vld [vmem:[#allocation6 + $0xe0] sm:$0xff]   ;;  %v11553_v18 = vld [vmem:[#allocation6 + $0xd8] sm:$0xff]   ;;  %v11556_v21 = vld [vmem:[#allocation6 + $0x10] sm:$0xff]   ;;  %vm1111_vm12 = vsmask.f32 7440  ;;  %s9596_s7 = sshll.u32 %s17052_s28, 4  ;;  %s17220_s14 = scalar_lea.hbm %s17273_s5, %s10421_s6  ;;  %s17222_s7 = int_to_ptr.vmem [resolvable:$true] %s9596_s7 }
  0x60   : > { %10426 = vmatprep.subr.bf16.mxu0 %v11542_v7  ;;  %v11551_v16 = vld [vmem:[#allocation6 + $0xa0] sm:$0xff]   ;;  %v11555_v20 = vld [vmem:[#allocation6 + $0x98] sm:$0xff]   ;;  %v11557_v22 = vld [vmem:[#allocation6 + $0xd0] sm:$0xff]   ;;  %s9583_s22 = scalar_lea.sflag [#allocation5], %s12216_s16  ;;  %s11979_s17 = scalar_lea.vmem %s17222_s7, 4096 }
  0x61   : > { %10537 = vmatpush3.bf16.msra.mxu1 %v11543_v8  ;;  %v11558_v23 = vld [vmem:[#allocation6 + $0x48] sm:$0xff]   ;;  %v11559_v24 = vld [vmem:[#allocation6 + $0x90] sm:$0xff]   ;;  %v11562_v27 = vld [vmem:[#allocation6 + $0x40] sm:$0xff]   ;;  %p11980_p11 = scmp.ne.s32.totalorder %s17222_s7, %s11979_s17  ;;  %p17694_p10 = scmp.ne.s32.totalorder %s17332_s23, 0 }
  0x62   : > { %10538 = vmatprep.subr.bf16.mxu1 %v11545_v10  ;;  %v11560_v25 = vld [vmem:[#allocation6 + $0x8] sm:$0xff]   ;;  %v11564_v29 = vld [vmem:[#allocation6] sm:$0xff]   ;;  %v275_v31 = vld [vmem:[%s12222_s30 + $0x10] sm:$0xff]  ;;  %s12056_s29 = smov [#allocation9]  }
  0x63   : > { %10427 = vmatpush3.bf16.msra.mxu0 %v11544_v9  ;;  %v11561_v26 = vld [vmem:[#allocation6 + $0xc8] sm:$0xff]   ;;  %v11565_v30 = vld [vmem:[#allocation6 + $0xc0] sm:$0xff]   ;;  %v276_v32 = vld [vmem:[%s12222_s30 + $0x18] sm:$0xff]  ;;  %v10359_v33 = vpack.c.bf16 %v275_v31, %v275_v31  ;;  %p11981_p1 = pnand %p11980_p11, %p17694_p10  ;;  %s11983_s24 = sshll.u32 %s12056_s29, 4  ;;  %s11984_s24 = int_to_ptr.vmem [resolvable:$false] %s11983_s24 }
  0x64   : > { %10428 = vmatprep.subr.bf16.mxu0 %v11546_v11  ;;  %v11563_v28 = vld [vmem:[#allocation6 + $0x88] sm:$0xff]   ;;  %v10360_v34 = vpack.c.bf16 %v276_v32, %v276_v32  ;;  %v11566_v35 = vld [vmem:[#allocation6 + $0x80] sm:$0xff]   ;;  %vm12235_vm5 = vmor %vm401_vm0, %vm402_vm1  ;;  %s11985_s26 = scalar_lea.vmem %s11984_s24, 8192  ;;  %p11986_p6 = scmp.lt.s32.totalorder %s17222_s7, %s11984_s24 }
  0x65   : > { %10539 = vmatpush3.bf16.msra.mxu1 %v11547_v12  ;;  %v17339_v36 = vsel %vm12235_vm5, 4294967295, %v17338_v36  ;;  %v422_v37 = vshrl.u32 %v10359_v33, 16  ;;  %v425_v38 = vshll.u32 %v10359_v33, 16  ;;  %v11567_v41 = vld [vmem:[#allocation6 + $0x178] sm:$0xff]   ;;  %v273_v42 = vld [vmem:[%s12222_s30] sm:$0xff]  ;;  %vm12242_vm6 = vmand %vm725_vm2, %vm726_vm3  ;;  %p11982_p2 = pneg %p11981_p1  ;;  %p11987_p12 = scmp.lt.s32.totalorder %s11985_s26, %s11979_s17 }
  0x66   : > { %10540 = vmatprep.subr.bf16.mxu1 %v11549_v14  ;;  %17340 = vst [vmem:[#allocation13_spill] sm:$0xff] %v17339_v36  ;;  %v430_v39 = vshrl.u32 %v10360_v34, 16  ;;  %v433_v40 = vshll.u32 %v10360_v34, 16  ;;  %v17342_v45 = vsel %vm12242_vm6, 4294967295, %v17341_v45  ;;  %v842_v46 = vld [vmem:[#allocation2] sm:$0xf]  ;;  %vm12251_vm7 = vmand %vm732_vm4, %vm401_vm0  ;;  %v12257_v52 = vpack.c.bf16 %v273_v42, %v273_v42 }
  0x67   : > { %10429 = vmatpush3.bf16.msra.mxu0 %v11548_v13  ;;  %v424_v43 = vrot.slane %v422_v37, 7  ;;  %17343 = vst [vmem:[#allocation14_spill] sm:$0xff] %v17342_v45  ;;  %v12246_v47 = vrot.slane %v422_v37, 4  ;;  %v274_v48 = vld [vmem:[%s12222_s30 + $0x8] sm:$0xff]  ;;  %v17345_v49 = vsel %vm12251_vm7, 4294967295, %v17344_v49  ;;  %v277_v7 = vld [vmem:[%s12222_s30 + $0x20] sm:$0xff]  ;;  %vm12293_vm10 = vmand %vm732_vm4, %vm726_vm3  ;;  %p11988_p7 = por %p11987_p12, %p11986_p6 }
  0x68   : > { %10430 = vmatprep.subr.bf16.mxu0 %v11550_v15  ;;  %v432_v44 = vrot.slane %v430_v39, 7  ;;  %17346 = vst [vmem:[#allocation15_spill] sm:$0xff] %v17345_v49  ;;  %v846_v50 = vld [vmem:[#allocation2 + $0x8] sm:$0x1]  ;;  %v12255_v51 = vrot.slane %v433_v40, 7  ;;  %v10358_v53 = vpack.c.bf16 %v274_v48, %v274_v48  ;;  %v405_v61 = vshrl.u32 %v12257_v52, 16  ;;  %vm12332_vm13 = vmor %vm1561_vm8, %vm1562_vm9 }
  0x69   : > { %10541 = vmatpush3.bf16.msra.mxu1 %v11551_v16  ;;  %v737_v54 = vld [vmem:[#allocation2 + $0x18] sm:$0xf]  ;;  %v427_v55 = vor.u32 %v425_v38, %v424_v43  ;;  %v428_v56 = vrot.slane %v424_v43, 4  ;;  %v741_v59 = vld [vmem:[#allocation2 + $0x20] sm:$0x1]  ;;  %v860_v60 = vrot.slane %v12246_v47, 4  ;;  %v12277_v12 = vpack.c.bf16 %v277_v7, %v277_v7  ;;  %vm12393_vm14 = vmor %vm1110_vm11, %vm1111_vm12  ;;  %p11989_p9 = pnand %p11988_p7, %p11982_p2 }
  0x6a   : > { %10542 = vmatprep.subr.bf16.mxu1 %v11553_v18  ;;  %v435_v57 = vor.u32 %v433_v40, %v432_v44  ;;  %v437_v58 = vrot.slane %v432_v44, 4  ;;  %v408_v62 = vshll.u32 %v12257_v52, 16  ;;  %v413_v2 = vshrl.u32 %v10358_v53, 16  ;;  %v278_v8 = vld [vmem:[%s12222_s30 + $0x28] sm:$0xff]  ;;  %v728_v11 = vld [vmem:[#allocation2 + $0xc] sm:$0xf] }
  0x6b   : > { %10431 = vmatpush3.bf16.msra.mxu0 %v11552_v17  ;;  %v843_v0 = vsel %vm12242_vm6, %v427_v55, %v842_v46  ;;  %v407_v3 = vrot.slane %v405_v61, 7  ;;  %v416_v4 = vshll.u32 %v10358_v53, 16  ;;  %v738_v5 = vsel %vm12242_vm6, %v427_v55, %v737_v54  ;;  %v279_v14 = vld [vmem:[%s12222_s30 + $0x30] sm:$0xff]  ;;  %v280_v15 = vld [vmem:[%s12222_s30 + $0x38] sm:$0xff]  ;;  %v281_v39 = vld [vmem:[%s12222_s30 + $0x40] sm:$0xff] }
  0x6c   : > { %10432 = vmatprep.subr.bf16.mxu0 %v11554_v19  ;;  %v436_v63 = vsel %vm12235_vm5, %v428_v56, %v435_v57  ;;  %v847_v1 = vsel %vm12251_vm7, %v437_v58, %v846_v50  ;;  %844 = vst [vmem:[#allocation2] sm:$0xf] %v843_v0  ;;  %v742_v6 = vsel %vm12251_vm7, %v437_v58, %v741_v59  ;;  %v956_v9 = vrot.slane %v12255_v51, 4  ;;  %v734_v18 = vld [vmem:[#allocation2 + $0x14] sm:$0x1] }
  0x6d   : > { %10543 = vmatpush3.bf16.msra.mxu1 %v11555_v20  ;;  %845 = vst [vmem:[#allocation2 + $0x4] sm:$0xf] %v436_v63  ;;  %848 = vst [vmem:[#allocation2 + $0x8] sm:$0x1] %v847_v1  ;;  %v415_v10 = vrot.slane %v413_v2, 7  ;;  %v10362_v13 = vpack.c.bf16 %v278_v8, %v278_v8  ;;  %v410_v16 = vor.u32 %v408_v62, %v407_v3  ;;  %v411_v17 = vrot.slane %v407_v3, 4 }
  0x6e   : > { %10544 = vmatprep.subr.bf16.mxu1 %v11557_v22  ;;  %740 = vst [vmem:[#allocation2 + $0x1c] sm:$0xf] %v436_v63  ;;  %739 = vst [vmem:[#allocation2 + $0x18] sm:$0xf] %v738_v5  ;;  %v12281_v19 = vrot.slane %v416_v4, 11  ;;  %v12283_v20 = vpack.c.bf16 %v279_v14, %v279_v14  ;;  %v282_v62 = vld [vmem:[%s12222_s30 + $0x48] sm:$0xff]  ;;  %v12343_v8 = vpack.c.bf16 %v281_v39, %v281_v39 }
  0x6f   : > { %10433 = vmatpush3.bf16.msra.mxu0 %v11556_v21  ;;  %743 = vst [vmem:[#allocation2 + $0x20] sm:$0x1] %v742_v6  ;;  %v418_v21 = vor.u32 %v416_v4, %v415_v10  ;;  %v420_v22 = vrot.slane %v415_v10, 4  ;;  %v744_v44 = vld [vmem:[#allocation2 + $0x24] sm:$0xf]  ;;  %v17350_v1 = vmov 0 }
  0x70   : > { %10434 = vmatprep.subr.bf16.mxu0 %v11558_v23  ;;  %v439_v23 = vshrl.u32 %v12277_v12, 16  ;;  %v456_v33 = vshrl.u32 %v12283_v20, 16  ;;  %v459_v37 = vshll.u32 %v12283_v20, 16  ;;  %v17351_v1 = vsel %vm12332_vm13, 4294967295, %v17350_v1  ;;  %v283_v3 = vld [vmem:[%s12222_s30 + $0x50] sm:$0xff] }
  0x71   : > { %10545 = vmatpush3.bf16.msra.mxu1 %v11559_v24  ;;  %v442_v24 = vshll.u32 %v12277_v12, 16  ;;  %v735_v31 = vsel %vm12251_vm7, %v420_v22, %v734_v18  ;;  %17352 = vst [vmem:[#allocation17_spill] sm:$0xff] %v17351_v1  ;;  %v748_v7 = vld [vmem:[#allocation2 + $0x2c] sm:$0x1]  ;;  %v11668_v1 = vld [vmem:[#allocation8 + $0xb8] sm:$0xff]  }
  0x72   : > { %10546 = vmatprep.subr.bf16.mxu1 %v11561_v26  ;;  %v447_v26 = vshrl.u32 %v10362_v13, 16  ;;  %v441_v32 = vrot.slane %v439_v23, 7  ;;  %736 = vst [vmem:[#allocation2 + $0x14] sm:$0x1] %v735_v31  ;;  %v285_v31 = vld [vmem:[%s12222_s30 + $0x60] sm:$0xff] }
  0x73   : > { %10435 = vmatpush3.bf16.msra.mxu0 %v11560_v25  ;;  %v729_v25 = vsel %vm12242_vm6, %v410_v16, %v728_v11  ;;  %v1050_v40 = vld [vmem:[#allocation2] sm:$0x1]  ;;  %v1497_v53 = vld [vmem:[#allocation2] sm:$0xe]  ;;  %v284_v16 = vld [vmem:[%s12222_s30 + $0x58] sm:$0xff] }
  0x74   : > { %10436 = vmatprep.subr.bf16.mxu0 %v11562_v27  ;;  %v450_v27 = vshll.u32 %v10362_v13, 16  ;;  %730 = vst [vmem:[#allocation2 + $0xc] sm:$0xf] %v729_v25  ;;  %v12304_v34 = vrot.slane %v447_v26, 7  ;;  %v12311_v42 = vld [vmem:[#allocation2 + $0x4] sm:$0xf]  ;;  %v444_v43 = vor.u32 %v442_v24, %v441_v32  ;;  %v1051_v46 = vsel %vm12251_vm7, %v860_v60, %v1050_v40 }
  0x75   : > { %10547 = vmatpush3.bf16.msra.mxu1 %v11563_v28  ;;  %v12289_v28 = vpack.c.bf16 %v280_v15, %v280_v15  ;;  %v1123_v50 = vshll.u32 %v12311_v42, 16  ;;  %v1127_v51 = vshrl.u32 %v12311_v42, 16  ;;  %v908_v54 = vld [vmem:[#allocation2 + $0x18] sm:$0x1]  ;;  %1052 = vst [vmem:[#allocation2] sm:$0x1] %v1051_v46  ;;  %v12364_v25 = vpack.c.bf16 %v282_v62, %v282_v62 }
  0x76   : > { %10548 = vmatprep.subr.bf16.mxu1 %v11565_v30  ;;  %v419_v30 = vsel %vm12235_vm5, %v411_v17, %v418_v21  ;;  %v9761_v55 = vrot.slane %v1497_v53, 9  ;;  %v1566_v56 = vrot.slane %v12311_v42, 5  ;;  %v909_v57 = vsel %vm12251_vm7, %v860_v60, %v908_v54  ;;  %v1005_v58 = vld [vmem:[#allocation2 + $0x20] sm:$0x1]  ;;  %v12338_v2 = vld [vmem:[#allocation2 + $0x1c] sm:$0xf] }
  0x77   : > { %10437 = vmatpush3.bf16.msra.mxu0 %v11564_v29  ;;  %v17347_v29 = vmov 0  ;;  %731 = vst [vmem:[#allocation2 + $0x10] sm:$0xf] %v419_v30  ;;  %v464_v38 = vshrl.u32 %v12289_v28, 16  ;;  %v452_v59 = vor.u32 %v450_v27, %v12304_v34  ;;  %v12328_v63 = vrot.slane %v1123_v50, 5 }
  0x78   : > { %10646 = vmatprep.subr.bf16.mxu0 %v11567_v41  ;;  %v17348_v29 = vsel %vm12293_vm10, 4294967295, %v17347_v29  ;;  %v1053_v41 = vld [vmem:[#allocation2 + $0x8] sm:$0x1]  ;;  %v1129_v0 = vrot.slane %v1127_v51, 4  ;;  %910 = vst [vmem:[#allocation2 + $0x18] sm:$0x1] %v909_v57  ;;  %v1006_v47 = vsel %vm12293_vm10, %v956_v9, %v1005_v58  ;;  %v745_v15 = vsel %vm12242_vm6, %v444_v43, %v744_v44 }
  0x79   : > { %10549 = vmatpush3.bf16.msra.mxu1 %v11566_v35  ;;  %17349 = vst [vmem:[#allocation16_spill] sm:$0xff] %v17348_v29  ;;  %v12306_v35 = vrot.slane %v450_v27, 11  ;;  %v1054_v48 = vsel %vm12293_vm10, %v956_v9, %v1053_v41  ;;  %v445_v60 = vrot.slane %v441_v32, 4  ;;  %v1568_v4 = vrot.slane %v1566_v56, 4  ;;  %1007 = vst [vmem:[#allocation2 + $0x20] sm:$0x1] %v1006_v47 }
  0x7a   : > { %1055 = vst [vmem:[#allocation2 + $0x8] sm:$0x1] %v1054_v48  ;;  %v1171_v5 = vshll.u32 %v12338_v2, 16  ;;  %v1175_v6 = vshrl.u32 %v12338_v2, 16  ;;  %v1130_v10 = vor.u32 %v1129_v0, %v12328_v63  ;;  %v454_v14 = vrot.slane %v12304_v34, 4 }
  0x7b   : > { %v905_v11 = vld [vmem:[#allocation2 + $0xc] sm:$0x1]  ;;  %v1498_v13 = vld [vmem:[#allocation2 + $0xc] sm:$0xe]  ;;  %v453_v9 = vsel %vm12235_vm5, %v445_v60, %v452_v59  ;;  %v12360_v21 = vsel %vm12332_vm13, %v9761_v55, %v1566_v56  ;;  %v1002_v22 = vld [vmem:[#allocation2 + $0x14] sm:$0x1]  ;;  %v12366_v26 = vpack.c.bf16 %v283_v3, %v283_v3  ;;  %v12389_v56 = vpack.c.bf16 %v285_v31, %v285_v31 }
  0x7c   : > { %v906_v17 = vsel %vm12251_vm7, %v405_v61, %v905_v11  ;;  %746 = vst [vmem:[#allocation2 + $0x24] sm:$0xf] %v745_v15  ;;  %747 = vst [vmem:[#allocation2 + $0x28] sm:$0xf] %v453_v9  ;;  %v12368_v27 = vrot.slane %v1130_v10, 4  ;;  %v1003_v30 = vsel %vm12293_vm10, %v12281_v19, %v1002_v22  ;;  %v9762_v40 = vrot.slane %v1498_v13, 9 }
  0x7d   : > { %907 = vst [vmem:[#allocation2 + $0xc] sm:$0x1] %v906_v17  ;;  %1004 = vst [vmem:[#allocation2 + $0x14] sm:$0x1] %v1003_v30  ;;  %v1679_v39 = vld [vmem:[#allocation2 + $0x1c] sm:$0xf]  ;;  %v749_v50 = vsel %vm12251_vm7, %v454_v14, %v748_v7  ;;  %v12385_v19 = vpack.c.bf16 %v284_v16, %v284_v16 }
  0x7e   : > { %v12356_v18 = vld [vmem:[#allocation2 + $0x10] sm:$0xf]  ;;  %v12379_v43 = vld [vmem:[#allocation2] sm:$0xf]  ;;  %750 = vst [vmem:[#allocation2 + $0x2c] sm:$0x1] %v749_v50 }
  0x7f   : > { %v12362_v24 = vld [vmem:[#allocation2 + $0x10] sm:$0xf]  ;;  %v1734_v52 = vshll.u32 %v12356_v18, 16  ;;  %v1738_v61 = vshrl.u32 %v12356_v18, 16  ;;  %v1114_v51 = vshrl.u32 %v12379_v43, 16  ;;  %v1117_v53 = vshll.u32 %v12379_v43, 16 }
  0x80   : > { %v1147_v32 = vshll.u32 %v12362_v24, 16  ;;  %v1151_v34 = vshrl.u32 %v12362_v24, 16  ;;  %v1573_v41 = vrot.slane %v12362_v24, 5  ;;  %v1678_v55 = vld [vmem:[#allocation2 + $0x18] sm:$0xf]  ;;  %v17353_v57 = vmov 0 }
  0x81   : > { %v1094_v44 = vld [vmem:[#allocation2 + $0x8] sm:$0x1]  ;;  %v12381_v46 = vrot.slane %v1734_v52, 5  ;;  %v1740_v48 = vrot.slane %v1738_v61, 4  ;;  %v17354_v57 = vsel %vm12393_vm14, 4294967295, %v17353_v57  ;;  %v1116_v47 = vrot.slane %v1114_v51, 4 }
  0x82   : > { %v1133_v54 = vshll.u32 %v1094_v44, 16  ;;  %17355 = vst [vmem:[#allocation18_spill] sm:$0xff] %v17354_v57  ;;  %v1569_v59 = vrot.slane %v1094_v44, 5  ;;  %v12398_v62 = vrot.slane %v1147_v32, 5  ;;  %v1153_v0 = vrot.slane %v1151_v34, 4 }
  0x83   : > { %v1741_v58 = vor.u32 %v1740_v48, %v12381_v46  ;;  %v1119_v60 = vrot.slane %v1117_v53, 5  ;;  %v9809_v7 = vcombine.low %v12379_v43, %v12311_v42  ;;  %v9858_v9 = vcombine.low %v1678_v55, %v1679_v39  ;;  %v12420_v43 = vld [vmem:[#allocation2 + $0x18] sm:$0xf] }
  0x84   : > { %v1135_v3 = vrot.slane %v1133_v54, 5  ;;  %v1570_v11 = vsel %vm12332_vm13, %v1568_v4, %v1569_v59  ;;  %v1154_v13 = vor.u32 %v1153_v0, %v12398_v62  ;;  %v1676_v16 = vld [vmem:[#allocation2 + $0xc] sm:$0xf]  ;;  %v12415_v42 = vsel %vm12332_vm13, %v9762_v40, %v1573_v41  ;;  %v1095_v30 = vld [vmem:[#allocation2 + $0x14] sm:$0x1] }
  0x85   : > { %v12402_v10 = vrot.slane %v1741_v58, 4  ;;  %v1120_v14 = vor.u32 %v1119_v60, %v1116_v47  ;;  %v9841_v17 = vcombine.low %v12360_v21, %v1570_v11  ;;  %v12411_v22 = vld [vmem:[#allocation2 + $0xc] sm:$0xf]  ;;  %v1725_v52 = vshrl.u32 %v1676_v16, 16  ;;  %v1096_v54 = vld [vmem:[#allocation2 + $0x20] sm:$0x1] }
  0x86   : > { %v1136_v15 = vsel %vm12393_vm14, %v12368_v27, %v1135_v3  ;;  %v1728_v61 = vshll.u32 %v1676_v16, 16  ;;  %v9857_v4 = vcombine.low %v1676_v16, %v12356_v18  ;;  %v1138_v31 = vshrl.u32 %v12411_v22, 16  ;;  %v1499_v55 = vld [vmem:[#allocation2 + $0x18] sm:$0xe]  ;;  %v11569_v58 = vld [vmem:[#allocation6 + $0x138] sm:$0xff]  }
  0x87   : > { %v1121_v32 = vrot.slane %v1120_v14, 4  ;;  %v1141_v34 = vshll.u32 %v12411_v22, 16  ;;  %v1157_v27 = vshll.u32 %v1095_v30, 16  ;;  %v1575_v39 = vrot.slane %v1573_v41, 4  ;;  %v911_v60 = vld [vmem:[#allocation2 + $0x24] sm:$0x1] }
  0x88   : > { %v12422_v21 = vrot.slane %v1725_v52, 4  ;;  %v12424_v44 = vrot.slane %v1728_v61, 5  ;;  %4293 = vmatprep.mubr.bf16.mxu1 %v9857_v4  ;;  %v1140_v40 = vrot.slane %v1138_v31, 4  ;;  %v1155_v48 = vrot.slane %v1154_v13, 4  ;;  %v11573_v14 = vld [vmem:[#allocation6 + $0x170] sm:$0xff]  }
  0x89   : > { %v1126_v18 = vsel %vm12393_vm14, %v1121_v32, %v12328_v63  ;;  %4294 = vmatmul.mubr.bf16.vlgmr.msra.gmra.mxu1 %v9841_v17  ;;  %v1143_v50 = vrot.slane %v1141_v34, 5  ;;  %v1159_v51 = vrot.slane %v1157_v27, 5  ;;  %v1576_v53 = vrot.slane %v1095_v30, 5  ;;  %v11575_v30 = vld [vmem:[#allocation6 + $0x130] sm:$0xff]   ;;  %v11579_v27 = vld [vmem:[#allocation6 + $0x168] sm:$0xff]  }
  0x8a   : > { %v9825_v41 = vcombine.low %v1126_v18, %v1136_v15  ;;  %4301 = vmatprep.mubr.bf16.mxu1 %v9858_v9  ;;  %v1162_v59 = vshrl.u32 %v12420_v43, 16  ;;  %v1165_v0 = vshll.u32 %v12420_v43, 16  ;;  %v1173_v47 = vrot.slane %v1171_v5, 5  ;;  %v1008_v9 = vld [vmem:[#allocation2 + $0x2c] sm:$0x1] }
  0x8b   : > { %v1144_v3 = vor.u32 %v1143_v50, %v1140_v40  ;;  %v9810_v63 = vcombine.low %v12411_v22, %v12362_v24  ;;  %v1577_v11 = vsel %vm12332_vm13, %v1575_v39, %v1576_v53  ;;  %v1177_v13 = vrot.slane %v1175_v6, 4  ;;  %v12447_v34 = vld [vmem:[#allocation2 + $0x28] sm:$0xf]  ;;  %v1500_v50 = vld [vmem:[#allocation2 + $0x24] sm:$0xe] }
  0x8c   : > { %4132 = vmatprep.mubr.bf16.mxu0 %v9825_v41  ;;  %v1160_v15 = vsel %vm12393_vm14, %v1155_v48, %v1159_v51  ;;  %v1164_v16 = vrot.slane %v1162_v59, 4  ;;  %v1167_v17 = vrot.slane %v1165_v0, 5  ;;  %v1181_v5 = vshll.u32 %v1096_v54, 16  ;;  %v751_v0 = vld [vmem:[#allocation2 + $0x30] sm:$0xf] }
  0x8d   : > { %4133 = vmatmul.mubr.bf16.vlgmr.msra.gmra.mxu0 %v9809_v7  ;;  %v1145_v52 = vrot.slane %v1144_v3, 4  ;;  %v9842_v61 = vcombine.low %v12415_v42, %v1577_v11  ;;  %v1178_v24 = vor.u32 %v1177_v13, %v1173_v47  ;;  %v912_v22 = vsel %vm12251_vm7, %v439_v23, %v911_v60  ;;  %v1681_v11 = vld [vmem:[#allocation2 + $0x28] sm:$0xf] }
  0x8e   : > { %10647 = vmatpush3.bf16.msra.mxu0 %v11569_v58  ;;  %v1168_v6 = vor.u32 %v1167_v17, %v1164_v16  ;;  %v1183_v4 = vrot.slane %v1181_v5, 5  ;;  %913 = vst [vmem:[#allocation2 + $0x24] sm:$0x1] %v912_v22  ;;  %v9763_v31 = vrot.slane %v1499_v55, 9  ;;  %v1580_v32 = vrot.slane %v12338_v2, 5 }
  0x8f   : > { %v1150_v7 = vsel %vm12393_vm14, %v1145_v52, %v12398_v62  ;;  %v1179_v42 = vrot.slane %v1178_v24, 4  ;;  %10648 = vmatprep.subr.bf16.mxu0 %v11573_v14  ;;  %v1583_v12 = vrot.slane %v1096_v54, 5  ;;  %v1009_v23 = vsel %vm12293_vm10, %v12306_v35, %v1008_v9  ;;  %v11581_v54 = vld [vmem:[#allocation6 + $0x128] sm:$0xff]   ;;  %v755_v5 = vld [vmem:[#allocation2 + $0x38] sm:$0x1] }
  0x90   : > { %v9826_v39 = vcombine.low %v1150_v7, %v1160_v15  ;;  %v1169_v40 = vrot.slane %v1168_v6, 4  ;;  %v1581_v48 = vsel %vm12332_vm13, %v9763_v31, %v1580_v32  ;;  %v1582_v18 = vrot.slane %v1580_v32, 4  ;;  %1010 = vst [vmem:[#allocation2 + $0x2c] sm:$0x1] %v1009_v23  ;;  %v286_v9 = vld [vmem:[%s12222_s30 + $0x68] sm:$0xff] }
  0x91   : > { %4302 = vmatmul.mubr.bf16.gmra.mxu1 %v9842_v61  ;;  %v1184_v62 = vsel %vm12393_vm14, %v1179_v42, %v1183_v4  ;;  %v1195_v51 = vshll.u32 %v12447_v34, 16  ;;  %v1199_v53 = vshrl.u32 %v12447_v34, 16  ;;  %v458_v35 = vrot.slane %v456_v33, 7 }
  0x92   : > { %4140 = vmatprep.mubr.bf16.mxu0 %v9826_v39  ;;  %v1174_v55 = vsel %vm12393_vm14, %v1169_v40, %v1173_v47  ;;  %10649 = vmatpush3.bf16.msra.mxu0 %v11575_v30  ;;  %v1584_v41 = vsel %vm12332_vm13, %v1582_v18, %v1583_v12  ;;  %v466_v58 = vrot.slane %v464_v38, 7  ;;  %v467_v59 = vshll.u32 %v12289_v28, 16  ;;  %v11585_v47 = vld [vmem:[#allocation6 + $0x160] sm:$0xff]   ;;  %v11591_v30 = vld [vmem:[#allocation6 + $0x158] sm:$0xff]  }
  0x93   : > { %v9827_v60 = vcombine.low %v1174_v55, %v1184_v62  ;;  %v9811_v3 = vcombine.low %v12420_v43, %v12338_v2  ;;  %v12472_v13 = vrot.slane %v1195_v51, 5  ;;  %v1201_v14 = vrot.slane %v1199_v53, 4  ;;  %10650 = vmatprep.subr.bf16.mxu0 %v11579_v27  ;;  %v11587_v28 = vld [vmem:[#allocation6 + $0x120] sm:$0xff]   ;;  %v288_v2 = vld [vmem:[%s12222_s30 + $0x78] sm:$0xff]  ;;  %v11599_v43 = vld [vmem:[#allocation6 + $0x110] sm:$0xff]  }
  0x94   : > { %v461_v15 = vor.u32 %v459_v37, %v458_v35  ;;  %v462_v16 = vrot.slane %v458_v35, 4  ;;  %v469_v17 = vor.u32 %v467_v59, %v466_v58  ;;  %v471_v38 = vrot.slane %v466_v58, 4  ;;  %v758_v58 = vld [vmem:[#allocation2 + $0x3c] sm:$0xf] }
  0x95   : > { %4141 = vmatmul.mubr.bf16.gmra.mxu0 %v9810_v63  ;;  %v1680_v52 = vld [vmem:[#allocation2 + $0x24] sm:$0xf]  ;;  %v9843_v61 = vcombine.low %v1581_v48, %v1584_v41  ;;  %v1202_v22 = vor.u32 %v1201_v14, %v12472_v13  ;;  %v12480_v6 = vrot.slane %v467_v59, 11  ;;  %v9764_v4 = vrot.slane %v1500_v50, 9  ;;  %v11593_v59 = vld [vmem:[#allocation6 + $0x118] sm:$0xff]  }
  0x96   : > { %v12477_v24 = vld [vmem:[#allocation2 + $0x24] sm:$0xf]  ;;  %4148 = vmatprep.mubr.bf16.mxu0 %v9827_v60  ;;  %v9859_v31 = vcombine.low %v1680_v52, %v1681_v11  ;;  %10651 = vmatpush3.bf16.msra.mxu0 %v11581_v54  ;;  %v12484_v7 = vpack.c.bf16 %v286_v9, %v286_v9  ;;  %v470_v12 = vsel %vm12235_vm5, %v462_v16, %v469_v17  ;;  %v1587_v27 = vrot.slane %v12447_v34, 5  ;;  %v11597_v9 = vld [vmem:[#allocation6 + $0x150] sm:$0xff]  }
  0x97   : > { %v1186_v37 = vshrl.u32 %v12477_v24, 16  ;;  %v1189_v32 = vshll.u32 %v12477_v24, 16  ;;  %v1097_v63 = vld [vmem:[#allocation2 + $0x2c] sm:$0x1]  ;;  %v1203_v42 = vrot.slane %v1202_v22, 4  ;;  %v752_v23 = vsel %vm12242_vm6, %v461_v15, %v751_v0  ;;  %10652 = vmatprep.subr.bf16.mxu0 %v11585_v47 }
  0x98   : > { %4309 = vmatprep.mubr.bf16.mxu1 %v9859_v31  ;;  %v1205_v48 = vshll.u32 %v1097_v63, 16  ;;  %753 = vst [vmem:[#allocation2 + $0x30] sm:$0xf] %v752_v23  ;;  %754 = vst [vmem:[#allocation2 + $0x34] sm:$0xf] %v470_v12  ;;  %v1590_v18 = vrot.slane %v1097_v63, 5  ;;  %v12493_v50 = vsel %vm12332_vm13, %v9764_v4, %v1587_v27  ;;  %v756_v51 = vsel %vm12251_vm7, %v471_v38, %v755_v5 }
  0x99   : > { %v1188_v39 = vrot.slane %v1186_v37, 4  ;;  %v1191_v40 = vrot.slane %v1189_v32, 5  ;;  %4310 = vmatmul.mubr.bf16.gmra.mxu1 %v9843_v61  ;;  %v1589_v62 = vrot.slane %v1587_v27, 4  ;;  %v473_v53 = vshrl.u32 %v12343_v8, 16  ;;  %757 = vst [vmem:[#allocation2 + $0x38] sm:$0x1] %v756_v51 }
  0x9a   : > { %v1207_v54 = vrot.slane %v1205_v48, 5  ;;  %v476_v55 = vshll.u32 %v12343_v8, 16  ;;  %v481_v41 = vshrl.u32 %v12364_v25, 16  ;;  %10653 = vmatpush3.bf16.msra.mxu0 %v11587_v28  ;;  %v484_v11 = vshll.u32 %v12364_v25, 16  ;;  %v287_v47 = vld [vmem:[%s12222_s30 + $0x70] sm:$0xff] }
  0x9b   : > { %v1192_v35 = vor.u32 %v1191_v40, %v1188_v39  ;;  %v12502_v0 = vsel %vm12332_vm13, %v1589_v62, %v1590_v18  ;;  %v475_v60 = vrot.slane %v473_v53, 7  ;;  %v490_v14 = vshrl.u32 %v12366_v26, 16  ;;  %10654 = vmatprep.subr.bf16.mxu0 %v11591_v30  ;;  %v762_v52 = vld [vmem:[#allocation2 + $0x44] sm:$0x1]  ;;  %v765_v40 = vld [vmem:[#allocation2 + $0x48] sm:$0xf] }
  0x9c   : > { %v1208_v16 = vsel %vm12393_vm14, %v1203_v42, %v1207_v54  ;;  %v9812_v17 = vcombine.low %v12477_v24, %v12447_v34  ;;  %v483_v38 = vrot.slane %v481_v41, 7  ;;  %v9844_v25 = vcombine.low %v12493_v50, %v12502_v0  ;;  %v11605_v41 = vld [vmem:[#allocation6 + $0x108] sm:$0xff]   ;;  %v776_v0 = vld [vmem:[#allocation2 + $0x5c] sm:$0x1] }
  0x9d   : > { %v1193_v15 = vrot.slane %v1192_v35, 4  ;;  %4149 = vmatmul.mubr.bf16.gmra.mxu0 %v9811_v3  ;;  %v478_v5 = vor.u32 %v476_v55, %v475_v60  ;;  %v479_v28 = vrot.slane %v475_v60, 4  ;;  %v12520_v61 = vrot.slane %v490_v14, 7 }
  0x9e   : > { %v486_v34 = vor.u32 %v484_v11, %v483_v38  ;;  %v488_v24 = vrot.slane %v483_v38, 4  ;;  %v493_v4 = vshll.u32 %v12366_v26, 16  ;;  %10655 = vmatpush3.bf16.msra.mxu0 %v11593_v59  ;;  %v12531_v32 = vrot.slane %v484_v11, 11 }
  0x9f   : > { %v1198_v22 = vsel %vm12393_vm14, %v1193_v15, %v12472_v13  ;;  %v914_v30 = vld [vmem:[#allocation2 + $0x30] sm:$0x1]  ;;  %v12527_v31 = vld [vmem:[#allocation2 + $0x34] sm:$0xf]  ;;  %v759_v37 = vsel %vm12242_vm6, %v478_v5, %v758_v58  ;;  %v12533_v63 = vpack.c.bf16 %v287_v47, %v287_v47  ;;  %10656 = vmatprep.subr.bf16.mxu0 %v11597_v9  ;;  %v11603_v13 = vld [vmem:[#allocation6 + $0x148] sm:$0xff]   ;;  %v12552_v55 = vpack.c.bf16 %v288_v2, %v288_v2 }
  0xa0   : > { %v9828_v3 = vcombine.low %v1198_v22, %v1208_v16  ;;  %v915_v42 = vsel %vm12251_vm7, %v456_v33, %v914_v30  ;;  %v1219_v12 = vshll.u32 %v12527_v31, 16  ;;  %v1223_v23 = vshrl.u32 %v12527_v31, 16  ;;  %760 = vst [vmem:[#allocation2 + $0x3c] sm:$0xf] %v759_v37  ;;  %v1501_v39 = vld [vmem:[#allocation2 + $0x30] sm:$0xe] }
  0xa1   : > { %v487_v27 = vsel %vm12235_vm5, %v479_v28, %v486_v34  ;;  %916 = vst [vmem:[#allocation2 + $0x30] sm:$0x1] %v915_v42  ;;  %v1011_v48 = vld [vmem:[#allocation2 + $0x38] sm:$0x1]  ;;  %v9765_v18 = vrot.slane %v1501_v39, 9  ;;  %v1594_v20 = vrot.slane %v12527_v31, 5  ;;  %v763_v33 = vsel %vm12251_vm7, %v488_v24, %v762_v52 }
  0xa2   : > { %4156 = vmatprep.mubr.bf16.mxu0 %v9828_v3  ;;  %761 = vst [vmem:[#allocation2 + $0x40] sm:$0xf] %v487_v27  ;;  %v495_v62 = vor.u32 %v493_v4, %v12520_v61  ;;  %v1012_v51 = vsel %vm12293_vm10, %v12480_v6, %v1011_v48  ;;  %v12550_v35 = vrot.slane %v1219_v12, 5  ;;  %v1225_v54 = vrot.slane %v1223_v23, 4  ;;  %764 = vst [vmem:[#allocation2 + $0x44] sm:$0x1] %v763_v33 }
  0xa3   : > { %10657 = vmatpush3.bf16.msra.mxu0 %v11599_v43  ;;  %v11607_v58 = vld [vmem:[#allocation6 + $0x1f8] sm:$0xff]   ;;  %1013 = vst [vmem:[#allocation2 + $0x38] sm:$0x1] %v1012_v51  ;;  %v12556_v59 = vsel %vm12332_vm13, %v9765_v18, %v1594_v20  ;;  %v496_v60 = vrot.slane %v12520_v61, 4  ;;  %v498_v11 = vshrl.u32 %v12385_v19, 16  ;;  %v501_v6 = vshll.u32 %v12385_v19, 16 }
  0xa4   : > { %v289_v47 = vld [vmem:[%s12222_s30 + $0x80] sm:$0xff]  ;;  %v290_v9 = vld [vmem:[%s12222_s30 + $0x88] sm:$0xff]  ;;  %10658 = vmatprep.subr.bf16.mxu0 %v11603_v13  ;;  %v11608_v15 = vld [vmem:[#allocation6 + $0x1b8] sm:$0xff]   ;;  %v1226_v38 = vor.u32 %v1225_v54, %v12550_v35  ;;  %v766_v5 = vsel %vm12242_vm6, %v495_v62, %v765_v40  ;;  %v507_v28 = vshrl.u32 %v12389_v56, 16  ;;  %v510_v52 = vshll.u32 %v12389_v56, 16  ;;  %10758 = vmatprep.subr.bf16.mxu1 %v11607_v58 }
  0xa5   : > { %v1683_v16 = vld [vmem:[#allocation2 + $0x34] sm:$0xf]  ;;  %v291_v22 = vld [vmem:[%s12222_s30 + $0x90] sm:$0xff]  ;;  %4157 = vmatmul.mubr.bf16.gmra.mxu0 %v9812_v17  ;;  %v1596_v61 = vrot.slane %v1594_v20, 4  ;;  %v12569_v34 = vrot.slane %v498_v11, 7  ;;  %v12571_v19 = vrot.slane %v501_v6, 11  ;;  %10759 = vmatpush3.bf16.msra.mxu1 %v11608_v15  ;;  %v12594_v18 = vpack.c.bf16 %v289_v47, %v289_v47 }
  0xa6   : > { %767 = vst [vmem:[#allocation2 + $0x48] sm:$0xf] %v766_v5  ;;  %v515_v24 = vshrl.u32 %v12484_v7, 16  ;;  %v12574_v4 = vrot.slane %v1226_v38, 4  ;;  %v12578_v2 = vrot.slane %v507_v28, 7  ;;  %v518_v43 = vshll.u32 %v12484_v7, 16 }
  0xa7   : > { %v524_v3 = vshrl.u32 %v12533_v63, 16  ;;  %10659 = vmatpush3.bf16.msra.mxu0 %v11605_v41  ;;  %v11609_v17 = vld [vmem:[#allocation6 + $0x1f0] sm:$0xff]   ;;  %v917_v37 = vld [vmem:[#allocation2 + $0x3c] sm:$0x1]  ;;  %v503_v13 = vor.u32 %v501_v6, %v12569_v34  ;;  %v505_v42 = vrot.slane %v12569_v34, 4  ;;  %v527_v23 = vshll.u32 %v12533_v63, 16 }
  0xa8   : > { %v11610_v30 = vld [vmem:[#allocation6 + $0x1b0] sm:$0xff]   ;;  %v12584_v12 = vrot.slane %v515_v24, 7  ;;  %v1682_v27 = vld [vmem:[#allocation2 + $0x30] sm:$0xf]  ;;  %v918_v40 = vsel %vm12251_vm7, %v473_v53, %v917_v37  ;;  %v512_v48 = vor.u32 %v510_v52, %v12578_v2  ;;  %v12596_v20 = vpack.c.bf16 %v290_v9, %v290_v9  ;;  %10760 = vmatprep.subr.bf16.mxu1 %v11609_v17  ;;  %v1502_v9 = vld [vmem:[#allocation2 + $0x3c] sm:$0xe] }
  0xa9   : > { %v12587_v39 = vld [vmem:[#allocation2 + $0x30] sm:$0xf]  ;;  %v9860_v33 = vcombine.low %v1682_v27, %v1683_v16  ;;  %919 = vst [vmem:[#allocation2 + $0x3c] sm:$0x1] %v918_v40  ;;  %v1014_v54 = vld [vmem:[#allocation2 + $0x44] sm:$0x1]  ;;  %v12602_v8 = vpack.c.bf16 %v291_v22, %v291_v22  ;;  %10761 = vmatpush3.bf16.msra.mxu1 %v11610_v30  ;;  %v504_v47 = vsel %vm12235_vm5, %v496_v60, %v503_v13 }
  0xaa   : > { %v1210_v62 = vshrl.u32 %v12587_v39, 16  ;;  %v1213_v51 = vshll.u32 %v12587_v39, 16  ;;  %v12600_v41 = vld [vmem:[#allocation2 + $0x40] sm:$0xf]  ;;  %v1098_v53 = vld [vmem:[#allocation2 + $0x38] sm:$0x1]  ;;  %v1015_v58 = vsel %vm12293_vm10, %v12531_v32, %v1014_v54  ;;  %v9813_v32 = vcombine.low %v12587_v39, %v12527_v31 }
  0xab   : > { %v1243_v11 = vshll.u32 %v12600_v41, 16  ;;  %v1247_v6 = vshrl.u32 %v12600_v41, 16  ;;  %v769_v15 = vld [vmem:[#allocation2 + $0x50] sm:$0x1]  ;;  %4317 = vmatprep.mubr.bf16.mxu1 %v9860_v33  ;;  %v1229_v5 = vshll.u32 %v1098_v53, 16  ;;  %v1597_v52 = vrot.slane %v1098_v53, 5 }
  0xac   : > { %v1212_v16 = vrot.slane %v1210_v62, 4  ;;  %v1215_v38 = vrot.slane %v1213_v51, 5  ;;  %1016 = vst [vmem:[#allocation2 + $0x44] sm:$0x1] %v1015_v58  ;;  %768 = vst [vmem:[#allocation2 + $0x4c] sm:$0xf] %v504_v47  ;;  %4318 = vmatmul.mubr.bf16.gmra.mxu1 %v9844_v25  ;;  %v770_v26 = vsel %vm12251_vm7, %v505_v42, %v769_v15  ;;  %v520_v58 = vor.u32 %v518_v43, %v12584_v12 }
  0xad   : > { %v772_v22 = vld [vmem:[#allocation2 + $0x54] sm:$0xf]  ;;  %v12616_v34 = vrot.slane %v1243_v11, 5  ;;  %v1249_v60 = vrot.slane %v1247_v6, 4  ;;  %v920_v24 = vld [vmem:[#allocation2 + $0x48] sm:$0x1]  ;;  %v1598_v13 = vsel %vm12332_vm13, %v1596_v61, %v1597_v52 }
  0xae   : > { %v1601_v17 = vrot.slane %v12600_v41, 5  ;;  %v1216_v30 = vor.u32 %v1215_v38, %v1212_v16  ;;  %v1231_v37 = vrot.slane %v1229_v5, 5  ;;  %v921_v50 = vsel %vm12251_vm7, %v490_v14, %v920_v24  ;;  %v1685_v25 = vld [vmem:[#allocation2 + $0x40] sm:$0xf]  ;;  %771 = vst [vmem:[#allocation2 + $0x50] sm:$0x1] %v770_v26 }
  0xaf   : > { %v9845_v31 = vcombine.low %v12556_v59, %v1598_v13  ;;  %v1250_v27 = vor.u32 %v1249_v60, %v12616_v34  ;;  %922 = vst [vmem:[#allocation2 + $0x48] sm:$0x1] %v921_v50  ;;  %v9766_v39 = vrot.slane %v1502_v9, 9  ;;  %v513_v61 = vrot.slane %v12578_v2, 4  ;;  %v11613_v14 = vld [vmem:[#allocation6 + $0x1e8] sm:$0xff]   ;;  %v11615_v7 = vld [vmem:[#allocation6 + $0x1e0] sm:$0xff]  }
  0xb0   : > { %v1603_v40 = vrot.slane %v1601_v17, 4  ;;  %v1217_v33 = vrot.slane %v1216_v30, 4  ;;  %v1232_v62 = vsel %vm12393_vm14, %v12574_v4, %v1231_v37  ;;  %v11614_v51 = vld [vmem:[#allocation6 + $0x1a8] sm:$0xff]   ;;  %v1684_v54 = vld [vmem:[#allocation2 + $0x3c] sm:$0xf]  ;;  %v522_v11 = vrot.slane %v12584_v12, 4  ;;  %10762 = vmatprep.subr.bf16.mxu1 %v11613_v14 }
  0xb1   : > { %v12633_v53 = vld [vmem:[#allocation2 + $0x3c] sm:$0xf]  ;;  %v12635_v59 = vrot.slane %v1250_v27, 4  ;;  %v773_v4 = vsel %vm12242_vm6, %v512_v48, %v772_v22  ;;  %v12643_v42 = vld [vmem:[#allocation2 + $0x48] sm:$0xe]  ;;  %v9861_v6 = vcombine.low %v1684_v54, %v1685_v25  ;;  %v12652_v12 = vsel %vm12332_vm13, %v9766_v39, %v1601_v17  ;;  %10763 = vmatpush3.bf16.msra.mxu1 %v11614_v51  ;;  %v11627_v63 = vld [vmem:[#allocation6 + $0x1c8] sm:$0xff]  }
  0xb2   : > { %v1222_v2 = vsel %vm12393_vm14, %v1217_v33, %v12550_v35  ;;  %v1234_v47 = vshrl.u32 %v12633_v53, 16  ;;  %v1237_v9 = vshll.u32 %v12633_v53, 16  ;;  %774 = vst [vmem:[#allocation2 + $0x54] sm:$0xf] %v773_v4  ;;  %v521_v5 = vsel %vm12235_vm5, %v513_v61, %v520_v58  ;;  %v11617_v54 = vld [vmem:[#allocation6 + $0x1a0] sm:$0xff]   ;;  %10764 = vmatprep.subr.bf16.mxu1 %v11615_v7 }
  0xb3   : > { %v9829_v15 = vcombine.low %v1222_v2, %v1232_v62  ;;  %v1099_v16 = vld [vmem:[#allocation2 + $0x44] sm:$0x1]  ;;  %v1687_v38 = vld [vmem:[#allocation2 + $0x4c] sm:$0xf]  ;;  %v777_v35 = vsel %vm12251_vm7, %v522_v11, %v776_v0  ;;  %4325 = vmatprep.mubr.bf16.mxu1 %v9861_v6  ;;  %775 = vst [vmem:[#allocation2 + $0x58] sm:$0xf] %v521_v5  ;;  %v9814_v17 = vcombine.low %v12633_v53, %v12600_v41 }
  0xb4   : > { %v12654_v48 = vld [vmem:[#allocation2 + $0x4c] sm:$0xf]  ;;  %v1236_v52 = vrot.slane %v1234_v47, 4  ;;  %v1239_v22 = vrot.slane %v1237_v9, 5  ;;  %v1253_v60 = vshll.u32 %v1099_v16, 16  ;;  %v1604_v24 = vrot.slane %v1099_v16, 5  ;;  %4326 = vmatmul.mubr.bf16.gmra.mxu1 %v9845_v31 }
  0xb5   : > { %778 = vst [vmem:[#allocation2 + $0x5c] sm:$0x1] %v777_v35  ;;  %4164 = vmatprep.mubr.bf16.mxu0 %v9829_v15  ;;  %v1267_v30 = vshll.u32 %v12654_v48, 16  ;;  %v1271_v37 = vshrl.u32 %v12654_v48, 16  ;;  %v9752_v13 = vrot.slane %v518_v43, 11  ;;  %v9767_v31 = vrot.slane %v12643_v42, 9  ;;  %10765 = vmatpush3.bf16.msra.mxu1 %v11617_v54 }
  0xb6   : > { %4165 = vmatmul.mubr.bf16.gmra.mxu0 %v9813_v32  ;;  %v1240_v50 = vor.u32 %v1239_v22, %v1236_v52  ;;  %v1255_v0 = vrot.slane %v1253_v60, 5  ;;  %v1686_v25 = vld [vmem:[#allocation2 + $0x48] sm:$0xf]  ;;  %v1605_v27 = vsel %vm12332_vm13, %v1603_v40, %v1604_v24  ;;  %v1608_v26 = vrot.slane %v12654_v48, 5  ;;  %v11616_v43 = vld [vmem:[#allocation6 + $0x140] sm:$0xff]  }
  0xb7   : > { %v12668_v39 = vld [vmem:[#allocation2 + $0x48] sm:$0xf]  ;;  %v9862_v33 = vcombine.low %v1686_v25, %v1687_v38  ;;  %v1017_v14 = vld [vmem:[#allocation2 + $0x50] sm:$0x1]  ;;  %v12677_v40 = vrot.slane %v1267_v30, 5  ;;  %v1273_v51 = vrot.slane %v1271_v37, 4  ;;  %v9846_v53 = vcombine.low %v12652_v12, %v1605_v27  ;;  %10660 = vmatprep.subr.bf16.mxu0 %v11616_v43 }
  0xb8   : > { %v1258_v41 = vshrl.u32 %v12668_v39, 16  ;;  %v1261_v62 = vshll.u32 %v12668_v39, 16  ;;  %v1241_v32 = vrot.slane %v1240_v50, 4  ;;  %v1256_v61 = vsel %vm12393_vm14, %v12635_v59, %v1255_v0  ;;  %v11619_v22 = vld [vmem:[#allocation6 + $0x100] sm:$0xff]   ;;  %v11622_v43 = vld [vmem:[#allocation6 + $0x198] sm:$0xff]  }
  0xb9   : > { %4333 = vmatprep.mubr.bf16.mxu1 %v9862_v33  ;;  %v1018_v58 = vsel %vm12293_vm10, %v12571_v19, %v1017_v14  ;;  %v923_v42 = vld [vmem:[#allocation2 + $0x54] sm:$0x1]  ;;  %v1274_v2 = vor.u32 %v1273_v51, %v12677_v40  ;;  %v9815_v6 = vcombine.low %v12668_v39, %v12654_v48  ;;  %v779_v19 = vld [vmem:[#allocation2 + $0x60] sm:$0xf]  ;;  %v12695_v16 = vsel %vm12332_vm13, %v9767_v31, %v1608_v26  ;;  %v1504_v12 = vld [vmem:[#allocation2 + $0x54] sm:$0xe] }
  0xba   : > { %v1260_v11 = vrot.slane %v1258_v41, 4  ;;  %v1263_v4 = vrot.slane %v1261_v62, 5  ;;  %v1246_v59 = vsel %vm12393_vm14, %v1241_v32, %v12616_v34  ;;  %1019 = vst [vmem:[#allocation2 + $0x50] sm:$0x1] %v1018_v58  ;;  %v924_v47 = vsel %vm12251_vm7, %v507_v28, %v923_v42  ;;  %v12701_v28 = vld [vmem:[#allocation2 + $0x58] sm:$0xf]  ;;  %10661 = vmatpush3.bf16.msra.mxu0 %v11619_v22 }
  0xbb   : > { %v9830_v9 = vcombine.low %v1246_v59, %v1256_v61  ;;  %925 = vst [vmem:[#allocation2 + $0x54] sm:$0x1] %v924_v47  ;;  %v526_v38 = vrot.slane %v524_v3, 7  ;;  %v1610_v5 = vrot.slane %v1608_v26, 4  ;;  %v532_v35 = vshrl.u32 %v12552_v55, 16  ;;  %v11621_v41 = vld [vmem:[#allocation6 + $0x1d8] sm:$0xff]  }
  0xbc   : > { %v1264_v15 = vor.u32 %v1263_v4, %v1260_v11  ;;  %v1020_v34 = vld [vmem:[#allocation2 + $0x5c] sm:$0x1]  ;;  %v535_v52 = vshll.u32 %v12552_v55, 16  ;;  %4334 = vmatmul.mubr.bf16.gmra.mxu1 %v9846_v53  ;;  %v12705_v60 = vrot.slane %v1274_v2, 4  ;;  %v1291_v24 = vshll.u32 %v12701_v28, 16  ;;  %10766 = vmatprep.subr.bf16.mxu1 %v11621_v41  ;;  %v11623_v58 = vld [vmem:[#allocation6 + $0x1d0] sm:$0xff]  }
  0xbd   : > { %v1021_v56 = vsel %vm12293_vm10, %v9752_v13, %v1020_v34  ;;  %4172 = vmatprep.mubr.bf16.mxu0 %v9830_v9  ;;  %v1295_v30 = vshrl.u32 %v12701_v28, 16  ;;  %v529_v37 = vor.u32 %v527_v23, %v526_v38  ;;  %v530_v50 = vrot.slane %v526_v38, 4  ;;  %v1689_v62 = vld [vmem:[#allocation2 + $0x58] sm:$0xf]  ;;  %v783_v14 = vld [vmem:[#allocation2 + $0x68] sm:$0x1]  ;;  %10767 = vmatpush3.bf16.msra.mxu1 %v11622_v43 }
  0xbe   : > { %1022 = vst [vmem:[#allocation2 + $0x5c] sm:$0x1] %v1021_v56  ;;  %4173 = vmatmul.mubr.bf16.gmra.mxu0 %v9814_v17  ;;  %v1265_v13 = vrot.slane %v1264_v15, 4  ;;  %v534_v0 = vrot.slane %v532_v35, 7  ;;  %v12711_v25 = vrot.slane %v535_v52, 11  ;;  %v12713_v55 = vrot.slane %v1291_v24, 5  ;;  %10768 = vmatprep.subr.bf16.mxu1 %v11623_v58 }
  0xbf   : > { %v1297_v27 = vrot.slane %v1295_v30, 4  ;;  %v780_v31 = vsel %vm12242_vm6, %v529_v37, %v779_v19  ;;  %v9768_v33 = vrot.slane %v1504_v12, 9  ;;  %v1615_v23 = vrot.slane %v12701_v28, 5  ;;  %v11624_v34 = vld [vmem:[#allocation6 + $0x190] sm:$0xff]   ;;  %v293_v39 = vld [vmem:[%s12222_s30 + $0xa0] sm:$0xff] }
  0xc0   : > { %v537_v26 = vor.u32 %v535_v52, %v534_v0  ;;  %v539_v7 = vrot.slane %v534_v0, 4  ;;  %781 = vst [vmem:[#allocation2 + $0x60] sm:$0xf] %v780_v31  ;;  %v541_v17 = vshrl.u32 %v12594_v18, 16  ;;  %v544_v51 = vshll.u32 %v12594_v18, 16 }
  0xc1   : > { %v1100_v32 = vld [vmem:[#allocation2 + $0x50] sm:$0x1]  ;;  %v1298_v61 = vor.u32 %v1297_v27, %v12713_v55  ;;  %v549_v54 = vshrl.u32 %v12596_v20, 16  ;;  %v552_v53 = vshll.u32 %v12596_v20, 16  ;;  %v1270_v11 = vsel %vm12393_vm14, %v1265_v13, %v12677_v40  ;;  %v786_v37 = vld [vmem:[#allocation2 + $0x6c] sm:$0xf]  ;;  %10769 = vmatpush3.bf16.msra.mxu1 %v11624_v34 }
  0xc2   : > { %v1277_v4 = vshll.u32 %v1100_v32, 16  ;;  %v1688_v42 = vld [vmem:[#allocation2 + $0x54] sm:$0xf]  ;;  %v1611_v59 = vrot.slane %v1100_v32, 5  ;;  %v538_v47 = vsel %vm12235_vm5, %v530_v50, %v537_v26  ;;  %v12736_v56 = vsel %vm12332_vm13, %v9768_v33, %v1615_v23  ;;  %10770 = vmatprep.subr.bf16.mxu1 %v11627_v63 }
  0xc3   : > { %v12726_v2 = vld [vmem:[#allocation2 + $0x54] sm:$0xf]  ;;  %v9863_v19 = vcombine.low %v1688_v42, %v1689_v62  ;;  %v1299_v15 = vrot.slane %v1298_v61, 4  ;;  %782 = vst [vmem:[#allocation2 + $0x64] sm:$0xf] %v538_v47  ;;  %v1617_v35 = vrot.slane %v1615_v23, 4 }
  0xc4   : > { %v1282_v9 = vshrl.u32 %v12726_v2, 16  ;;  %v1285_v20 = vshll.u32 %v12726_v2, 16  ;;  %v1279_v40 = vrot.slane %v1277_v4, 5  ;;  %v1612_v38 = vsel %vm12332_vm13, %v1610_v5, %v1611_v59  ;;  %v292_v13 = vld [vmem:[%s12222_s30 + $0x98] sm:$0xff] }
  0xc5   : > { %v1101_v12 = vld [vmem:[#allocation2 + $0x5c] sm:$0x1]  ;;  %4341 = vmatprep.mubr.bf16.mxu1 %v9863_v19  ;;  %v9847_v52 = vcombine.low %v12695_v16, %v1612_v38  ;;  %v784_v5 = vsel %vm12251_vm7, %v539_v7, %v783_v14  ;;  %v543_v27 = vrot.slane %v541_v17, 7  ;;  %v551_v62 = vrot.slane %v549_v54, 7  ;;  %v790_v26 = vld [vmem:[#allocation2 + $0x74] sm:$0x1] }
  0xc6   : > { %v1284_v22 = vrot.slane %v1282_v9, 4  ;;  %v1287_v24 = vrot.slane %v1285_v20, 5  ;;  %v1301_v30 = vshll.u32 %v1101_v12, 16  ;;  %v1280_v50 = vsel %vm12393_vm14, %v12705_v60, %v1279_v40  ;;  %785 = vst [vmem:[#allocation2 + $0x68] sm:$0x1] %v784_v5 }
  0xc7   : > { %v1618_v0 = vrot.slane %v1101_v12, 5  ;;  %v9831_v31 = vcombine.low %v1270_v11, %v1280_v50  ;;  %4342 = vmatmul.mubr.bf16.gmra.mxu1 %v9847_v52  ;;  %v926_v41 = vld [vmem:[#allocation2 + $0x60] sm:$0x1]  ;;  %v9816_v23 = vcombine.low %v12726_v2, %v12701_v28  ;;  %v546_v7 = vor.u32 %v544_v51, %v543_v27  ;;  %v1505_v32 = vld [vmem:[#allocation2 + $0x60] sm:$0xe] }
  0xc8   : > { %v1288_v16 = vor.u32 %v1287_v24, %v1284_v22  ;;  %v1303_v33 = vrot.slane %v1301_v30, 5  ;;  %v927_v60 = vsel %vm12251_vm7, %v524_v3, %v926_v41  ;;  %v547_v43 = vrot.slane %v543_v27, 4 }
  0xc9   : > { %4180 = vmatprep.mubr.bf16.mxu0 %v9831_v31  ;;  %928 = vst [vmem:[#allocation2 + $0x60] sm:$0x1] %v927_v60  ;;  %v12757_v54 = vsel %vm12332_vm13, %v1617_v35, %v1618_v0  ;;  %v554_v58 = vor.u32 %v552_v53, %v551_v62  ;;  %v556_v51 = vrot.slane %v551_v62, 4  ;;  %v787_v11 = vsel %vm12242_vm6, %v546_v7, %v786_v37  ;;  %v295_v35 = vld [vmem:[%s12222_s30 + $0xb0] sm:$0xff] }
  0xca   : > { %v1289_v61 = vrot.slane %v1288_v16, 4  ;;  %v1304_v14 = vsel %vm12393_vm14, %v1299_v15, %v1303_v33  ;;  %4181 = vmatmul.mubr.bf16.gmra.mxu0 %v9815_v6  ;;  %v12762_v3 = vld [vmem:[#allocation2 + $0x64] sm:$0xf]  ;;  %v12766_v4 = vrot.slane %v552_v53, 11  ;;  %v10376_v42 = vpack.c.bf16 %v292_v13, %v292_v13  ;;  %788 = vst [vmem:[#allocation2 + $0x6c] sm:$0xf] %v787_v11 }
  0xcb   : > { %v1315_v47 = vshll.u32 %v12762_v3, 16  ;;  %v1319_v19 = vshrl.u32 %v12762_v3, 16  ;;  %v555_v48 = vsel %vm12235_vm5, %v547_v43, %v554_v58  ;;  %v294_v6 = vld [vmem:[%s12222_s30 + $0xa8] sm:$0xff]  ;;  %v9769_v20 = vrot.slane %v1505_v32, 9  ;;  %v793_v32 = vld [vmem:[#allocation2 + $0x78] sm:$0xf] }
  0xcc   : > { %v1294_v59 = vsel %vm12393_vm14, %v1289_v61, %v12713_v55  ;;  %v1691_v53 = vld [vmem:[#allocation2 + $0x64] sm:$0xf]  ;;  %789 = vst [vmem:[#allocation2 + $0x70] sm:$0xf] %v555_v48  ;;  %v1622_v15 = vrot.slane %v12762_v3, 5  ;;  %v791_v55 = vsel %vm12251_vm7, %v556_v51, %v790_v26  ;;  %v558_v38 = vshrl.u32 %v12602_v8, 16 }
  0xcd   : > { %v9832_v9 = vcombine.low %v1294_v59, %v1304_v14  ;;  %v12780_v34 = vrot.slane %v1315_v47, 5  ;;  %v1321_v40 = vrot.slane %v1319_v19, 4  ;;  %792 = vst [vmem:[#allocation2 + $0x74] sm:$0x1] %v791_v55  ;;  %v561_v12 = vshll.u32 %v12602_v8, 16  ;;  %v11628_v13 = vld [vmem:[#allocation6 + $0x188] sm:$0xff]  }
  0xce   : > { %v9848_v52 = vcombine.low %v12736_v56, %v12757_v54  ;;  %v1023_v22 = vld [vmem:[#allocation2 + $0x68] sm:$0x1]  ;;  %v12787_v24 = vrot.slane %v1622_v15, 4  ;;  %v566_v30 = vshrl.u32 %v10376_v42, 16  ;;  %v569_v37 = vshll.u32 %v10376_v42, 16  ;;  %v11629_v56 = vld [vmem:[#allocation6 + $0x1c0] sm:$0xff]   ;;  %10771 = vmatpush3.bf16.msra.mxu1 %v11628_v13 }
  0xcf   : > { %4188 = vmatprep.mubr.bf16.mxu0 %v9832_v9  ;;  %v1024_v50 = vsel %vm12293_vm10, %v12711_v25, %v1023_v22  ;;  %v1322_v0 = vor.u32 %v1321_v40, %v12780_v34  ;;  %v12795_v5 = vsel %vm12332_vm13, %v9769_v20, %v1622_v15  ;;  %v560_v27 = vrot.slane %v558_v38, 7  ;;  %10772 = vmatprep.subr.bf16.mxu1 %v11629_v56  ;;  %v11630_v61 = vld [vmem:[#allocation6 + $0x180] sm:$0xff]   ;;  %v11631_v42 = vld [vmem:[#allocation6 + $0x238] sm:$0xff]  }
  0xd0   : > { %v1690_v31 = vld [vmem:[#allocation2 + $0x60] sm:$0xf]  ;;  %1025 = vst [vmem:[#allocation2 + $0x68] sm:$0x1] %v1024_v50  ;;  %v568_v33 = vrot.slane %v566_v30, 7  ;;  %v12801_v41 = vrot.slane %v569_v37, 11  ;;  %v12803_v62 = vpack.c.bf16 %v293_v39, %v293_v39  ;;  %v12805_v25 = vpack.c.bf16 %v294_v6, %v294_v6  ;;  %11366 = vmatprep.subr.bf16.mxu0 %v11631_v42 }
  0xd1   : > { %v12799_v16 = vld [vmem:[#allocation2 + $0x60] sm:$0xf]  ;;  %v9864_v26 = vcombine.low %v1690_v31, %v1691_v53  ;;  %v12809_v43 = vrot.slane %v1322_v0, 4  ;;  %v929_v14 = vld [vmem:[#allocation2 + $0x6c] sm:$0x1]  ;;  %v563_v54 = vor.u32 %v561_v12, %v560_v27  ;;  %v564_v58 = vrot.slane %v560_v27, 4 }
  0xd2   : > { %v1306_v60 = vshrl.u32 %v12799_v16, 16  ;;  %v1309_v7 = vshll.u32 %v12799_v16, 16  ;;  %4189 = vmatmul.mubr.bf16.gmra.mxu0 %v9816_v23  ;;  %v571_v63 = vor.u32 %v569_v37, %v568_v33  ;;  %v12814_v51 = vld [vmem:[#allocation2 + $0x6c] sm:$0xe]  ;;  %v12816_v11 = vpack.c.bf16 %v295_v35, %v295_v35  ;;  %v797_v23 = vld [vmem:[#allocation2 + $0x80] sm:$0x1]  ;;  %10773 = vmatpush3.bf16.msra.mxu1 %v11630_v61 }
  0xd3   : > { %4349 = vmatprep.mubr.bf16.mxu1 %v9864_v26  ;;  %v9817_v19 = vcombine.low %v12799_v16, %v12762_v3  ;;  %v930_v28 = vsel %vm12251_vm7, %v541_v17, %v929_v14  ;;  %v12824_v2 = vld [vmem:[#allocation2 + $0x70] sm:$0xf]  ;;  %v573_v53 = vrot.slane %v568_v33, 4  ;;  %v794_v20 = vsel %vm12242_vm6, %v563_v54, %v793_v32 }
  0xd4   : > { %v1308_v59 = vrot.slane %v1306_v60, 4  ;;  %v1311_v47 = vrot.slane %v1309_v7, 5  ;;  %4350 = vmatmul.mubr.bf16.gmra.mxu1 %v9848_v52  ;;  %931 = vst [vmem:[#allocation2 + $0x6c] sm:$0x1] %v930_v28  ;;  %v1026_v48 = vld [vmem:[#allocation2 + $0x74] sm:$0x1]  ;;  %v572_v9 = vsel %vm12235_vm5, %v564_v58, %v571_v63 }
  0xd5   : > { %v1339_v39 = vshll.u32 %v12824_v2, 16  ;;  %v1343_v6 = vshrl.u32 %v12824_v2, 16  ;;  %v1027_v17 = vsel %vm12293_vm10, %v12766_v4, %v1026_v48  ;;  %796 = vst [vmem:[#allocation2 + $0x7c] sm:$0xf] %v572_v9  ;;  %v9770_v15 = vrot.slane %v12814_v51, 9  ;;  %v296_v55 = vld [vmem:[%s12222_s30 + $0xb8] sm:$0xff] }
  0xd6   : > { %v1312_v18 = vor.u32 %v1311_v47, %v1308_v59  ;;  %1028 = vst [vmem:[#allocation2 + $0x74] sm:$0x1] %v1027_v17  ;;  %795 = vst [vmem:[#allocation2 + $0x78] sm:$0xf] %v794_v20  ;;  %v1629_v35 = vrot.slane %v12824_v2, 5  ;;  %v798_v52 = vsel %vm12251_vm7, %v573_v53, %v797_v23  ;;  %v575_v30 = vshrl.u32 %v12803_v62, 16 }
  0xd7   : > { %v12837_v40 = vrot.slane %v1339_v39, 5  ;;  %v1345_v12 = vrot.slane %v1343_v6, 4  ;;  %v1102_v22 = vld [vmem:[#allocation2 + $0x68] sm:$0x1]  ;;  %799 = vst [vmem:[#allocation2 + $0x80] sm:$0x1] %v798_v52  ;;  %v12846_v56 = vpack.c.bf16 %v296_v55, %v296_v55 }
  0xd8   : > { %v1313_v4 = vrot.slane %v1312_v18, 4  ;;  %v578_v37 = vshll.u32 %v12803_v62, 16  ;;  %v583_v13 = vshrl.u32 %v12805_v25, 16  ;;  %v1325_v50 = vshll.u32 %v1102_v22, 16  ;;  %v1693_v33 = vld [vmem:[#allocation2 + $0x70] sm:$0xf] }
  0xd9   : > { %v1625_v0 = vrot.slane %v1102_v22, 5  ;;  %v1346_v27 = vor.u32 %v1345_v12, %v12837_v40  ;;  %v1631_v26 = vrot.slane %v1629_v35, 4  ;;  %v577_v60 = vrot.slane %v575_v30, 7 }
  0xda   : > { %v1318_v31 = vsel %vm12393_vm14, %v1313_v4, %v12780_v34  ;;  %v585_v7 = vrot.slane %v583_v13, 7  ;;  %v1327_v32 = vrot.slane %v1325_v50, 5  ;;  %v586_v54 = vshll.u32 %v12805_v25, 16  ;;  %v800_v25 = vld [vmem:[#allocation2 + $0x84] sm:$0xf] }
  0xdb   : > { %v1626_v61 = vsel %vm12332_vm13, %v12787_v24, %v1625_v0  ;;  %v12856_v14 = vrot.slane %v1346_v27, 4  ;;  %v1692_v58 = vld [vmem:[#allocation2 + $0x6c] sm:$0xf]  ;;  %v580_v34 = vor.u32 %v578_v37, %v577_v60  ;;  %v581_v42 = vrot.slane %v577_v60, 4 }
  0xdc   : > { %v9849_v63 = vcombine.low %v12795_v5, %v1626_v61  ;;  %v12860_v51 = vld [vmem:[#allocation2 + $0x6c] sm:$0xf]  ;;  %v590_v59 = vrot.slane %v585_v7, 4  ;;  %v1328_v47 = vsel %vm12393_vm14, %v12809_v43, %v1327_v32  ;;  %v9865_v28 = vcombine.low %v1692_v58, %v1693_v33  ;;  %v12867_v48 = vld [vmem:[#allocation2 + $0x7c] sm:$0xf] }
  0xdd   : > { %v1330_v23 = vshrl.u32 %v12860_v51, 16  ;;  %v1333_v24 = vshll.u32 %v12860_v51, 16  ;;  %v9833_v39 = vcombine.low %v1318_v31, %v1328_v47  ;;  %v1103_v6 = vld [vmem:[#allocation2 + $0x74] sm:$0x1]  ;;  %v932_v5 = vld [vmem:[#allocation2 + $0x78] sm:$0x1]  ;;  %v12871_v9 = vsel %vm12332_vm13, %v9770_v15, %v1629_v35 }
  0xde   : > { %v1363_v53 = vshll.u32 %v12867_v48, 16  ;;  %v1367_v18 = vshrl.u32 %v12867_v48, 16  ;;  %4357 = vmatprep.mubr.bf16.mxu1 %v9865_v28  ;;  %v1349_v20 = vshll.u32 %v1103_v6, 16  ;;  %v933_v55 = vsel %vm12251_vm7, %v558_v38, %v932_v5  ;;  %v1029_v12 = vld [vmem:[#allocation2 + $0x80] sm:$0x1]  ;;  %v297_v32 = vld [vmem:[%s12222_s30 + $0xc0] sm:$0xff] }
  0xdf   : > { %v1332_v43 = vrot.slane %v1330_v23, 4  ;;  %v1335_v17 = vrot.slane %v1333_v24, 5  ;;  %4196 = vmatprep.mubr.bf16.mxu0 %v9833_v39  ;;  %4358 = vmatmul.mubr.bf16.gmra.mxu1 %v9849_v63  ;;  %934 = vst [vmem:[#allocation2 + $0x78] sm:$0x1] %v933_v55  ;;  %v1632_v52 = vrot.slane %v1103_v6, 5  ;;  %v1030_v15 = vsel %vm12293_vm10, %v12801_v41, %v1029_v12 }
  0xe0   : > { %v12882_v35 = vrot.slane %v1363_v53, 5  ;;  %v1369_v22 = vrot.slane %v1367_v18, 4  ;;  %v1507_v4 = vld [vmem:[#allocation2 + $0x78] sm:$0xe]  ;;  %4197 = vmatmul.mubr.bf16.gmra.mxu0 %v9817_v19  ;;  %v1351_v37 = vrot.slane %v1349_v20, 5  ;;  %v588_v38 = vor.u32 %v586_v54, %v585_v7 }
  0xe1   : > { %v1336_v8 = vor.u32 %v1335_v17, %v1332_v43  ;;  %1031 = vst [vmem:[#allocation2 + $0x80] sm:$0x1] %v1030_v15  ;;  %v801_v13 = vsel %vm12242_vm6, %v580_v34, %v800_v25  ;;  %v804_v50 = vld [vmem:[#allocation2 + $0x8c] sm:$0x1]  ;;  %v9818_v41 = vcombine.low %v12860_v51, %v12824_v2  ;;  %v1633_v0 = vsel %vm12332_vm13, %v1631_v26, %v1632_v52  ;;  %v298_v51 = vld [vmem:[%s12222_s30 + $0xc8] sm:$0xff] }
  0xe2   : > { %v1370_v27 = vor.u32 %v1369_v22, %v12882_v35  ;;  %802 = vst [vmem:[#allocation2 + $0x84] sm:$0xf] %v801_v13  ;;  %v12894_v3 = vrot.slane %v586_v54, 11  ;;  %v1352_v19 = vsel %vm12393_vm14, %v12856_v14, %v1351_v37  ;;  %v589_v31 = vsel %vm12235_vm5, %v581_v42, %v588_v38  ;;  %v1695_v14 = vld [vmem:[#allocation2 + $0x7c] sm:$0xf] }
  0xe3   : > { %v1337_v16 = vrot.slane %v1336_v8, 4  ;;  %v9771_v33 = vrot.slane %v1507_v4, 9  ;;  %803 = vst [vmem:[#allocation2 + $0x88] sm:$0xf] %v589_v31  ;;  %v1636_v2 = vrot.slane %v12867_v48, 5  ;;  %v805_v26 = vsel %vm12251_vm7, %v590_v59, %v804_v50 }
  0xe4   : > { %v12901_v60 = vrot.slane %v1370_v27, 4  ;;  %v592_v7 = vshrl.u32 %v12816_v11, 16  ;;  %806 = vst [vmem:[#allocation2 + $0x8c] sm:$0x1] %v805_v26  ;;  %v595_v54 = vshll.u32 %v12816_v11, 16  ;;  %v600_v58 = vshrl.u32 %v12846_v56, 16 }
  0xe5   : > { %v1342_v61 = vsel %vm12393_vm14, %v1337_v16, %v12837_v40  ;;  %v603_v63 = vshll.u32 %v12846_v56, 16  ;;  %v9850_v42 = vcombine.low %v12871_v9, %v1633_v0  ;;  %v1638_v59 = vrot.slane %v1636_v2, 4  ;;  %v807_v53 = vld [vmem:[#allocation2 + $0x90] sm:$0xf] }
  0xe6   : > { %v9834_v34 = vcombine.low %v1342_v61, %v1352_v19  ;;  %v594_v47 = vrot.slane %v592_v7, 7  ;;  %v1694_v28 = vld [vmem:[#allocation2 + $0x78] sm:$0xf]  ;;  %v12922_v40 = vsel %vm12332_vm13, %v9771_v33, %v1636_v2  ;;  %v602_v24 = vrot.slane %v600_v58, 7 }
  0xe7   : > { %v12918_v23 = vld [vmem:[#allocation2 + $0x78] sm:$0xf]  ;;  %v12924_v25 = vrot.slane %v603_v63, 11  ;;  %v12926_v39 = vpack.c.bf16 %v297_v32, %v297_v32  ;;  %v9866_v56 = vcombine.low %v1694_v28, %v1695_v14  ;;  %v12930_v18 = vpack.c.bf16 %v298_v51, %v298_v51  ;;  %v300_v51 = vld [vmem:[%s12222_s30 + $0xd8] sm:$0xff] }
  0xe8   : > { %4204 = vmatprep.mubr.bf16.mxu0 %v9834_v34  ;;  %v1104_v6 = vld [vmem:[#allocation2 + $0x80] sm:$0x1]  ;;  %v1354_v5 = vshrl.u32 %v12918_v23, 16  ;;  %v1357_v9 = vshll.u32 %v12918_v23, 16  ;;  %v597_v55 = vor.u32 %v595_v54, %v594_v47  ;;  %v598_v12 = vrot.slane %v594_v47, 4 }
  0xe9   : > { %4205 = vmatmul.mubr.bf16.gmra.mxu0 %v9818_v41  ;;  %v1373_v43 = vshll.u32 %v1104_v6, 16  ;;  %v935_v17 = vld [vmem:[#allocation2 + $0x84] sm:$0x1]  ;;  %v1639_v20 = vrot.slane %v1104_v6, 5  ;;  %4365 = vmatprep.mubr.bf16.mxu1 %v9866_v56  ;;  %v605_v4 = vor.u32 %v603_v63, %v602_v24  ;;  %v1508_v8 = vld [vmem:[#allocation2 + $0x84] sm:$0xe]  ;;  %v9819_v38 = vcombine.low %v12918_v23, %v12867_v48 }
  0xea   : > { %v1356_v52 = vrot.slane %v1354_v5, 4  ;;  %v1359_v15 = vrot.slane %v1357_v9, 5  ;;  %v936_v22 = vsel %vm12251_vm7, %v575_v30, %v935_v17  ;;  %4366 = vmatmul.mubr.bf16.gmra.mxu1 %v9850_v42  ;;  %v12938_v13 = vld [vmem:[#allocation2 + $0x88] sm:$0xf]  ;;  %v607_v50 = vrot.slane %v602_v24, 4  ;;  %v301_v23 = vld [vmem:[%s12222_s30 + $0xe0] sm:$0xff] }
  0xeb   : > { %v1375_v37 = vrot.slane %v1373_v43, 5  ;;  %937 = vst [vmem:[#allocation2 + $0x84] sm:$0x1] %v936_v22  ;;  %v808_v41 = vsel %vm12242_vm6, %v597_v55, %v807_v53  ;;  %v1640_v62 = vsel %vm12332_vm13, %v1638_v59, %v1639_v20  ;;  %v1032_v27 = vld [vmem:[#allocation2 + $0x8c] sm:$0x1]  ;;  %v1387_v30 = vshll.u32 %v12938_v13, 16 }
  0xec   : > { %v1360_v0 = vor.u32 %v1359_v15, %v1356_v52  ;;  %v1391_v16 = vshrl.u32 %v12938_v13, 16  ;;  %809 = vst [vmem:[#allocation2 + $0x90] sm:$0xf] %v808_v41  ;;  %v811_v19 = vld [vmem:[#allocation2 + $0x98] sm:$0x1]  ;;  %v1033_v31 = vsel %vm12293_vm10, %v12894_v3, %v1032_v27  ;;  %v606_v33 = vsel %vm12235_vm5, %v598_v12, %v605_v4  ;;  %v299_v63 = vld [vmem:[%s12222_s30 + $0xd0] sm:$0xff] }
  0xed   : > { %v1376_v48 = vsel %vm12393_vm14, %v12901_v60, %v1375_v37  ;;  %v9772_v2 = vrot.slane %v1508_v8, 9  ;;  %1034 = vst [vmem:[#allocation2 + $0x8c] sm:$0x1] %v1033_v31  ;;  %v12954_v32 = vrot.slane %v1387_v30, 5  ;;  %810 = vst [vmem:[#allocation2 + $0x94] sm:$0xf] %v606_v33  ;;  %v9851_v54 = vcombine.low %v12922_v40, %v1640_v62 }
  0xee   : > { %v1361_v26 = vrot.slane %v1360_v0, 4  ;;  %v1393_v61 = vrot.slane %v1391_v16, 4  ;;  %v1643_v14 = vrot.slane %v12938_v13, 5  ;;  %v812_v60 = vsel %vm12251_vm7, %v607_v50, %v811_v19  ;;  %v1697_v42 = vld [vmem:[#allocation2 + $0x88] sm:$0xf]  ;;  %v302_v5 = vld [vmem:[%s12222_s30 + $0xe8] sm:$0xff] }
  0xef   : > { %v609_v3 = vshrl.u32 %v12926_v39, 16  ;;  %v617_v58 = vshrl.u32 %v12930_v18, 16  ;;  %813 = vst [vmem:[#allocation2 + $0x98] sm:$0x1] %v812_v60  ;;  %v612_v28 = vshll.u32 %v12926_v39, 16  ;;  %v620_v6 = vshll.u32 %v12930_v18, 16 }
  0xf0   : > { %v1366_v34 = vsel %vm12393_vm14, %v1361_v26, %v12882_v35  ;;  %v1394_v59 = vor.u32 %v1393_v61, %v12954_v32  ;;  %v12970_v47 = vsel %vm12332_vm13, %v9772_v2, %v1643_v14  ;;  %v1645_v24 = vrot.slane %v1643_v14, 4  ;;  %v814_v22 = vld [vmem:[#allocation2 + $0x9c] sm:$0xf]  ;;  %v818_v30 = vld [vmem:[#allocation2 + $0xa4] sm:$0x1] }
  0xf1   : > { %v9835_v40 = vcombine.low %v1366_v34, %v1376_v48  ;;  %v611_v56 = vrot.slane %v609_v3, 7  ;;  %v619_v43 = vrot.slane %v617_v58, 7  ;;  %v12980_v17 = vpack.c.bf16 %v299_v63, %v299_v63  ;;  %v2325_v45 = vld [vmem:[#allocation2 + $0x80] sm:$0x1] }
  0xf2   : > { %v1696_v35 = vld [vmem:[#allocation2 + $0x84] sm:$0xf]  ;;  %v1395_v53 = vrot.slane %v1394_v59, 4  ;;  %v12982_v20 = vpack.c.bf16 %v300_v51, %v300_v51  ;;  %v12986_v18 = vpack.c.bf16 %v301_v23, %v301_v23  ;;  %v12994_v16 = vpack.c.bf16 %v302_v5, %v302_v5 }
  0xf3   : > { %v12978_v9 = vld [vmem:[#allocation2 + $0x84] sm:$0xf]  ;;  %4212 = vmatprep.mubr.bf16.mxu0 %v9835_v40  ;;  %v9867_v55 = vcombine.low %v1696_v35, %v1697_v42  ;;  %v938_v15 = vld [vmem:[#allocation2 + $0x90] sm:$0x1]  ;;  %v614_v8 = vor.u32 %v612_v28, %v611_v56  ;;  %v615_v37 = vrot.slane %v611_v56, 4  ;;  %v622_v50 = vor.u32 %v620_v6, %v619_v43 }
  0xf4   : > { %v1378_v12 = vshrl.u32 %v12978_v9, 16  ;;  %v1381_v52 = vshll.u32 %v12978_v9, 16  ;;  %4213 = vmatmul.mubr.bf16.gmra.mxu0 %v9819_v38  ;;  %v939_v4 = vsel %vm12251_vm7, %v592_v7, %v938_v15  ;;  %v1105_v41 = vld [vmem:[#allocation2 + $0x8c] sm:$0x1]  ;;  %v9820_v27 = vcombine.low %v12978_v9, %v12938_v13  ;;  %v12997_v48 = vld [vmem:[#allocation2 + $0x94] sm:$0xf] }
  0xf5   : > { %4373 = vmatprep.mubr.bf16.mxu1 %v9867_v55  ;;  %940 = vst [vmem:[#allocation2 + $0x90] sm:$0x1] %v939_v4  ;;  %v303_v38 = vld [vmem:[%s12222_s30 + $0xf0] sm:$0xff]  ;;  %v1397_v11 = vshll.u32 %v1105_v41, 16  ;;  %v1646_v19 = vrot.slane %v1105_v41, 5  ;;  %v623_v7 = vsel %vm12235_vm5, %v615_v37, %v622_v50  ;;  %v624_v31 = vrot.slane %v619_v43, 4 }
  0xf6   : > { %v1380_v0 = vrot.slane %v1378_v12, 4  ;;  %v1383_v62 = vrot.slane %v1381_v52, 5  ;;  %4374 = vmatmul.mubr.bf16.gmra.mxu1 %v9851_v54  ;;  %v1035_v2 = vld [vmem:[#allocation2 + $0x98] sm:$0x1]  ;;  %v1411_v26 = vshll.u32 %v12997_v48, 16  ;;  %v1415_v13 = vshrl.u32 %v12997_v48, 16 }
  0xf7   : > { %v815_v61 = vsel %vm12242_vm6, %v614_v8, %v814_v22  ;;  %817 = vst [vmem:[#allocation2 + $0xa0] sm:$0xf] %v623_v7  ;;  %v1509_v14 = vld [vmem:[#allocation2 + $0x90] sm:$0xe]  ;;  %v1399_v54 = vrot.slane %v1397_v11, 5  ;;  %v1647_v60 = vsel %vm12332_vm13, %v1645_v24, %v1646_v19  ;;  %v1036_v58 = vsel %vm12293_vm10, %v12924_v25, %v1035_v2 }
  0xf8   : > { %v1384_v33 = vor.u32 %v1383_v62, %v1380_v0  ;;  %816 = vst [vmem:[#allocation2 + $0x9c] sm:$0xf] %v815_v61  ;;  %v13010_v63 = vpack.c.bf16 %v303_v38, %v303_v38  ;;  %1037 = vst [vmem:[#allocation2 + $0x98] sm:$0x1] %v1036_v58  ;;  %v13012_v34 = vrot.slane %v1411_v26, 5  ;;  %v1417_v42 = vrot.slane %v1415_v13, 4 }
  0xf9   : > { %v9758_v59 = vrot.slane %v620_v6, 11  ;;  %v1400_v28 = vsel %vm12393_vm14, %v1395_v53, %v1399_v54  ;;  %v1699_v23 = vld [vmem:[#allocation2 + $0x94] sm:$0xf]  ;;  %v9773_v40 = vrot.slane %v1509_v14, 9  ;;  %v1650_v24 = vrot.slane %v12997_v48, 5 }
  0xfa   : > { %v1385_v51 = vrot.slane %v1384_v33, 4  ;;  %v819_v56 = vsel %vm12251_vm7, %v624_v31, %v818_v30  ;;  %v9852_v5 = vcombine.low %v12970_v47, %v1647_v60  ;;  %v1418_v35 = vor.u32 %v1417_v42, %v13012_v34  ;;  %v821_v4 = vld [vmem:[#allocation2 + $0xa8] sm:$0xf]  ;;  %v304_v60 = vld [vmem:[%s12222_s30 + $0xf8] sm:$0xff] }
  0xfb   : > { %820 = vst [vmem:[#allocation2 + $0xa4] sm:$0x1] %v819_v56  ;;  %v626_v6 = vshrl.u32 %v12980_v17, 16  ;;  %v13029_v55 = vsel %vm12332_vm13, %v9773_v40, %v1650_v24  ;;  %v629_v12 = vshll.u32 %v12980_v17, 16  ;;  %v634_v52 = vshrl.u32 %v12982_v20, 16 }
  0xfc   : > { %v1390_v25 = vsel %vm12393_vm14, %v1385_v51, %v12954_v32  ;;  %v1698_v53 = vld [vmem:[#allocation2 + $0x90] sm:$0xf]  ;;  %v1652_v22 = vrot.slane %v1650_v24, 4  ;;  %v1419_v8 = vrot.slane %v1418_v35, 4  ;;  %v13061_v35 = vpack.c.bf16 %v304_v60, %v304_v60 }
  0xfd   : > { %v9836_v9 = vcombine.low %v1390_v25, %v1400_v28  ;;  %v13025_v43 = vld [vmem:[#allocation2 + $0x90] sm:$0xf]  ;;  %v9868_v32 = vcombine.low %v1698_v53, %v1699_v23  ;;  %v628_v41 = vrot.slane %v626_v6, 7  ;;  %v636_v0 = vrot.slane %v634_v52, 7 }
  0xfe   : > { %v1402_v47 = vshrl.u32 %v13025_v43, 16  ;;  %v1405_v15 = vshll.u32 %v13025_v43, 16  ;;  %v9821_v37 = vcombine.low %v13025_v43, %v12997_v48  ;;  %v13037_v50 = vld [vmem:[#allocation2 + $0xa0] sm:$0xf]  ;;  %v825_v24 = vld [vmem:[#allocation2 + $0xb0] sm:$0x1] }
  0xff   : > { %4220 = vmatprep.mubr.bf16.mxu0 %v9836_v9  ;;  %4381 = vmatprep.mubr.bf16.mxu1 %v9868_v32  ;;  %v941_v38 = vld [vmem:[#allocation2 + $0x9c] sm:$0x1]  ;;  %v1435_v11 = vshll.u32 %v13037_v50, 16  ;;  %v1439_v19 = vshrl.u32 %v13037_v50, 16  ;;  %v1106_v7 = vld [vmem:[#allocation2 + $0x98] sm:$0x1]  ;;  %v631_v33 = vor.u32 %v629_v12, %v628_v41 }
 0x100   : > { %4221 = vmatmul.mubr.bf16.gmra.mxu0 %v9820_v27  ;;  %v1404_v62 = vrot.slane %v1402_v47, 4  ;;  %v1407_v30 = vrot.slane %v1405_v15, 5  ;;  %4382 = vmatmul.mubr.bf16.gmra.mxu1 %v9852_v5  ;;  %v942_v31 = vsel %vm12251_vm7, %v609_v3, %v941_v38  ;;  %v632_v2 = vrot.slane %v628_v41, 4  ;;  %v1510_v54 = vld [vmem:[#allocation2 + $0x9c] sm:$0xe] }
 0x101   : > { %v637_v27 = vshll.u32 %v12982_v20, 16  ;;  %v1421_v13 = vshll.u32 %v1106_v7, 16  ;;  %943 = vst [vmem:[#allocation2 + $0x9c] sm:$0x1] %v942_v31  ;;  %v1653_v61 = vrot.slane %v1106_v7, 5  ;;  %v13048_v14 = vrot.slane %v1435_v11, 5 }
 0x102   : > { %v1408_v26 = vor.u32 %v1407_v30, %v1404_v62  ;;  %v1038_v58 = vld [vmem:[#allocation2 + $0xa4] sm:$0x1]  ;;  %v1441_v51 = vrot.slane %v1439_v19, 4  ;;  %v641_v28 = vrot.slane %v636_v0, 4  ;;  %v822_v39 = vsel %vm12242_vm6, %v631_v33, %v821_v4  ;;  %v1701_v52 = vld [vmem:[#allocation2 + $0xa0] sm:$0xf] }
 0x103   : > { %v639_v42 = vor.u32 %v637_v27, %v636_v0  ;;  %v1423_v23 = vrot.slane %v1421_v13, 5  ;;  %v1654_v20 = vsel %vm12332_vm13, %v1652_v22, %v1653_v61  ;;  %v1039_v40 = vsel %vm12293_vm10, %v9758_v59, %v1038_v58  ;;  %823 = vst [vmem:[#allocation2 + $0xa8] sm:$0xf] %v822_v39  ;;  %v13072_v22 = vld [vmem:[#allocation2 + $0x18] sm:$0xf] }
 0x104   : > { %v1409_v3 = vrot.slane %v1408_v26, 4  ;;  %v9853_v56 = vcombine.low %v13029_v55, %v1654_v20  ;;  %1040 = vst [vmem:[#allocation2 + $0xa4] sm:$0x1] %v1039_v40  ;;  %v1442_v25 = vor.u32 %v1441_v51, %v13048_v14  ;;  %v9774_v59 = vrot.slane %v1510_v54, 9  ;;  %v13078_v0 = vld [vmem:[#allocation2 + $0x1c] sm:$0xf] }
 0x105   : > { %v640_v5 = vsel %vm12235_vm5, %v632_v2, %v639_v42  ;;  %v1424_v53 = vsel %vm12393_vm14, %v1419_v8, %v1423_v23  ;;  %v1657_v12 = vrot.slane %v13037_v50, 5  ;;  %v9759_v32 = vrot.slane %v637_v27, 11  ;;  %v828_v2 = vld [vmem:[#allocation2 + $0xb4] sm:$0xf]  ;;  %v832_v23 = vld [vmem:[#allocation2 + $0xbc] sm:$0x1] }
 0x106   : > { %v1414_v9 = vsel %vm12393_vm14, %v1409_v3, %v13012_v34  ;;  %824 = vst [vmem:[#allocation2 + $0xac] sm:$0xf] %v640_v5  ;;  %v826_v47 = vsel %vm12251_vm7, %v641_v28, %v825_v24  ;;  %v643_v15 = vshrl.u32 %v12986_v18, 16  ;;  %v13074_v4 = vrot.slane %v1442_v25, 4 }
 0x107   : > { %v9837_v55 = vcombine.low %v1414_v9, %v1424_v53  ;;  %v1659_v34 = vrot.slane %v1657_v12, 4  ;;  %827 = vst [vmem:[#allocation2 + $0xb0] sm:$0x1] %v826_v47  ;;  %v646_v8 = vshll.u32 %v12986_v18, 16  ;;  %v651_v41 = vshrl.u32 %v12994_v16, 16 }
 0x108   : > { %v1700_v62 = vld [vmem:[#allocation2 + $0x9c] sm:$0xf]  ;;  %v13084_v38 = vsel %vm12332_vm13, %v9774_v59, %v1657_v12  ;;  %v645_v11 = vrot.slane %v643_v15, 7  ;;  %v654_v19 = vshll.u32 %v12994_v16, 16  ;;  %v1731_v7 = vor.u32 %v12424_v44, %v12422_v21  ;;  %v2317_v21 = vld [vmem:[#allocation2 + $0x20] sm:$0x1] }
 0x109   : > { %4228 = vmatprep.mubr.bf16.mxu0 %v9837_v55  ;;  %v13080_v30 = vld [vmem:[#allocation2 + $0x9c] sm:$0xf]  ;;  %v9869_v18 = vcombine.low %v1700_v62, %v1701_v52  ;;  %v9905_v27 = vcombine.low %v13072_v22, %v13078_v0  ;;  %v13098_v61 = vrot.slane %v651_v41, 7  ;;  %v13100_v54 = vrot.slane %v643_v15, 4 }
 0x10a   : > { %4229 = vmatmul.mubr.bf16.gmra.mxu0 %v9821_v37  ;;  %v1426_v31 = vshrl.u32 %v13080_v30, 16  ;;  %v1429_v33 = vshll.u32 %v13080_v30, 16  ;;  %v944_v26 = vld [vmem:[#allocation2 + $0xa8] sm:$0x1]  ;;  %v13096_v13 = vor.u32 %v646_v8, %v645_v11  ;;  %v649_v16 = vrot.slane %v645_v11, 4 }
 0x10b   : > { %17357 = vst [vmem:[#allocation20_spill] sm:$0xff] %v13098_v61  ;;  %17358 = vst [vmem:[#allocation21_spill] sm:$0xff] %v13100_v54  ;;  %4389 = vmatprep.mubr.bf16.mxu1 %v9869_v18  ;;  %v1107_v48 = vld [vmem:[#allocation2 + $0xa4] sm:$0x1]  ;;  %v945_v60 = vsel %vm12251_vm7, %v626_v6, %v944_v26  ;;  %v13106_v58 = vrot.slane %v654_v19, 7  ;;  %v656_v39 = vor.u32 %v654_v19, %v13098_v61  ;;  %v17280_v40 = vrot.slane %v13098_v61, 4 }
 0x10c   : > { %17356 = vst [vmem:[#allocation19_spill] sm:$0xff] %v13096_v13  ;;  %v1428_v43 = vrot.slane %v1426_v31, 4  ;;  %v1431_v37 = vrot.slane %v1429_v33, 5  ;;  %4390 = vmatmul.mubr.bf16.gmra.mxu1 %v9853_v56  ;;  %v1445_v51 = vshll.u32 %v1107_v48, 16  ;;  %946 = vst [vmem:[#allocation2 + $0xa8] sm:$0x1] %v945_v60  ;;  %v829_v3 = vsel %vm12242_vm6, %v13096_v13, %v828_v2 }
 0x10d   : > { %17359 = vst [vmem:[#allocation22_spill] sm:$0xff] %v13106_v58  ;;  %v1660_v42 = vrot.slane %v1107_v48, 5  ;;  %v13108_v28 = vld [vmem:[#allocation2 + $0xac] sm:$0xf]  ;;  %830 = vst [vmem:[#allocation2 + $0xb4] sm:$0xf] %v829_v3  ;;  %v9822_v25 = vcombine.low %v13080_v30, %v13037_v50  ;;  %v657_v53 = vsel %vm12235_vm5, %v649_v16, %v656_v39  ;;  %v833_v62 = vsel %vm12251_vm7, %v17280_v40, %v832_v23 }
 0x10e   : > { %v1432_v20 = vor.u32 %v1431_v37, %v1428_v43  ;;  %v1459_v17 = vshll.u32 %v13108_v28, 16  ;;  %v1463_v6 = vshrl.u32 %v13108_v28, 16  ;;  %v1511_v24 = vld [vmem:[#allocation2 + $0xa8] sm:$0xe]  ;;  %v1447_v56 = vrot.slane %v1445_v51, 5 }
 0x10f   : > { %v1661_v5 = vsel %vm12332_vm13, %v1659_v34, %v1660_v42  ;;  %v1041_v9 = vld [vmem:[#allocation2 + $0xb0] sm:$0x1]  ;;  %831 = vst [vmem:[#allocation2 + $0xb8] sm:$0xf] %v657_v53  ;;  %853 = vst [vmem:[#allocation2 + $0xd0] sm:$0xf] %v657_v53 }
 0x110   : > { %v1433_v59 = vrot.slane %v1432_v20, 4  ;;  %v1042_v12 = vsel %vm12293_vm10, %v9759_v32, %v1041_v9  ;;  %v13125_v55 = vrot.slane %v1459_v17, 5  ;;  %v17279_v52 = vrot.slane %v13100_v54, 4  ;;  %v1703_v32 = vld [vmem:[#allocation2 + $0xac] sm:$0xf] }
 0x111   : > { %v1448_v50 = vsel %vm12393_vm14, %v13074_v4, %v1447_v56  ;;  %1043 = vst [vmem:[#allocation2 + $0xb0] sm:$0x1] %v1042_v12  ;;  %v1465_v47 = vrot.slane %v1463_v6, 4  ;;  %v17278_v15 = vrot.slane %v13106_v58, 4  ;;  %v9775_v34 = vrot.slane %v1511_v24, 9 }
 0x112   : > { %v1438_v8 = vsel %vm12393_vm14, %v1433_v59, %v13048_v14  ;;  %v1664_v41 = vrot.slane %v13108_v28, 5  ;;  %v660_v30 = vshrl.u32 %v13010_v63, 16  ;;  %834 = vst [vmem:[#allocation2 + $0xbc] sm:$0x1] %v833_v62  ;;  %v663_v19 = vshll.u32 %v13010_v63, 16 }
 0x113   : > { %v9838_v4 = vcombine.low %v1438_v8, %v1448_v50  ;;  %v1466_v11 = vor.u32 %v1465_v47, %v13125_v55  ;;  %v668_v18 = vshrl.u32 %v13061_v35, 16  ;;  %v13144_v31 = vld [vmem:[#allocation2 + $0x24] sm:$0xf]  ;;  %v13146_v14 = vld [vmem:[#allocation2 + $0x28] sm:$0xf]  ;;  %v9854_v2 = vcombine.low %v13084_v38, %v1661_v5 }
 0x114   : > { %17360 = vst [vmem:[#allocation23_spill] sm:$0xff] %v13146_v14  ;;  %v1702_v33 = vld [vmem:[#allocation2 + $0xa8] sm:$0xf]  ;;  %v13153_v16 = vsel %vm12332_vm13, %v9775_v34, %v1664_v41  ;;  %v1666_v48 = vrot.slane %v1664_v41, 4  ;;  %v662_v43 = vrot.slane %v660_v30, 7  ;;  %v9906_v38 = vcombine.low %v13144_v31, %v13146_v14 }
 0x115   : > { %v13149_v26 = vld [vmem:[#allocation2 + $0xa8] sm:$0xf]  ;;  %4236 = vmatprep.mubr.bf16.mxu0 %v9838_v4  ;;  %v9870_v37 = vcombine.low %v1702_v33, %v1703_v32  ;;  %v947_v42 = vld [vmem:[#allocation2 + $0xb4] sm:$0x1]  ;;  %v835_v39 = vld [vmem:[#allocation2 + $0xc0] sm:$0xf] }
 0x116   : > { %v1450_v60 = vshrl.u32 %v13149_v26, 16  ;;  %v1453_v51 = vshll.u32 %v13149_v26, 16  ;;  %4237 = vmatmul.mubr.bf16.gmra.mxu0 %v9822_v25  ;;  %v1467_v3 = vrot.slane %v1466_v11, 4  ;;  %v9823_v23 = vcombine.low %v13149_v26, %v13108_v28  ;;  %v13167_v6 = vld [vmem:[#allocation2 + $0x30] sm:$0xf] }
 0x117   : > { %v948_v20 = vsel %vm12251_vm7, %v17279_v52, %v947_v42  ;;  %v665_v17 = vor.u32 %v663_v19, %v662_v43  ;;  %v13169_v24 = vld [vmem:[#allocation2 + $0x34] sm:$0xf]  ;;  %4397 = vmatprep.mubr.bf16.mxu1 %v9870_v37  ;;  %v13171_v9 = vld [vmem:[#allocation2 + $0xb8] sm:$0xf]  ;;  %v666_v25 = vrot.slane %v662_v43, 4  ;;  %v13177_v47 = vrot.slane %v668_v18, 7 }
 0x118   : > { %v1452_v56 = vrot.slane %v1450_v60, 4  ;;  %v1455_v5 = vrot.slane %v1453_v51, 5  ;;  %949 = vst [vmem:[#allocation2 + $0xb4] sm:$0x1] %v948_v20  ;;  %v9907_v53 = vcombine.low %v13167_v6, %v13169_v24  ;;  %4398 = vmatmul.mubr.bf16.gmra.mxu1 %v9854_v2  ;;  %v1108_v59 = vld [vmem:[#allocation2 + $0xb0] sm:$0x1] }
 0x119   : > { %v1483_v12 = vshll.u32 %v13171_v9, 16  ;;  %v1487_v50 = vshrl.u32 %v13171_v9, 16  ;;  %17361 = vst [vmem:[#allocation24_spill] sm:$0xff] %v13177_v47  ;;  %v671_v34 = vshll.u32 %v13061_v35, 16  ;;  %v1469_v32 = vshll.u32 %v1108_v59, 16 }
 0x11a   : > { %v1456_v8 = vor.u32 %v1455_v5, %v1452_v56  ;;  %v1667_v41 = vrot.slane %v1108_v59, 5  ;;  %v836_v62 = vsel %vm12242_vm6, %v665_v17, %v835_v39  ;;  %v13182_v4 = vld [vmem:[#allocation2 + $0x3c] sm:$0xf]  ;;  %v13184_v11 = vld [vmem:[#allocation2 + $0x40] sm:$0xf]  ;;  %v2334_v44 = vshrl.u32 %v13072_v22, 16 }
 0x11b   : > { %v1044_v19 = vld [vmem:[#allocation2 + $0xbc] sm:$0x1]  ;;  %v13186_v33 = vrot.slane %v1483_v12, 5  ;;  %v1489_v2 = vrot.slane %v1487_v50, 4  ;;  %v673_v43 = vor.u32 %v671_v34, %v13177_v47  ;;  %837 = vst [vmem:[#allocation2 + $0xc0] sm:$0xf] %v836_v62  ;;  %v9908_v35 = vcombine.low %v13182_v4, %v13184_v11 }
 0x11c   : > { %v1512_v18 = vld [vmem:[#allocation2 + $0xb4] sm:$0xe]  ;;  %v1457_v37 = vrot.slane %v1456_v8, 4  ;;  %v1471_v60 = vrot.slane %v1469_v32, 5  ;;  %v1705_v51 = vld [vmem:[#allocation2 + $0xb8] sm:$0xf]  ;;  %v1668_v42 = vsel %vm12332_vm13, %v1666_v48, %v1667_v41  ;;  %v1045_v39 = vsel %vm12293_vm10, %v17278_v15, %v1044_v19 }
 0x11d   : > { %v1708_v20 = vld [vmem:[#allocation2 + $0x14] sm:$0x1]  ;;  %1046 = vst [vmem:[#allocation2 + $0xbc] sm:$0x1] %v1045_v39  ;;  %v1490_v17 = vor.u32 %v1489_v2, %v13186_v33  ;;  %v674_v56 = vsel %vm12235_vm5, %v666_v25, %v673_v43  ;;  %v13201_v59 = vrot.slane %v671_v34, 11  ;;  %v9776_v50 = vrot.slane %v1512_v18, 9 }
 0x11e   : > { %v1462_v48 = vsel %vm12393_vm14, %v1457_v37, %v13125_v55  ;;  %v1472_v12 = vsel %vm12393_vm14, %v1467_v3, %v1471_v60  ;;  %838 = vst [vmem:[#allocation2 + $0xc4] sm:$0xf] %v674_v56  ;;  %v1671_v8 = vrot.slane %v13171_v9, 5  ;;  %v2108_v32 = vld [vmem:[#allocation2 + $0xc] sm:$0xe]  ;;  %v9855_v25 = vcombine.low %v13153_v16, %v1668_v42 }
 0x11f   : > { %17362 = vst [vmem:[#allocation25_spill] sm:$0xff] %v13201_v59  ;;  %v9839_v41 = vcombine.low %v1462_v48, %v1472_v12  ;;  %v1704_v62 = vld [vmem:[#allocation2 + $0xb4] sm:$0xf]  ;;  %v1491_v34 = vrot.slane %v1490_v17, 4  ;;  %v1744_v2 = vshll.u32 %v1708_v20, 16  ;;  %v9777_v60 = vrot.slane %v2108_v32, 9 }
 0x120   : > { %v13210_v19 = vld [vmem:[#allocation2 + $0xb4] sm:$0xf]  ;;  %v9871_v43 = vcombine.low %v1704_v62, %v1705_v51  ;;  %v13218_v18 = vsel %vm12332_vm13, %v9776_v50, %v1671_v8  ;;  %v1673_v37 = vrot.slane %v1671_v8, 4  ;;  %v11775_v16 = vld [vmem:[#allocation2 + $0x10] sm:$0xf]  ;;  %v2177_v48 = vrot.slane %v1708_v20, 5 }
 0x121   : > { %v1474_v39 = vshrl.u32 %v13210_v19, 16  ;;  %v1477_v55 = vshll.u32 %v13210_v19, 16  ;;  %v9824_v3 = vcombine.low %v13210_v19, %v13171_v9  ;;  %4244 = vmatprep.mubr.bf16.mxu0 %v9839_v41  ;;  %v2174_v42 = vrot.slane %v11775_v16, 5  ;;  %v11789_v52 = vld [vmem:[#allocation2 + $0x64] sm:$0xf] }
 0x122   : > { %4245 = vmatmul.mubr.bf16.gmra.mxu0 %v9823_v23  ;;  %4405 = vmatprep.mubr.bf16.mxu1 %v9871_v43  ;;  %v950_v56 = vld [vmem:[#allocation2 + $0xc0] sm:$0x1]  ;;  %v1732_v12 = vrot.slane %v1731_v7, 4  ;;  %v1746_v26 = vrot.slane %v1744_v2, 5  ;;  %v2337_v63 = vshll.u32 %v13072_v22, 16  ;;  %v2358_v19 = vshrl.u32 %v13144_v31, 16 }
 0x123   : > { %v1476_v51 = vrot.slane %v1474_v39, 4  ;;  %v1479_v17 = vrot.slane %v1477_v55, 5  ;;  %4406 = vmatmul.mubr.bf16.gmra.mxu1 %v9855_v25  ;;  %v951_v50 = vsel %vm12251_vm7, %v660_v30, %v950_v56  ;;  %v2175_v8 = vsel %vm12332_vm13, %v9777_v60, %v2174_v42  ;;  %v2109_v25 = vld [vmem:[#allocation2 + $0x18] sm:$0xe]  ;;  %v1709_v55 = vld [vmem:[#allocation2 + $0x20] sm:$0x1] }
 0x124   : > { %v2176_v28 = vrot.slane %v2174_v42, 4  ;;  %v1109_v23 = vld [vmem:[#allocation2 + $0xbc] sm:$0x1]  ;;  %952 = vst [vmem:[#allocation2 + $0xc0] sm:$0x1] %v951_v50  ;;  %v1737_v20 = vsel %vm12393_vm14, %v1732_v12, %v12381_v46  ;;  %v1747_v62 = vsel %vm12393_vm14, %v12402_v10, %v1746_v26  ;;  %v2336_v46 = vrot.slane %v2334_v44, 4 }
 0x125   : > { %v1480_v32 = vor.u32 %v1479_v17, %v1476_v51  ;;  %v1493_v7 = vshll.u32 %v1109_v23, 16  ;;  %v1674_v41 = vrot.slane %v1109_v23, 5  ;;  %v13242_v39 = vcombine.low %v1737_v20, %v1747_v62  ;;  %v1707_v50 = vld [vmem:[#allocation2 + $0xc4] sm:$0xf]  ;;  %v11776_v20 = vld [vmem:[#allocation2 + $0x1c] sm:$0xf] }
 0x126   : > { %v2178_v30 = vsel %vm12332_vm13, %v2176_v28, %v2177_v48  ;;  %v2339_v42 = vrot.slane %v2337_v63, 5  ;;  %v2343_v51 = vshll.u32 %v13078_v0, 16  ;;  %v2347_v56 = vshrl.u32 %v13078_v0, 16  ;;  %v13446_v5 = vld [vmem:[#allocation2 + $0x6c] sm:$0xf] }
 0x127   : > { %v1481_v2 = vrot.slane %v1480_v32, 4  ;;  %v9889_v43 = vcombine.low %v2175_v8, %v2178_v30  ;;  %v1495_v60 = vrot.slane %v1493_v7, 5  ;;  %v1675_v16 = vsel %vm12332_vm13, %v1673_v37, %v1674_v41  ;;  %v11777_v41 = vld [vmem:[#allocation2 + $0x18] sm:$0xf]  ;;  %v11791_v58 = vld [vmem:[#allocation2 + $0x70] sm:$0xf] }
 0x128   : > { %v9856_v10 = vcombine.low %v13218_v18, %v1675_v16  ;;  %v2353_v48 = vshll.u32 %v2317_v21, 16  ;;  %v2340_v8 = vor.u32 %v2339_v42, %v2336_v46  ;;  %v2345_v28 = vrot.slane %v2343_v51, 5  ;;  %v2318_v42 = vld [vmem:[#allocation2 + $0x2c] sm:$0x1]  ;;  %v13476_v61 = vld [vmem:[#allocation2 + $0x78] sm:$0xf] }
 0x129   : > { %v1486_v17 = vsel %vm12393_vm14, %v1481_v2, %v13186_v33  ;;  %v1496_v12 = vsel %vm12393_vm14, %v1491_v34, %v1495_v60  ;;  %v9778_v26 = vrot.slane %v2109_v25, 9  ;;  %v2349_v23 = vrot.slane %v2347_v56, 4  ;;  %v2117_v59 = vld [vmem:[#allocation2 + $0x78] sm:$0xe] }
 0x12a   : > { %v9840_v37 = vcombine.low %v1486_v17, %v1496_v12  ;;  %v2355_v32 = vrot.slane %v2353_v48, 5  ;;  %v2181_v44 = vrot.slane %v11776_v20, 5  ;;  %v2341_v7 = vrot.slane %v2340_v8, 4 }
 0x12b   : > { %v1706_v63 = vld [vmem:[#allocation2 + $0xc0] sm:$0xf]  ;;  %v2184_v33 = vrot.slane %v1709_v55, 5  ;;  %v1749_v18 = vshrl.u32 %v11777_v41, 16  ;;  %v1752_v30 = vshll.u32 %v11777_v41, 16  ;;  %v2350_v62 = vor.u32 %v2349_v23, %v2345_v28 }
 0x12c   : > { %4252 = vmatprep.mubr.bf16.mxu0 %v9840_v37  ;;  %v9872_v21 = vcombine.low %v1706_v63, %v1707_v50  ;;  %v2182_v34 = vsel %vm12332_vm13, %v9778_v26, %v2181_v44  ;;  %v2183_v2 = vrot.slane %v2181_v44, 4  ;;  %v2346_v25 = vsel %vm12393_vm14, %v2341_v7, %v2345_v28  ;;  %v2110_v37 = vld [vmem:[#allocation2 + $0x24] sm:$0xe]  ;;  %v13267_v23 = vld [vmem:[#allocation2 + $0x48] sm:$0xf] }
 0x12d   : > { %4253 = vmatmul.mubr.bf16.gmra.mxu0 %v9824_v3  ;;  %v1751_v46 = vrot.slane %v1749_v18, 4  ;;  %v1754_v60 = vrot.slane %v1752_v30, 5  ;;  %v1758_v16 = vshll.u32 %v11776_v20, 16  ;;  %v2351_v51 = vrot.slane %v2350_v62, 4  ;;  %v13269_v44 = vld [vmem:[#allocation2 + $0x4c] sm:$0xf] }
 0x12e   : > { %4413 = vmatprep.mubr.bf16.mxu1 %v9872_v21  ;;  %4454 = vmatprep.mubr.bf16.mxu0 %v9889_v43  ;;  %v2185_v17 = vsel %vm12332_vm13, %v2183_v2, %v2184_v33  ;;  %v1762_v56 = vshrl.u32 %v11776_v20, 16  ;;  %v1768_v48 = vshll.u32 %v1709_v55, 16  ;;  %v2361_v26 = vshll.u32 %v13144_v31, 16  ;;  %v1710_v43 = vld [vmem:[#allocation2 + $0x2c] sm:$0x1] }
 0x12f   : > { %4414 = vmatmul.mubr.bf16.gmra.mxu1 %v9856_v10  ;;  %v9890_v12 = vcombine.low %v2182_v34, %v2185_v17  ;;  %v1755_v50 = vor.u32 %v1754_v60, %v1751_v46  ;;  %v1760_v9 = vrot.slane %v1758_v16, 5  ;;  %v2356_v3 = vsel %vm12393_vm14, %v2351_v51, %v2355_v32  ;;  %v11634_v62 = vld [vmem:[#allocation6 + $0x230] sm:$0xff]  }
 0x130   : > { %v1764_v8 = vrot.slane %v1762_v56, 4  ;;  %v1770_v28 = vrot.slane %v1768_v48, 5  ;;  %v9921_v55 = vcombine.low %v2346_v25, %v2356_v3  ;;  %v2360_v20 = vrot.slane %v2358_v19, 4  ;;  %v11778_v51 = vld [vmem:[#allocation2 + $0x28] sm:$0xf] }
 0x131   : > { %v1756_v10 = vrot.slane %v1755_v50, 4  ;;  %v2367_v63 = vshll.u32 %v13146_v14, 16  ;;  %v2363_v33 = vrot.slane %v2361_v26, 5  ;;  %v2371_v41 = vshrl.u32 %v13146_v14, 16  ;;  %v11779_v56 = vld [vmem:[#allocation2 + $0x24] sm:$0xf] }
 0x132   : > { %v1765_v7 = vor.u32 %v1764_v8, %v1760_v9  ;;  %v2377_v32 = vshll.u32 %v2318_v42, 16  ;;  %4615 = vmatprep.mubr.bf16.mxu1 %v9921_v55  ;;  %v9909_v34 = vcombine.low %v13267_v23, %v13269_v44  ;;  %v9779_v16 = vrot.slane %v2110_v37, 9  ;;  %v11780_v50 = vld [vmem:[#allocation6 + $0x238] sm:$0xff]  }
 0x133   : > { %v1761_v18 = vsel %vm12393_vm14, %v1756_v10, %v1760_v9  ;;  %v2369_v30 = vrot.slane %v2367_v63, 5  ;;  %v2364_v25 = vor.u32 %v2363_v33, %v2360_v20  ;;  %v2373_v46 = vrot.slane %v2371_v41, 4  ;;  %v11637_v10 = vld [vmem:[#allocation6 + $0x228] sm:$0xff]   ;;  %v2111_v41 = vld [vmem:[#allocation2 + $0x30] sm:$0xe] }
 0x134   : > { %v1766_v2 = vrot.slane %v1765_v7, 4  ;;  %v2379_v60 = vrot.slane %v2377_v32, 5  ;;  %v2188_v42 = vrot.slane %v11778_v51, 5  ;;  %v2191_v17 = vrot.slane %v1710_v43, 5  ;;  %v2319_v7 = vld [vmem:[#allocation2 + $0x38] sm:$0x1] }
 0x135   : > { %4455 = vmatmul.mubr.bf16.vlgmr.msra.gmra.mxu0 %v13242_v39  ;;  %v1773_v48 = vshrl.u32 %v11779_v56, 16  ;;  %v2365_v19 = vrot.slane %v2364_v25, 4  ;;  %v2374_v3 = vor.u32 %v2373_v46, %v2369_v30  ;;  %v1776_v8 = vshll.u32 %v11779_v56, 16  ;;  %v1711_v56 = vld [vmem:[#allocation2 + $0x38] sm:$0x1] }
 0x136   : > { %11367 = vmatpush3.bf16.msra.mxu0 %v11780_v50  ;;  %4462 = vmatprep.mubr.bf16.mxu0 %v9890_v12  ;;  %v1771_v9 = vsel %vm12393_vm14, %v1766_v2, %v1770_v28  ;;  %v2189_v26 = vsel %vm12332_vm13, %v9779_v16, %v2188_v42  ;;  %v2190_v37 = vrot.slane %v2188_v42, 4  ;;  %v1782_v63 = vshll.u32 %v11778_v51, 16  ;;  %v13450_v14 = vld [vmem:[#allocation2 + $0x70] sm:$0xf] }
 0x137   : > { %4616 = vmatmul.mubr.bf16.vlgmr.msra.gmra.mxu1 %v9905_v27  ;;  %v9874_v39 = vcombine.low %v1761_v18, %v1771_v9  ;;  %11368 = vmatprep.subr.bf16.mxu0 %v11634_v62  ;;  %v1775_v55 = vrot.slane %v1773_v48, 4  ;;  %v2370_v12 = vsel %vm12393_vm14, %v2365_v19, %v2369_v30  ;;  %v2375_v20 = vrot.slane %v2374_v3, 4  ;;  %v11640_v48 = vld [vmem:[#allocation6 + $0x220] sm:$0xff]  }
 0x138   : > { %v1778_v28 = vrot.slane %v1776_v8, 5  ;;  %v2192_v33 = vsel %vm12332_vm13, %v2190_v37, %v2191_v17  ;;  %v1786_v22 = vshrl.u32 %v11778_v51, 16  ;;  %v1792_v0 = vshll.u32 %v1710_v43, 16 }
 0x139   : > { %v2382_v27 = vshrl.u32 %v13167_v6, 16  ;;  %v2380_v32 = vsel %vm12393_vm14, %v2375_v20, %v2379_v60  ;;  %v9891_v18 = vcombine.low %v2189_v26, %v2192_v33  ;;  %v1784_v25 = vrot.slane %v1782_v63, 5  ;;  %v11643_v63 = vld [vmem:[#allocation6 + $0x218] sm:$0xff]  }
 0x13a   : > { %v1779_v2 = vor.u32 %v1778_v28, %v1775_v55  ;;  %11369 = vmatpush3.bf16.msra.mxu0 %v11634_v62  ;;  %v9922_v30 = vcombine.low %v2370_v12, %v2380_v32  ;;  %v1788_v46 = vrot.slane %v1786_v22, 4  ;;  %v1794_v16 = vrot.slane %v1792_v0, 5  ;;  %v11781_v62 = vld [vmem:[#allocation2 + $0x34] sm:$0xf]  ;;  %v11782_v0 = vld [vmem:[#allocation2 + $0x30] sm:$0xf] }
 0x13b   : > { %v2384_v42 = vrot.slane %v2382_v27, 4  ;;  %11370 = vmatprep.subr.bf16.mxu0 %v11637_v10  ;;  %v2385_v43 = vshll.u32 %v13167_v6, 16  ;;  %v2391_v51 = vshll.u32 %v13169_v24, 16  ;;  %v2395_v50 = vshrl.u32 %v13169_v24, 16 }
 0x13c   : > { %v1780_v17 = vrot.slane %v1779_v2, 4  ;;  %4623 = vmatprep.mubr.bf16.mxu1 %v9922_v30  ;;  %v1789_v60 = vor.u32 %v1788_v46, %v1784_v25  ;;  %v2401_v9 = vshll.u32 %v2319_v7, 16  ;;  %v9780_v19 = vrot.slane %v2111_v41, 9 }
 0x13d   : > { %4463 = vmatmul.mubr.bf16.gmra.mxu0 %v9874_v39  ;;  %v2195_v3 = vrot.slane %v11781_v62, 5  ;;  %v2387_v26 = vrot.slane %v2385_v43, 5  ;;  %v2393_v37 = vrot.slane %v2391_v51, 5  ;;  %v2397_v55 = vrot.slane %v2395_v50, 4  ;;  %v2320_v43 = vld [vmem:[#allocation2 + $0x44] sm:$0x1] }
 0x13e   : > { %4470 = vmatprep.mubr.bf16.mxu0 %v9891_v18  ;;  %v1785_v8 = vsel %vm12393_vm14, %v1780_v17, %v1784_v25  ;;  %11371 = vmatpush3.bf16.msra.mxu0 %v11637_v10  ;;  %v1790_v12 = vrot.slane %v1789_v60, 4  ;;  %v2403_v39 = vrot.slane %v2401_v9, 5  ;;  %v2198_v22 = vrot.slane %v1711_v56, 5  ;;  %v11646_v51 = vld [vmem:[#allocation6 + $0x210] sm:$0xff]  }
 0x13f   : > { %4624 = vmatmul.mubr.bf16.gmra.mxu1 %v9906_v38  ;;  %v2196_v20 = vsel %vm12332_vm13, %v9780_v19, %v2195_v3  ;;  %v2197_v28 = vrot.slane %v2195_v3, 4  ;;  %11372 = vmatprep.subr.bf16.mxu0 %v11640_v48  ;;  %v2388_v7 = vor.u32 %v2387_v26, %v2384_v42  ;;  %v2398_v33 = vor.u32 %v2397_v55, %v2393_v37 }
 0x140   : > { %v1797_v27 = vshrl.u32 %v11782_v0, 16  ;;  %v1795_v10 = vsel %vm12393_vm14, %v1790_v12, %v1794_v16  ;;  %v1800_v41 = vshll.u32 %v11782_v0, 16  ;;  %v1806_v32 = vshll.u32 %v11781_v62, 16 }
 0x141   : > { %v1810_v31 = vshrl.u32 %v11781_v62, 16  ;;  %v9875_v38 = vcombine.low %v1785_v8, %v1795_v10  ;;  %v2389_v18 = vrot.slane %v2388_v7, 4  ;;  %v2399_v2 = vrot.slane %v2398_v33, 4  ;;  %v2112_v8 = vld [vmem:[#allocation2 + $0x3c] sm:$0xe] }
 0x142   : > { %v2199_v25 = vsel %vm12332_vm13, %v2197_v28, %v2198_v22  ;;  %11373 = vmatpush3.bf16.msra.mxu0 %v11640_v48  ;;  %v1799_v46 = vrot.slane %v1797_v27, 4  ;;  %v1802_v42 = vrot.slane %v1800_v41, 5  ;;  %v1808_v17 = vrot.slane %v1806_v32, 5 }
 0x143   : > { %v9892_v30 = vcombine.low %v2196_v20, %v2199_v25  ;;  %11374 = vmatprep.subr.bf16.mxu0 %v11643_v63  ;;  %v2394_v16 = vsel %vm12393_vm14, %v2389_v18, %v2393_v37  ;;  %v2404_v50 = vsel %vm12393_vm14, %v2399_v2, %v2403_v39  ;;  %v1812_v60 = vrot.slane %v1810_v31, 4  ;;  %v1712_v20 = vld [vmem:[#allocation2 + $0x44] sm:$0x1]  ;;  %v11783_v31 = vld [vmem:[#allocation2 + $0x40] sm:$0xf]  ;;  %v11652_v18 = vld [vmem:[#allocation6 + $0x200] sm:$0xff]  }
 0x144   : > { %v1816_v9 = vshll.u32 %v1711_v56, 16  ;;  %v9923_v19 = vcombine.low %v2394_v16, %v2404_v50  ;;  %v1803_v62 = vor.u32 %v1802_v42, %v1799_v46  ;;  %v2406_v48 = vshrl.u32 %v13182_v4, 16  ;;  %v11649_v39 = vld [vmem:[#allocation6 + $0x208] sm:$0xff]   ;;  %v11784_v46 = vld [vmem:[#allocation2 + $0x3c] sm:$0xf] }
 0x145   : > { %4471 = vmatmul.mubr.bf16.gmra.mxu0 %v9875_v38  ;;  %v2409_v3 = vshll.u32 %v13182_v4, 16  ;;  %v1813_v26 = vor.u32 %v1812_v60, %v1808_v17  ;;  %v2415_v12 = vshll.u32 %v13184_v11, 16  ;;  %v2419_v37 = vshrl.u32 %v13184_v11, 16 }
 0x146   : > { %4478 = vmatprep.mubr.bf16.mxu0 %v9892_v30  ;;  %v1818_v55 = vrot.slane %v1816_v9, 5  ;;  %11375 = vmatpush3.bf16.msra.mxu0 %v11643_v63  ;;  %v1804_v56 = vrot.slane %v1803_v62, 4  ;;  %v2408_v28 = vrot.slane %v2406_v48, 4  ;;  %v2425_v33 = vshll.u32 %v2320_v43, 16  ;;  %v2321_v48 = vld [vmem:[#allocation2 + $0x50] sm:$0x1] }
 0x147   : > { %4631 = vmatprep.mubr.bf16.mxu1 %v9923_v19  ;;  %v2411_v7 = vrot.slane %v2409_v3, 5  ;;  %11376 = vmatprep.subr.bf16.mxu0 %v11646_v51  ;;  %v1814_v22 = vrot.slane %v1813_v26, 4  ;;  %v2417_v0 = vrot.slane %v2415_v12, 5  ;;  %v2421_v27 = vrot.slane %v2419_v37, 4  ;;  %v2113_v3 = vld [vmem:[#allocation2 + $0x48] sm:$0xe] }
 0x148   : > { %4632 = vmatmul.mubr.bf16.gmra.mxu1 %v9907_v53  ;;  %v9781_v10 = vrot.slane %v2112_v8, 9  ;;  %v1809_v41 = vsel %vm12393_vm14, %v1804_v56, %v1808_v17  ;;  %v2427_v63 = vrot.slane %v2425_v33, 5  ;;  %v2202_v38 = vrot.slane %v11783_v31, 5  ;;  %v13332_v56 = vld [vmem:[#allocation2 + $0x50] sm:$0x1] }
 0x149   : > { %v2412_v32 = vor.u32 %v2411_v7, %v2408_v28  ;;  %v1819_v2 = vsel %vm12393_vm14, %v1814_v22, %v1818_v55  ;;  %v2422_v25 = vor.u32 %v2421_v27, %v2417_v0  ;;  %v2205_v30 = vrot.slane %v1712_v20, 5  ;;  %v13328_v8 = vpop.f32.mrf.mxu1 }
 0x14a   : > { %v1821_v6 = vshrl.u32 %v11784_v46, 16  ;;  %11377 = vmatpush3.bf16.msra.mxu0 %v11646_v51  ;;  %v9876_v24 = vcombine.low %v1809_v41, %v1819_v2  ;;  %v2203_v42 = vsel %vm12332_vm13, %v9781_v10, %v2202_v38  ;;  %v2204_v43 = vrot.slane %v2202_v38, 4 }
 0x14b   : > { %v2413_v53 = vrot.slane %v2412_v32, 4  ;;  %11378 = vmatprep.subr.bf16.mxu0 %v11649_v39  ;;  %v2423_v17 = vrot.slane %v2422_v25, 4  ;;  %v1824_v50 = vshll.u32 %v11784_v46, 16  ;;  %v1830_v60 = vshll.u32 %v11783_v31, 16 }
 0x14c   : > { %v1823_v16 = vrot.slane %v1821_v6, 4  ;;  %v2206_v19 = vsel %vm12332_vm13, %v2204_v43, %v2205_v30  ;;  %v1834_v62 = vshrl.u32 %v11783_v31, 16  ;;  %v1840_v51 = vshll.u32 %v1712_v20, 16 }
 0x14d   : > { %4479 = vmatmul.mubr.bf16.gmra.mxu0 %v9876_v24  ;;  %v2418_v9 = vsel %vm12393_vm14, %v2413_v53, %v2417_v0  ;;  %v2428_v26 = vsel %vm12393_vm14, %v2423_v17, %v2427_v63  ;;  %v9893_v55 = vcombine.low %v2203_v42, %v2206_v19  ;;  %v1826_v12 = vrot.slane %v1824_v50, 5  ;;  %v13335_v0 = vpop.f32.mrf.mxu1  ;;  %v13340_v38 = vpop.f32.mrf.mxu0  ;;  %v11785_v42 = vld [vmem:[#allocation2 + $0x4c] sm:$0xf] }
 0x14e   : > { %v1832_v37 = vrot.slane %v1830_v60, 5  ;;  %11379 = vmatpush3.bf16.msra.mxu0 %v11649_v39  ;;  %v9924_v28 = vcombine.low %v2418_v9, %v2428_v26  ;;  %v1836_v7 = vrot.slane %v1834_v62, 4  ;;  %v1842_v33 = vrot.slane %v1840_v51, 5 }
 0x14f   : > { %v2430_v22 = vshrl.u32 %v13267_v23, 16  ;;  %11380 = vmatprep.subr.bf16.mxu0 %v11652_v18  ;;  %4486 = vmatprep.mubr.bf16.mxu0 %v9893_v55  ;;  %v1827_v20 = vor.u32 %v1826_v12, %v1823_v16  ;;  %v2433_v27 = vshll.u32 %v13267_v23, 16  ;;  %v2439_v10 = vshll.u32 %v13269_v44, 16  ;;  %v13342_v2 = vpop.f32.mrf.mxu1  ;;  %v13348_v16 = vpop.f32.mrf.mxu0  ;;  %v11787_v23 = vld [vmem:[#allocation2 + $0x58] sm:$0xf] }
 0x150   : > { %v2443_v41 = vshrl.u32 %v13269_v44, 16  ;;  %4639 = vmatprep.mubr.bf16.mxu1 %v9924_v28  ;;  %v1837_v32 = vor.u32 %v1836_v7, %v1832_v37  ;;  %v2449_v39 = vshll.u32 %v2321_v48, 16  ;;  %v9782_v31 = vrot.slane %v2113_v3, 9  ;;  %v13358_v48 = vld [vmem:[#allocation2 + $0x54] sm:$0xf] }
 0x151   : > { %v2432_v63 = vrot.slane %v2430_v22, 4  ;;  %4640 = vmatmul.mubr.bf16.gmra.mxu1 %v9908_v35  ;;  %v1828_v25 = vrot.slane %v1827_v20, 4  ;;  %v2435_v30 = vrot.slane %v2433_v27, 5  ;;  %v2441_v46 = vrot.slane %v2439_v10, 5  ;;  %v13350_v50 = vpop.f32.mrf.mxu1  ;;  %v11786_v35 = vld [vmem:[#allocation2 + $0x48] sm:$0xf]  ;;  %v13362_v26 = vpop.f32.mrf.mxu0 }
 0x152   : > { %v2445_v6 = vrot.slane %v2443_v41, 4  ;;  %11381 = vmatpush3.bf16.msra.mxu0 %v11652_v18  ;;  %v1838_v24 = vrot.slane %v1837_v32, 4  ;;  %v2451_v53 = vrot.slane %v2449_v39, 5  ;;  %v2209_v43 = vrot.slane %v11785_v42, 5  ;;  %v13360_v3 = vld [vmem:[#allocation2 + $0x58] sm:$0xf] }
 0x153   : > { %v2212_v17 = vrot.slane %v13332_v56, 5  ;;  %v1833_v60 = vsel %vm12393_vm14, %v1828_v25, %v1832_v37  ;;  %v2436_v4 = vor.u32 %v2435_v30, %v2432_v63  ;;  %v1845_v9 = vshrl.u32 %v11786_v35, 16  ;;  %v13364_v55 = vpop.f32.mrf.mxu1  ;;  %v2322_v22 = vld [vmem:[#allocation2 + $0x5c] sm:$0x1]  ;;  %v13368_v41 = vpop.f32.mrf.mxu0 }
 0x154   : > { %v2446_v11 = vor.u32 %v2445_v6, %v2441_v46  ;;  %v1843_v18 = vsel %vm12393_vm14, %v1838_v24, %v1842_v33  ;;  %v2210_v19 = vsel %vm12332_vm13, %v9782_v31, %v2209_v43  ;;  %v2211_v62 = vrot.slane %v2209_v43, 4 }
 0x155   : > { %v1848_v51 = vshll.u32 %v11786_v35, 16  ;;  %v9877_v12 = vcombine.low %v1833_v60, %v1843_v18  ;;  %v2437_v37 = vrot.slane %v2436_v4, 4  ;;  %v1847_v7 = vrot.slane %v1845_v9, 4  ;;  %v13370_v32 = vpop.f32.mrf.mxu1  ;;  %v13379_v60 = vpop.f32.mrf.mxu0 }
 0x156   : > { %v2447_v28 = vrot.slane %v2446_v11, 4  ;;  %v2213_v33 = vsel %vm12332_vm13, %v2211_v62, %v2212_v17  ;;  %v1854_v27 = vshll.u32 %v11785_v42, 16  ;;  %v1858_v10 = vshrl.u32 %v11785_v42, 16  ;;  %v13377_v17 = vld [vmem:[#allocation2 + $0x5c] sm:$0x1] }
 0x157   : > { %v1850_v20 = vrot.slane %v1848_v51, 5  ;;  %4487 = vmatmul.mubr.bf16.gmra.mxu0 %v9877_v12  ;;  %v2442_v63 = vsel %vm12393_vm14, %v2437_v37, %v2441_v46  ;;  %v9894_v31 = vcombine.low %v2210_v19, %v2213_v33  ;;  %v1864_v25 = vshll.u32 %v13332_v56, 16  ;;  %v2114_v42 = vld [vmem:[#allocation2 + $0x54] sm:$0xe]  ;;  %v13381_v4 = vpop.f32.mrf.mxu1  ;;  %v13387_v62 = vpop.f32.mrf.mxu0 }
 0x158   : > { %v2452_v39 = vsel %vm12393_vm14, %v2447_v28, %v2451_v53  ;;  %v1856_v24 = vrot.slane %v1854_v27, 5  ;;  %v1860_v43 = vrot.slane %v1858_v10, 4  ;;  %v2454_v46 = vshrl.u32 %v13358_v48, 16 }
 0x159   : > { %v9925_v30 = vcombine.low %v2442_v63, %v2452_v39  ;;  %v1851_v6 = vor.u32 %v1850_v20, %v1847_v7  ;;  %4494 = vmatprep.mubr.bf16.mxu0 %v9894_v31  ;;  %v1866_v11 = vrot.slane %v1864_v25, 5  ;;  %v2457_v53 = vshll.u32 %v13358_v48, 16  ;;  %v13394_v7 = vpop.f32.mrf.mxu1  ;;  %v13398_v10 = vpop.f32.mrf.mxu0 }
 0x15a   : > { %v2463_v35 = vshll.u32 %v13360_v3, 16  ;;  %v1861_v9 = vor.u32 %v1860_v43, %v1856_v24  ;;  %v2467_v18 = vshrl.u32 %v13360_v3, 16  ;;  %v2473_v19 = vshll.u32 %v2322_v22, 16 }
 0x15b   : > { %4647 = vmatprep.mubr.bf16.mxu1 %v9925_v30  ;;  %v1852_v56 = vrot.slane %v1851_v6, 4  ;;  %v2456_v51 = vrot.slane %v2454_v46, 4  ;;  %v2459_v12 = vrot.slane %v2457_v53, 5  ;;  %v9910_v28 = vcombine.low %v13358_v48, %v13360_v3  ;;  %v11788_v3 = vld [vmem:[#allocation2 + $0x54] sm:$0xf] }
 0x15c   : > { %4648 = vmatmul.mubr.bf16.gmra.mxu1 %v9909_v34  ;;  %v2465_v37 = vrot.slane %v2463_v35, 5  ;;  %v1862_v20 = vrot.slane %v1861_v9, 4  ;;  %v2469_v27 = vrot.slane %v2467_v18, 4  ;;  %v2475_v22 = vrot.slane %v2473_v19, 5  ;;  %v13403_v6 = vld [vmem:[#allocation2 + $0x60] sm:$0xf] }
 0x15d   : > { %v1857_v33 = vsel %vm12393_vm14, %v1852_v56, %v1856_v24  ;;  %v2460_v63 = vor.u32 %v2459_v12, %v2456_v51  ;;  %v9783_v39 = vrot.slane %v2114_v42, 9  ;;  %v2216_v44 = vrot.slane %v11787_v23, 5  ;;  %v13405_v24 = vpop.f32.mrf.mxu0  ;;  %v13409_v35 = vld [vmem:[#allocation2 + $0x64] sm:$0xf]  ;;  %v13411_v56 = vpop.f32.mrf.mxu1  ;;  %v2323_v51 = vld [vmem:[#allocation2 + $0x68] sm:$0x1] }
 0x15e   : > { %v2219_v34 = vrot.slane %v13377_v17, 5  ;;  %v1867_v31 = vsel %vm12393_vm14, %v1862_v20, %v1866_v11  ;;  %v2470_v48 = vor.u32 %v2469_v27, %v2465_v37  ;;  %v1869_v25 = vshrl.u32 %v11788_v3, 16 }
 0x15f   : > { %v1872_v30 = vshll.u32 %v11788_v3, 16  ;;  %v9878_v43 = vcombine.low %v1857_v33, %v1867_v31  ;;  %v2461_v46 = vrot.slane %v2460_v63, 4  ;;  %v2217_v42 = vsel %vm12332_vm13, %v9783_v39, %v2216_v44  ;;  %v13413_v12 = vpop.f32.mrf.mxu0  ;;  %v2115_v3 = vld [vmem:[#allocation2 + $0x60] sm:$0xe]  ;;  %v13425_v15 = vpop.f32.mrf.mxu1 }
 0x160   : > { %v2218_v53 = vrot.slane %v2216_v44, 4  ;;  %v2471_v9 = vrot.slane %v2470_v48, 4  ;;  %v1871_v11 = vrot.slane %v1869_v25, 4  ;;  %v1878_v19 = vshll.u32 %v11787_v23, 16 }
 0x161   : > { %v1874_v18 = vrot.slane %v1872_v30, 5  ;;  %4495 = vmatmul.mubr.bf16.gmra.mxu0 %v9878_v43  ;;  %v2466_v33 = vsel %vm12393_vm14, %v2461_v46, %v2465_v37  ;;  %v1882_v27 = vshrl.u32 %v11787_v23, 16  ;;  %v1888_v63 = vshll.u32 %v13377_v17, 16  ;;  %v13422_v25 = vpop.f32.mrf.mxu0  ;;  %v1715_v46 = vld [vmem:[#allocation2 + $0x68] sm:$0x1] }
 0x162   : > { %v2220_v20 = vsel %vm12332_vm13, %v2218_v53, %v2219_v34  ;;  %v2476_v39 = vsel %vm12393_vm14, %v2471_v9, %v2475_v22  ;;  %v1880_v48 = vrot.slane %v1878_v19, 5  ;;  %v2478_v37 = vshrl.u32 %v13403_v6, 16 }
 0x163   : > { %v9895_v44 = vcombine.low %v2217_v42, %v2220_v20  ;;  %v1875_v31 = vor.u32 %v1874_v18, %v1871_v11  ;;  %v9926_v30 = vcombine.low %v2466_v33, %v2476_v39  ;;  %v1884_v43 = vrot.slane %v1882_v27, 4  ;;  %v13430_v42 = vpop.f32.mrf.mxu0 }
 0x164   : > { %v1890_v21 = vrot.slane %v1888_v63, 5  ;;  %v2481_v17 = vshll.u32 %v13403_v6, 16  ;;  %v2487_v22 = vshll.u32 %v13409_v35, 16  ;;  %v2491_v34 = vshrl.u32 %v13409_v35, 16 }
 0x165   : > { %4502 = vmatprep.mubr.bf16.mxu0 %v9895_v44  ;;  %v1876_v23 = vrot.slane %v1875_v31, 4  ;;  %4655 = vmatprep.mubr.bf16.mxu1 %v9926_v30  ;;  %v1885_v53 = vor.u32 %v1884_v43, %v1880_v48  ;;  %v2480_v9 = vrot.slane %v2478_v37, 4  ;;  %v2497_v11 = vshll.u32 %v2323_v51, 16  ;;  %v13436_v63 = vpop.f32.mrf.mxu0  ;;  %v13438_v43 = vpop.f32.mrf.mxu1 }
 0x166   : > { %v9911_v18 = vcombine.low %v13403_v6, %v13409_v35  ;;  %4656 = vmatmul.mubr.bf16.gmra.mxu1 %v9910_v28  ;;  %v2483_v33 = vrot.slane %v2481_v17, 5  ;;  %v2489_v20 = vrot.slane %v2487_v22, 5  ;;  %v2493_v27 = vrot.slane %v2491_v34, 4  ;;  %v11790_v6 = vld [vmem:[#allocation2 + $0x60] sm:$0xf] }
 0x167   : > { %v1881_v19 = vsel %vm12393_vm14, %v1876_v23, %v1880_v48  ;;  %v1886_v39 = vrot.slane %v1885_v53, 4  ;;  %v2499_v44 = vrot.slane %v2497_v11, 5  ;;  %v9784_v31 = vrot.slane %v2115_v3, 9  ;;  %v13440_v35 = vpop.f32.mrf.mxu0 }
 0x168   : > { %v2223_v30 = vrot.slane %v11789_v52, 5  ;;  %v2484_v51 = vor.u32 %v2483_v33, %v2480_v9  ;;  %v2494_v37 = vor.u32 %v2493_v27, %v2489_v20  ;;  %v2226_v40 = vrot.slane %v1715_v46, 5 }
 0x169   : > { %v1893_v28 = vshrl.u32 %v11790_v6, 16  ;;  %v1891_v48 = vsel %vm12393_vm14, %v1886_v39, %v1890_v21  ;;  %v1896_v22 = vshll.u32 %v11790_v6, 16  ;;  %v1902_v27 = vshll.u32 %v11789_v52, 16  ;;  %v13452_v21 = vpop.f32.mrf.mxu1 }
 0x16a   : > { %v2224_v23 = vsel %vm12332_vm13, %v9784_v31, %v2223_v30  ;;  %v2225_v17 = vrot.slane %v2223_v30, 4  ;;  %v9879_v3 = vcombine.low %v1881_v19, %v1891_v48  ;;  %v2485_v34 = vrot.slane %v2484_v51, 4  ;;  %v2324_v51 = vld [vmem:[#allocation2 + $0x74] sm:$0x1] }
 0x16b   : > { %v2495_v53 = vrot.slane %v2494_v37, 4  ;;  %v1895_v11 = vrot.slane %v1893_v28, 4  ;;  %v1898_v33 = vrot.slane %v1896_v22, 5  ;;  %v1906_v36 = vshrl.u32 %v11789_v52, 16  ;;  %v13458_v37 = vpop.f32.mrf.mxu0  ;;  %v1716_v48 = vld [vmem:[#allocation2 + $0x74] sm:$0x1] }
 0x16c   : > { %v2227_v9 = vsel %vm12332_vm13, %v2225_v17, %v2226_v40  ;;  %4503 = vmatmul.mubr.bf16.gmra.mxu0 %v9879_v3  ;;  %v2490_v39 = vsel %vm12393_vm14, %v2485_v34, %v2489_v20  ;;  %v1912_v30 = vshll.u32 %v1715_v46, 16  ;;  %v1904_v28 = vrot.slane %v1902_v27, 5  ;;  %v2116_v17 = vld [vmem:[#allocation2 + $0x6c] sm:$0xe] }
 0x16d   : > { %v2500_v19 = vsel %vm12393_vm14, %v2495_v53, %v2499_v44  ;;  %v9896_v31 = vcombine.low %v2224_v23, %v2227_v9  ;;  %v1899_v6 = vor.u32 %v1898_v33, %v1895_v11  ;;  %v1908_v52 = vrot.slane %v1906_v36, 4  ;;  %v13464_v9 = vpop.f32.mrf.mxu1 }
 0x16e   : > { %v9927_v40 = vcombine.low %v2490_v39, %v2500_v19  ;;  %v1914_v22 = vrot.slane %v1912_v30, 5  ;;  %v2502_v3 = vshrl.u32 %v13446_v5, 16  ;;  %v2505_v20 = vshll.u32 %v13446_v5, 16  ;;  %v13468_v39 = vpop.f32.mrf.mxu0 }
 0x16f   : > { %4510 = vmatprep.mubr.bf16.mxu0 %v9896_v31  ;;  %v2511_v34 = vshll.u32 %v13450_v14, 16  ;;  %v1900_v44 = vrot.slane %v1899_v6, 4  ;;  %v1909_v46 = vor.u32 %v1908_v52, %v1904_v28  ;;  %v2515_v23 = vshrl.u32 %v13450_v14, 16  ;;  %v13472_v6 = vpop.f32.mrf.mxu1 }
 0x170   : > { %4663 = vmatprep.mubr.bf16.mxu1 %v9927_v40  ;;  %v2521_v53 = vshll.u32 %v2324_v51, 16  ;;  %v2504_v36 = vrot.slane %v2502_v3, 4  ;;  %v2507_v11 = vrot.slane %v2505_v20, 5  ;;  %v9912_v27 = vcombine.low %v13446_v5, %v13450_v14  ;;  %v11792_v14 = vld [vmem:[#allocation2 + $0x6c] sm:$0xf] }
 0x171   : > { %4664 = vmatmul.mubr.bf16.gmra.mxu1 %v9911_v18  ;;  %v2513_v33 = vrot.slane %v2511_v34, 5  ;;  %v1905_v19 = vsel %vm12393_vm14, %v1900_v44, %v1904_v28  ;;  %v1910_v31 = vrot.slane %v1909_v46, 4  ;;  %v2517_v30 = vrot.slane %v2515_v23, 4  ;;  %v13478_v28 = vpop.f32.mrf.mxu1 }
 0x172   : > { %v2523_v40 = vrot.slane %v2521_v53, 5  ;;  %v2508_v51 = vor.u32 %v2507_v11, %v2504_v36  ;;  %v9785_v52 = vrot.slane %v2116_v17, 9  ;;  %v2230_v18 = vrot.slane %v11791_v58, 5  ;;  %v13482_v53 = vld [vmem:[#allocation2 + $0x7c] sm:$0xf]  ;;  %v13484_v36 = vpop.f32.mrf.mxu0 }
 0x173   : > { %v2233_v3 = vrot.slane %v1716_v48, 5  ;;  %v1915_v20 = vsel %vm12393_vm14, %v1910_v31, %v1914_v22  ;;  %v2518_v34 = vor.u32 %v2517_v30, %v2513_v33  ;;  %v1917_v5 = vshrl.u32 %v11792_v14, 16 }
 0x174   : > { %v1920_v54 = vshll.u32 %v11792_v14, 16  ;;  %v9880_v44 = vcombine.low %v1905_v19, %v1915_v20  ;;  %v2509_v46 = vrot.slane %v2508_v51, 4  ;;  %v2231_v23 = vsel %vm12332_vm13, %v9785_v52, %v2230_v18  ;;  %v13486_v14 = vpop.f32.mrf.mxu1 }
 0x175   : > { %v2232_v17 = vrot.slane %v2230_v18, 4  ;;  %v2519_v11 = vrot.slane %v2518_v34, 4  ;;  %v1919_v22 = vrot.slane %v1917_v5, 4  ;;  %v1926_v30 = vshll.u32 %v11791_v58, 16 }
 0x176   : > { %v1922_v31 = vrot.slane %v1920_v54, 5  ;;  %4511 = vmatmul.mubr.bf16.gmra.mxu0 %v9880_v44  ;;  %v2514_v19 = vsel %vm12393_vm14, %v2509_v46, %v2513_v33  ;;  %v1930_v52 = vshrl.u32 %v11791_v58, 16  ;;  %v1936_v18 = vshll.u32 %v1716_v48, 16  ;;  %v13497_v54 = vld [vmem:[%s17270_s2] ss:$0 sm:$0xff]  ;;  %v13499_v44 = vpop.f32.mrf.mxu1  ;;  %v13502_v58 = vpop.f32.mrf.mxu0 }
 0x177   : > { %v2234_v51 = vsel %vm12332_vm13, %v2232_v17, %v2233_v3  ;;  %v2524_v20 = vsel %vm12393_vm14, %v2519_v11, %v2523_v40  ;;  %v1928_v5 = vrot.slane %v1926_v30, 5  ;;  %v2526_v3 = vshrl.u32 %v13476_v61, 16  ;;  %v13507_v11 = vld [vmem:[#allocation2 + $0x80] sm:$0x1] }
 0x178   : > { %v9897_v13 = vcombine.low %v2231_v23, %v2234_v51  ;;  %v1923_v34 = vor.u32 %v1922_v31, %v1919_v22  ;;  %v9928_v29 = vcombine.low %v2514_v19, %v2524_v20  ;;  %v1932_v33 = vrot.slane %v1930_v52, 4  ;;  %v13509_v22 = vpop.f32.mrf.mxu1  ;;  %v13513_v52 = vpop.f32.mrf.mxu0 }
 0x179   : > { %v1938_v46 = vrot.slane %v1936_v18, 5  ;;  %v2529_v40 = vshll.u32 %v13476_v61, 16  ;;  %v2535_v23 = vshll.u32 %v13482_v53, 16  ;;  %v2539_v17 = vshrl.u32 %v13482_v53, 16 }
 0x17a   : > { %4518 = vmatprep.mubr.bf16.mxu0 %v9897_v13  ;;  %v1924_v48 = vrot.slane %v1923_v34, 4  ;;  %4671 = vmatprep.mubr.bf16.mxu1 %v9928_v29  ;;  %v1933_v31 = vor.u32 %v1932_v33, %v1928_v5  ;;  %v2528_v30 = vrot.slane %v2526_v3, 4  ;;  %v2545_v19 = vshll.u32 %v2325_v45, 16  ;;  %v13517_v49 = vpop.f32.mrf.mxu1 }
 0x17b   : > { %v10440_v51 = vadd.f32 %v13348_v16, %v13340_v38  ;;  %4672 = vmatmul.mubr.bf16.gmra.mxu1 %v9912_v27  ;;  %v2531_v18 = vrot.slane %v2529_v40, 5  ;;  %v2537_v20 = vrot.slane %v2535_v23, 5  ;;  %v2541_v34 = vrot.slane %v2539_v17, 4  ;;  %v13522_v38 = vpop.f32.mrf.mxu0  ;;  %v11793_v17 = vld [vmem:[#allocation2 + $0x7c] sm:$0xf] }
 0x17c   : > { %v1929_v13 = vsel %vm12393_vm14, %v1924_v48, %v1928_v5  ;;  %v1934_v47 = vrot.slane %v1933_v31, 4  ;;  %v2547_v29 = vrot.slane %v2545_v19, 5  ;;  %v9913_v45 = vcombine.low %v13476_v61, %v13482_v53  ;;  %v13528_v48 = vpop.f32.mrf.mxu1 }
 0x17d   : > { %v4135_v33 = vadd.f32 %v10440_v51, %v13497_v54  ;;  %v2532_v16 = vor.u32 %v2531_v18, %v2528_v30  ;;  %v2542_v27 = vor.u32 %v2541_v34, %v2537_v20  ;;  %v10552_v5 = vadd.f32 %v13335_v0, %v13328_v8  ;;  %v13533_v53 = vpop.f32.mrf.mxu0  ;;  %v13537_v8 = vld [vmem:[#allocation2 + $0x84] sm:$0xf] }
 0x17e   : > { %v10443_v3 = vadd.f32 %v13368_v41, %v13362_v26  ;;  %v1939_v40 = vsel %vm12393_vm14, %v1934_v47, %v1938_v46  ;;  %v9786_v23 = vrot.slane %v2117_v59, 9  ;;  %v2237_v31 = vrot.slane %v11793_v17, 5  ;;  %v13539_v0 = vpop.f32.mrf.mxu1  ;;  %v13546_v46 = vld [vmem:[#allocation2 + $0x88] sm:$0xf] }
 0x17f   : > { %v2240_v61 = vrot.slane %v13507_v11, 5  ;;  %v9881_v30 = vcombine.low %v1929_v13, %v1939_v40  ;;  %v2533_v19 = vrot.slane %v2532_v16, 4  ;;  %v2543_v51 = vrot.slane %v2542_v27, 4  ;;  %17364 = vst [vmem:[#allocation27_spill] sm:$0xff] %v13539_v0  ;;  %v13548_v13 = vpop.f32.mrf.mxu0  ;;  %v11794_v16 = vld [vmem:[#allocation2 + $0x78] sm:$0xf] }
 0x180   : > { %v13535_v18 = vadd.f32 %v10552_v5, %v4135_v33  ;;  %v4138_v26 = vadd.f32 %v10443_v3, %v13497_v54  ;;  %v2238_v47 = vsel %vm12332_vm13, %v9786_v23, %v2237_v31  ;;  %v2239_v59 = vrot.slane %v2237_v31, 4  ;;  %v13554_v3 = vpop.f32.mrf.mxu1  ;;  %v2326_v0 = vld [vmem:[#allocation2 + $0x8c] sm:$0x1] }
 0x181   : > { %v10555_v41 = vadd.f32 %v13350_v50, %v13342_v2  ;;  %4519 = vmatmul.mubr.bf16.gmra.mxu0 %v9881_v30  ;;  %v2538_v34 = vsel %vm12393_vm14, %v2533_v19, %v2537_v20  ;;  %v2548_v33 = vsel %vm12393_vm14, %v2543_v51, %v2547_v29  ;;  %v1941_v27 = vshrl.u32 %v11794_v16, 16  ;;  %17365 = vst [vmem:[#allocation28_spill] sm:$0xff] %v13554_v3  ;;  %v13560_v31 = vpop.f32.mrf.mxu0 }
 0x182   : > { %17363 = vst [vmem:[#allocation26_spill] sm:$0xff] %v13535_v18  ;;  %v1944_v5 = vshll.u32 %v11794_v16, 16  ;;  %v9929_v40 = vcombine.low %v2538_v34, %v2548_v33  ;;  %v2241_v2 = vsel %vm12332_vm13, %v2239_v59, %v2240_v61  ;;  %v1950_v23 = vshll.u32 %v11793_v17, 16  ;;  %v13562_v29 = vpop.f32.mrf.mxu1  ;;  %v2118_v33 = vld [vmem:[#allocation2 + $0x84] sm:$0xe] }
 0x183   : > { %v13558_v50 = vadd.f32 %v10555_v41, %v4138_v26  ;;  %v9898_v30 = vcombine.low %v2238_v47, %v2241_v2  ;;  %v1943_v18 = vrot.slane %v1941_v27, 4  ;;  %v1954_v19 = vshrl.u32 %v11793_v17, 16  ;;  %17367 = vst [vmem:[#allocation30_spill] sm:$0xff] %v13562_v29  ;;  %v13567_v26 = vpop.f32.mrf.mxu0 }
 0x184   : > { %v1946_v20 = vrot.slane %v1944_v5, 5  ;;  %4679 = vmatprep.mubr.bf16.mxu1 %v9929_v40  ;;  %v1952_v51 = vrot.slane %v1950_v23, 5  ;;  %v1960_v16 = vshll.u32 %v13507_v11, 16  ;;  %v2550_v34 = vshrl.u32 %v13537_v8, 16  ;;  %17368 = vst [vmem:[#allocation31_spill] sm:$0xff] %v13567_v26  ;;  %v13571_v27 = vpop.f32.mrf.mxu1 }
 0x185   : > { %17366 = vst [vmem:[#allocation29_spill] sm:$0xff] %v13558_v50  ;;  %v2553_v61 = vshll.u32 %v13537_v8, 16  ;;  %4680 = vmatmul.mubr.bf16.gmra.mxu1 %v9913_v45  ;;  %4526 = vmatprep.mubr.bf16.mxu0 %v9898_v30  ;;  %v1956_v47 = vrot.slane %v1954_v19, 4  ;;  %v2559_v41 = vshll.u32 %v13546_v46, 16  ;;  %v2563_v17 = vshrl.u32 %v13546_v46, 16  ;;  %v13577_v19 = vpop.f32.mrf.mxu0 }
 0x186   : > { %v1947_v59 = vor.u32 %v1946_v20, %v1943_v18  ;;  %v1962_v5 = vrot.slane %v1960_v16, 5  ;;  %v2552_v40 = vrot.slane %v2550_v34, 4  ;;  %v2569_v2 = vshll.u32 %v2326_v0, 16  ;;  %v1718_v23 = vld [vmem:[#allocation2 + $0x8c] sm:$0x1] }
 0x187   : > { %v2555_v11 = vrot.slane %v2553_v61, 5  ;;  %v1957_v29 = vor.u32 %v1956_v47, %v1952_v51  ;;  %v2561_v3 = vrot.slane %v2559_v41, 5  ;;  %v2565_v26 = vrot.slane %v2563_v17, 4  ;;  %v11795_v17 = vld [vmem:[#allocation2 + $0x88] sm:$0xf] }
 0x188   : > { %v1948_v50 = vrot.slane %v1947_v59, 4  ;;  %v2571_v30 = vrot.slane %v2569_v2, 5  ;;  %v10446_v18 = vadd.f32 %v13387_v62, %v13379_v60  ;;  %v9914_v20 = vcombine.low %v13537_v8, %v13546_v46  ;;  %v13583_v59 = vpop.f32.mrf.mxu1 }
 0x189   : > { %v2556_v45 = vor.u32 %v2555_v11, %v2552_v40  ;;  %v1958_v34 = vrot.slane %v1957_v29, 4  ;;  %v2566_v0 = vor.u32 %v2565_v26, %v2561_v3  ;;  %v10558_v61 = vadd.f32 %v13370_v32, %v13364_v55  ;;  %v13597_v11 = vld [vmem:[#allocation2 + $0x90] sm:$0xf] }
 0x18a   : > { %v1953_v16 = vsel %vm12393_vm14, %v1948_v50, %v1952_v51  ;;  %v4143_v41 = vadd.f32 %v10446_v18, %v13497_v54  ;;  %v10449_v60 = vadd.f32 %v13405_v24, %v13398_v10  ;;  %v9787_v62 = vrot.slane %v2118_v33, 9  ;;  %v13590_v51 = vpop.f32.mrf.mxu1  ;;  %v13599_v10 = vpop.f32.mrf.mxu0 }
 0x18b   : > { %v2557_v47 = vrot.slane %v2556_v45, 4  ;;  %v1963_v8 = vsel %vm12393_vm14, %v1958_v34, %v1962_v5  ;;  %v2567_v46 = vrot.slane %v2566_v0, 4  ;;  %v2244_v50 = vrot.slane %v11795_v17, 5  ;;  %v13607_v45 = vld [vmem:[#allocation2 + $0x94] sm:$0xf] }
 0x18c   : > { %v2247_v29 = vrot.slane %v1718_v23, 5  ;;  %v9882_v26 = vcombine.low %v1953_v16, %v1963_v8  ;;  %v13594_v32 = vadd.f32 %v10558_v61, %v4143_v41  ;;  %v4146_v40 = vadd.f32 %v10449_v60, %v13497_v54  ;;  %v11796_v16 = vld [vmem:[#allocation2 + $0x84] sm:$0xf]  ;;  %v13611_v41 = vpop.f32.mrf.mxu1 }
 0x18d   : > { %v2562_v55 = vsel %vm12393_vm14, %v2557_v47, %v2561_v3  ;;  %v2572_v24 = vsel %vm12393_vm14, %v2567_v46, %v2571_v30  ;;  %v2245_v33 = vsel %vm12332_vm13, %v9787_v62, %v2244_v50  ;;  %v2246_v5 = vrot.slane %v2244_v50, 4  ;;  %v2327_v3 = vld [vmem:[#allocation2 + $0x98] sm:$0x1]  ;;  %v13609_v47 = vpop.f32.mrf.mxu0 }
 0x18e   : > { %17369 = vst [vmem:[#allocation32_spill] sm:$0xff] %v13594_v32  ;;  %v10561_v2 = vadd.f32 %v13394_v7, %v13381_v4  ;;  %4527 = vmatmul.mubr.bf16.gmra.mxu0 %v9882_v26  ;;  %v9930_v18 = vcombine.low %v2562_v55, %v2572_v24  ;;  %v1965_v34 = vshrl.u32 %v11796_v16, 16  ;;  %v1968_v0 = vshll.u32 %v11796_v16, 16 }
 0x18f   : > { %v1974_v61 = vshll.u32 %v11795_v17, 16  ;;  %v2248_v30 = vsel %vm12332_vm13, %v2246_v5, %v2247_v29  ;;  %v1978_v62 = vshrl.u32 %v11795_v17, 16  ;;  %v1984_v4 = vshll.u32 %v1718_v23, 16  ;;  %v13617_v26 = vpop.f32.mrf.mxu0  ;;  %v13625_v5 = vpop.f32.mrf.mxu1 }
 0x190   : > { %v13615_v60 = vadd.f32 %v10561_v2, %v4146_v40  ;;  %4687 = vmatprep.mubr.bf16.mxu1 %v9930_v18  ;;  %v9899_v7 = vcombine.low %v2245_v33, %v2248_v30  ;;  %v1967_v8 = vrot.slane %v1965_v34, 4  ;;  %v1970_v46 = vrot.slane %v1968_v0, 5  ;;  %v2119_v0 = vld [vmem:[#allocation2 + $0x90] sm:$0xe] }
 0x191   : > { %v1976_v50 = vrot.slane %v1974_v61, 5  ;;  %4688 = vmatmul.mubr.bf16.gmra.mxu1 %v9914_v20  ;;  %v1980_v55 = vrot.slane %v1978_v62, 4  ;;  %v1986_v24 = vrot.slane %v1984_v4, 5  ;;  %v2574_v16 = vshrl.u32 %v13597_v11, 16  ;;  %v13623_v33 = vpop.f32.mrf.mxu0 }
 0x192   : > { %17370 = vst [vmem:[#allocation33_spill] sm:$0xff] %v13615_v60  ;;  %v2577_v32 = vshll.u32 %v13597_v11, 16  ;;  %4534 = vmatprep.mubr.bf16.mxu0 %v9899_v7  ;;  %v1971_v29 = vor.u32 %v1970_v46, %v1967_v8  ;;  %v2583_v40 = vshll.u32 %v13607_v45, 16  ;;  %v2587_v23 = vshrl.u32 %v13607_v45, 16  ;;  %v1719_v7 = vld [vmem:[#allocation2 + $0x98] sm:$0x1] }
 0x193   : > { %v2593_v17 = vshll.u32 %v2327_v3, 16  ;;  %v1981_v2 = vor.u32 %v1980_v55, %v1976_v50  ;;  %v2576_v18 = vrot.slane %v2574_v16, 4  ;;  %v10452_v34 = vadd.f32 %v13422_v25, %v13413_v12  ;;  %v13629_v8 = vpop.f32.mrf.mxu0 }
 0x194   : > { %v2579_v20 = vrot.slane %v2577_v32, 5  ;;  %v1972_v61 = vrot.slane %v1971_v29, 4  ;;  %v2585_v30 = vrot.slane %v2583_v40, 5  ;;  %v2589_v62 = vrot.slane %v2587_v23, 4  ;;  %v13642_v40 = vpop.f32.mrf.mxu1 }
 0x195   : > { %v2595_v4 = vrot.slane %v2593_v17, 5  ;;  %v1982_v46 = vrot.slane %v1981_v2, 4  ;;  %v4151_v60 = vadd.f32 %v10452_v34, %v13497_v54  ;;  %v9915_v55 = vcombine.low %v13597_v11, %v13607_v45  ;;  %v13640_v29 = vpop.f32.mrf.mxu0  ;;  %v11797_v11 = vld [vmem:[#allocation2 + $0x94] sm:$0xf] }
 0x196   : > { %v2580_v3 = vor.u32 %v2579_v20, %v2576_v18  ;;  %v1977_v32 = vsel %vm12393_vm14, %v1972_v61, %v1976_v50  ;;  %v2590_v16 = vor.u32 %v2589_v62, %v2585_v30  ;;  %v10564_v12 = vadd.f32 %v13425_v15, %v13411_v56  ;;  %v13649_v56 = vld [vmem:[#allocation2 + $0x9c] sm:$0xf]  ;;  %v13657_v61 = vld [vmem:[#allocation2 + $0xa0] sm:$0xf] }
 0x197   : > { %v10455_v25 = vadd.f32 %v13436_v63, %v13430_v42  ;;  %v1987_v23 = vsel %vm12393_vm14, %v1982_v46, %v1986_v24  ;;  %v9788_v2 = vrot.slane %v2119_v0, 9  ;;  %v2251_v45 = vrot.slane %v11797_v11, 5  ;;  %v13651_v42 = vpop.f32.mrf.mxu1  ;;  %v11798_v46 = vld [vmem:[#allocation2 + $0x90] sm:$0xf] }
 0x198   : > { %v2581_v17 = vrot.slane %v2580_v3, 4  ;;  %v9883_v18 = vcombine.low %v1977_v32, %v1987_v23  ;;  %v2591_v50 = vrot.slane %v2590_v16, 4  ;;  %v13646_v20 = vadd.f32 %v10564_v12, %v4151_v60  ;;  %v2328_v16 = vld [vmem:[#allocation2 + $0xa4] sm:$0x1]  ;;  %v13663_v12 = vpop.f32.mrf.mxu0 }
 0x199   : > { %v4154_v15 = vadd.f32 %v10455_v25, %v13497_v54  ;;  %v2252_v24 = vsel %vm12332_vm13, %v9788_v2, %v2251_v45  ;;  %v2253_v34 = vrot.slane %v2251_v45, 4  ;;  %v2254_v0 = vrot.slane %v1719_v7, 5  ;;  %17372 = vst [vmem:[#allocation35_spill] sm:$0xff] %v13663_v12 }
 0x19a   : > { %17371 = vst [vmem:[#allocation34_spill] sm:$0xff] %v13646_v20  ;;  %v2586_v63 = vsel %vm12393_vm14, %v2581_v17, %v2585_v30  ;;  %4535 = vmatmul.mubr.bf16.gmra.mxu0 %v9883_v18  ;;  %v2596_v60 = vsel %vm12393_vm14, %v2591_v50, %v2595_v4  ;;  %v10567_v62 = vadd.f32 %v13452_v21, %v13438_v43  ;;  %v1989_v3 = vshrl.u32 %v11798_v46, 16  ;;  %v13665_v30 = vpop.f32.mrf.mxu1 }
 0x19b   : > { %v1992_v32 = vshll.u32 %v11798_v46, 16  ;;  %v9931_v25 = vcombine.low %v2586_v63, %v2596_v60  ;;  %v2255_v23 = vsel %vm12332_vm13, %v2253_v34, %v2254_v0  ;;  %v1998_v17 = vshll.u32 %v11797_v11, 16  ;;  %v13677_v0 = vpop.f32.mrf.mxu0 }
 0x19c   : > { %v2002_v2 = vshrl.u32 %v11797_v11, 16  ;;  %v9900_v45 = vcombine.low %v2252_v24, %v2255_v23  ;;  %v13669_v18 = vadd.f32 %v10567_v62, %v4154_v15  ;;  %v1991_v4 = vrot.slane %v1989_v3, 4  ;;  %v13672_v12 = vpop.f32.mrf.mxu1  ;;  %v2120_v24 = vld [vmem:[#allocation2 + $0x9c] sm:$0xe] }
 0x19d   : > { %v1994_v50 = vrot.slane %v1992_v32, 5  ;;  %4695 = vmatprep.mubr.bf16.mxu1 %v9931_v25  ;;  %v2000_v43 = vrot.slane %v1998_v17, 5  ;;  %v2008_v46 = vshll.u32 %v1719_v7, 16  ;;  %v2598_v20 = vshrl.u32 %v13649_v56, 16 }
 0x19e   : > { %17373 = vst [vmem:[#allocation36_spill] sm:$0xff] %v13669_v18  ;;  %v2004_v21 = vrot.slane %v2002_v2, 4  ;;  %4696 = vmatmul.mubr.bf16.gmra.mxu1 %v9915_v55  ;;  %4542 = vmatprep.mubr.bf16.mxu0 %v9900_v45  ;;  %v2601_v34 = vshll.u32 %v13649_v56, 16  ;;  %v2607_v11 = vshll.u32 %v13657_v61, 16  ;;  %v2611_v15 = vshrl.u32 %v13657_v61, 16 }
 0x19f   : > { %v1995_v63 = vor.u32 %v1994_v50, %v1991_v4  ;;  %v2010_v62 = vrot.slane %v2008_v46, 5  ;;  %v2600_v3 = vrot.slane %v2598_v20, 4  ;;  %v2617_v7 = vshll.u32 %v2328_v16, 16  ;;  %v13683_v50 = vpop.f32.mrf.mxu1 }
 0x1a0   : > { %v2005_v60 = vor.u32 %v2004_v21, %v2000_v43  ;;  %v2603_v25 = vrot.slane %v2601_v34, 5  ;;  %v2609_v23 = vrot.slane %v2607_v11, 5  ;;  %v2613_v17 = vrot.slane %v2611_v15, 4  ;;  %v13689_v34 = vpop.f32.mrf.mxu0 }
 0x1a1   : > { %v1996_v32 = vrot.slane %v1995_v63, 4  ;;  %v2619_v2 = vrot.slane %v2617_v7, 5  ;;  %v10458_v45 = vadd.f32 %v13458_v37, %v13440_v35  ;;  %v9916_v4 = vcombine.low %v13649_v56, %v13657_v61  ;;  %v1720_v63 = vld [vmem:[#allocation2 + $0xa4] sm:$0x1]  ;;  %v13696_v61 = vpop.f32.mrf.mxu1 }
 0x1a2   : > { %v2006_v55 = vrot.slane %v2005_v60, 4  ;;  %v2604_v46 = vor.u32 %v2603_v25, %v2600_v3  ;;  %v2614_v20 = vor.u32 %v2613_v17, %v2609_v23  ;;  %v10570_v16 = vadd.f32 %v13472_v6, %v13464_v9  ;;  %v11799_v3 = vld [vmem:[#allocation2 + $0xa0] sm:$0xf]  ;;  %v13698_v9 = vpop.f32.mrf.mxu0 }
 0x1a3   : > { %v2001_v21 = vsel %vm12393_vm14, %v1996_v32, %v2000_v43  ;;  %v4159_v35 = vadd.f32 %v10458_v45, %v13497_v54  ;;  %v10461_v37 = vadd.f32 %v13484_v36, %v13468_v39  ;;  %v9789_v56 = vrot.slane %v2120_v24, 9  ;;  %v13705_v17 = vpop.f32.mrf.mxu1  ;;  %v13713_v45 = vld [vmem:[#allocation2 + $0xa8] sm:$0xf] }
 0x1a4   : > { %v2011_v11 = vsel %vm12393_vm14, %v2006_v55, %v2010_v62  ;;  %v2605_v15 = vrot.slane %v2604_v46, 4  ;;  %v2615_v60 = vrot.slane %v2614_v20, 4  ;;  %v2258_v7 = vrot.slane %v11799_v3, 5  ;;  %v11655_v46 = vld [vmem:[#allocation8 + $0x78] sm:$0xff]  }
 0x1a5   : > { %v9884_v43 = vcombine.low %v2001_v21, %v2011_v11  ;;  %v13700_v6 = vadd.f32 %v10570_v16, %v4159_v35  ;;  %v4162_v32 = vadd.f32 %v10461_v37, %v13497_v54  ;;  %v2261_v62 = vrot.slane %v1720_v63, 5  ;;  %v13715_v21 = vpop.f32.mrf.mxu0  ;;  %v11656_v20 = vld [vmem:[#allocation8 + $0x38] sm:$0xff]   ;;  %v11800_v16 = vld [vmem:[#allocation2 + $0x9c] sm:$0xf]  ;;  %10894 = vmatprep.subr.bf16.mxu1 %v11655_v46 }
 0x1a6   : > { %v10573_v25 = vadd.f32 %v13486_v14, %v13478_v28  ;;  %v2610_v39 = vsel %vm12393_vm14, %v2605_v15, %v2609_v23  ;;  %v2620_v36 = vsel %vm12393_vm14, %v2615_v60, %v2619_v2  ;;  %v2259_v24 = vsel %vm12332_vm13, %v9789_v56, %v2258_v7  ;;  %v13721_v56 = vld [vmem:[#allocation2 + $0xac] sm:$0xf]  ;;  %v13725_v60 = vpop.f32.mrf.mxu1  ;;  %10895 = vmatpush3.bf16.msra.mxu1 %v11656_v20 }
 0x1a7   : > { %17374 = vst [vmem:[#allocation37_spill] sm:$0xff] %v13700_v6  ;;  %4543 = vmatmul.mubr.bf16.gmra.mxu0 %v9884_v43  ;;  %v2260_v55 = vrot.slane %v2258_v7, 4  ;;  %v9932_v28 = vcombine.low %v2610_v39, %v2620_v36  ;;  %v2013_v11 = vshrl.u32 %v11800_v16, 16  ;;  %v2016_v35 = vshll.u32 %v11800_v16, 16  ;;  %17376 = vst [vmem:[#allocation39_spill] sm:$0xff] %v13721_v56  ;;  %v13723_v15 = vpop.f32.mrf.mxu0 }
 0x1a8   : > { %v13717_v14 = vadd.f32 %v10573_v25, %v4162_v32  ;;  %v2022_v2 = vshll.u32 %v11799_v3, 16  ;;  %v2026_v37 = vshrl.u32 %v11799_v3, 16  ;;  %v2032_v43 = vshll.u32 %v1720_v63, 16  ;;  %v13727_v39 = vld [vmem:[#allocation2 + $0xb0] sm:$0x1] }
 0x1a9   : > { %v2262_v23 = vsel %vm12332_vm13, %v2260_v55, %v2261_v62  ;;  %4703 = vmatprep.mubr.bf16.mxu1 %v9932_v28  ;;  %v2015_v32 = vrot.slane %v2013_v11, 4  ;;  %v2018_v25 = vrot.slane %v2016_v35, 5  ;;  %17377 = vst [vmem:[#allocation40_spill] sm:$0xff] %v13727_v39  ;;  %v2622_v36 = vshrl.u32 %v13713_v45, 16  ;;  %v13731_v16 = vpop.f32.mrf.mxu0 }
 0x1aa   : > { %17375 = vst [vmem:[#allocation38_spill] sm:$0xff] %v13717_v14  ;;  %v9901_v7 = vcombine.low %v2259_v24, %v2262_v23  ;;  %4704 = vmatmul.mubr.bf16.gmra.mxu1 %v9916_v4  ;;  %v2024_v62 = vrot.slane %v2022_v2, 5  ;;  %v2028_v3 = vrot.slane %v2026_v37, 4  ;;  %v2034_v63 = vrot.slane %v2032_v43, 5  ;;  %v13740_v2 = vpop.f32.mrf.mxu1 }
 0x1ab   : > { %v2625_v55 = vshll.u32 %v13713_v45, 16  ;;  %v2019_v14 = vor.u32 %v2018_v25, %v2015_v32  ;;  %v2624_v46 = vrot.slane %v2622_v36, 4  ;;  %v2631_v24 = vshll.u32 %v13721_v56, 16  ;;  %v13738_v20 = vpop.f32.mrf.mxu0  ;;  %v2121_v25 = vld [vmem:[#allocation2 + $0xa8] sm:$0xe] }
 0x1ac   : > { %4550 = vmatprep.mubr.bf16.mxu0 %v9901_v7  ;;  %v2635_v28 = vshrl.u32 %v13721_v56, 16  ;;  %v2029_v11 = vor.u32 %v2028_v3, %v2024_v62  ;;  %v2641_v23 = vshll.u32 %v13727_v39, 16  ;;  %v10464_v4 = vadd.f32 %v13513_v52, %v13502_v58  ;;  %v13747_v39 = vpop.f32.mrf.mxu1 }
 0x1ad   : > { %v2627_v35 = vrot.slane %v2625_v55, 5  ;;  %v2020_v37 = vrot.slane %v2019_v14, 4  ;;  %v2633_v43 = vrot.slane %v2631_v24, 5  ;;  %v9917_v32 = vcombine.low %v13713_v45, %v13721_v56  ;;  %v13745_v18 = vpop.f32.mrf.mxu0  ;;  %v1721_v24 = vld [vmem:[#allocation2 + $0xb0] sm:$0x1] }
 0x1ae   : > { %v2637_v7 = vrot.slane %v2635_v28, 4  ;;  %v2030_v36 = vrot.slane %v2029_v11, 4  ;;  %v2643_v3 = vrot.slane %v2641_v23, 5  ;;  %v4167_v55 = vadd.f32 %v10464_v4, %v13497_v54  ;;  %17378 = vst [vmem:[#allocation41_spill] sm:$0xff] %v13745_v18  ;;  %v13757_v4 = vpop.f32.mrf.mxu1 }
 0x1af   : > { %v2628_v6 = vor.u32 %v2627_v35, %v2624_v46  ;;  %v2025_v58 = vsel %vm12393_vm14, %v2020_v37, %v2024_v62  ;;  %v10576_v14 = vadd.f32 %v13509_v22, %v13499_v44  ;;  %v10467_v45 = vadd.f32 %v13533_v53, %v13522_v38  ;;  %v11801_v35 = vld [vmem:[#allocation2 + $0xac] sm:$0xf]  ;;  %v13762_v44 = vpop.f32.mrf.mxu0 }
 0x1b0   : > { %v2638_v52 = vor.u32 %v2637_v7, %v2633_v43  ;;  %v2035_v46 = vsel %vm12393_vm14, %v2030_v36, %v2034_v63  ;;  %v9790_v11 = vrot.slane %v2121_v25, 9  ;;  %v2265_v23 = vrot.slane %v11801_v35, 5  ;;  %v11802_v25 = vld [vmem:[#allocation2 + $0xa8] sm:$0xf] }
 0x1b1   : > { %v2629_v28 = vrot.slane %v2628_v6, 4  ;;  %v9885_v56 = vcombine.low %v2025_v58, %v2035_v46  ;;  %v13759_v62 = vadd.f32 %v10576_v14, %v4167_v55  ;;  %v4170_v37 = vadd.f32 %v10467_v45, %v13497_v54  ;;  %v13772_v58 = vld [vmem:[#allocation2 + $0xb4] sm:$0xf] }
 0x1b2   : > { %v2639_v18 = vrot.slane %v2638_v52, 4  ;;  %v2266_v38 = vsel %vm12332_vm13, %v9790_v11, %v2265_v23  ;;  %v2267_v53 = vrot.slane %v2265_v23, 4  ;;  %v2268_v6 = vrot.slane %v1721_v24, 5  ;;  %v13774_v52 = vpop.f32.mrf.mxu1 }
 0x1b3   : > { %17379 = vst [vmem:[#allocation42_spill] sm:$0xff] %v13759_v62  ;;  %v2634_v22 = vsel %vm12393_vm14, %v2629_v28, %v2633_v43  ;;  %4551 = vmatmul.mubr.bf16.gmra.mxu0 %v9885_v56  ;;  %v10579_v7 = vadd.f32 %v13528_v48, %v13517_v49  ;;  %v2037_v36 = vshrl.u32 %v11802_v25, 16  ;;  %v2040_v55 = vshll.u32 %v11802_v25, 16  ;;  %v13778_v56 = vld [vmem:[#allocation2 + $0xb8] sm:$0xf] }
 0x1b4   : > { %v2644_v63 = vsel %vm12393_vm14, %v2639_v18, %v2643_v3  ;;  %v2269_v14 = vsel %vm12332_vm13, %v2267_v53, %v2268_v6  ;;  %v2046_v45 = vshll.u32 %v11801_v35, 16  ;;  %v2050_v46 = vshrl.u32 %v11801_v35, 16  ;;  %17380 = vst [vmem:[#allocation43_spill] sm:$0xff] %v13778_v56  ;;  %v13782_v48 = vld [vmem:[#allocation2 + $0xbc] sm:$0x1]  ;;  %v13784_v11 = vpop.f32.mrf.mxu0 }
 0x1b5   : > { %v9933_v43 = vcombine.low %v2634_v22, %v2644_v63  ;;  %v9902_v28 = vcombine.low %v2266_v38, %v2269_v14  ;;  %v13780_v18 = vadd.f32 %v10579_v7, %v4170_v37  ;;  %v2039_v3 = vrot.slane %v2037_v36, 4  ;;  %17382 = vst [vmem:[#allocation45_spill] sm:$0xff] %v13782_v48 }
 0x1b6   : > { %v2042_v49 = vrot.slane %v2040_v55, 5  ;;  %v2048_v23 = vrot.slane %v2046_v45, 5  ;;  %v2052_v25 = vrot.slane %v2050_v46, 4  ;;  %v2056_v22 = vshll.u32 %v1721_v24, 16  ;;  %v13790_v6 = vpop.f32.mrf.mxu0  ;;  %v13792_v7 = vpop.f32.mrf.mxu1 }
 0x1b7   : > { %17381 = vst [vmem:[#allocation44_spill] sm:$0xff] %v13780_v18  ;;  %4711 = vmatprep.mubr.bf16.mxu1 %v9933_v43  ;;  %v2646_v63 = vshrl.u32 %v13772_v58, 16  ;;  %4558 = vmatprep.mubr.bf16.mxu0 %v9902_v28  ;;  %v2649_v53 = vshll.u32 %v13772_v58, 16  ;;  %v2655_v37 = vshll.u32 %v13778_v56, 16  ;;  %v2659_v38 = vshrl.u32 %v13778_v56, 16  ;;  %17383 = vst [vmem:[#allocation46_spill] sm:$0xff] %v13790_v6 }
 0x1b8   : > { %4712 = vmatmul.mubr.bf16.gmra.mxu1 %v9917_v32  ;;  %v2043_v35 = vor.u32 %v2042_v49, %v2039_v3  ;;  %17384 = vst [vmem:[#allocation47_spill] sm:$0xff] %v13792_v7  ;;  %v2053_v36 = vor.u32 %v2052_v25, %v2048_v23  ;;  %v2058_v55 = vrot.slane %v2056_v22, 5  ;;  %v2665_v24 = vshll.u32 %v13782_v48, 16  ;;  %v2122_v28 = vld [vmem:[#allocation2 + $0xb4] sm:$0xe]  ;;  %v13795_v3 = vpop.f32.mrf.mxu0  ;;  %v13797_v49 = vpop.f32.mrf.mxu1 }
 0x1b9   : > { %v2648_v43 = vrot.slane %v2646_v63, 4  ;;  %v2651_v45 = vrot.slane %v2649_v53, 5  ;;  %v2657_v32 = vrot.slane %v2655_v37, 5  ;;  %v2661_v46 = vrot.slane %v2659_v38, 4  ;;  %17385 = vst [vmem:[#allocation48_spill] sm:$0xff] %v13795_v3  ;;  %17386 = vst [vmem:[#allocation49_spill] sm:$0xff] %v13797_v49 }
 0x1ba   : > { %v2044_v14 = vrot.slane %v2043_v35, 4  ;;  %v2054_v18 = vrot.slane %v2053_v36, 4  ;;  %v2667_v62 = vrot.slane %v2665_v24, 5  ;;  %v10470_v6 = vadd.f32 %v13560_v31, %v13548_v13  ;;  %v17387_v53 = vld [vmem:[#allocation27_spill] sm:$0xff]  ;;  %v17388_v37 = vld [vmem:[#allocation28_spill] sm:$0xff]  ;;  %v13807_v3 = vpop.f32.mrf.mxu1 }
 0x1bb   : > { %v9918_v25 = vcombine.low %v13772_v58, %v13778_v56  ;;  %v2652_v63 = vor.u32 %v2651_v45, %v2648_v43  ;;  %v2662_v35 = vor.u32 %v2661_v46, %v2657_v32  ;;  %v10582_v38 = vadd.f32 %v17388_v37, %v17387_v53  ;;  %v1722_v48 = vld [vmem:[#allocation2 + $0xbc] sm:$0x1]  ;;  %17389 = vst [vmem:[#allocation27_spill] sm:$0xff] %v13807_v3  ;;  %v11657_v49 = vld [vmem:[#allocation8 + $0x70] sm:$0xff]   ;;  %v11803_v46 = vld [vmem:[#allocation2 + $0xb8] sm:$0xf] }
 0x1bc   : > { %v2049_v22 = vsel %vm12393_vm14, %v2044_v14, %v2048_v23  ;;  %v11658_v36 = vld [vmem:[#allocation8 + $0x30] sm:$0xff]   ;;  %v2059_v24 = vsel %vm12393_vm14, %v2054_v18, %v2058_v55  ;;  %v4175_v13 = vadd.f32 %v10470_v6, %v13497_v54  ;;  %v9791_v56 = vrot.slane %v2122_v28, 9  ;;  %v13814_v23 = vpop.f32.mrf.mxu0  ;;  %v13816_v37 = vpop.f32.mrf.mxu1  ;;  %10896 = vmatprep.subr.bf16.mxu1 %v11657_v49  ;;  %v17392_v6 = vld [vmem:[#allocation30_spill] sm:$0xff] }
 0x1bd   : > { %v17390_v31 = vld [vmem:[#allocation31_spill] sm:$0xff]  ;;  %v9886_v43 = vcombine.low %v2049_v22, %v2059_v24  ;;  %v2653_v14 = vrot.slane %v2652_v63, 4  ;;  %v2663_v45 = vrot.slane %v2662_v35, 4  ;;  %v2272_v53 = vrot.slane %v11803_v46, 5  ;;  %10897 = vmatpush3.bf16.msra.mxu1 %v11658_v36  ;;  %v11804_v24 = vld [vmem:[#allocation2 + $0xb4] sm:$0xf] }
 0x1be   : > { %v10473_v58 = vadd.f32 %v13577_v19, %v17390_v31  ;;  %v13818_v3 = vadd.f32 %v10582_v38, %v4175_v13  ;;  %v2275_v55 = vrot.slane %v1722_v48, 5  ;;  %v10585_v7 = vadd.f32 %v13571_v27, %v17392_v6  ;;  %v839_v63 = vld [vmem:[#allocation2 + $0xc8] sm:$0x1]  ;;  %v13831_v27 = vld [vmem:[#allocation2 + $0xc0] sm:$0xf] }
 0x1bf   : > { %4559 = vmatmul.mubr.bf16.gmra.mxu0 %v9886_v43  ;;  %v2658_v19 = vsel %vm12393_vm14, %v2653_v14, %v2657_v32  ;;  %v2668_v28 = vsel %vm12393_vm14, %v2663_v45, %v2667_v62  ;;  %v2273_v22 = vsel %vm12332_vm13, %v9791_v56, %v2272_v53  ;;  %v2274_v49 = vrot.slane %v2272_v53, 4  ;;  %v13837_v14 = vld [vmem:[#allocation2 + $0xc4] sm:$0xf] }
 0x1c0   : > { %17391 = vst [vmem:[#allocation28_spill] sm:$0xff] %v13818_v3  ;;  %v4178_v18 = vadd.f32 %v10473_v58, %v13497_v54  ;;  %v9934_v35 = vcombine.low %v2658_v19, %v2668_v28  ;;  %v2061_v13 = vshrl.u32 %v11804_v24, 16  ;;  %v2064_v31 = vshll.u32 %v11804_v24, 16  ;;  %v13833_v36 = vpop.f32.mrf.mxu0  ;;  %v13839_v56 = vpop.f32.mrf.mxu1 }
 0x1c1   : > { %v2276_v32 = vsel %vm12332_vm13, %v2274_v49, %v2275_v55  ;;  %v2070_v58 = vshll.u32 %v11803_v46, 16  ;;  %v2074_v62 = vshrl.u32 %v11803_v46, 16  ;;  %v2080_v43 = vshll.u32 %v1722_v48, 16  ;;  %17394 = vst [vmem:[#allocation30_spill] sm:$0xff] %v13839_v56 }
 0x1c2   : > { %v13829_v38 = vadd.f32 %v10585_v7, %v4178_v18  ;;  %4719 = vmatprep.mubr.bf16.mxu1 %v9934_v35  ;;  %v9903_v7 = vcombine.low %v2273_v22, %v2276_v32  ;;  %v2063_v45 = vrot.slane %v2061_v13, 4  ;;  %v2066_v53 = vrot.slane %v2064_v31, 5  ;;  %v17395_v18 = vld [vmem:[#allocation24_spill] sm:$0xff]  ;;  %v13845_v24 = vpop.f32.mrf.mxu0  ;;  %v13851_v22 = vpop.f32.mrf.mxu1 }
 0x1c3   : > { %v17396_v6 = vrot.slane %v17395_v18, 4  ;;  %4720 = vmatmul.mubr.bf16.gmra.mxu1 %v9918_v25  ;;  %v2072_v48 = vrot.slane %v2070_v58, 5  ;;  %v2076_v55 = vrot.slane %v2074_v62, 4  ;;  %v2670_v49 = vshrl.u32 %v13831_v27, 16  ;;  %17398 = vst [vmem:[#allocation24_spill] sm:$0xff] %v13851_v22 }
 0x1c4   : > { %17393 = vst [vmem:[#allocation31_spill] sm:$0xff] %v13829_v38  ;;  %v13847_v38 = vld [vmem:[#allocation2 + $0x2c] sm:$0x1]  ;;  %4566 = vmatprep.mubr.bf16.mxu0 %v9903_v7  ;;  %v2067_v35 = vor.u32 %v2066_v53, %v2063_v45  ;;  %v2673_v13 = vshll.u32 %v13831_v27, 16  ;;  %v2683_v31 = vshrl.u32 %v13837_v14, 16  ;;  %v13856_v32 = vpop.f32.mrf.mxu0  ;;  %v10476_v58 = vadd.f32 %v13609_v47, %v13599_v10 }
 0x1c5   : > { %v840_v28 = vsel %vm12251_vm7, %v17396_v6, %v839_v63  ;;  %v2679_v63 = vshll.u32 %v13837_v14, 16  ;;  %v2077_v18 = vor.u32 %v2076_v55, %v2072_v48  ;;  %v2082_v6 = vrot.slane %v2080_v43, 5  ;;  %v2123_v62 = vld [vmem:[#allocation2 + $0xc0] sm:$0xe] }
 0x1c6   : > { %841 = vst [vmem:[#allocation2 + $0xc8] sm:$0x1] %v840_v28  ;;  %v2672_v25 = vrot.slane %v2670_v49, 4  ;;  %v13860_v28 = vpop.f32.mrf.mxu1  ;;  %v2068_v46 = vrot.slane %v2067_v35, 4  ;;  %v2675_v7 = vrot.slane %v2673_v13, 5  ;;  %v2685_v53 = vrot.slane %v2683_v31, 4  ;;  %v13864_v3 = vpop.f32.mrf.mxu0 }
 0x1c7   : > { %17399 = vst [vmem:[#allocation50_spill] sm:$0xff] %v13860_v28  ;;  %v13862_v45 = vrot.slane %v2679_v63, 5  ;;  %17400 = vst [vmem:[#allocation51_spill] sm:$0xff] %v13864_v3  ;;  %v2078_v22 = vrot.slane %v2077_v18, 4  ;;  %v4183_v56 = vadd.f32 %v10476_v58, %v13497_v54  ;;  %v10588_v43 = vadd.f32 %v13590_v51, %v13583_v59  ;;  %v13881_v54 = vld [vmem:[%s17270_s2] ss:$0 sm:$0xff] }
 0x1c8   : > { %v10479_v55 = vadd.f32 %v13623_v33, %v13617_v26  ;;  %v2073_v10 = vsel %vm12393_vm14, %v2068_v46, %v2072_v48  ;;  %v2676_v47 = vor.u32 %v2675_v7, %v2672_v25  ;;  %v9792_v35 = vrot.slane %v2123_v62, 9  ;;  %v11807_v51 = vld [vmem:[#allocation2 + $0xc4] sm:$0xf]  ;;  %v850_v33 = vld [vmem:[#allocation2 + $0xcc] sm:$0xf]  ;;  %v13884_v46 = vpop.f32.mrf.mxu1  ;;  %v17404_v58 = vld [vmem:[#allocation25_spill] sm:$0xff] }
 0x1c9   : > { %v2686_v49 = vor.u32 %v2685_v53, %v13862_v45  ;;  %v2083_v13 = vsel %vm12393_vm14, %v2078_v22, %v2082_v6  ;;  %v13876_v63 = vadd.f32 %v10588_v43, %v4183_v56  ;;  %v2279_v26 = vrot.slane %v11807_v51, 5  ;;  %17402 = vst [vmem:[#allocation53_spill] sm:$0xff] %v13884_v46  ;;  %v854_v6 = vld [vmem:[#allocation2 + $0xd4] sm:$0x1] }
 0x1ca   : > { %v4186_v59 = vadd.f32 %v13881_v54, %v10479_v55  ;;  %v9887_v48 = vcombine.low %v2073_v10, %v2083_v13  ;;  %v13886_v18 = vrot.slane %v2676_v47, 4  ;;  %v10591_v22 = vadd.f32 %v13625_v5, %v13611_v41  ;;  %v13892_v25 = vpop.f32.mrf.mxu0  ;;  %v11808_v55 = vld [vmem:[#allocation2 + $0xc0] sm:$0xf]  ;;  %v13903_v47 = vld [vmem:[#allocation2 + $0xd0] sm:$0xf] }
 0x1cb   : > { %17401 = vst [vmem:[#allocation52_spill] sm:$0xff] %v13876_v63  ;;  %17403 = vst [vmem:[#allocation54_spill] sm:$0xff] %v13892_v25  ;;  %v13897_v53 = vrot.slane %v2686_v49, 4  ;;  %v13901_v43 = vsel %vm12332_vm13, %v9792_v35, %v2279_v26  ;;  %v2085_v10 = vshrl.u32 %v11808_v55, 16  ;;  %v2281_v41 = vrot.slane %v2279_v26, 4  ;;  %v17409_v46 = vld [vmem:[#allocation20_spill] sm:$0xff] }
 0x1cc   : > { %4567 = vmatmul.mubr.bf16.gmra.mxu0 %v9887_v48  ;;  %v13905_v5 = vadd.f32 %v10591_v22, %v4186_v59  ;;  %v2088_v13 = vshll.u32 %v11808_v55, 16  ;;  %v2094_v56 = vshll.u32 %v11807_v51, 16  ;;  %v13907_v63 = vpop.f32.mrf.mxu0  ;;  %v2098_v49 = vshrl.u32 %v11807_v51, 16  ;;  %v2717_v48 = vld [vmem:[#allocation2 + $0x18] sm:$0xe] }
 0x1cd   : > { %v1047_v31 = vld [vmem:[#allocation2 + $0xc8] sm:$0x1]  ;;  %v17410_v28 = vrot.slane %v17409_v46, 4  ;;  %v2703_v22 = vshll.u32 %v13903_v47, 16  ;;  %v2707_v51 = vshrl.u32 %v13903_v47, 16  ;;  %v10482_v46 = vadd.f32 %v13640_v29, %v13629_v8 }
 0x1ce   : > { %v1048_v7 = vsel %vm12293_vm10, %v17404_v58, %v1047_v31  ;;  %17406 = vst [vmem:[#allocation25_spill] sm:$0xff] %v13905_v5  ;;  %v2087_v31 = vrot.slane %v2085_v10, 4  ;;  %v17407_v58 = vld [vmem:[#allocation19_spill] sm:$0xff]  ;;  %v2090_v59 = vrot.slane %v2088_v13, 5  ;;  %v13918_v26 = vrot.slane %v2094_v56, 5  ;;  %v13922_v55 = vpop.f32.mrf.mxu0 }
 0x1cf   : > { %1049 = vst [vmem:[#allocation2 + $0xc8] sm:$0x1] %v1048_v7  ;;  %v851_v35 = vsel %vm12242_vm6, %v17407_v58, %v850_v33  ;;  %v855_v3 = vsel %vm12251_vm7, %v17410_v28, %v854_v6  ;;  %v13916_v7 = vpop.f32.mrf.mxu1  ;;  %17412 = vst [vmem:[#allocation20_spill] sm:$0xff] %v13922_v55  ;;  %v2100_v33 = vrot.slane %v2098_v49, 4  ;;  %v10594_v28 = vadd.f32 %v13651_v42, %v13642_v40  ;;  %v17413_v6 = vld [vmem:[#allocation35_spill] sm:$0xff] }
 0x1d0   : > { %17411 = vst [vmem:[#allocation19_spill] sm:$0xff] %v13916_v7  ;;  %852 = vst [vmem:[#allocation2 + $0xcc] sm:$0xf] %v851_v35  ;;  %v10485_v10 = vadd.f32 %v13677_v0, %v17413_v6  ;;  %v2091_v13 = vor.u32 %v2090_v59, %v2087_v31  ;;  %v13934_v58 = vrot.slane %v2707_v51, 4  ;;  %v9793_v35 = vrot.slane %v2717_v48, 9  ;;  %v13947_v51 = vpop.f32.mrf.mxu0 }
 0x1d1   : > { %856 = vst [vmem:[#allocation2 + $0xd4] sm:$0x1] %v855_v3  ;;  %v13930_v56 = vpop.f32.mrf.mxu1  ;;  %v13932_v3 = vrot.slane %v2703_v22, 5  ;;  %v2101_v25 = vor.u32 %v2100_v33, %v13918_v26  ;;  %v4191_v49 = vadd.f32 %v13881_v54, %v10482_v46  ;;  %v11809_v29 = vld [vmem:[#allocation2 + $0x1c] sm:$0xf]  ;;  %v2682_v42 = vsel %vm12393_vm14, %v13886_v18, %v13862_v45  ;;  %17416 = vst [vmem:[#allocation56_spill] sm:$0xff] %v13947_v51 }
 0x1d2   : > { %17414 = vst [vmem:[#allocation35_spill] sm:$0xff] %v13930_v56  ;;  %v4194_v8 = vadd.f32 %v13881_v54, %v10485_v10  ;;  %v2783_v5 = vrot.slane %v11809_v29, 5  ;;  %v2092_v0 = vrot.slane %v2091_v13, 4  ;;  %v11810_v31 = vld [vmem:[#allocation2 + $0x20] sm:$0x1]  ;;  %v10597_v48 = vadd.f32 %v13672_v12, %v13665_v30 }
 0x1d3   : > { %v13939_v40 = vpop.f32.mrf.mxu1  ;;  %v2786_v59 = vrot.slane %v11810_v31, 5  ;;  %v2718_v22 = vld [vmem:[#allocation2 + $0x24] sm:$0xe]  ;;  %v2102_v6 = vrot.slane %v2101_v25, 4  ;;  %v2710_v10 = vor.u32 %v13934_v58, %v13932_v3  ;;  %v13953_v29 = vadd.f32 %v10594_v28, %v4191_v49 }
 0x1d4   : > { %17415 = vst [vmem:[#allocation55_spill] sm:$0xff] %v13939_v40  ;;  %v2785_v40 = vrot.slane %v2783_v5, 4  ;;  %v2784_v12 = vsel %vm12332_vm13, %v9793_v35, %v2783_v5  ;;  %v11659_v31 = vld [vmem:[#allocation8 + $0x68] sm:$0xff]   ;;  %v2097_v25 = vsel %vm12393_vm14, %v2092_v0, %v13918_v26  ;;  %v13965_v49 = vadd.f32 %v10597_v48, %v4194_v8  ;;  %v17424_v48 = vld [vmem:[#allocation23_spill] sm:$0xff] }
 0x1d5   : > { %17418 = vst [vmem:[#allocation58_spill] sm:$0xff] %v13953_v29  ;;  %v13958_v30 = vpop.f32.mrf.mxu1  ;;  %v11660_v51 = vld [vmem:[#allocation8 + $0x28] sm:$0xff]   ;;  %v9794_v29 = vrot.slane %v2718_v22, 9  ;;  %10898 = vmatprep.subr.bf16.mxu1 %v11659_v31  ;;  %v17427_v31 = vrot.slane %v13847_v38, 5  ;;  %v10603_v38 = vadd.f32 %v13725_v60, %v13705_v17 }
 0x1d6   : > { %v13949_v33 = vld [vmem:[#allocation2 + $0xc8] sm:$0x1]  ;;  %17419 = vst [vmem:[#allocation59_spill] sm:$0xff] %v13958_v30  ;;  %v2787_v28 = vsel %vm12332_vm13, %v2785_v40, %v2786_v59  ;;  %v13973_v7 = vpop.f32.mrf.mxu0  ;;  %v17422_v40 = vld [vmem:[#allocation22_spill] sm:$0xff]  ;;  %10899 = vmatpush3.bf16.msra.mxu1 %v11660_v51 }
 0x1d7   : > { %17417 = vst [vmem:[#allocation57_spill] sm:$0xff] %v13949_v33  ;;  %v1723_v46 = vld [vmem:[#allocation2 + $0xc8] sm:$0x1]  ;;  %v2689_v45 = vshll.u32 %v13949_v33, 16  ;;  %v1056_v55 = vld [vmem:[#allocation2 + $0xcc] sm:$0x1]  ;;  %v9937_v59 = vcombine.low %v2784_v12, %v2787_v28 }
 0x1d8   : > { %v2282_v18 = vrot.slane %v1723_v46, 5  ;;  %v2104_v13 = vshll.u32 %v1723_v46, 16  ;;  %v1059_v58 = vld [vmem:[#allocation2 + $0xd4] sm:$0x1]  ;;  %v17420_v33 = vld [vmem:[#allocation21_spill] sm:$0xff]  ;;  %v17423_v8 = vrot.slane %v17422_v40, 4 }
 0x1d9   : > { %v2691_v46 = vrot.slane %v2689_v45, 5  ;;  %v17421_v30 = vrot.slane %v17420_v33, 4  ;;  %v2719_v33 = vld [vmem:[#allocation2 + $0x30] sm:$0xe]  ;;  %v11811_v28 = vld [vmem:[#allocation2 + $0x34] sm:$0xf] }
 0x1da   : > { %v2283_v5 = vsel %vm12332_vm13, %v2281_v41, %v2282_v18  ;;  %v2106_v35 = vrot.slane %v2104_v13, 5  ;;  %v1060_v0 = vsel %vm12293_vm10, %v17423_v8, %v1059_v58  ;;  %v17425_v41 = vrot.slane %v17424_v48, 5  ;;  %v13995_v13 = vpop.f32.mrf.mxu0  ;;  %v2721_v8 = vld [vmem:[#allocation2 + $0x48] sm:$0xe]  ;;  %v11813_v17 = vld [vmem:[#allocation2 + $0x40] sm:$0xf] }
 0x1db   : > { %v1057_v56 = vsel %vm12251_vm7, %v17421_v30, %v1056_v55  ;;  %v9904_v26 = vcombine.low %v13901_v43, %v2283_v5  ;;  %v2692_v55 = vsel %vm12393_vm14, %v13897_v53, %v2691_v46  ;;  %1061 = vst [vmem:[#allocation2 + $0xd4] sm:$0x1] %v1060_v0  ;;  %v10488_v18 = vadd.f32 %v13698_v9, %v13689_v34  ;;  %v2720_v30 = vld [vmem:[#allocation2 + $0x3c] sm:$0xe] }
 0x1dc   : > { %1058 = vst [vmem:[#allocation2 + $0xcc] sm:$0x1] %v1057_v56  ;;  %v13984_v22 = vsel %vm12332_vm13, %v9794_v29, %v17425_v41  ;;  %v2107_v43 = vsel %vm12393_vm14, %v2102_v6, %v2106_v35  ;;  %v17426_v56 = vmov %v17425_v41  ;;  %v13997_v29 = vpop.f32.mrf.mxu1  ;;  %v9935_v12 = vcombine.low %v2682_v42, %v2692_v55  ;;  %v14008_v42 = vpop.f32.mrf.mxu0 }
 0x1dd   : > { %v2792_v45 = vrot.slane %v17426_v56, 4  ;;  %4574 = vmatprep.mubr.bf16.mxu0 %v9904_v26  ;;  %v9888_v51 = vcombine.low %v2097_v25, %v2107_v43  ;;  %v10600_v53 = vadd.f32 %v13696_v61, %v13683_v50  ;;  %v10491_v6 = vadd.f32 %v13723_v15, %v13715_v21  ;;  %v11812_v21 = vld [vmem:[#allocation2 + $0x38] sm:$0x1]  ;;  %v11814_v43 = vld [vmem:[#allocation2 + $0x44] sm:$0x1] }
 0x1de   : > { %v4199_v34 = vadd.f32 %v13881_v54, %v10488_v18  ;;  %v9795_v9 = vrot.slane %v2719_v33, 9  ;;  %v2797_v46 = vrot.slane %v11811_v28, 5  ;;  %v14010_v25 = vpop.f32.mrf.mxu1  ;;  %4727 = vmatprep.mubr.bf16.mxu1 %v9935_v12  ;;  %v14012_v50 = vrot.slane %v2710_v10, 4 }
 0x1df   : > { %v2794_v58 = vsel %vm12332_vm13, %v2792_v45, %v17427_v31  ;;  %4575 = vmatmul.mubr.bf16.gmra.mxu0 %v9888_v51  ;;  %v4202_v61 = vadd.f32 %v13881_v54, %v10491_v6  ;;  %v2800_v15 = vrot.slane %v11812_v21, 5  ;;  %v17428_v5 = vcombine.low %v13831_v27, %v13837_v14 }
 0x1e0   : > { %11382 = vmatprep.mubr.bf16.mxu0 %v9937_v59  ;;  %v14020_v35 = vadd.f32 %v10600_v53, %v4199_v34  ;;  %v2798_v26 = vsel %vm12332_vm13, %v9795_v9, %v2797_v46  ;;  %v2799_v40 = vrot.slane %v2797_v46, 4  ;;  %v9796_v10 = vrot.slane %v2720_v30, 9  ;;  %v14024_v0 = vpop.f32.mrf.mxu1  ;;  %v14031_v59 = vpop.f32.mrf.mxu0  ;;  %v11815_v9 = vld [vmem:[#allocation2 + $0x4c] sm:$0xf] }
 0x1e1   : > { %4728 = vmatmul.mubr.bf16.gmra.mxu1 %v17428_v5  ;;  %v9938_v48 = vcombine.low %v13984_v22, %v2794_v58  ;;  %v14027_v41 = vadd.f32 %v10603_v38, %v4202_v61  ;;  %v2804_v60 = vrot.slane %v11813_v17, 5  ;;  %v10494_v27 = vadd.f32 %v13738_v20, %v13731_v16  ;;  %v17429_v22 = vld [vmem:[#allocation41_spill] sm:$0xff]  ;;  %v11816_v38 = vld [vmem:[#allocation2 + $0x50] sm:$0x1]  ;;  %v2722_v17 = vld [vmem:[#allocation2 + $0x54] sm:$0xe] }
 0x1e2   : > { %v2801_v55 = vsel %vm12332_vm13, %v2799_v40, %v2800_v15  ;;  %v2807_v56 = vrot.slane %v11814_v43, 5  ;;  %v10606_v45 = vadd.f32 %v13747_v39, %v13740_v2  ;;  %v10497_v18 = vadd.f32 %v13762_v44, %v17429_v22  ;;  %v14041_v12 = vpop.f32.mrf.mxu1  ;;  %v14043_v51 = vld [vmem:[#allocation2 + $0xd4] sm:$0x1]  ;;  %v14052_v46 = vpop.f32.mrf.mxu0 }
 0x1e3   : > { %v14033_v33 = vld [vmem:[#allocation2 + $0xcc] sm:$0xf]  ;;  %v9939_v53 = vcombine.low %v2798_v26, %v2801_v55  ;;  %v9797_v6 = vrot.slane %v2721_v8, 9  ;;  %v2713_v30 = vshll.u32 %v14043_v51, 16  ;;  %v2805_v31 = vsel %vm12332_vm13, %v9796_v10, %v2804_v60 }
 0x1e4   : > { %v2694_v16 = vshrl.u32 %v14033_v33, 16  ;;  %v2697_v20 = vshll.u32 %v14033_v33, 16  ;;  %v2806_v58 = vrot.slane %v2804_v60, 4  ;;  %v4207_v39 = vadd.f32 %v13881_v54, %v10494_v27  ;;  %v14058_v26 = vpop.f32.mrf.mxu1  ;;  %v14062_v60 = vpop.f32.mrf.mxu0 }
 0x1e5   : > { %v4210_v34 = vadd.f32 %v13881_v54, %v10497_v18  ;;  %v2811_v28 = vrot.slane %v11815_v9, 5  ;;  %v2715_v61 = vrot.slane %v2713_v30, 5  ;;  %v2814_v5 = vrot.slane %v11816_v38, 5  ;;  %v11818_v30 = vld [vmem:[#allocation2 + $0x5c] sm:$0x1] }
 0x1e6   : > { %v2696_v2 = vrot.slane %v2694_v16, 4  ;;  %v2699_v44 = vrot.slane %v2697_v20, 5  ;;  %v2808_v21 = vsel %vm12332_vm13, %v2806_v58, %v2807_v56  ;;  %v14056_v15 = vadd.f32 %v10606_v45, %v4207_v39  ;;  %v11817_v56 = vld [vmem:[#allocation2 + $0x58] sm:$0xf]  ;;  %v14068_v22 = vpop.f32.mrf.mxu1  ;;  %v17430_v16 = vld [vmem:[#allocation46_spill] sm:$0xff] }
 0x1e7   : > { %v9920_v10 = vcombine.low %v14033_v33, %v13903_v47  ;;  %11383 = vmatmul.mubr.bf16.vlgmr.msra.gmra.mxu0 %v9938_v48  ;;  %v2813_v8 = vrot.slane %v2811_v28, 4  ;;  %v9940_v27 = vcombine.low %v2805_v31, %v2808_v21  ;;  %v2812_v55 = vsel %vm12332_vm13, %v9797_v6, %v2811_v28  ;;  %v2723_v58 = vld [vmem:[#allocation2 + $0x60] sm:$0xe]  ;;  %v17432_v9 = vld [vmem:[#allocation49_spill] sm:$0xff]  ;;  %v17433_v28 = vld [vmem:[#allocation48_spill] sm:$0xff] }
 0x1e8   : > { %v2700_v40 = vor.u32 %v2699_v44, %v2696_v2  ;;  %11386 = vmatprep.mubr.bf16.mxu0 %v9939_v53  ;;  %v10609_v43 = vadd.f32 %v13774_v52, %v13757_v4  ;;  %v2818_v45 = vrot.slane %v11817_v56, 5  ;;  %v2716_v48 = vsel %vm12393_vm14, %v14012_v50, %v2715_v61  ;;  %v14077_v53 = vpop.f32.mrf.mxu0  ;;  %v14081_v39 = vpop.f32.mrf.mxu1  ;;  %v17431_v44 = vld [vmem:[#allocation47_spill] sm:$0xff]  ;;  %v11819_v38 = vld [vmem:[#allocation2 + $0x64] sm:$0xf] }
 0x1e9   : > { %v2815_v33 = vsel %vm12332_vm13, %v2813_v8, %v2814_v5  ;;  %v10500_v20 = vadd.f32 %v17430_v16, %v13784_v11  ;;  %v9798_v4 = vrot.slane %v2722_v17, 9  ;;  %v2821_v31 = vrot.slane %v11818_v30, 5 }
 0x1ea   : > { %v2701_v18 = vrot.slane %v2700_v40, 4  ;;  %v14079_v6 = vadd.f32 %v10609_v43, %v4210_v34  ;;  %v2820_v52 = vrot.slane %v2818_v45, 4  ;;  %v10612_v11 = vadd.f32 %v17432_v9, %v17431_v44  ;;  %v14091_v40 = vpop.f32.mrf.mxu0 }
 0x1eb   : > { %v4215_v2 = vadd.f32 %v13881_v54, %v10500_v20  ;;  %v10503_v34 = vadd.f32 %v13814_v23, %v17433_v28  ;;  %v9941_v21 = vcombine.low %v2812_v55, %v2815_v33  ;;  %v2825_v5 = vrot.slane %v11819_v38, 5  ;;  %v17434_v20 = vld [vmem:[#allocation27_spill] sm:$0xff]  ;;  %v14100_v55 = vpop.f32.mrf.mxu1  ;;  %v11821_v33 = vld [vmem:[#allocation2 + $0x70] sm:$0xf]  ;;  %v17438_v38 = vld [vmem:[#allocation50_spill] sm:$0xff] }
 0x1ec   : > { %v2706_v50 = vsel %vm12393_vm14, %v2701_v18, %v13932_v3  ;;  %v9799_v43 = vrot.slane %v2723_v58, 9  ;;  %v11820_v3 = vld [vmem:[#allocation2 + $0x68] sm:$0x1]  ;;  %v2819_v18 = vsel %vm12332_vm13, %v9798_v4, %v2818_v45  ;;  %v10615_v23 = vadd.f32 %v13816_v37, %v17434_v20  ;;  %v11661_v45 = vld [vmem:[#allocation8 + $0x60] sm:$0xff]   ;;  %v2724_v37 = vld [vmem:[#allocation2 + $0x6c] sm:$0xe] }
 0x1ed   : > { %v9936_v61 = vcombine.low %v2706_v50, %v2716_v48  ;;  %v14093_v8 = vadd.f32 %v10612_v11, %v4215_v2  ;;  %v4218_v17 = vadd.f32 %v13881_v54, %v10503_v34  ;;  %v2828_v56 = vrot.slane %v11820_v3, 5  ;;  %v17435_v50 = vld [vmem:[#allocation30_spill] sm:$0xff]  ;;  %v17436_v2 = vld [vmem:[#allocation24_spill] sm:$0xff]  ;;  %v11662_v4 = vld [vmem:[#allocation8 + $0x20] sm:$0xff]   ;;  %v14112_v11 = vpop.f32.mrf.mxu0  ;;  %10900 = vmatprep.subr.bf16.mxu1 %v11661_v45 }
 0x1ee   : > { %v2827_v16 = vrot.slane %v2825_v5, 4  ;;  %v2822_v48 = vsel %vm12332_vm13, %v2820_v52, %v2821_v31  ;;  %v2832_v30 = vrot.slane %v11821_v33, 5  ;;  %v10506_v58 = vadd.f32 %v13845_v24, %v13833_v36  ;;  %v2725_v34 = vld [vmem:[#allocation2 + $0x78] sm:$0xe]  ;;  %10901 = vmatpush3.bf16.msra.mxu1 %v11662_v4  ;;  %v11824_v45 = vld [vmem:[#allocation2 + $0x80] sm:$0x1] }
 0x1ef   : > { %4735 = vmatprep.mubr.bf16.mxu1 %v9936_v61  ;;  %11387 = vmatmul.mubr.bf16.gmra.mxu0 %v9940_v27  ;;  %v10618_v44 = vadd.f32 %v17436_v2, %v17435_v50  ;;  %v14108_v9 = vadd.f32 %v10615_v23, %v4218_v17  ;;  %v2826_v52 = vsel %vm12332_vm13, %v9799_v43, %v2825_v5  ;;  %v11822_v61 = vld [vmem:[#allocation2 + $0x7c] sm:$0xf]  ;;  %v14122_v3 = vpop.f32.mrf.mxu0  ;;  %v14124_v20 = vpop.f32.mrf.mxu1  ;;  %v9800_v5 = vrot.slane %v2724_v37, 9  ;;  %v17441_v37 = vld [vmem:[#allocation19_spill] sm:$0xff] }
 0x1f0   : > { %4736 = vmatmul.mubr.bf16.gmra.mxu1 %v9920_v10  ;;  %11390 = vmatprep.mubr.bf16.mxu0 %v9941_v21  ;;  %v17437_v10 = vld [vmem:[#allocation51_spill] sm:$0xff]  ;;  %v2829_v36 = vsel %vm12332_vm13, %v2827_v16, %v2828_v56  ;;  %v4223_v24 = vadd.f32 %v13881_v54, %v10506_v58  ;;  %v9942_v31 = vcombine.low %v2819_v18, %v2822_v48  ;;  %v2839_v21 = vrot.slane %v11822_v61, 5  ;;  %v17439_v17 = vld [vmem:[#allocation53_spill] sm:$0xff]  ;;  %v11823_v56 = vld [vmem:[#allocation2 + $0x74] sm:$0x1] }
 0x1f1   : > { %v10509_v27 = vadd.f32 %v17437_v10, %v13856_v32  ;;  %v10621_v32 = vadd.f32 %v17439_v17, %v17438_v38  ;;  %v2834_v43 = vrot.slane %v2832_v30, 4  ;;  %v2835_v16 = vrot.slane %v11823_v56, 5  ;;  %v14130_v33 = vpop.f32.mrf.mxu0  ;;  %v14132_v58 = vpop.f32.mrf.mxu1  ;;  %v17442_v61 = vld [vmem:[#allocation35_spill] sm:$0xff]  ;;  %v17443_v17 = vld [vmem:[#allocation20_spill] sm:$0xff] }
 0x1f2   : > { %v14126_v23 = vadd.f32 %v10618_v44, %v4223_v24  ;;  %v9943_v18 = vcombine.low %v2826_v52, %v2829_v36  ;;  %v9801_v50 = vrot.slane %v2725_v34, 9  ;;  %v2841_v2 = vrot.slane %v2839_v21, 4  ;;  %v17444_v44 = vld [vmem:[#allocation56_spill] sm:$0xff]  ;;  %v11825_v56 = vld [vmem:[#allocation2 + $0x88] sm:$0xf] }
 0x1f3   : > { %v4226_v28 = vadd.f32 %v13881_v54, %v10509_v27  ;;  %v2842_v10 = vrot.slane %v11824_v45, 5  ;;  %v17440_v27 = vld [vmem:[#allocation54_spill] sm:$0xff]  ;;  %v10624_v38 = vadd.f32 %v17442_v61, %v17441_v37  ;;  %v10515_v24 = vadd.f32 %v17444_v44, %v17443_v17  ;;  %v14140_v52 = vpop.f32.mrf.mxu0  ;;  %v14142_v36 = vpop.f32.mrf.mxu1  ;;  %v17445_v37 = vld [vmem:[#allocation55_spill] sm:$0xff] }
 0x1f4   : > { %v10512_v4 = vadd.f32 %v13907_v63, %v17440_v27  ;;  %v2836_v34 = vsel %vm12332_vm13, %v2834_v43, %v2835_v16  ;;  %v2846_v63 = vrot.slane %v11825_v56, 5  ;;  %v17446_v61 = vld [vmem:[#allocation59_spill] sm:$0xff]  ;;  %v2727_v16 = vld [vmem:[#allocation2 + $0x90] sm:$0xe] }
 0x1f5   : > { %v14128_v48 = vadd.f32 %v10621_v32, %v4226_v28  ;;  %v2833_v28 = vsel %vm12332_vm13, %v9800_v5, %v2832_v30  ;;  %v2726_v32 = vld [vmem:[#allocation2 + $0x84] sm:$0xe]  ;;  %v4234_v27 = vadd.f32 %v13881_v54, %v10515_v24  ;;  %v10627_v17 = vadd.f32 %v17446_v61, %v17445_v37  ;;  %v14152_v44 = vpop.f32.mrf.mxu1 }
 0x1f6   : > { %v4231_v45 = vadd.f32 %v13881_v54, %v10512_v4  ;;  %v2840_v30 = vsel %vm12332_vm13, %v9801_v50, %v2839_v21  ;;  %v2843_v5 = vsel %vm12332_vm13, %v2841_v2, %v2842_v10  ;;  %v11826_v4 = vld [vmem:[#allocation2 + $0x94] sm:$0xf]  ;;  %v9944_v56 = vcombine.low %v2833_v28, %v2836_v34  ;;  %v11827_v50 = vld [vmem:[#allocation2 + $0x8c] sm:$0x1] }
 0x1f7   : > { %11391 = vmatmul.mubr.bf16.gmra.mxu0 %v9942_v31  ;;  %v14154_v31 = vpop.f32.mrf.mxu0  ;;  %v9802_v24 = vrot.slane %v2726_v32, 9  ;;  %v14162_v57 = vadd.f32 %v10627_v17, %v4234_v27  ;;  %v10518_v37 = vadd.f32 %v13995_v13, %v13973_v7  ;;  %v14168_v62 = vpop.f32.mrf.mxu1  ;;  %v2848_v21 = vrot.slane %v2846_v63, 4  ;;  %v11828_v13 = vld [vmem:[#allocation2 + $0x98] sm:$0x1] }
 0x1f8   : > { %11394 = vmatprep.mubr.bf16.mxu0 %v9943_v18  ;;  %v14160_v43 = vadd.f32 %v10624_v38, %v4231_v45  ;;  %v2853_v18 = vrot.slane %v11826_v4, 5  ;;  %v2849_v19 = vrot.slane %v11827_v50, 5  ;;  %v10630_v2 = vadd.f32 %v14010_v25, %v13997_v29 }
 0x1f9   : > { %v14166_v61 = vpop.f32.mrf.mxu0  ;;  %v10521_v10 = vadd.f32 %v14031_v59, %v14008_v42  ;;  %v9945_v38 = vcombine.low %v2840_v30, %v2843_v5  ;;  %v9803_v28 = vrot.slane %v2727_v16, 9  ;;  %v4239_v34 = vadd.f32 %v13881_v54, %v10518_v37  ;;  %v14175_v45 = vpop.f32.mrf.mxu1  ;;  %v2728_v30 = vld [vmem:[#allocation2 + $0x9c] sm:$0xe]  ;;  %v11829_v5 = vld [vmem:[#allocation2 + $0xa0] sm:$0xf] }
 0x1fa   : > { %v2855_v7 = vrot.slane %v2853_v18, 4  ;;  %v2856_v27 = vrot.slane %v11828_v13, 5  ;;  %v10633_v4 = vadd.f32 %v14041_v12, %v14024_v0  ;;  %v2847_v42 = vsel %vm12332_vm13, %v9802_v24, %v2846_v63  ;;  %v2729_v24 = vld [vmem:[#allocation2 + $0xa8] sm:$0xe] }
 0x1fb   : > { %v10665_v32 = vpop.f32.mrf.mxu0  ;;  %v4242_v17 = vadd.f32 %v13881_v54, %v10521_v10  ;;  %v14180_v50 = vadd.f32 %v10630_v2, %v4239_v34  ;;  %v14182_v25 = vpop.f32.mrf.mxu1  ;;  %v2850_v59 = vsel %vm12332_vm13, %v2848_v21, %v2849_v19  ;;  %v2860_v16 = vrot.slane %v11829_v5, 5  ;;  %v17447_v19 = vld [vmem:[#allocation39_spill] sm:$0xff] }
 0x1fc   : > { %v2854_v0 = vsel %vm12332_vm13, %v9803_v28, %v2853_v18  ;;  %v10524_v12 = vadd.f32 %v14062_v60, %v14052_v46  ;;  %v2857_v63 = vsel %vm12332_vm13, %v2855_v7, %v2856_v27  ;;  %v2867_v21 = vrot.slane %v17447_v19, 5 }
 0x1fd   : > { %v10666_v29 = vpop.f32.mrf.mxu0  ;;  %v14188_v37 = vadd.f32 %v10633_v4, %v4242_v17  ;;  %v10636_v10 = vadd.f32 %v14068_v22, %v14058_v26  ;;  %v9946_v34 = vcombine.low %v2847_v42, %v2850_v59  ;;  %v9804_v18 = vrot.slane %v2728_v30, 9  ;;  %v11830_v17 = vld [vmem:[#allocation2 + $0xa4] sm:$0x1]  ;;  %v17448_v59 = vld [vmem:[#allocation40_spill] sm:$0xff] }
 0x1fe   : > { %v4247_v28 = vadd.f32 %v13881_v54, %v10524_v12  ;;  %v2862_v13 = vrot.slane %v2860_v16, 4  ;;  %v2863_v4 = vrot.slane %v11830_v17, 5  ;;  %v10639_v27 = vadd.f32 %v14100_v55, %v14081_v39 }
 0x1ff   : > { %11395 = vmatmul.mubr.bf16.gmra.mxu0 %v9944_v56  ;;  %v10668_v2 = vpop.f32.mrf.mxu0  ;;  %v14194_v56 = vpop.f32.mrf.mxu1  ;;  %v9947_v5 = vcombine.low %v2854_v0, %v2857_v63  ;;  %v9805_v26 = vrot.slane %v2729_v24, 9  ;;  %v2869_v42 = vrot.slane %v2867_v21, 4  ;;  %v2870_v30 = vrot.slane %v17448_v59, 5 }
 0x200   : > { %11398 = vmatprep.mubr.bf16.mxu0 %v9945_v38  ;;  %v10527_v38 = vadd.f32 %v14091_v40, %v14077_v53  ;;  %v14209_v22 = vadd.f32 %v10636_v10, %v4247_v28  ;;  %v10530_v19 = vadd.f32 %v14122_v3, %v14112_v11  ;;  %v10533_v39 = vadd.f32 %v14140_v52, %v14130_v33  ;;  %v17449_v11 = vld [vmem:[#allocation43_spill] sm:$0xff] }
 0x201   : > { %v10669_v46 = vpop.f32.mrf.mxu0  ;;  %v14204_v60 = vpop.f32.mrf.mxu1  ;;  %v10645_v55 = vadd.f32 %v14152_v44, %v14142_v36  ;;  %v2861_v24 = vsel %vm12332_vm13, %v9804_v18, %v2860_v16  ;;  %v2864_v10 = vsel %vm12332_vm13, %v2862_v13, %v2863_v4  ;;  %v2874_v3 = vrot.slane %v17449_v11, 5  ;;  %v11663_v16 = vld [vmem:[#allocation8 + $0x58] sm:$0xff]  }
 0x202   : > { %v4250_v7 = vadd.f32 %v13881_v54, %v10527_v38  ;;  %v10642_v38 = vadd.f32 %v14132_v58, %v14124_v20  ;;  %v4255_v20 = vadd.f32 %v13881_v54, %v10530_v19  ;;  %v2868_v33 = vsel %vm12332_vm13, %v9805_v26, %v2867_v21  ;;  %v2730_v58 = vld [vmem:[#allocation2 + $0xb4] sm:$0xe]  ;;  %10902 = vmatprep.subr.bf16.mxu1 %v11663_v16 }
 0x203   : > { %v10671_v53 = vpop.f32.mrf.mxu0  ;;  %v14211_v40 = vpop.f32.mrf.mxu1  ;;  %v4258_v52 = vadd.f32 %v13881_v54, %v10533_v39  ;;  %v10664_v36 = vadd.f32 %v14166_v61, %v14154_v31  ;;  %v10667_v44 = vadd.f32 %v10666_v29, %v10665_v32  ;;  %v11664_v18 = vld [vmem:[#allocation8 + $0x18] sm:$0xff]   ;;  %v2871_v28 = vsel %vm12332_vm13, %v2869_v42, %v2870_v30  ;;  %v17453_v30 = vld [vmem:[#allocation45_spill] sm:$0xff] }
 0x204   : > { %v14214_v12 = vadd.f32 %v10639_v27, %v4250_v7  ;;  %v2881_v13 = vrot.slane %v13837_v14, 5  ;;  %v14240_v17 = vadd.f32 %v10642_v38, %v4255_v20  ;;  %v10670_v4 = vadd.f32 %v10669_v46, %v10668_v2  ;;  %v2731_v7 = vld [vmem:[#allocation2 + $0xc0] sm:$0xe]  ;;  %v17452_v42 = vld [vmem:[#allocation32_spill] sm:$0xff]  ;;  %10903 = vmatpush3.bf16.msra.mxu1 %v11664_v18  ;;  %v17454_v20 = vld [vmem:[#allocation57_spill] sm:$0xff] }
 0x205   : > { %v10672_v0 = vpop.f32.mrf.mxu0  ;;  %v14224_v63 = vpop.f32.mrf.mxu1  ;;  %v14242_v21 = vadd.f32 %v10645_v55, %v4258_v52  ;;  %v17450_v27 = vld [vmem:[#allocation26_spill] sm:$0xff]  ;;  %v9948_v29 = vcombine.low %v2861_v24, %v2864_v10  ;;  %v9806_v26 = vrot.slane %v2730_v58, 9  ;;  %v9949_v2 = vcombine.low %v2868_v33, %v2871_v28 }
 0x206   : > { %v14245_v54 = vadd.f32 %v10664_v36, %v17450_v27  ;;  %v14253_v14 = vadd.f32 %v10670_v4, %v17452_v42  ;;  %v10673_v59 = vadd.f32 %v10672_v0, %v10671_v53  ;;  %v2876_v46 = vrot.slane %v2874_v3, 4  ;;  %v17455_v36 = vld [vmem:[#allocation33_spill] sm:$0xff]  ;;  %v17456_v24 = vld [vmem:[#allocation34_spill] sm:$0xff]  ;;  %v17457_v27 = vld [vmem:[#allocation36_spill] sm:$0xff] }
 0x207   : > { %11399 = vmatmul.mubr.bf16.gmra.mxu0 %v9946_v34  ;;  %v10674_v34 = vpop.f32.mrf.mxu0  ;;  %v14250_v61 = vpop.f32.mrf.mxu1  ;;  %v2877_v19 = vrot.slane %v17453_v30, 5  ;;  %v9807_v55 = vrot.slane %v2731_v7, 9  ;;  %v2883_v11 = vrot.slane %v2881_v13, 4  ;;  %v2884_v52 = vrot.slane %v17454_v20, 5  ;;  %v2732_v7 = vld [vmem:[#allocation2 + $0xcc] sm:$0xe] }
 0x208   : > { %11402 = vmatprep.mubr.bf16.mxu0 %v9947_v5  ;;  %v17451_v5 = vld [vmem:[#allocation29_spill] sm:$0xff]  ;;  %v2875_v33 = vsel %vm12332_vm13, %v9806_v26, %v2874_v3  ;;  %v2888_v16 = vrot.slane %v13903_v47, 5  ;;  %v2891_v47 = vrot.slane %v14043_v51, 5  ;;  %v17459_v20 = vld [vmem:[#allocation38_spill] sm:$0xff] }
 0x209   : > { %v14248_v31 = vadd.f32 %v10667_v44, %v17451_v5  ;;  %v10675_v32 = vpop.f32.mrf.mxu0  ;;  %v14258_v44 = vadd.f32 %v10673_v59, %v17455_v36  ;;  %v14263_v58 = vpop.f32.mrf.mxu1  ;;  %v2882_v28 = vsel %vm12332_vm13, %v9807_v55, %v2881_v13  ;;  %v2885_v4 = vsel %vm12332_vm13, %v2883_v11, %v2884_v52  ;;  %v17458_v30 = vld [vmem:[#allocation37_spill] sm:$0xff] }
 0x20a   : > { %v10676_v38 = vadd.f32 %v10675_v32, %v10674_v34  ;;  %v2878_v34 = vsel %vm12332_vm13, %v2876_v46, %v2877_v19  ;;  %v9951_v42 = vcombine.low %v2882_v28, %v2885_v4  ;;  %v9808_v59 = vrot.slane %v2732_v7, 9 }
 0x20b   : > { %v10677_v39 = vpop.f32.mrf.mxu0  ;;  %v14277_v32 = vpop.f32.mrf.mxu1  ;;  %v9950_v3 = vcombine.low %v2875_v33, %v2878_v34 }
 0x20c   : > { %v14261_v10 = vadd.f32 %v10676_v38, %v17456_v24  ;;  %v2889_v55 = vsel %vm12332_vm13, %v9808_v59, %v2888_v16 }
 0x20d   : > { %v10678_v53 = vpop.f32.mrf.mxu0  ;;  %v14283_v19 = vpop.f32.mrf.mxu1 }
 0x20e   : > { %v10679_v0 = vadd.f32 %v10678_v53, %v10677_v39 }
 0x20f   : > { %11403 = vmatmul.mubr.bf16.gmra.mxu0 %v9948_v29  ;;  %v10680_v18 = vpop.f32.mrf.mxu0  ;;  %v14292_v51 = vpop.f32.mrf.mxu1 }
 0x210   : > { %11406 = vmatprep.mubr.bf16.mxu0 %v9949_v2  ;;  %v14275_v5 = vadd.f32 %v10679_v0, %v17457_v27  ;;  %v2890_v2 = vrot.slane %v2888_v16, 4  ;;  %v17462_v27 = vld [vmem:[#allocation44_spill] sm:$0xff] }
 0x211   : > { %v10681_v29 = vpop.f32.mrf.mxu0  ;;  %v14294_v0 = vpop.f32.mrf.mxu1 }
 0x212   : > { %v10682_v26 = vadd.f32 %v10681_v29, %v10680_v18  ;;  %v2892_v11 = vsel %vm12332_vm13, %v2890_v2, %v2891_v47  ;;  %v17460_v18 = vld [vmem:[#allocation42_spill] sm:$0xff] }
 0x213   : > { %v10683_v46 = vpop.f32.mrf.mxu0  ;;  %v9952_v36 = vcombine.low %v2889_v55, %v2892_v11  ;;  %v14299_v4 = vpop.f32.mrf.mxu1  ;;  %v17466_v11 = vld [vmem:[#allocation31_spill] sm:$0xff] }
 0x214   : > { %v14281_v13 = vadd.f32 %v10682_v26, %v17458_v30 }
 0x215   : > { %v10684_v38 = vpop.f32.mrf.mxu0  ;;  %v14304_v26 = vpop.f32.mrf.mxu1 }
 0x216   : > { %v10685_v39 = vadd.f32 %v10684_v38, %v10683_v46  ;;  %v17464_v46 = vld [vmem:[#allocation28_spill] sm:$0xff] }
 0x217   : > { %11407 = vmatmul.mubr.bf16.gmra.mxu0 %v9950_v3  ;;  %v10686_v24 = vpop.f32.mrf.mxu0  ;;  %v14306_v47 = vpop.f32.mrf.mxu1 }
 0x218   : > { %11410 = vmatprep.mubr.bf16.mxu0 %v9951_v42  ;;  %v14290_v52 = vadd.f32 %v10685_v39, %v17459_v20 }
 0x219   : > { %v10687_v53 = vpop.f32.mrf.mxu0 }
 0x21a   : > { %v10688_v33 = vadd.f32 %v10687_v53, %v10686_v24  ;;  %v11666_v24 = vld [vmem:[#allocation8 + $0x10] sm:$0xff]  }
 0x21b   : > { %v10689_v34 = vpop.f32.mrf.mxu0 }
 0x21c   : > { %v14297_v28 = vadd.f32 %v10688_v33, %v17460_v18  ;;  %v14311_v55 = vpop.f32.mrf.mxu1 }
 0x21d   : > { %v10690_v16 = vpop.f32.mrf.mxu0 }
 0x21e   : > { %17461 = vst [vmem:[#allocation21_spill] sm:$0xff] %v14297_v28  ;;  %v10691_v7 = vadd.f32 %v10690_v16, %v10689_v34  ;;  %v14316_v33 = vpop.f32.mrf.mxu1 }
 0x21f   : > { %11411 = vmatmul.mubr.bf16.gmra.mxu0 %v9952_v36  ;;  %v11665_v36 = vld [vmem:[#allocation8 + $0x50] sm:$0xff]  }
 0x220   : > { %v14302_v29 = vadd.f32 %v10691_v7, %v17462_v27  ;;  %10904 = vmatprep.subr.bf16.mxu1 %v11665_v36  ;;  %v17468_v7 = vld [vmem:[#allocation52_spill] sm:$0xff] }
 0x221   : > { %v10692_v3 = vpop.f32.mrf.mxu0  ;;  %10905 = vmatpush3.bf16.msra.mxu1 %v11666_v24 }
 0x222   : > { %17463 = vst [vmem:[#allocation22_spill] sm:$0xff] %v14302_v29 }
 0x223   : > { %v10693_v42 = vpop.f32.mrf.mxu0 }
 0x224   : > { %v10694_v59 = vadd.f32 %v10693_v42, %v10692_v3  ;;  %v14321_v3 = vpop.f32.mrf.mxu1 }
 0x225   : > { %v10695_v2 = vpop.f32.mrf.mxu0 }
 0x226   : > { %v14309_v30 = vadd.f32 %v10694_v59, %v17464_v46 }
 0x227   : > { %v10696_v38 = vpop.f32.mrf.mxu0 }
 0x228   : > { %17465 = vst [vmem:[#allocation23_spill] sm:$0xff] %v14309_v30  ;;  %v10697_v39 = vadd.f32 %v10696_v38, %v10695_v2  ;;  %v17470_v2 = vld [vmem:[#allocation25_spill] sm:$0xff]  ;;  %v14326_v38 = vpop.f32.mrf.mxu1 }
 0x22a   : > { %v14314_v20 = vadd.f32 %v10697_v39, %v17466_v11  ;;  %v11667_v11 = vld [vmem:[#allocation8 + $0xf8] sm:$0xff]   ;;  %v14328_v24 = vpop.f32.mrf.mxu1 }
 0x22b   : > { %11006 = vmatprep.subr.bf16.mxu0 %v11667_v11  ;;  %v11674_v11 = vld [vmem:[#allocation8 + $0xa8] sm:$0xff]  }
 0x22c   : > { %17467 = vst [vmem:[#allocation41_spill] sm:$0xff] %v14314_v20  ;;  %v10698_v53 = vpop.f32.mrf.mxu0  ;;  %11007 = vmatpush3.bf16.msra.mxu0 %v11668_v1 }
 0x22e   : > { %v10699_v34 = vpop.f32.mrf.mxu0 }
 0x22f   : > { %v10700_v18 = vadd.f32 %v10699_v34, %v10698_v53  ;;  %v17472_v34 = vld [vmem:[#allocation58_spill] sm:$0xff] }
 0x230   : > { %v10701_v16 = vpop.f32.mrf.mxu0 }
 0x231   : > { %v14319_v27 = vadd.f32 %v10700_v18, %v17468_v7  ;;  %v11671_v7 = vld [vmem:[#allocation8 + $0xf0] sm:$0xff]  }
 0x232   : > { %v10702_v42 = vpop.f32.mrf.mxu0  ;;  %11008 = vmatprep.subr.bf16.mxu0 %v11671_v7 }
 0x233   : > { %17469 = vst [vmem:[#allocation46_spill] sm:$0xff] %v14319_v27  ;;  %v10703_v59 = vadd.f32 %v10702_v42, %v10701_v16  ;;  %v11672_v42 = vld [vmem:[#allocation8 + $0xb0] sm:$0xff]  }
 0x234   : > { %11009 = vmatpush3.bf16.msra.mxu0 %v11672_v42 }
 0x235   : > { %v14324_v46 = vadd.f32 %v10703_v59, %v17470_v2  ;;  %v14333_v2 = vpop.f32.mrf.mxu1 }
 0x236   : > { %v10704_v39 = vpop.f32.mrf.mxu0 }
 0x237   : > { %17471 = vst [vmem:[#allocation47_spill] sm:$0xff] %v14324_v46  ;;  %v14338_v27 = vpop.f32.mrf.mxu1 }
 0x238   : > { %v10705_v36 = vpop.f32.mrf.mxu0 }
 0x239   : > { %v10706_v20 = vadd.f32 %v10705_v36, %v10704_v39  ;;  %v11673_v39 = vld [vmem:[#allocation8 + $0xe8] sm:$0xff]  }
 0x23a   : > { %v10707_v53 = vpop.f32.mrf.mxu0  ;;  %11010 = vmatprep.subr.bf16.mxu0 %v11673_v39  ;;  %v11669_v39 = vld [vmem:[#allocation8 + $0x48] sm:$0xff]  }
 0x23b   : > { %v14331_v18 = vadd.f32 %v10706_v20, %v17472_v34  ;;  %11011 = vmatpush3.bf16.msra.mxu0 %v11674_v11  ;;  %v11675_v20 = vld [vmem:[#allocation8 + $0xe0] sm:$0xff]   ;;  %10906 = vmatprep.subr.bf16.mxu1 %v11669_v39 }
 0x23c   : > { %v10708_v16 = vpop.f32.mrf.mxu0  ;;  %11012 = vmatprep.subr.bf16.mxu0 %v11675_v20  ;;  %v11682_v20 = vld [vmem:[#allocation8 + $0x90] sm:$0xff]   ;;  %v11679_v39 = vld [vmem:[#allocation8 + $0x40] sm:$0xff]  }
 0x23d   : > { %17473 = vst [vmem:[#allocation49_spill] sm:$0xff] %v14331_v18  ;;  %v10709_v59 = vadd.f32 %v10708_v16, %v10707_v53  ;;  %v11676_v18 = vld [vmem:[#allocation8 + $0xa0] sm:$0xff]   ;;  %v14340_v53 = vpop.f32.mrf.mxu1  ;;  %v11677_v16 = vld [vmem:[#allocation8 + $0xd8] sm:$0xff]  }
 0x23f   : > { %v14336_v46 = vadd.f32 %v10709_v59, %v13965_v49  ;;  %11013 = vmatpush3.bf16.msra.mxu0 %v11676_v18  ;;  %v11678_v59 = vld [vmem:[#allocation8 + $0x98] sm:$0xff]   ;;  %v14345_v11 = vpop.f32.mrf.mxu1 }
 0x240   : > { %11014 = vmatprep.subr.bf16.mxu0 %v11677_v16 }
 0x241   : > { %17474 = vst [vmem:[#allocation48_spill] sm:$0xff] %v14336_v46  ;;  %v10710_v36 = vpop.f32.mrf.mxu0  ;;  %v11670_v46 = vld [vmem:[#allocation8 + $0x8] sm:$0xff]  }
 0x242   : > { %10907 = vmatpush3.bf16.msra.mxu1 %v11670_v46 }
 0x243   : > { %v10711_v1 = vpop.f32.mrf.mxu0  ;;  %11015 = vmatpush3.bf16.msra.mxu0 %v11678_v59  ;;  %10908 = vmatprep.subr.bf16.mxu1 %v11679_v39 }
 0x244   : > { %v10712_v34 = vadd.f32 %v10711_v1, %v10710_v36  ;;  %v11681_v1 = vld [vmem:[#allocation8 + $0xd0] sm:$0xff]  }
 0x245   : > { %v10713_v30 = vpop.f32.mrf.mxu0  ;;  %11016 = vmatprep.subr.bf16.mxu0 %v11681_v1 }
 0x246   : > { %v14343_v7 = vadd.f32 %v10712_v34, %v14020_v35  ;;  %v14350_v35 = vpop.f32.mrf.mxu1 }
 0x247   : > { %v10714_v49 = vpop.f32.mrf.mxu0  ;;  %11017 = vmatpush3.bf16.msra.mxu0 %v11682_v20  ;;  %v11680_v20 = vld [vmem:[#allocation8] sm:$0xff]  }
 0x248   : > { %17475 = vst [vmem:[#allocation27_spill] sm:$0xff] %v14343_v7  ;;  %v10715_v42 = vadd.f32 %v10714_v49, %v10713_v30  ;;  %v11683_v30 = vld [vmem:[#allocation8 + $0xc8] sm:$0xff]   ;;  %v14352_v16 = vpop.f32.mrf.mxu1  ;;  %10909 = vmatpush3.bf16.msra.mxu1 %v11680_v20 }
 0x249   : > { %v11684_v49 = vld [vmem:[#allocation8 + $0x88] sm:$0xff]   ;;  %11018 = vmatprep.subr.bf16.mxu0 %v11683_v30 }
 0x24a   : > { %v14348_v36 = vadd.f32 %v10715_v42, %v14027_v41  ;;  %v14357_v59 = vpop.f32.mrf.mxu1 }
 0x24b   : > { %11019 = vmatpush3.bf16.msra.mxu0 %v11684_v49 }
 0x24c   : > { %17476 = vst [vmem:[#allocation30_spill] sm:$0xff] %v14348_v36 }
 0x24e   : > { %v10716_v18 = vpop.f32.mrf.mxu0 }
 0x250   : > { %v10717_v34 = vpop.f32.mrf.mxu0 }
 0x251   : > { %v10718_v7 = vadd.f32 %v10717_v34, %v10716_v18  ;;  %v14362_v18 = vpop.f32.mrf.mxu1 }
 0x252   : > { %v10719_v29 = vpop.f32.mrf.mxu0 }
 0x253   : > { %v14355_v41 = vadd.f32 %v10718_v7, %v14056_v15  ;;  %v14364_v49 = vpop.f32.mrf.mxu1 }
 0x254   : > { %v10720_v42 = vpop.f32.mrf.mxu0 }
 0x255   : > { %17477 = vst [vmem:[#allocation24_spill] sm:$0xff] %v14355_v41  ;;  %v10721_v46 = vadd.f32 %v10720_v42, %v10719_v29  ;;  %v11686_v41 = vld [vmem:[#allocation8 + $0xc0] sm:$0xff]   ;;  %v14369_v28 = vpop.f32.mrf.mxu1 }
 0x256   : > { %11020 = vmatprep.subr.bf16.mxu0 %v11686_v41 }
 0x257   : > { %v14360_v1 = vadd.f32 %v10721_v46, %v14079_v6  ;;  %v11687_v6 = vld [vmem:[#allocation8 + $0x80] sm:$0xff]   ;;  %v14374_v39 = vpop.f32.mrf.mxu1 }
 0x258   : > { %11021 = vmatpush3.bf16.msra.mxu0 %v11687_v6 }
 0x259   : > { %17478 = vst [vmem:[#allocation51_spill] sm:$0xff] %v14360_v1  ;;  %v14376_v1 = vpop.f32.mrf.mxu1 }
 0x25a   : > { %v10722_v30 = vpop.f32.mrf.mxu0  ;;  %17481 = vst [vmem:[#allocation54_spill] sm:$0xff] %v14376_v1 }
 0x25c   : > { %v10723_v34 = vpop.f32.mrf.mxu0 }
 0x25d   : > { %v10724_v36 = vadd.f32 %v10723_v34, %v10722_v30 }
 0x25e   : > { %v10725_v15 = vpop.f32.mrf.mxu0 }
 0x25f   : > { %v14367_v7 = vadd.f32 %v10724_v36, %v14093_v8 }
 0x260   : > { %v10726_v29 = vpop.f32.mrf.mxu0 }
 0x261   : > { %17479 = vst [vmem:[#allocation50_spill] sm:$0xff] %v14367_v7  ;;  %v10727_v42 = vadd.f32 %v10726_v29, %v10725_v15  ;;  %v14381_v7 = vpop.f32.mrf.mxu1 }
 0x263   : > { %v14372_v46 = vadd.f32 %v10727_v42, %v14108_v9  ;;  %v14386_v41 = vpop.f32.mrf.mxu1 }
 0x264   : > { %17484 = vst [vmem:[#allocation20_spill] sm:$0xff] %v14386_v41 }
 0x265   : > { %17480 = vst [vmem:[#allocation53_spill] sm:$0xff] %v14372_v46  ;;  %v14388_v46 = vpop.f32.mrf.mxu1 }
 0x266   : > { %17485 = vst [vmem:[#allocation56_spill] sm:$0xff] %v14388_v46  ;;  %v11690_v46 = vld [vmem:[#allocation8 + $0x178] sm:$0xff]  }
 0x267   : > { %v10728_v20 = vpop.f32.mrf.mxu0  ;;  %11118 = vmatprep.subr.bf16.mxu1 %v11690_v46 }
 0x269   : > { %v10729_v30 = vpop.f32.mrf.mxu0 }
 0x26a   : > { %v10730_v34 = vadd.f32 %v10729_v30, %v10728_v20 }
 0x26b   : > { %v10731_v8 = vpop.f32.mrf.mxu0 }
 0x26c   : > { %v14379_v36 = vadd.f32 %v10730_v34, %v14126_v23  ;;  %v14393_v34 = vpop.f32.mrf.mxu1 }
 0x26d   : > { %v10732_v15 = vpop.f32.mrf.mxu0 }
 0x26e   : > { %17482 = vst [vmem:[#allocation19_spill] sm:$0xff] %v14379_v36  ;;  %v10733_v29 = vadd.f32 %v10732_v15, %v10731_v8 }
 0x270   : > { %v14384_v9 = vadd.f32 %v10733_v29, %v14128_v48  ;;  %v14398_v48 = vpop.f32.mrf.mxu1 }
 0x272   : > { %17483 = vst [vmem:[#allocation35_spill] sm:$0xff] %v14384_v9  ;;  %v14400_v36 = vpop.f32.mrf.mxu1 }
 0x273   : > { %v10734_v42 = vpop.f32.mrf.mxu0  ;;  %17488 = vst [vmem:[#allocation39_spill] sm:$0xff] %v14400_v36 }
 0x275   : > { %v10735_v6 = vpop.f32.mrf.mxu0 }
 0x276   : > { %v10736_v20 = vadd.f32 %v10735_v6, %v10734_v42 }
 0x277   : > { %v10737_v30 = vpop.f32.mrf.mxu0 }
 0x278   : > { %v14391_v1 = vadd.f32 %v10736_v20, %v14160_v43  ;;  %v14405_v20 = vpop.f32.mrf.mxu1 }
 0x279   : > { %v10738_v23 = vpop.f32.mrf.mxu0 }
 0x27a   : > { %17486 = vst [vmem:[#allocation55_spill] sm:$0xff] %v14391_v1  ;;  %v10739_v8 = vadd.f32 %v10738_v23, %v10737_v30  ;;  %v14410_v23 = vpop.f32.mrf.mxu1 }
 0x27c   : > { %v14396_v15 = vadd.f32 %v10739_v8, %v14162_v57 }
 0x27e   : > { %17487 = vst [vmem:[#allocation59_spill] sm:$0xff] %v14396_v15  ;;  %v10835_v15 = vpop.f32.mrf.mxu1 }
 0x27f   : > { %v10740_v29 = vpop.f32.mrf.mxu0 }
 0x281   : > { %v10741_v9 = vpop.f32.mrf.mxu0 }
 0x282   : > { %v10742_v41 = vadd.f32 %v10741_v9, %v10740_v29 }
 0x283   : > { %v10743_v42 = vpop.f32.mrf.mxu0 }
 0x284   : > { %v14403_v6 = vadd.f32 %v10742_v41, %v14180_v50  ;;  %v10837_v50 = vpop.f32.mrf.mxu1 }
 0x285   : > { %v10744_v43 = vpop.f32.mrf.mxu0 }
 0x286   : > { %17489 = vst [vmem:[#allocation40_spill] sm:$0xff] %v14403_v6  ;;  %v10745_v30 = vadd.f32 %v10744_v43, %v10743_v42  ;;  %v10838_v42 = vpop.f32.mrf.mxu1 }
 0x288   : > { %v14408_v57 = vadd.f32 %v10745_v30, %v14188_v37  ;;  %v10840_v43 = vpop.f32.mrf.mxu1  ;;  %v10776_v30 = vadd.f32 %v14175_v45, %v14168_v62  ;;  %v10794_v62 = vadd.f32 %v14299_v4, %v14294_v0  ;;  %v10797_v45 = vadd.f32 %v14306_v47, %v14304_v26 }
 0x289   : > { %v10809_v0 = vadd.f32 %v14340_v53, %v14338_v27  ;;  %v10812_v4 = vadd.f32 %v14350_v35, %v14345_v11  ;;  %v10815_v47 = vadd.f32 %v14357_v59, %v14352_v16  ;;  %v17494_v11 = vld [vmem:[#allocation23_spill] sm:$0xff] }
 0x28a   : > { %17490 = vst [vmem:[#allocation43_spill] sm:$0xff] %v14408_v57  ;;  %v10779_v57 = vadd.f32 %v14194_v56, %v14182_v25  ;;  %v10800_v56 = vadd.f32 %v14316_v33, %v14311_v55 }
 0x28c   : > { %v10746_v8 = vpop.f32.mrf.mxu0 }
 0x28e   : > { %v10747_v1 = vpop.f32.mrf.mxu0 }
 0x28f   : > { %v10748_v36 = vadd.f32 %v10747_v1, %v10746_v8  ;;  %v10782_v1 = vadd.f32 %v14211_v40, %v14204_v60  ;;  %v10841_v8 = vpop.f32.mrf.mxu1  ;;  %v10803_v60 = vadd.f32 %v14326_v38, %v14321_v3  ;;  %v17491_v3 = vld [vmem:[#allocation21_spill] sm:$0xff] }
 0x290   : > { %v10749_v9 = vpop.f32.mrf.mxu0  ;;  %v14469_v38 = vadd.f32 %v10800_v56, %v17491_v3 }
 0x291   : > { %v14413_v29 = vadd.f32 %v10748_v36, %v14209_v22  ;;  %v10785_v22 = vadd.f32 %v14250_v61, %v14224_v63  ;;  %v4618_v63 = vadd.f32 %v10776_v30, %v14245_v54  ;;  %v10806_v61 = vadd.f32 %v14333_v2, %v14328_v24 }
 0x292   : > { %v10750_v41 = vpop.f32.mrf.mxu0  ;;  %v10818_v2 = vadd.f32 %v14364_v49, %v14362_v18  ;;  %v17497_v18 = vld [vmem:[#allocation20_spill] sm:$0xff] }
 0x293   : > { %v10751_v46 = vadd.f32 %v10750_v41, %v10749_v9  ;;  %v10791_v41 = vadd.f32 %v14292_v51, %v14283_v19  ;;  %v4629_v19 = vadd.f32 %v10785_v22, %v14258_v44  ;;  %v4621_v51 = vadd.f32 %v10779_v57, %v14248_v31  ;;  %v17495_v57 = vld [vmem:[#allocation41_spill] sm:$0xff]  ;;  %v17498_v49 = vld [vmem:[#allocation56_spill] sm:$0xff] }
 0x294   : > { %v4642_v44 = vadd.f32 %v10794_v62, %v14281_v13  ;;  %v14460_v31 = vadd.f32 %v10797_v45, %v14290_v52  ;;  %v10821_v13 = vadd.f32 %v14374_v39, %v14369_v28  ;;  %v17493_v52 = vld [vmem:[#allocation54_spill] sm:$0xff]  ;;  %v10830_v28 = vadd.f32 %v14398_v48, %v14393_v34  ;;  %v17503_v34 = vld [vmem:[#allocation27_spill] sm:$0xff] }
 0x295   : > { %v14416_v6 = vadd.f32 %v10751_v46, %v14214_v12  ;;  %v10788_v12 = vadd.f32 %v14277_v32, %v14263_v58  ;;  %v4626_v32 = vadd.f32 %v10782_v1, %v14253_v14  ;;  %v14463_v55 = vadd.f32 %v10791_v41, %v14275_v5 }
 0x296   : > { %v10824_v5 = vadd.f32 %v14381_v7, %v17493_v52  ;;  %v14484_v46 = vadd.f32 %v10809_v0, %v17495_v57  ;;  %v10827_v1 = vadd.f32 %v17498_v49, %v17497_v18  ;;  %v17499_v7 = vld [vmem:[#allocation39_spill] sm:$0xff]  ;;  %v5464_v52 = vld [vmem:[#allocation2] sm:$0xf] }
 0x297   : > { %v14454_v54 = vadd.f32 %v10788_v12, %v14261_v10  ;;  %v17492_v10 = vld [vmem:[#allocation22_spill] sm:$0xff]  ;;  %v10833_v39 = vadd.f32 %v14405_v20, %v17499_v7  ;;  %v10842_v20 = vadd.f32 %v10841_v8, %v10840_v43 }
 0x298   : > { %v14472_v24 = vadd.f32 %v10803_v60, %v17492_v10  ;;  %v17501_v60 = vld [vmem:[#allocation49_spill] sm:$0xff]  ;;  %v14506_v48 = vadd.f32 %v10824_v5, %v17503_v34  ;;  %v17507_v8 = vld [vmem:[#allocation50_spill] sm:$0xff] }
 0x299   : > { %v5363_v34 = vld [vmem:[#allocation2 + $0x20] sm:$0x1] }
 0x29f   : > { %v10752_v37 = vpop.f32.mrf.mxu0 }
 0x2a1   : > { %v10753_v36 = vpop.f32.mrf.mxu0 }
 0x2a2   : > { %v10754_v9 = vadd.f32 %v10753_v36, %v10752_v37  ;;  %v17496_v37 = vld [vmem:[#allocation46_spill] sm:$0xff]  ;;  %v17500_v36 = vld [vmem:[#allocation47_spill] sm:$0xff] }
 0x2a3   : > { %v10755_v25 = vpop.f32.mrf.mxu0  ;;  %v14487_v30 = vadd.f32 %v10812_v4, %v17496_v37  ;;  %v14496_v12 = vadd.f32 %v10815_v47, %v17500_v36 }
 0x2a4   : > { %v14439_v40 = vadd.f32 %v10754_v9, %v14240_v17  ;;  %v14451_v17 = vpop.f32.mrf.mxu1  ;;  %v10836_v9 = vadd.f32 %v10835_v15, %v14410_v23 }
 0x2a5   : > { %v10756_v58 = vpop.f32.mrf.mxu0 }
 0x2a6   : > { %v10757_v26 = vadd.f32 %v10756_v58, %v10755_v25  ;;  %v10844_v35 = vpop.f32.mrf.mxu1  ;;  %v10839_v25 = vadd.f32 %v10838_v42, %v10837_v50  ;;  %v17504_v50 = vld [vmem:[#allocation24_spill] sm:$0xff] }
 0x2a7   : > { %v11384_v14 = vpop.f32.mrf.mxu0  ;;  %v14513_v42 = vadd.f32 %v10830_v28, %v17504_v50 }
 0x2a8   : > { %v14466_v33 = vadd.f32 %v10757_v26, %v14242_v21  ;;  %v4787_v27 = vadd.f32 %v11384_v14, %v4626_v32  ;;  %v14481_v21 = vadd.f32 %v10806_v61, %v17494_v11  ;;  %v17502_v61 = vld [vmem:[#allocation48_spill] sm:$0xff]  ;;  %v14508_v32 = vpop.f32.mrf.mxu1  ;;  %v17505_v26 = vld [vmem:[#allocation51_spill] sm:$0xff]  ;;  %v17506_v14 = vld [vmem:[#allocation30_spill] sm:$0xff] }
 0x2a9   : > { %v4778_v53 = vpop.f32.mrf.mxu0  ;;  %v14503_v58 = vadd.f32 %v10821_v13, %v17502_v61  ;;  %v14516_v47 = vadd.f32 %v10833_v39, %v17505_v26  ;;  %v5359_v13 = vld [vmem:[#allocation2 + $0x18] sm:$0xf]  ;;  %v11831_v26 = vld [vmem:[#allocation2 + $0xc] sm:$0xf] }
 0x2aa   : > { %v4907_v16 = vmax.f32 %v4787_v27, 0.0  ;;  %v4779_v59 = vadd.f32 %v4778_v53, %v4618_v63  ;;  %v14500_v63 = vadd.f32 %v10818_v2, %v17501_v60  ;;  %v14519_v27 = vadd.f32 %v10827_v1, %v17506_v14  ;;  %v14528_v57 = vpop.f32.mrf.mxu1  ;;  %v17509_v1 = vld [vmem:[#allocation19_spill] sm:$0xff] }
 0x2ab   : > { %v11385_v22 = vpop.f32.mrf.mxu0  ;;  %v14523_v2 = vadd.f32 %v10836_v9, %v17507_v8  ;;  %v14534_v28 = vadd.f32 %v10842_v20, %v17509_v1  ;;  %v14539_v9 = vadd.f32 %v10844_v35, %v14451_v17 }
 0x2ac   : > { %v10391_v41 = vpack.c.bf16 %v4907_v16, %v4907_v16  ;;  %v4905_v62 = vmax.f32 %v4779_v59, 0.0  ;;  %v4790_v45 = vadd.f32 %v11385_v22, %v4629_v19  ;;  %v17508_v16 = vld [vmem:[#allocation53_spill] sm:$0xff] }
 0x2ad   : > { %v4781_v56 = vpop.f32.mrf.mxu0  ;;  %v14526_v59 = vadd.f32 %v10839_v25, %v17508_v16 }
 0x2ae   : > { %v5051_v0 = vshrl.u32 %v10391_v41, 16  ;;  %v14510_v4 = vpack.c.bf16 %v4905_v62, %v4905_v62  ;;  %v4908_v15 = vmax.f32 %v4790_v45, 0.0  ;;  %v4782_v23 = vadd.f32 %v4781_v56, %v4621_v51 }
 0x2af   : > { %v11388_v19 = vpop.f32.mrf.mxu0  ;;  %v5054_v10 = vshll.u32 %v10391_v41, 16 }
 0x2b0   : > { %v5053_v3 = vrot.slane %v5051_v0, 7  ;;  %v5034_v43 = vshrl.u32 %v14510_v4, 16  ;;  %v10392_v51 = vpack.c.bf16 %v4908_v15, %v4908_v15  ;;  %v4906_v5 = vmax.f32 %v4782_v23, 0.0  ;;  %v14546_v15 = vpop.f32.mrf.mxu1  ;;  %v5468_v23 = vld [vmem:[#allocation2 + $0x8] sm:$0x1] }
 0x2b1   : > { %v4803_v53 = vadd.f32 %v11388_v19, %v4642_v44  ;;  %v4794_v11 = vpop.f32.mrf.mxu0  ;;  %v14530_v18 = vrot.slane %v5051_v0, 4  ;;  %v5037_v49 = vshll.u32 %v14510_v4, 16 }
 0x2b2   : > { %v5056_v37 = vor.u32 %v5054_v10, %v5053_v3  ;;  %v5036_v7 = vrot.slane %v5034_v43, 7  ;;  %v5059_v39 = vshrl.u32 %v10392_v51, 16  ;;  %v5062_v22 = vshll.u32 %v10392_v51, 16 }
 0x2b3   : > { %v10390_v44 = vpack.c.bf16 %v4906_v5, %v4906_v5  ;;  %v11389_v36 = vpop.f32.mrf.mxu0  ;;  %v4911_v25 = vmax.f32 %v4803_v53, 0.0  ;;  %v5057_v56 = vrot.slane %v5053_v3, 4  ;;  %v4795_v20 = vadd.f32 %v4794_v11, %v14454_v54 }
 0x2b4   : > { %v5360_v62 = vsel %vm12242_vm6, %v5056_v37, %v5359_v13  ;;  %v5465_v45 = vsel %vm12242_vm6, %v5056_v37, %v5464_v52  ;;  %v5039_v60 = vor.u32 %v5037_v49, %v5036_v7  ;;  %v5061_v61 = vrot.slane %v5059_v39, 7  ;;  %v5356_v49 = vld [vmem:[#allocation2 + $0x14] sm:$0x1]  ;;  %v14563_v39 = vpop.f32.mrf.mxu1 }
 0x2b5   : > { %5361 = vst [vmem:[#allocation2 + $0x18] sm:$0xf] %v5360_v62  ;;  %5466 = vst [vmem:[#allocation2] sm:$0xf] %v5465_v45  ;;  %v4797_v0 = vpop.f32.mrf.mxu0  ;;  %v5481_v17 = vrot.slane %v14530_v18, 4  ;;  %v5040_v35 = vrot.slane %v5036_v7, 4  ;;  %v14549_v50 = vpack.c.bf16 %v4911_v25, %v4911_v25  ;;  %v4806_v45 = vadd.f32 %v11389_v36, %v14460_v31 }
 0x2b6   : > { %v5042_v19 = vshrl.u32 %v10390_v44, 16  ;;  %v5353_v14 = vsel %vm12242_vm6, %v5039_v60, %v11831_v26  ;;  %v5064_v3 = vor.u32 %v5062_v22, %v5061_v61  ;;  %v5066_v10 = vrot.slane %v5061_v61, 4  ;;  %v5373_v25 = vld [vmem:[#allocation2 + $0x30] sm:$0xf] }
 0x2b7   : > { %v14553_v8 = vrot.slane %v5062_v22, 7  ;;  %v11392_v13 = vpop.f32.mrf.mxu0  ;;  %5354 = vst [vmem:[#allocation2 + $0xc] sm:$0xf] %v5353_v14  ;;  %v5045_v52 = vshll.u32 %v10390_v44, 16  ;;  %v5085_v51 = vshrl.u32 %v14549_v50, 16  ;;  %v5088_v5 = vshll.u32 %v14549_v50, 16 }
 0x2b8   : > { %v5044_v54 = vrot.slane %v5042_v19, 7  ;;  %v5065_v11 = vsel %vm12235_vm5, %v5057_v56, %v5064_v3  ;;  %v5364_v37 = vsel %vm12251_vm7, %v5066_v10, %v5363_v34  ;;  %v5469_v18 = vsel %vm12251_vm7, %v5066_v10, %v5468_v23  ;;  %v14586_v10 = vpop.f32.mrf.mxu1 }
 0x2b9   : > { %v4909_v1 = vmax.f32 %v4795_v20, 0.0  ;;  %v4810_v7 = vpop.f32.mrf.mxu0  ;;  %5362 = vst [vmem:[#allocation2 + $0x1c] sm:$0xf] %v5065_v11  ;;  %5365 = vst [vmem:[#allocation2 + $0x20] sm:$0x1] %v5364_v37  ;;  %v14567_v62 = vrot.slane %v5085_v51, 7  ;;  %v4798_v60 = vadd.f32 %v4797_v0, %v14463_v55  ;;  %v4819_v61 = vadd.f32 %v11392_v13, %v14481_v21 }
 0x2ba   : > { %5467 = vst [vmem:[#allocation2 + $0x4] sm:$0xf] %v5065_v11  ;;  %5470 = vst [vmem:[#allocation2 + $0x8] sm:$0x1] %v5469_v18  ;;  %v5047_v22 = vor.u32 %v5045_v52, %v5044_v54  ;;  %v5049_v44 = vrot.slane %v5044_v54, 4  ;;  %v4811_v34 = vadd.f32 %v4810_v7, %v14469_v38  ;;  %v5577_v26 = vrot.slane %v14553_v8, 4 }
 0x2bb   : > { %v14570_v56 = vpack.c.bf16 %v4909_v1, %v4909_v1  ;;  %v11393_v20 = vpop.f32.mrf.mxu0  ;;  %v5090_v36 = vor.u32 %v5088_v5, %v14567_v62  ;;  %v10072_v38 = vrot.slane %v5045_v52, 11  ;;  %v4912_v8 = vmax.f32 %v4806_v45, 0.0  ;;  %v5366_v1 = vld [vmem:[#allocation2 + $0x24] sm:$0xf] }
 0x2bc   : > { %v5529_v23 = vld [vmem:[#allocation2 + $0x18] sm:$0x1]  ;;  %v5670_v19 = vld [vmem:[#allocation2] sm:$0x1]  ;;  %v5048_v14 = vsel %vm12235_vm5, %v5040_v35, %v5047_v22  ;;  %v5357_v31 = vsel %vm12251_vm7, %v5049_v44, %v5356_v49  ;;  %v4910_v13 = vmax.f32 %v4798_v60, 0.0  ;;  %v4915_v54 = vmax.f32 %v4819_v61, 0.0 }
 0x2bd   : > { %v5530_v55 = vsel %vm12251_vm7, %v5481_v17, %v5529_v23  ;;  %v5671_v21 = vsel %vm12251_vm7, %v5481_v17, %v5670_v19  ;;  %5355 = vst [vmem:[#allocation2 + $0x10] sm:$0xf] %v5048_v14  ;;  %5358 = vst [vmem:[#allocation2 + $0x14] sm:$0x1] %v5357_v31  ;;  %v5068_v0 = vshrl.u32 %v14570_v56, 16  ;;  %v4813_v3 = vpop.f32.mrf.mxu0  ;;  %v5374_v35 = vsel %vm12242_vm6, %v5090_v36, %v5373_v25 }
 0x2be   : > { %5531 = vst [vmem:[#allocation2 + $0x18] sm:$0x1] %v5530_v55  ;;  %5672 = vst [vmem:[#allocation2] sm:$0x1] %v5671_v21  ;;  %v5526_v5 = vld [vmem:[#allocation2 + $0xc] sm:$0x1]  ;;  %v14596_v37 = vadd.f32 %v11393_v20, %v14484_v46  ;;  %v10396_v7 = vpack.c.bf16 %v4912_v8, %v4912_v8  ;;  %v10394_v22 = vpack.c.bf16 %v4910_v13, %v4910_v13  ;;  %v14613_v20 = vpop.f32.mrf.mxu1 }
 0x2bf   : > { %5375 = vst [vmem:[#allocation2 + $0x30] sm:$0xf] %v5374_v35  ;;  %v14592_v17 = vrot.slane %v5068_v0, 7  ;;  %v5071_v52 = vshll.u32 %v14570_v56, 16  ;;  %v4913_v11 = vmax.f32 %v4811_v34, 0.0  ;;  %v14598_v18 = vpop.f32.mrf.mxu0  ;;  %v5527_v49 = vsel %vm12251_vm7, %v5034_v43, %v5526_v5 }
 0x2c0   : > { %v14604_v44 = vpack.c.bf16 %v4915_v54, %v4915_v54  ;;  %5528 = vst [vmem:[#allocation2 + $0xc] sm:$0x1] %v5527_v49  ;;  %v5625_v45 = vld [vmem:[#allocation2 + $0x20] sm:$0x1]  ;;  %v5091_v60 = vrot.slane %v14567_v62, 4  ;;  %v14611_v34 = vadd.f32 %v4813_v3, %v14472_v24  ;;  %v5093_v31 = vshrl.u32 %v10396_v7, 16 }
 0x2c1   : > { %v5673_v25 = vld [vmem:[#allocation2 + $0x8] sm:$0x1]  ;;  %v5073_v46 = vor.u32 %v5071_v52, %v14592_v17  ;;  %v14608_v61 = vpack.c.bf16 %v4913_v11, %v4913_v11  ;;  %v4826_v4 = vpop.f32.mrf.mxu0  ;;  %v5626_v23 = vsel %vm12293_vm10, %v5577_v26, %v5625_v45  ;;  %v5074_v14 = vrot.slane %v14592_v17, 4  ;;  %v5377_v36 = vld [vmem:[#allocation2 + $0x38] sm:$0x1] }
 0x2c2   : > { %v5674_v19 = vsel %vm12293_vm10, %v5577_v26, %v5673_v25  ;;  %5627 = vst [vmem:[#allocation2 + $0x20] sm:$0x1] %v5626_v23  ;;  %v5076_v24 = vshrl.u32 %v10394_v22, 16  ;;  %v5119_v55 = vshrl.u32 %v14604_v44, 16  ;;  %v4916_v21 = vmax.f32 %v14596_v37, 0.0 }
 0x2c3   : > { %5675 = vst [vmem:[#allocation2 + $0x8] sm:$0x1] %v5674_v19  ;;  %v5367_v62 = vsel %vm12242_vm6, %v5073_v46, %v5366_v1  ;;  %v11397_v3 = vpop.f32.mrf.mxu0  ;;  %v5095_v8 = vrot.slane %v5093_v31, 7  ;;  %v5096_v13 = vshll.u32 %v10396_v7, 16  ;;  %v5079_v26 = vshll.u32 %v10394_v22, 16  ;;  %v14632_v1 = vpop.f32.mrf.mxu1 }
 0x2c4   : > { %v5622_v35 = vld [vmem:[#allocation2 + $0x14] sm:$0x1]  ;;  %5368 = vst [vmem:[#allocation2 + $0x24] sm:$0xf] %v5367_v62  ;;  %v5370_v54 = vld [vmem:[#allocation2 + $0x2c] sm:$0x1] }
 0x2c5   : > { %v17307_v5 = vshrl.u32 %v14608_v61, 16  ;;  %v5623_v17 = vsel %vm12293_vm10, %v10072_v38, %v5622_v35  ;;  %v5078_v52 = vrot.slane %v5076_v24, 7  ;;  %v14629_v11 = vrot.slane %v5119_v55, 7  ;;  %v5387_v37 = vld [vmem:[#allocation2 + $0x48] sm:$0xf]  ;;  %v4829_v46 = vpop.f32.mrf.mxu0 }
 0x2c6   : > { %v5122_v49 = vshll.u32 %v14604_v44, 16  ;;  %5624 = vst [vmem:[#allocation2 + $0x14] sm:$0x1] %v5623_v17  ;;  %v5535_v45 = vld [vmem:[#allocation2 + $0x30] sm:$0x1]  ;;  %v5098_v7 = vor.u32 %v5096_v13, %v5095_v8  ;;  %v5100_v22 = vrot.slane %v5095_v8, 4 }
 0x2c7   : > { %v14636_v25 = vrot.slane %v17307_v5, 7  ;;  %v5105_v38 = vshll.u32 %v14608_v61, 16  ;;  %v5536_v23 = vsel %vm12251_vm7, %v5085_v51, %v5535_v45  ;;  %v5081_v19 = vor.u32 %v5079_v26, %v5078_v52  ;;  %v5380_v24 = vld [vmem:[#allocation2 + $0x3c] sm:$0xf]  ;;  %v14655_v45 = vpop.f32.mrf.mxu1 }
 0x2c8   : > { %v5083_v31 = vrot.slane %v5078_v52, 4  ;;  %v5124_v62 = vor.u32 %v5122_v49, %v14629_v11  ;;  %5537 = vst [vmem:[#allocation2 + $0x30] sm:$0x1] %v5536_v23  ;;  %v5099_v35 = vsel %vm12235_vm5, %v5091_v60, %v5098_v7  ;;  %v5378_v8 = vsel %vm12251_vm7, %v5100_v22, %v5377_v36 }
 0x2c9   : > { %v10074_v17 = vrot.slane %v5096_v13, 11  ;;  %v5107_v5 = vor.u32 %v5105_v38, %v14636_v25  ;;  %5376 = vst [vmem:[#allocation2 + $0x34] sm:$0xf] %v5099_v35  ;;  %5379 = vst [vmem:[#allocation2 + $0x38] sm:$0x1] %v5378_v8  ;;  %v5082_v50 = vsel %vm12235_vm5, %v5074_v14, %v5081_v19  ;;  %v10073_v52 = vrot.slane %v5079_v26, 11 }
 0x2ca   : > { %v5371_v51 = vsel %vm12251_vm7, %v5083_v31, %v5370_v54  ;;  %v5388_v49 = vsel %vm12242_vm6, %v5124_v62, %v5387_v37  ;;  %5369 = vst [vmem:[#allocation2 + $0x28] sm:$0xf] %v5082_v50  ;;  %v14659_v36 = vpack.c.bf16 %v4916_v21, %v4916_v21  ;;  %v4914_v13 = vmax.f32 %v14611_v34, 0.0  ;;  %v11400_v54 = vpop.f32.mrf.mxu0 }
 0x2cb   : > { %5372 = vst [vmem:[#allocation2 + $0x2c] sm:$0x1] %v5371_v51  ;;  %5389 = vst [vmem:[#allocation2 + $0x48] sm:$0xf] %v5388_v49  ;;  %v5381_v60 = vsel %vm12242_vm6, %v5107_v5, %v5380_v24  ;;  %v4835_v14 = vadd.f32 %v14598_v18, %v14500_v63  ;;  %v5532_v26 = vld [vmem:[#allocation2 + $0x24] sm:$0x1]  ;;  %v4827_v37 = vadd.f32 %v4826_v4, %v14487_v30  ;;  %v14676_v4 = vpop.f32.mrf.mxu1 }
 0x2cc   : > { %v5125_v7 = vrot.slane %v14629_v11, 4  ;;  %5382 = vst [vmem:[#allocation2 + $0x3c] sm:$0xf] %v5381_v60  ;;  %v4838_v22 = vadd.f32 %v11397_v3, %v14503_v58  ;;  %v4830_v38 = vadd.f32 %v4829_v46, %v14496_v12  ;;  %v5533_v21 = vsel %vm12251_vm7, %v5068_v0, %v5532_v26  ;;  %v4842_v3 = vpop.f32.mrf.mxu0 }
 0x2cd   : > { %v5108_v34 = vrot.slane %v14636_v25, 4  ;;  %v5127_v63 = vshrl.u32 %v14659_v36, 16  ;;  %v14674_v18 = vpack.c.bf16 %v4914_v13, %v4914_v13  ;;  %5534 = vst [vmem:[#allocation2 + $0x24] sm:$0x1] %v5533_v21  ;;  %v4919_v5 = vmax.f32 %v4835_v14, 0.0 }
 0x2ce   : > { %v4917_v11 = vmax.f32 %v4827_v37, 0.0  ;;  %v4920_v23 = vmax.f32 %v4838_v22, 0.0  ;;  %v4918_v30 = vmax.f32 %v4830_v38, 0.0  ;;  %v5130_v12 = vshll.u32 %v14659_v36, 16  ;;  %v5391_v25 = vld [vmem:[#allocation2 + $0x50] sm:$0x1] }
 0x2cf   : > { %v5129_v58 = vrot.slane %v5127_v63, 7  ;;  %v5110_v56 = vshrl.u32 %v14674_v18, 16  ;;  %v14681_v0 = vadd.f32 %v11400_v54, %v14513_v42  ;;  %v5113_v46 = vshll.u32 %v14674_v18, 16  ;;  %v14697_v54 = vpop.f32.mrf.mxu1  ;;  %v5384_v21 = vld [vmem:[#allocation2 + $0x44] sm:$0x1] }
 0x2d0   : > { %v14684_v19 = vpack.c.bf16 %v4919_v5, %v4919_v5  ;;  %v14686_v31 = vpack.c.bf16 %v4917_v11, %v4917_v11  ;;  %v14688_v62 = vpack.c.bf16 %v4920_v23, %v4920_v23  ;;  %v5631_v24 = vld [vmem:[#allocation2 + $0x38] sm:$0x1]  ;;  %v14690_v51 = vpack.c.bf16 %v4918_v30, %v4918_v30  ;;  %v5401_v5 = vld [vmem:[#allocation2 + $0x60] sm:$0xf]  ;;  %v17515_v23 = vld [vmem:[#allocation35_spill] sm:$0xff] }
 0x2d1   : > { %v5132_v35 = vor.u32 %v5130_v12, %v5129_v58  ;;  %v5134_v8 = vrot.slane %v5129_v58, 4  ;;  %v5112_v50 = vrot.slane %v5110_v56, 7  ;;  %v5632_v42 = vsel %vm12293_vm10, %v10074_v17, %v5631_v24  ;;  %v5394_v24 = vld [vmem:[#allocation2 + $0x54] sm:$0xf] }
 0x2d2   : > { %v5628_v49 = vld [vmem:[#allocation2 + $0x2c] sm:$0x1]  ;;  %v5541_v60 = vld [vmem:[#allocation2 + $0x48] sm:$0x1]  ;;  %v5153_v36 = vshrl.u32 %v14684_v19, 16  ;;  %v5156_v13 = vshll.u32 %v14684_v19, 16  ;;  %v4843_v14 = vadd.f32 %v4842_v3, %v14506_v48  ;;  %v14719_v63 = vadd.f32 %v14528_v57, %v14508_v32  ;;  %v14732_v57 = vpop.f32.mrf.mxu1 }
 0x2d3   : > { %5633 = vst [vmem:[#allocation2 + $0x38] sm:$0x1] %v5632_v42  ;;  %v5629_v26 = vsel %vm12293_vm10, %v10073_v52, %v5628_v49  ;;  %v5542_v37 = vsel %vm12251_vm7, %v5119_v55, %v5541_v60  ;;  %v5538_v17 = vld [vmem:[#allocation2 + $0x3c] sm:$0x1]  ;;  %v5133_v22 = vsel %vm12235_vm5, %v5125_v7, %v5132_v35  ;;  %v5392_v38 = vsel %vm12251_vm7, %v5134_v8, %v5391_v25  ;;  %v5405_v42 = vld [vmem:[#allocation2 + $0x68] sm:$0x1] }
 0x2d4   : > { %5630 = vst [vmem:[#allocation2 + $0x2c] sm:$0x1] %v5629_v26  ;;  %5543 = vst [vmem:[#allocation2 + $0x48] sm:$0x1] %v5542_v37  ;;  %v17514_v48 = vshrl.u32 %v14608_v61, 16  ;;  %v5115_v44 = vor.u32 %v5113_v46, %v5112_v50  ;;  %v5117_v55 = vrot.slane %v5112_v50, 4  ;;  %v14725_v30 = vadd.f32 %v14539_v9, %v17515_v23 }
 0x2d5   : > { %5390 = vst [vmem:[#allocation2 + $0x4c] sm:$0xf] %v5133_v22  ;;  %5393 = vst [vmem:[#allocation2 + $0x50] sm:$0x1] %v5392_v38  ;;  %v5155_v7 = vrot.slane %v5153_v36, 7  ;;  %v5136_v61 = vshrl.u32 %v14686_v31, 16 }
 0x2d6   : > { %v5539_v52 = vsel %vm12251_vm7, %v17514_v48, %v5538_v17  ;;  %v5161_v11 = vshrl.u32 %v14688_v62, 16  ;;  %v5116_v58 = vsel %vm12235_vm5, %v5108_v34, %v5115_v44  ;;  %v5385_v56 = vsel %vm12251_vm7, %v5117_v55, %v5384_v21 }
 0x2d7   : > { %5540 = vst [vmem:[#allocation2 + $0x3c] sm:$0x1] %v5539_v52  ;;  %v5158_v3 = vor.u32 %v5156_v13, %v5155_v7  ;;  %v5139_v32 = vshll.u32 %v14686_v31, 16  ;;  %5383 = vst [vmem:[#allocation2 + $0x40] sm:$0xf] %v5116_v58  ;;  %v5138_v25 = vrot.slane %v5136_v61, 7  ;;  %v11401_v13 = vpop.f32.mrf.mxu0  ;;  %v10862_v52 = vpop.f32.mrf.mxu1 }
 0x2d8   : > { %5386 = vst [vmem:[#allocation2 + $0x44] sm:$0x1] %v5385_v56  ;;  %v5163_v35 = vrot.slane %v5161_v11, 7  ;;  %v5164_v9 = vshll.u32 %v14688_v62, 16  ;;  %v5144_v8 = vshrl.u32 %v14690_v51, 16  ;;  %v10076_v34 = vrot.slane %v5130_v12, 11 }
 0x2d9   : > { %v5402_v50 = vsel %vm12242_vm6, %v5158_v3, %v5401_v5  ;;  %v4923_v49 = vmax.f32 %v14681_v0, 0.0  ;;  %v4921_v60 = vmax.f32 %v4843_v14, 0.0  ;;  %v5159_v26 = vrot.slane %v5155_v7, 4  ;;  %v5398_v5 = vld [vmem:[#allocation2 + $0x5c] sm:$0x1]  ;;  %v4845_v3 = vpop.f32.mrf.mxu0 }
 0x2da   : > { %5403 = vst [vmem:[#allocation2 + $0x60] sm:$0xf] %v5402_v50  ;;  %v5141_v37 = vor.u32 %v5139_v32, %v5138_v25  ;;  %v5166_v17 = vor.u32 %v5164_v9, %v5163_v35  ;;  %v5168_v22 = vrot.slane %v5163_v35, 4  ;;  %v5146_v38 = vrot.slane %v5144_v8, 7  ;;  %v14766_v8 = vld [vmem:[#allocation2 + $0xc] sm:$0xf] }
 0x2db   : > { %v5147_v21 = vshll.u32 %v14690_v51, 16  ;;  %v14744_v48 = vpack.c.bf16 %v4923_v49, %v4923_v49  ;;  %v14746_v12 = vpack.c.bf16 %v4921_v60, %v4921_v60  ;;  %v5142_v55 = vrot.slane %v5138_v25, 4  ;;  %v6114_v31 = vld [vmem:[#allocation2] sm:$0xe] }
 0x2dc   : > { %v5637_v44 = vld [vmem:[#allocation2 + $0x50] sm:$0x1]  ;;  %v5395_v0 = vsel %vm12242_vm6, %v5141_v37, %v5394_v24  ;;  %v5167_v14 = vsel %vm12235_vm5, %v5159_v26, %v5166_v17  ;;  %v5406_v7 = vsel %vm12251_vm7, %v5168_v22, %v5405_v42  ;;  %v5151_v58 = vrot.slane %v5146_v38, 4  ;;  %v5408_v17 = vld [vmem:[#allocation2 + $0x6c] sm:$0xf] }
 0x2dd   : > { %v5638_v11 = vsel %vm12293_vm10, %v10076_v34, %v5637_v44  ;;  %5396 = vst [vmem:[#allocation2 + $0x54] sm:$0xf] %v5395_v0  ;;  %5404 = vst [vmem:[#allocation2 + $0x64] sm:$0xf] %v5167_v14  ;;  %v5149_v23 = vor.u32 %v5147_v21, %v5146_v38  ;;  %v5187_v56 = vshrl.u32 %v14744_v48, 16  ;;  %v10851_v32 = vadd.f32 %v14563_v39, %v14546_v15  ;;  %v11404_v38 = vpop.f32.mrf.mxu0  ;;  %v17516_v44 = vld [vmem:[#allocation55_spill] sm:$0xff] }
 0x2de   : > { %5407 = vst [vmem:[#allocation2 + $0x68] sm:$0x1] %v5406_v7  ;;  %v10854_v25 = vadd.f32 %v14613_v20, %v14586_v10  ;;  %5639 = vst [vmem:[#allocation2 + $0x50] sm:$0x1] %v5638_v11  ;;  %v10075_v24 = vrot.slane %v5113_v46, 11  ;;  %v5170_v35 = vshrl.u32 %v14746_v12, 16  ;;  %v5399_v42 = vsel %vm12251_vm7, %v5151_v58, %v5398_v5  ;;  %v10864_v20 = vpop.f32.mrf.mxu1 }
 0x2df   : > { %v5634_v34 = vld [vmem:[#allocation2 + $0x44] sm:$0x1]  ;;  %v5150_v50 = vsel %vm12235_vm5, %v5142_v55, %v5149_v23  ;;  %v14774_v15 = vrot.slane %v5187_v56, 7  ;;  %v5190_v39 = vshll.u32 %v14744_v48, 16  ;;  %v10857_v10 = vadd.f32 %v14655_v45, %v14632_v1  ;;  %5400 = vst [vmem:[#allocation2 + $0x5c] sm:$0x1] %v5399_v42 }
 0x2e0   : > { %v5635_v18 = vsel %vm12293_vm10, %v10075_v24, %v5634_v34  ;;  %5397 = vst [vmem:[#allocation2 + $0x58] sm:$0xf] %v5150_v50  ;;  %v5415_v46 = vld [vmem:[#allocation2 + $0x78] sm:$0xf]  ;;  %v14783_v49 = vrot.slane %v5170_v35, 7  ;;  %v5173_v60 = vshll.u32 %v14746_v12, 16  ;;  %v10860_v37 = vadd.f32 %v14697_v54, %v14676_v4 }
 0x2e1   : > { %v14786_v26 = vld [vmem:[#allocation2 + $0x10] sm:$0xf]  ;;  %5636 = vst [vmem:[#allocation2 + $0x44] sm:$0x1] %v5635_v18  ;;  %v5547_v1 = vld [vmem:[#allocation2 + $0x60] sm:$0x1]  ;;  %v5192_v45 = vor.u32 %v5190_v39, %v14774_v15  ;;  %v14795_v55 = vadd.f32 %v14719_v63, %v17516_v44  ;;  %v10863_v11 = vadd.f32 %v10862_v52, %v14732_v57  ;;  %v4846_v52 = vadd.f32 %v4845_v3, %v14519_v27 }
 0x2e2   : > { %v10182_v22 = vcombine.low %v14766_v8, %v14786_v26  ;;  %v5548_v0 = vsel %vm12251_vm7, %v5153_v36, %v5547_v1  ;;  %v5175_v4 = vor.u32 %v5173_v60, %v14783_v49  ;;  %v17517_v54 = vld [vmem:[#allocation40_spill] sm:$0xff]  ;;  %v17518_v7 = vld [vmem:[#allocation59_spill] sm:$0xff]  ;;  %v10078_v63 = vrot.slane %v5164_v9, 11  ;;  %v14814_v23 = vld [vmem:[#allocation2 + $0x4] sm:$0xf] }
 0x2e3   : > { %v14803_v14 = vadd.f32 %v10854_v25, %v17517_v54  ;;  %v14806_v5 = vadd.f32 %v10851_v32, %v17518_v7  ;;  %5549 = vst [vmem:[#allocation2 + $0x60] sm:$0x1] %v5548_v0  ;;  %v5416_v19 = vsel %vm12242_vm6, %v5192_v45, %v5415_v46  ;;  %v4854_v36 = vadd.f32 %v11401_v13, %v14516_v47  ;;  %v11712_v58 = vld [vmem:[#allocation8 + $0x1f8] sm:$0xff]   ;;  %v10865_v25 = vpop.f32.mrf.mxu1  ;;  %v14820_v9 = vld [vmem:[#allocation2 + $0x8] sm:$0x1] }
 0x2e4   : > { %8906 = vmatprep.mubr.bf16.mxu0 %v10182_v22  ;;  %v5544_v24 = vld [vmem:[#allocation2 + $0x54] sm:$0x1]  ;;  %5417 = vst [vmem:[#allocation2 + $0x78] sm:$0xf] %v5416_v19  ;;  %v5409_v57 = vsel %vm12242_vm6, %v5175_v4, %v5408_v17  ;;  %v4867_v62 = vadd.f32 %v11404_v38, %v14534_v28  ;;  %v17519_v32 = vld [vmem:[#allocation43_spill] sm:$0xff]  ;;  %v10077_v42 = vrot.slane %v5147_v21, 11  ;;  %v14834_v27 = vadd.f32 %v10860_v37, %v14413_v29 }
 0x2e5   : > { %v5643_v34 = vld [vmem:[#allocation2 + $0x68] sm:$0x1]  ;;  %v14823_v50 = vadd.f32 %v10857_v10, %v17519_v32  ;;  %v5545_v47 = vsel %vm12251_vm7, %v5136_v61, %v5544_v24  ;;  %5410 = vst [vmem:[#allocation2 + $0x6c] sm:$0xf] %v5409_v57  ;;  %11230 = vmatprep.subr.bf16.mxu0 %v11712_v58  ;;  %v4924_v28 = vmax.f32 %v4854_v36, 0.0  ;;  %v4922_v3 = vmax.f32 %v4846_v52, 0.0 }
 0x2e6   : > { %v5644_v13 = vsel %vm12293_vm10, %v10078_v63, %v5643_v34  ;;  %5546 = vst [vmem:[#allocation2 + $0x54] sm:$0x1] %v5545_v47  ;;  %v4927_v39 = vmax.f32 %v4867_v62, 0.0  ;;  %v6180_v10 = vrot.slane %v14814_v23, 5  ;;  %v14837_v61 = vadd.f32 %v10865_v25, %v10864_v20  ;;  %v5640_v18 = vld [vmem:[#allocation2 + $0x5c] sm:$0x1]  ;;  %v4858_v62 = vpop.f32.mrf.mxu0 }
 0x2e7   : > { %5645 = vst [vmem:[#allocation2 + $0x68] sm:$0x1] %v5644_v13  ;;  %v6339_v46 = vshrl.u32 %v14766_v8, 16  ;;  %v6183_v51 = vrot.slane %v14820_v9, 5  ;;  %v14842_v21 = vadd.f32 %v10863_v11, %v14416_v6  ;;  %v5641_v29 = vsel %vm12293_vm10, %v10077_v42, %v5640_v18  ;;  %v11713_v25 = vld [vmem:[#allocation8 + $0x1b8] sm:$0xff]  }
 0x2e8   : > { %v14846_v60 = vpack.c.bf16 %v4924_v28, %v4924_v28  ;;  %v14848_v37 = vpack.c.bf16 %v4922_v3, %v4922_v3  ;;  %v14850_v1 = vpack.c.bf16 %v4927_v39, %v4927_v39  ;;  %5642 = vst [vmem:[#allocation2 + $0x5c] sm:$0x1] %v5641_v29  ;;  %v6342_v20 = vshll.u32 %v14766_v8, 16  ;;  %v5419_v34 = vld [vmem:[#allocation2 + $0x80] sm:$0x1] }
 0x2e9   : > { %v6348_v45 = vshll.u32 %v14786_v26, 16  ;;  %v10086_v17 = vrot.slane %v6114_v31, 9  ;;  %v6182_v22 = vrot.slane %v6180_v10, 4  ;;  %v5193_v38 = vrot.slane %v14774_v15, 4  ;;  %v5412_v57 = vld [vmem:[#allocation2 + $0x74] sm:$0x1] }
 0x2ea   : > { %v5176_v6 = vrot.slane %v14783_v49, 4  ;;  %v5195_v44 = vshrl.u32 %v14846_v60, 16  ;;  %v5178_v0 = vshrl.u32 %v14848_v37, 16  ;;  %v5198_v54 = vshll.u32 %v14846_v60, 16  ;;  %v5429_v28 = vld [vmem:[#allocation2 + $0x90] sm:$0xf] }
 0x2eb   : > { %v5553_v4 = vld [vmem:[#allocation2 + $0x78] sm:$0x1]  ;;  %v5221_v7 = vshrl.u32 %v14850_v1, 16  ;;  %v6181_v8 = vsel %vm12332_vm13, %v10086_v17, %v6180_v10  ;;  %v6184_v63 = vsel %vm12332_vm13, %v6182_v22, %v6183_v51  ;;  %v5181_v58 = vshll.u32 %v14848_v37, 16  ;;  %v14886_v10 = vld [vmem:[#allocation2] sm:$0xf] }
 0x2ec   : > { %v5554_v15 = vsel %vm12251_vm7, %v5187_v56, %v5553_v4  ;;  %v5550_v49 = vld [vmem:[#allocation2 + $0x6c] sm:$0x1]  ;;  %v5197_v19 = vrot.slane %v5195_v44, 7  ;;  %v5180_v36 = vrot.slane %v5178_v0, 7  ;;  %v5224_v56 = vshll.u32 %v14850_v1, 16 }
 0x2ed   : > { %5555 = vst [vmem:[#allocation2 + $0x78] sm:$0x1] %v5554_v15  ;;  %v5551_v24 = vsel %vm12251_vm7, %v5170_v35, %v5550_v49  ;;  %v14875_v48 = vrot.slane %v5221_v7, 7  ;;  %v10166_v52 = vcombine.low %v6181_v8, %v6184_v63  ;;  %v14878_v12 = vld [vmem:[#allocation2 + $0x18] sm:$0xf]  ;;  %v14880_v3 = vrot.slane %v6339_v46, 4 }
 0x2ee   : > { %5552 = vst [vmem:[#allocation2 + $0x6c] sm:$0x1] %v5551_v24  ;;  %v5200_v32 = vor.u32 %v5198_v54, %v5197_v19  ;;  %v5202_v47 = vrot.slane %v5197_v19, 4  ;;  %v5183_v13 = vor.u32 %v5181_v58, %v5180_v36  ;;  %v5185_v42 = vrot.slane %v5180_v36, 4  ;;  %v14909_v4 = vld [vmem:[#allocation2 + $0xc] sm:$0xf] }
 0x2ef   : > { %v14882_v35 = vrot.slane %v6342_v20, 5  ;;  %v6352_v39 = vshrl.u32 %v14786_v26, 16  ;;  %v5226_v31 = vor.u32 %v5224_v56, %v14875_v48  ;;  %8907 = vmatmul.mubr.bf16.vlgmr.msra.gmra.mxu0 %v10166_v52  ;;  %v14896_v60 = vrot.slane %v6348_v45, 5  ;;  %v14900_v20 = vld [vmem:[#allocation2 + $0x1c] sm:$0xf] }
 0x2f0   : > { %v5201_v18 = vsel %vm12235_vm5, %v5193_v38, %v5200_v32  ;;  %v5420_v51 = vsel %vm12251_vm7, %v5202_v47, %v5419_v34  ;;  %v5184_v29 = vsel %vm12235_vm5, %v5176_v6, %v5183_v13  ;;  %v5413_v46 = vsel %vm12251_vm7, %v5185_v42, %v5412_v57  ;;  %11231 = vmatpush3.bf16.msra.mxu0 %v11713_v25  ;;  %v11405_v38 = vpop.f32.mrf.mxu0  ;;  %v14914_v19 = vld [vmem:[#allocation2 + $0x10] sm:$0xf]  ;;  %v11720_v34 = vld [vmem:[#allocation8 + $0x1f0] sm:$0xff]  }
 0x2f1   : > { %5418 = vst [vmem:[#allocation2 + $0x7c] sm:$0xf] %v5201_v18  ;;  %5421 = vst [vmem:[#allocation2 + $0x80] sm:$0x1] %v5420_v51  ;;  %v5430_v37 = vsel %vm12242_vm6, %v5226_v31, %v5429_v28  ;;  %v6363_v17 = vshrl.u32 %v14878_v12, 16  ;;  %v6366_v22 = vshll.u32 %v14878_v12, 16  ;;  %v10183_v6 = vcombine.low %v14878_v12, %v14900_v20  ;;  %11232 = vmatprep.subr.bf16.mxu0 %v11720_v34 }
 0x2f2   : > { %5411 = vst [vmem:[#allocation2 + $0x70] sm:$0xf] %v5184_v29  ;;  %5414 = vst [vmem:[#allocation2 + $0x74] sm:$0x1] %v5413_v46  ;;  %v4859_v45 = vadd.f32 %v4858_v62, %v14523_v2  ;;  %v5731_v44 = vshrl.u32 %v14886_v10, 16  ;;  %v5734_v0 = vshll.u32 %v14886_v10, 16  ;;  %v4870_v62 = vadd.f32 %v11405_v38, %v14725_v30 }
 0x2f3   : > { %5431 = vst [vmem:[#allocation2 + $0x90] sm:$0xf] %v5430_v37  ;;  %v10080_v8 = vrot.slane %v5198_v54, 11  ;;  %v5740_v63 = vshll.u32 %v14814_v23, 16  ;;  %v5744_v15 = vshrl.u32 %v14814_v23, 16  ;;  %v5750_v49 = vshll.u32 %v14820_v9, 16  ;;  %8914 = vmatprep.mubr.bf16.mxu0 %v10183_v6  ;;  %v4861_v54 = vpop.f32.mrf.mxu0 }
 0x2f4   : > { %v10079_v36 = vrot.slane %v5181_v58, 11  ;;  %v4925_v25 = vmax.f32 %v4859_v45, 0.0  ;;  %v5733_v24 = vrot.slane %v5731_v44, 4  ;;  %v5736_v2 = vrot.slane %v5734_v0, 5  ;;  %v11721_v32 = vld [vmem:[#allocation8 + $0x1b0] sm:$0xff]  }
 0x2f5   : > { %v5742_v57 = vrot.slane %v5740_v63, 5  ;;  %v5746_v56 = vrot.slane %v5744_v15, 4  ;;  %v5752_v52 = vrot.slane %v5750_v49, 5  ;;  %v5755_v9 = vshrl.u32 %v14909_v4, 16  ;;  %11233 = vmatpush3.bf16.msra.mxu0 %v11721_v32  ;;  %v11408_v15 = vpop.f32.mrf.mxu0  ;;  %v11691_v32 = vld [vmem:[#allocation8 + $0x138] sm:$0xff]  }
 0x2f6   : > { %v14917_v47 = vpack.c.bf16 %v4925_v25, %v4925_v25  ;;  %v5737_v13 = vor.u32 %v5736_v2, %v5733_v24  ;;  %v5758_v42 = vshll.u32 %v14909_v4, 16  ;;  %v4928_v28 = vmax.f32 %v4870_v62, 0.0  ;;  %v5422_v24 = vld [vmem:[#allocation2 + $0x84] sm:$0xf] }
 0x2f7   : > { %v5747_v58 = vor.u32 %v5746_v56, %v5742_v57  ;;  %v5764_v31 = vshll.u32 %v14914_v19, 16  ;;  %v5768_v18 = vshrl.u32 %v14914_v19, 16  ;;  %v6345_v30 = vor.u32 %v14882_v35, %v14880_v3  ;;  %v4874_v26 = vpop.f32.mrf.mxu0 }
 0x2f8   : > { %v5649_v51 = vld [vmem:[#allocation2 + $0x80] sm:$0x1]  ;;  %v5204_v46 = vshrl.u32 %v14917_v47, 16  ;;  %v5207_v37 = vshll.u32 %v14917_v47, 16  ;;  %v4862_v38 = vadd.f32 %v4861_v54, %v14526_v59  ;;  %v5738_v0 = vrot.slane %v5737_v13, 4 }
 0x2f9   : > { %v5646_v29 = vld [vmem:[#allocation2 + $0x74] sm:$0x1]  ;;  %v5650_v6 = vsel %vm12293_vm10, %v10080_v8, %v5649_v51  ;;  %v5748_v63 = vrot.slane %v5747_v58, 4  ;;  %v14940_v25 = vpack.c.bf16 %v4928_v28, %v4928_v28  ;;  %v5760_v56 = vrot.slane %v5758_v42, 5 }
 0x2fa   : > { %v5647_v45 = vsel %vm12293_vm10, %v10079_v36, %v5646_v29  ;;  %v5559_v44 = vld [vmem:[#allocation2 + $0x90] sm:$0x1]  ;;  %5651 = vst [vmem:[#allocation2 + $0x80] sm:$0x1] %v5650_v6  ;;  %v14938_v59 = vrot.slane %v5204_v46, 7  ;;  %v5757_v36 = vrot.slane %v5755_v9, 4  ;;  %v5743_v34 = vsel %vm12393_vm14, %v5738_v0, %v5742_v57 }
 0x2fb   : > { %5648 = vst [vmem:[#allocation2 + $0x74] sm:$0x1] %v5647_v45  ;;  %v5560_v49 = vsel %vm12251_vm7, %v5221_v7, %v5559_v44  ;;  %v14942_v8 = vld [vmem:[#allocation2 + $0x14] sm:$0x1]  ;;  %v5753_v1 = vsel %vm12393_vm14, %v5748_v63, %v5752_v52  ;;  %v5766_v62 = vrot.slane %v5764_v31, 5  ;;  %v5229_v13 = vshrl.u32 %v14940_v25, 16 }
 0x2fc   : > { %5561 = vst [vmem:[#allocation2 + $0x90] sm:$0x1] %v5560_v49  ;;  %v5209_v7 = vor.u32 %v5207_v37, %v14938_v59  ;;  %v10150_v54 = vcombine.low %v5743_v34, %v5753_v1  ;;  %v4883_v58 = vadd.f32 %v11408_v15, %v14803_v14  ;;  %v10134_v9 = vcombine.low %v14886_v10, %v14814_v23  ;;  %v11695_v29 = vld [vmem:[#allocation8 + $0x170] sm:$0xff]   ;;  %v5433_v14 = vld [vmem:[#allocation2 + $0x98] sm:$0x1]  ;;  %v11701_v1 = vld [vmem:[#allocation8 + $0x168] sm:$0xff]  }
 0x2fd   : > { %v5761_v28 = vor.u32 %v5760_v56, %v5757_v36  ;;  %v5770_v51 = vrot.slane %v5768_v18, 4  ;;  %v5774_v57 = vshll.u32 %v14942_v8, 16  ;;  %v5231_v42 = vrot.slane %v5229_v13, 7  ;;  %v10867_v18 = vpop.f32.mrf.mxu1  ;;  %v6115_v49 = vld [vmem:[#allocation2 + $0xc] sm:$0xe] }
 0x2fe   : > { %v5423_v52 = vsel %vm12242_vm6, %v5209_v7, %v5422_v24  ;;  %8745 = vmatprep.mubr.bf16.mxu1 %v10150_v54  ;;  %v5232_v31 = vshll.u32 %v14940_v25, 16  ;;  %v4926_v37 = vmax.f32 %v4862_v38, 0.0  ;;  %v5227_v6 = vrot.slane %v14875_v48, 4  ;;  %v11697_v36 = vld [vmem:[#allocation8 + $0x130] sm:$0xff]  }
 0x2ff   : > { %5424 = vst [vmem:[#allocation2 + $0x84] sm:$0xf] %v5423_v52  ;;  %8746 = vmatmul.mubr.bf16.vlgmr.msra.gmra.mxu1 %v10134_v9  ;;  %v5762_v45 = vrot.slane %v5761_v28, 4  ;;  %v5771_v23 = vor.u32 %v5770_v51, %v5766_v62  ;;  %v5776_v10 = vrot.slane %v5774_v57, 5  ;;  %v5236_v0 = vrot.slane %v5231_v42, 4  ;;  %v11703_v52 = vld [vmem:[#allocation8 + $0x128] sm:$0xff]  }
 0x300   : > { %11119 = vmatpush3.bf16.msra.mxu1 %v11691_v32  ;;  %v5234_v44 = vor.u32 %v5232_v31, %v5231_v42  ;;  %v14960_v63 = vpack.c.bf16 %v4926_v37, %v4926_v37  ;;  %v4931_v15 = vmax.f32 %v4883_v58, 0.0  ;;  %v6190_v24 = vrot.slane %v14942_v8, 5 }
 0x301   : > { %v5767_v48 = vsel %vm12393_vm14, %v5762_v45, %v5766_v62  ;;  %v5772_v38 = vrot.slane %v5771_v23, 4  ;;  %v6187_v34 = vrot.slane %v14914_v19, 5  ;;  %11120 = vmatprep.subr.bf16.mxu1 %v11695_v29  ;;  %v14968_v56 = vrot.slane %v6352_v39, 4  ;;  %v10868_v39 = vpop.f32.mrf.mxu1  ;;  %v5426_v29 = vld [vmem:[#allocation2 + $0x8c] sm:$0x1]  ;;  %v11707_v45 = vld [vmem:[#allocation8 + $0x160] sm:$0xff]  }
 0x302   : > { %v5235_v7 = vsel %vm12235_vm5, %v5227_v6, %v5234_v44  ;;  %v5434_v54 = vsel %vm12251_vm7, %v5236_v0, %v5433_v14  ;;  %v5212_v32 = vshrl.u32 %v14960_v63, 16  ;;  %v14977_v62 = vpack.c.bf16 %v4931_v15, %v4931_v15  ;;  %v14993_v14 = vld [vmem:[#allocation2 + $0x24] sm:$0xf] }
 0x303   : > { %5432 = vst [vmem:[#allocation2 + $0x94] sm:$0xf] %v5235_v7  ;;  %5435 = vst [vmem:[#allocation2 + $0x98] sm:$0x1] %v5434_v54  ;;  %v5777_v8 = vsel %vm12393_vm14, %v5772_v38, %v5776_v10  ;;  %v10087_v13 = vrot.slane %v6115_v49, 9  ;;  %v6189_v58 = vrot.slane %v6187_v34, 4  ;;  %v14998_v0 = vadd.f32 %v10868_v39, %v10867_v18 }
 0x304   : > { %v14981_v9 = vrot.slane %v6363_v17, 4  ;;  %v10151_v28 = vcombine.low %v5767_v48, %v5777_v8  ;;  %v5214_v51 = vrot.slane %v5212_v32, 7  ;;  %v5215_v57 = vshll.u32 %v14960_v63, 16  ;;  %11121 = vmatpush3.bf16.msra.mxu1 %v11697_v36  ;;  %v15009_v36 = vld [vmem:[#allocation2 + $0x28] sm:$0xf]  ;;  %v11409_v48 = vpop.f32.mrf.mxu0  ;;  %v11728_v38 = vld [vmem:[#allocation8 + $0x1e8] sm:$0xff]  }
 0x305   : > { %v14986_v42 = vrot.slane %v6366_v22, 5  ;;  %v5255_v37 = vshrl.u32 %v14977_v62, 16  ;;  %v6188_v6 = vsel %vm12332_vm13, %v10087_v13, %v6187_v34  ;;  %v6191_v17 = vsel %vm12332_vm13, %v6189_v58, %v6190_v24  ;;  %11122 = vmatprep.subr.bf16.mxu1 %v11701_v1  ;;  %v11729_v24 = vld [vmem:[#allocation8 + $0x1a8] sm:$0xff]   ;;  %v5443_v34 = vld [vmem:[#allocation2 + $0xa8] sm:$0xf]  ;;  %v11709_v58 = vld [vmem:[#allocation8 + $0x120] sm:$0xff]   ;;  %11234 = vmatprep.subr.bf16.mxu0 %v11728_v38 }
 0x306   : > { %v5210_v23 = vrot.slane %v14938_v59, 4  ;;  %v5556_v10 = vld [vmem:[#allocation2 + $0x84] sm:$0x1]  ;;  %8753 = vmatprep.mubr.bf16.mxu1 %v10151_v28  ;;  %v5217_v12 = vor.u32 %v5215_v57, %v5214_v51  ;;  %v5219_v22 = vrot.slane %v5214_v51, 4  ;;  %v10167_v44 = vcombine.low %v6188_v6, %v6191_v17  ;;  %v15017_v1 = vld [vmem:[#allocation2 + $0x18] sm:$0xf]  ;;  %11235 = vmatpush3.bf16.msra.mxu0 %v11729_v24 }
 0x307   : > { %v5557_v15 = vsel %vm12251_vm7, %v5204_v46, %v5556_v10  ;;  %v15006_v49 = vrot.slane %v5255_v37, 7  ;;  %v5258_v59 = vshll.u32 %v14977_v62, 16  ;;  %v10184_v46 = vcombine.low %v14993_v14, %v15009_v36  ;;  %v15026_v13 = vld [vmem:[#allocation2 + $0x1c] sm:$0xf]  ;;  %v11733_v62 = vld [vmem:[#allocation8 + $0x108] sm:$0xff]  }
 0x308   : > { %5558 = vst [vmem:[#allocation2 + $0x84] sm:$0x1] %v5557_v15  ;;  %v5218_v18 = vsel %vm12235_vm5, %v5210_v23, %v5217_v12  ;;  %v5427_v47 = vsel %vm12251_vm7, %v5219_v22, %v5426_v29  ;;  %8915 = vmatmul.mubr.bf16.gmra.mxu0 %v10167_v44  ;;  %11123 = vmatpush3.bf16.msra.mxu1 %v11703_v52  ;;  %v10082_v32 = vrot.slane %v5232_v31, 11  ;;  %v15031_v39 = vrot.slane %v6345_v30, 4  ;;  %v15037_v29 = vld [vmem:[#allocation2 + $0x20] sm:$0x1] }
 0x309   : > { %v6355_v7 = vor.u32 %v14968_v56, %v14896_v60  ;;  %v6369_v54 = vor.u32 %v14986_v42, %v14981_v9  ;;  %5425 = vst [vmem:[#allocation2 + $0x88] sm:$0xf] %v5218_v18  ;;  %5428 = vst [vmem:[#allocation2 + $0x8c] sm:$0x1] %v5427_v47  ;;  %v5260_v8 = vor.u32 %v5258_v59, %v15006_v49  ;;  %11124 = vmatprep.subr.bf16.mxu1 %v11707_v45  ;;  %v11715_v52 = vld [vmem:[#allocation8 + $0x158] sm:$0xff]  }
 0x30a   : > { %v5655_v28 = vld [vmem:[#allocation2 + $0x98] sm:$0x1]  ;;  %8922 = vmatprep.mubr.bf16.mxu0 %v10184_v46  ;;  %v4875_v51 = vadd.f32 %v4874_v26, %v14795_v55  ;;  %v10135_v25 = vcombine.low %v14909_v4, %v14914_v19  ;;  %v4886_v31 = vadd.f32 %v11409_v48, %v14823_v50  ;;  %v6372_v6 = vshll.u32 %v14900_v20, 16  ;;  %v4877_v26 = vpop.f32.mrf.mxu0  ;;  %v11717_v12 = vld [vmem:[#allocation8 + $0x118] sm:$0xff]   ;;  %v11723_v48 = vld [vmem:[#allocation8 + $0x150] sm:$0xff]  }
 0x30b   : > { %v5656_v3 = vsel %vm12293_vm10, %v10082_v32, %v5655_v28  ;;  %v5444_v35 = vsel %vm12242_vm6, %v5260_v8, %v5443_v34  ;;  %v5779_v30 = vshrl.u32 %v15017_v1, 16  ;;  %v5782_v50 = vshll.u32 %v15017_v1, 16  ;;  %v11738_v9 = vld [vmem:[#allocation8 + $0x1d8] sm:$0xff]  }
 0x30c   : > { %5657 = vst [vmem:[#allocation2 + $0x98] sm:$0x1] %v5656_v3  ;;  %5445 = vst [vmem:[#allocation2 + $0xa8] sm:$0xf] %v5444_v35  ;;  %v4929_v55 = vmax.f32 %v4875_v51, 0.0  ;;  %8754 = vmatmul.mubr.bf16.gmra.mxu1 %v10135_v25  ;;  %v4932_v4 = vmax.f32 %v4886_v31, 0.0  ;;  %v4878_v47 = vadd.f32 %v4877_v26, %v14806_v5  ;;  %v11412_v28 = vpop.f32.mrf.mxu0 }
 0x30d   : > { %v5788_v19 = vshll.u32 %v15026_v13, 16  ;;  %v6376_v17 = vshrl.u32 %v14900_v20, 16  ;;  %v5781_v45 = vrot.slane %v5779_v30, 4  ;;  %v5792_v23 = vshrl.u32 %v15026_v13, 16  ;;  %11125 = vmatpush3.bf16.msra.mxu1 %v11709_v58  ;;  %v11725_v31 = vld [vmem:[#allocation8 + $0x110] sm:$0xff]  }
 0x30e   : > { %v5798_v10 = vshll.u32 %v15037_v29, 16  ;;  %v15050_v22 = vpack.c.bf16 %v4929_v55, %v4929_v55  ;;  %v15052_v44 = vpack.c.bf16 %v4932_v4, %v4932_v4  ;;  %v5784_v15 = vrot.slane %v5782_v50, 5  ;;  %11126 = vmatprep.subr.bf16.mxu1 %v11715_v52  ;;  %v5436_v30 = vld [vmem:[#allocation2 + $0x9c] sm:$0xf]  ;;  %v15123_v20 = vld [vmem:[#allocation2 + $0x30] sm:$0xf] }
 0x30f   : > { %v5790_v59 = vrot.slane %v5788_v19, 5  ;;  %v10081_v38 = vrot.slane %v5215_v57, 11  ;;  %v6387_v24 = vshrl.u32 %v14993_v14, 16  ;;  %v5794_v18 = vrot.slane %v5792_v23, 4 }
 0x310   : > { %v5652_v34 = vld [vmem:[#allocation2 + $0x8c] sm:$0x1]  ;;  %v5238_v46 = vshrl.u32 %v15050_v22, 16  ;;  %v5263_v32 = vshrl.u32 %v15052_v44, 16  ;;  %v5800_v8 = vrot.slane %v5798_v10, 5  ;;  %v4738_v58 = vadd.f32 %v14837_v61, %v14439_v40  ;;  %v11731_v40 = vld [vmem:[#allocation8 + $0x148] sm:$0xff]  }
 0x311   : > { %v5653_v51 = vsel %vm12293_vm10, %v10081_v38, %v5652_v34  ;;  %v5785_v63 = vor.u32 %v5784_v15, %v5781_v45  ;;  %v5795_v57 = vor.u32 %v5794_v18, %v5790_v59  ;;  %v4930_v25 = vmax.f32 %v4878_v47, 0.0  ;;  %11127 = vmatpush3.bf16.msra.mxu1 %v11717_v12  ;;  %v5447_v12 = vld [vmem:[#allocation2 + $0xb0] sm:$0x1] }
 0x312   : > { %5654 = vst [vmem:[#allocation2 + $0x8c] sm:$0x1] %v5653_v51  ;;  %v5240_v5 = vrot.slane %v5238_v46, 7  ;;  %v5241_v52 = vshll.u32 %v15050_v22, 16  ;;  %v5265_v3 = vrot.slane %v5263_v32, 7  ;;  %v5266_v35 = vshll.u32 %v15052_v44, 16  ;;  %11128 = vmatprep.subr.bf16.mxu1 %v11723_v48 }
 0x313   : > { %v5565_v61 = vld [vmem:[#allocation2 + $0xa8] sm:$0x1]  ;;  %v5786_v55 = vrot.slane %v5785_v63, 4  ;;  %v5796_v4 = vrot.slane %v5795_v57, 4  ;;  %v15068_v50 = vpack.c.bf16 %v4930_v25, %v4930_v25  ;;  %v4899_v19 = vadd.f32 %v11412_v28, %v4738_v58  ;;  %v5440_v32 = vld [vmem:[#allocation2 + $0xa4] sm:$0x1] }
 0x314   : > { %v5261_v26 = vrot.slane %v15006_v49, 4  ;;  %v5566_v45 = vsel %vm12251_vm7, %v5255_v37, %v5565_v61  ;;  %v5243_v23 = vor.u32 %v5241_v52, %v5240_v5  ;;  %v5268_v10 = vor.u32 %v5266_v35, %v5265_v3  ;;  %v6116_v28 = vld [vmem:[#allocation2 + $0x18] sm:$0xe] }
 0x315   : > { %5567 = vst [vmem:[#allocation2 + $0xa8] sm:$0x1] %v5566_v45  ;;  %v5270_v15 = vrot.slane %v5265_v3, 4  ;;  %v5791_v48 = vsel %vm12393_vm14, %v5786_v55, %v5790_v59  ;;  %v5801_v38 = vsel %vm12393_vm14, %v5796_v4, %v5800_v8  ;;  %v5246_v49 = vshrl.u32 %v15068_v50, 16  ;;  %11129 = vmatpush3.bf16.msra.mxu1 %v11725_v31  ;;  %v11736_v52 = vld [vmem:[#allocation8 + $0x1e0] sm:$0xff]  }
 0x316   : > { %v5437_v37 = vsel %vm12242_vm6, %v5243_v23, %v5436_v30  ;;  %v5269_v18 = vsel %vm12235_vm5, %v5261_v26, %v5268_v10  ;;  %v10152_v47 = vcombine.low %v5791_v48, %v5801_v38  ;;  %v5249_v34 = vshll.u32 %v15068_v50, 16  ;;  %11130 = vmatprep.subr.bf16.mxu1 %v11731_v40  ;;  %v11737_v3 = vld [vmem:[#allocation8 + $0x1a0] sm:$0xff]   ;;  %v4890_v30 = vpop.f32.mrf.mxu0  ;;  %11236 = vmatprep.subr.bf16.mxu0 %v11736_v52  ;;  %v5457_v48 = vld [vmem:[#allocation2 + $0xc0] sm:$0xf] }
 0x317   : > { %5438 = vst [vmem:[#allocation2 + $0x9c] sm:$0xf] %v5437_v37  ;;  %5446 = vst [vmem:[#allocation2 + $0xac] sm:$0xf] %v5269_v18  ;;  %v5448_v59 = vsel %vm12251_vm7, %v5270_v15, %v5447_v12  ;;  %v5248_v8 = vrot.slane %v5246_v49, 7  ;;  %v4935_v58 = vmax.f32 %v4899_v19, 0.0  ;;  %11237 = vmatpush3.bf16.msra.mxu0 %v11737_v3  ;;  %v10136_v37 = vcombine.low %v15017_v1, %v15026_v13 }
 0x318   : > { %v6194_v51 = vrot.slane %v15026_v13, 5  ;;  %v15093_v63 = vrot.slane %v6355_v7, 4  ;;  %v15098_v57 = vrot.slane %v6369_v54, 4  ;;  %v6390_v25 = vshll.u32 %v14993_v14, 16  ;;  %5449 = vst [vmem:[#allocation2 + $0xb0] sm:$0x1] %v5448_v59  ;;  %8761 = vmatprep.mubr.bf16.mxu1 %v10152_v47  ;;  %11238 = vmatprep.subr.bf16.mxu0 %v11738_v9  ;;  %v11413_v18 = vpop.f32.mrf.mxu0 }
 0x319   : > { %v6197_v31 = vrot.slane %v15037_v29, 5  ;;  %v5244_v40 = vrot.slane %v5240_v5, 4  ;;  %v5251_v61 = vor.u32 %v5249_v34, %v5248_v8  ;;  %v5253_v56 = vrot.slane %v5248_v8, 4  ;;  %11131 = vmatpush3.bf16.msra.mxu1 %v11733_v62  ;;  %v11741_v5 = vld [vmem:[#allocation8 + $0x140] sm:$0xff]   ;;  %v11740_v12 = vld [vmem:[#allocation8 + $0x198] sm:$0xff]  }
 0x31a   : > { %v15104_v7 = vpack.c.bf16 %v4935_v58, %v4935_v58  ;;  %v15108_v42 = vrot.slane %v6372_v6, 5  ;;  %v15112_v54 = vrot.slane %v6376_v17, 4  ;;  %v10088_v29 = vrot.slane %v6116_v28, 9  ;;  %v11743_v4 = vld [vmem:[#allocation8 + $0x100] sm:$0xff]   ;;  %v15125_v17 = vld [vmem:[#allocation2 + $0x24] sm:$0xf]  ;;  %11132 = vmatprep.subr.bf16.mxu1 %v11741_v5  ;;  %8762 = vmatmul.mubr.bf16.gmra.mxu1 %v10136_v37  ;;  %v4893_v9 = vpop.f32.mrf.mxu0 }
 0x31b   : > { %v6196_v55 = vrot.slane %v6194_v51, 4  ;;  %v15116_v19 = vrot.slane %v6387_v24, 4  ;;  %v5252_v26 = vsel %vm12235_vm5, %v5244_v40, %v5251_v61  ;;  %v5441_v6 = vsel %vm12251_vm7, %v5253_v56, %v5440_v32  ;;  %v15138_v49 = vld [vmem:[#allocation2 + $0x34] sm:$0xf]  ;;  %v15149_v58 = vld [vmem:[#allocation2 + $0x28] sm:$0xf]  ;;  %11239 = vmatpush3.bf16.msra.mxu0 %v11740_v12 }
 0x31c   : > { %v5289_v45 = vshrl.u32 %v15104_v7, 16  ;;  %v15127_v23 = vrot.slane %v6390_v25, 5  ;;  %5439 = vst [vmem:[#allocation2 + $0xa0] sm:$0xf] %v5252_v26  ;;  %5442 = vst [vmem:[#allocation2 + $0xa4] sm:$0x1] %v5441_v6  ;;  %v6195_v24 = vsel %vm12332_vm13, %v10088_v29, %v6194_v51  ;;  %v4891_v62 = vadd.f32 %v4890_v30, %v14834_v27 }
 0x31d   : > { %v5292_v14 = vshll.u32 %v15104_v7, 16  ;;  %v6198_v10 = vsel %vm12332_vm13, %v6196_v55, %v6197_v31  ;;  %11133 = vmatpush3.bf16.msra.mxu1 %v11743_v4  ;;  %v10084_v32 = vrot.slane %v5266_v35, 11  ;;  %v10185_v59 = vcombine.low %v15123_v20, %v15138_v49  ;;  %v15158_v51 = vld [vmem:[#allocation2 + $0x2c] sm:$0x1]  ;;  %v11746_v12 = vld [vmem:[#allocation8 + $0x1c8] sm:$0xff]  }
 0x31e   : > { %v15136_v15 = vrot.slane %v5289_v45, 7  ;;  %v10168_v38 = vcombine.low %v6195_v24, %v6198_v10  ;;  %v5562_v47 = vld [vmem:[#allocation2 + $0x9c] sm:$0x1]  ;;  %v4741_v8 = vadd.f32 %v14998_v0, %v14466_v33  ;;  %v5803_v28 = vshrl.u32 %v15125_v17, 16  ;;  %v11744_v29 = vld [vmem:[#allocation8 + $0x1d0] sm:$0xff]  }
 0x31f   : > { %v6396_v27 = vshll.u32 %v15009_v36, 16  ;;  %v5563_v1 = vsel %vm12251_vm7, %v5238_v46, %v5562_v47  ;;  %v5661_v13 = vld [vmem:[#allocation2 + $0xb0] sm:$0x1]  ;;  %v4933_v35 = vmax.f32 %v4891_v62, 0.0  ;;  %v5806_v22 = vshll.u32 %v15125_v17, 16  ;;  %v11745_v55 = vld [vmem:[#allocation8 + $0x190] sm:$0xff]   ;;  %11240 = vmatprep.subr.bf16.mxu0 %v11744_v29 }
 0x320   : > { %v5294_v44 = vor.u32 %v5292_v14, %v15136_v15  ;;  %8923 = vmatmul.mubr.bf16.gmra.mxu0 %v10168_v38  ;;  %5564 = vst [vmem:[#allocation2 + $0x9c] sm:$0x1] %v5563_v1  ;;  %v5662_v33 = vsel %vm12293_vm10, %v10084_v32, %v5661_v13  ;;  %v4902_v0 = vadd.f32 %v11413_v18, %v4741_v8  ;;  %v5805_v25 = vrot.slane %v5803_v28, 4  ;;  %v5450_v38 = vld [vmem:[#allocation2 + $0xb4] sm:$0xf]  ;;  %v11747_v47 = vld [vmem:[#allocation8 + $0x188] sm:$0xff]  }
 0x321   : > { %8930 = vmatprep.mubr.bf16.mxu0 %v10185_v59  ;;  %5663 = vst [vmem:[#allocation2 + $0xb0] sm:$0x1] %v5662_v33  ;;  %v15165_v31 = vpack.c.bf16 %v4933_v35, %v4933_v35  ;;  %v5812_v52 = vshll.u32 %v15149_v58, 16  ;;  %v5816_v3 = vshrl.u32 %v15149_v58, 16  ;;  %v10083_v40 = vrot.slane %v5249_v34, 11  ;;  %11241 = vmatpush3.bf16.msra.mxu0 %v11745_v55 }
 0x322   : > { %v5458_v46 = vsel %vm12242_vm6, %v5294_v44, %v5457_v48  ;;  %v4936_v61 = vmax.f32 %v4902_v0, 0.0  ;;  %v5808_v56 = vrot.slane %v5806_v22, 5  ;;  %v5822_v30 = vshll.u32 %v15158_v51, 16  ;;  %v5471_v8 = vld [vmem:[#allocation2 + $0xcc] sm:$0xf]  ;;  %11242 = vmatprep.subr.bf16.mxu0 %v11746_v12  ;;  %v11750_v22 = vld [vmem:[#allocation8 + $0x1c0] sm:$0xff]  }
 0x323   : > { %5459 = vst [vmem:[#allocation2 + $0xc0] sm:$0xf] %v5458_v46  ;;  %v6400_v5 = vshrl.u32 %v15009_v36, 16  ;;  %v5658_v4 = vld [vmem:[#allocation2 + $0xa4] sm:$0x1]  ;;  %v5272_v26 = vshrl.u32 %v15165_v31, 16  ;;  %v4894_v18 = vadd.f32 %v4893_v9, %v14842_v21  ;;  %v6393_v32 = vor.u32 %v15127_v23, %v15116_v19 }
 0x324   : > { %v5814_v6 = vrot.slane %v5812_v52, 5  ;;  %v5818_v14 = vrot.slane %v5816_v3, 4  ;;  %v5659_v24 = vsel %vm12293_vm10, %v10083_v40, %v5658_v4  ;;  %v5275_v50 = vshll.u32 %v15165_v31, 16  ;;  %v5461_v52 = vld [vmem:[#allocation2 + $0xc8] sm:$0x1]  ;;  %v11751_v40 = vld [vmem:[#allocation8 + $0x180] sm:$0xff]  }
 0x325   : > { %v15177_v34 = vpack.c.bf16 %v4936_v61, %v4936_v61  ;;  %v5809_v10 = vor.u32 %v5808_v56, %v5805_v25  ;;  %5660 = vst [vmem:[#allocation2 + $0xa4] sm:$0x1] %v5659_v24  ;;  %v15179_v48 = vrot.slane %v5272_v26, 7  ;;  %v5824_v37 = vrot.slane %v5822_v30, 5  ;;  %v6117_v25 = vld [vmem:[#allocation2 + $0x24] sm:$0xe]  ;;  %11243 = vmatpush3.bf16.msra.mxu0 %v11747_v47 }
 0x326   : > { %v5819_v62 = vor.u32 %v5818_v14, %v5814_v6  ;;  %v6411_v59 = vshrl.u32 %v15123_v20, 16  ;;  %v5295_v13 = vrot.slane %v15136_v15, 4  ;;  %v6204_v33 = vrot.slane %v15158_v51, 5  ;;  %11244 = vmatprep.subr.bf16.mxu0 %v11750_v22  ;;  %v15215_v24 = vld [vmem:[#allocation2 + $0x3c] sm:$0xf] }
 0x327   : > { %v5297_v28 = vshrl.u32 %v15177_v34, 16  ;;  %v5810_v1 = vrot.slane %v5809_v10, 4  ;;  %v5277_v44 = vor.u32 %v5275_v50, %v15179_v48  ;;  %v5300_v0 = vshll.u32 %v15177_v34, 16  ;;  %v15224_v50 = vld [vmem:[#allocation2 + $0x30] sm:$0xf] }
 0x328   : > { %v5820_v35 = vrot.slane %v5819_v62, 4  ;;  %v4934_v23 = vmax.f32 %v4894_v18, 0.0  ;;  %v6201_v3 = vrot.slane %v15149_v58, 5  ;;  %v15205_v41 = vrot.slane %v6396_v27, 5  ;;  %v5475_v62 = vld [vmem:[#allocation2 + $0xd4] sm:$0x1] }
 0x329   : > { %v5299_v21 = vrot.slane %v5297_v28, 7  ;;  %v5815_v19 = vsel %vm12393_vm14, %v5810_v1, %v5814_v6  ;;  %v5451_v31 = vsel %vm12242_vm6, %v5277_v44, %v5450_v38  ;;  %v5472_v15 = vsel %vm12242_vm6, %v5277_v44, %v5471_v8  ;;  %11245 = vmatpush3.bf16.msra.mxu0 %v11751_v40  ;;  %v5454_v38 = vld [vmem:[#allocation2 + $0xbc] sm:$0x1]  ;;  %v15230_v18 = vld [vmem:[#allocation2 + $0x40] sm:$0xf]  ;;  %v11752_v1 = vld [vmem:[#allocation8 + $0x238] sm:$0xff]  }
 0x32a   : > { %v5571_v46 = vld [vmem:[#allocation2 + $0xc0] sm:$0x1]  ;;  %v5825_v51 = vsel %vm12393_vm14, %v5820_v35, %v5824_v37  ;;  %5452 = vst [vmem:[#allocation2 + $0xb4] sm:$0xf] %v5451_v31  ;;  %5473 = vst [vmem:[#allocation2 + $0xcc] sm:$0xf] %v5472_v15  ;;  %v15207_v29 = vpack.c.bf16 %v4934_v23, %v4934_v23  ;;  %v10186_v8 = vcombine.low %v15215_v24, %v15230_v18  ;;  %11414 = vmatprep.subr.bf16.mxu1 %v11752_v1 }
 0x32b   : > { %v5572_v61 = vsel %vm12251_vm7, %v5289_v45, %v5571_v46  ;;  %v5302_v56 = vor.u32 %v5300_v0, %v5299_v21  ;;  %v5304_v30 = vrot.slane %v5299_v21, 4  ;;  %v10153_v9 = vcombine.low %v5815_v19, %v5825_v51  ;;  %v5718_v44 = vld [vmem:[#allocation2 + $0x38] sm:$0x1] }
 0x32c   : > { %5573 = vst [vmem:[#allocation2 + $0xc0] sm:$0x1] %v5572_v61  ;;  %v10089_v55 = vrot.slane %v6117_v25, 9  ;;  %v6203_v4 = vrot.slane %v6201_v3, 4  ;;  %v15209_v6 = vrot.slane %v6400_v5, 4  ;;  %v5506_v7 = vrot.slane %v5272_v26, 4 }
 0x32d   : > { %v5303_v45 = vsel %vm12235_vm5, %v5295_v13, %v5302_v56  ;;  %v5462_v14 = vsel %vm12251_vm7, %v5304_v30, %v5461_v52  ;;  %8769 = vmatprep.mubr.bf16.mxu1 %v10153_v9  ;;  %v15217_v36 = vrot.slane %v6393_v32, 4  ;;  %v5280_v27 = vshrl.u32 %v15207_v29, 16 }
 0x32e   : > { %5460 = vst [vmem:[#allocation2 + $0xc4] sm:$0xf] %v5303_v45  ;;  %5463 = vst [vmem:[#allocation2 + $0xc8] sm:$0x1] %v5462_v14  ;;  %v6202_v5 = vsel %vm12332_vm13, %v10089_v55, %v6201_v3  ;;  %v6205_v26 = vsel %vm12332_vm13, %v6203_v4, %v6204_v33  ;;  %v15226_v34 = vrot.slane %v6411_v59, 4  ;;  %v6414_v10 = vshll.u32 %v15123_v20, 16 }
 0x32f   : > { %v6420_v12 = vshll.u32 %v15138_v49, 16  ;;  %v10169_v37 = vcombine.low %v6202_v5, %v6205_v26  ;;  %v5282_v47 = vrot.slane %v5280_v27, 7  ;;  %v5283_v32 = vshll.u32 %v15207_v29, 16  ;;  %v15237_v59 = vld [vmem:[#allocation2 + $0x34] sm:$0xf] }
 0x330   : > { %v10137_v28 = vcombine.low %v15125_v17, %v15149_v58  ;;  %v5278_v20 = vrot.slane %v15179_v48, 4  ;;  %v5507_v13 = vrot.slane %v5506_v7, 4  ;;  %v5827_v35 = vshrl.u32 %v15224_v50, 16  ;;  %v6118_v3 = vld [vmem:[#allocation2 + $0x30] sm:$0xe] }
 0x331   : > { %8931 = vmatmul.mubr.bf16.gmra.mxu0 %v10169_v37  ;;  %v5830_v33 = vshll.u32 %v15224_v50, 16  ;;  %v5568_v19 = vld [vmem:[#allocation2 + $0xb4] sm:$0x1]  ;;  %v5676_v23 = vld [vmem:[#allocation2 + $0xcc] sm:$0x1]  ;;  %v10085_v17 = vrot.slane %v5300_v0, 11  ;;  %v5285_v58 = vor.u32 %v5283_v32, %v5282_v47 }
 0x332   : > { %v5287_v25 = vrot.slane %v5282_v47, 4  ;;  %8938 = vmatprep.mubr.bf16.mxu0 %v10186_v8  ;;  %8770 = vmatmul.mubr.bf16.gmra.mxu1 %v10137_v28  ;;  %v5569_v48 = vsel %vm12251_vm7, %v5507_v13, %v5568_v19  ;;  %v5677_v22 = vsel %vm12251_vm7, %v5507_v13, %v5676_v23  ;;  %v6435_v46 = vshrl.u32 %v15215_v24, 16  ;;  %v15269_v28 = vld [vmem:[#allocation2 + $0x3c] sm:$0xf]  ;;  %v5719_v19 = vld [vmem:[#allocation2 + $0x44] sm:$0x1] }
 0x333   : > { %v5829_v31 = vrot.slane %v5827_v35, 4  ;;  %5570 = vst [vmem:[#allocation2 + $0xb4] sm:$0x1] %v5569_v48  ;;  %5678 = vst [vmem:[#allocation2 + $0xcc] sm:$0x1] %v5677_v22  ;;  %v5286_v15 = vsel %vm12235_vm5, %v5278_v20, %v5285_v58  ;;  %v5832_v51 = vrot.slane %v5830_v33, 5 }
 0x334   : > { %v5455_v0 = vsel %vm12251_vm7, %v5287_v25, %v5454_v38  ;;  %v5476_v52 = vsel %vm12251_vm7, %v5287_v25, %v5475_v62  ;;  %5453 = vst [vmem:[#allocation2 + $0xb8] sm:$0xf] %v5286_v15  ;;  %5474 = vst [vmem:[#allocation2 + $0xd0] sm:$0xf] %v5286_v15  ;;  %v6438_v61 = vshll.u32 %v15215_v24, 16  ;;  %v5836_v56 = vshll.u32 %v15237_v59, 16 }
 0x335   : > { %v5667_v40 = vld [vmem:[#allocation2 + $0xc8] sm:$0x1]  ;;  %5456 = vst [vmem:[#allocation2 + $0xbc] sm:$0x1] %v5455_v0  ;;  %5477 = vst [vmem:[#allocation2 + $0xd4] sm:$0x1] %v5476_v52  ;;  %v5833_v29 = vor.u32 %v5832_v51, %v5829_v31 }
 0x336   : > { %v5840_v53 = vshrl.u32 %v15237_v59, 16  ;;  %v5846_v30 = vshll.u32 %v5718_v44, 16  ;;  %v5668_v9 = vsel %vm12293_vm10, %v10085_v17, %v5667_v40  ;;  %v6211_v16 = vrot.slane %v5718_v44, 5  ;;  %v15265_v38 = vld [vmem:[#allocation2 + $0x48] sm:$0xf] }
 0x337   : > { %v6208_v55 = vrot.slane %v15237_v59, 5  ;;  %v6416_v4 = vrot.slane %v6414_v10, 5  ;;  %5669 = vst [vmem:[#allocation2 + $0xc8] sm:$0x1] %v5668_v9  ;;  %v5602_v7 = vrot.slane %v5283_v32, 7  ;;  %v5838_v45 = vrot.slane %v5836_v56, 5 }
 0x338   : > { %v5842_v14 = vrot.slane %v5840_v53, 4  ;;  %v15263_v27 = vrot.slane %v6420_v12, 5  ;;  %v5834_v24 = vrot.slane %v5833_v29, 4  ;;  %v10090_v5 = vrot.slane %v6118_v3, 9  ;;  %v15279_v20 = vld [vmem:[#allocation2 + $0x40] sm:$0xf] }
 0x339   : > { %v6210_v26 = vrot.slane %v6208_v55, 4  ;;  %v6424_v62 = vshrl.u32 %v15138_v49, 16  ;;  %v6444_v37 = vshll.u32 %v15230_v18, 16  ;;  %v5848_v8 = vrot.slane %v5846_v30, 5  ;;  %v15283_v33 = vld [vmem:[#allocation2 + $0x4c] sm:$0xf] }
 0x33a   : > { %v5843_v47 = vor.u32 %v5842_v14, %v5838_v45  ;;  %v15271_v10 = vrot.slane %v6435_v46, 4  ;;  %v15273_v32 = vrot.slane %v6438_v61, 5  ;;  %v6209_v12 = vsel %vm12332_vm13, %v10090_v5, %v6208_v55  ;;  %v6119_v53 = vld [vmem:[#allocation2 + $0x3c] sm:$0xe] }
 0x33b   : > { %v6212_v1 = vsel %vm12332_vm13, %v6210_v26, %v6211_v16  ;;  %v5603_v13 = vrot.slane %v5602_v7, 4  ;;  %v5839_v49 = vsel %vm12393_vm14, %v5834_v24, %v5838_v45  ;;  %v6417_v23 = vor.u32 %v6416_v4, %v15226_v34  ;;  %v6302_v26 = vld [vmem:[#allocation2 + $0x54] sm:$0xf] }
 0x33c   : > { %v5844_v44 = vrot.slane %v5843_v47, 4  ;;  %v10170_v35 = vcombine.low %v6209_v12, %v6212_v1  ;;  %v5664_v17 = vld [vmem:[#allocation2 + $0xbc] sm:$0x1]  ;;  %v5679_v58 = vld [vmem:[#allocation2 + $0xd4] sm:$0x1]  ;;  %v10187_v25 = vcombine.low %v15265_v38, %v15283_v33  ;;  %v5851_v48 = vshrl.u32 %v15269_v28, 16 }
 0x33d   : > { %v5854_v22 = vshll.u32 %v15269_v28, 16  ;;  %v5665_v46 = vsel %vm12293_vm10, %v5603_v13, %v5664_v17  ;;  %v5680_v31 = vsel %vm12293_vm10, %v5603_v13, %v5679_v58  ;;  %v5860_v34 = vshll.u32 %v15279_v20, 16  ;;  %v15316_v12 = vld [vmem:[#allocation2 + $0x4c] sm:$0xf]  ;;  %v5720_v13 = vld [vmem:[#allocation2 + $0x50] sm:$0x1] }
 0x33e   : > { %v5849_v15 = vsel %vm12393_vm14, %v5844_v44, %v5848_v8  ;;  %8939 = vmatmul.mubr.bf16.gmra.mxu0 %v10170_v35  ;;  %5666 = vst [vmem:[#allocation2 + $0xbc] sm:$0x1] %v5665_v46  ;;  %5681 = vst [vmem:[#allocation2 + $0xd4] sm:$0x1] %v5680_v31  ;;  %v6459_v52 = vshrl.u32 %v15265_v38, 16  ;;  %v5853_v51 = vrot.slane %v5851_v48, 4  ;;  %v10138_v40 = vcombine.low %v15224_v50, %v15237_v59 }
 0x33f   : > { %v10154_v0 = vcombine.low %v5839_v49, %v5849_v15  ;;  %8946 = vmatprep.mubr.bf16.mxu0 %v10187_v25  ;;  %v5856_v3 = vrot.slane %v5854_v22, 5  ;;  %v5862_v61 = vrot.slane %v5860_v34, 5  ;;  %v5864_v43 = vshrl.u32 %v15279_v20, 16  ;;  %v15309_v59 = vld [vmem:[#allocation2 + $0x48] sm:$0xf] }
 0x340   : > { %v5870_v56 = vshll.u32 %v5719_v19, 16  ;;  %v15301_v30 = vrot.slane %v6417_v23, 4  ;;  %v6218_v29 = vrot.slane %v5719_v19, 5  ;;  %v6215_v16 = vrot.slane %v15279_v20, 5 }
 0x341   : > { %8777 = vmatprep.mubr.bf16.mxu1 %v10154_v0  ;;  %v5857_v9 = vor.u32 %v5856_v3, %v5853_v51  ;;  %v15304_v55 = vrot.slane %v6424_v62, 4  ;;  %v15306_v4 = vrot.slane %v6444_v37, 5  ;;  %v6448_v7 = vshrl.u32 %v15230_v18, 16  ;;  %v6120_v51 = vld [vmem:[#allocation2 + $0x48] sm:$0xe] }
 0x342   : > { %8778 = vmatmul.mubr.bf16.gmra.mxu1 %v10138_v40  ;;  %v5866_v50 = vrot.slane %v5864_v43, 4  ;;  %v6441_v45 = vor.u32 %v15273_v32, %v15271_v10  ;;  %v10091_v24 = vrot.slane %v6119_v53, 9  ;;  %v6217_v5 = vrot.slane %v6215_v16, 4  ;;  %v15323_v32 = vld [vmem:[#allocation2 + $0x58] sm:$0xf] }
 0x343   : > { %v5858_v14 = vrot.slane %v5857_v9, 4  ;;  %v15313_v47 = vrot.slane %v6459_v52, 4  ;;  %v6462_v62 = vshll.u32 %v15265_v38, 16  ;;  %v5872_v37 = vrot.slane %v5870_v56, 5 }
 0x344   : > { %v5867_v8 = vor.u32 %v5866_v50, %v5862_v61  ;;  %v6468_v18 = vshll.u32 %v15283_v33, 16  ;;  %v6216_v1 = vsel %vm12332_vm13, %v10091_v24, %v6215_v16  ;;  %v6219_v10 = vsel %vm12332_vm13, %v6217_v5, %v6218_v29  ;;  %v15339_v16 = vld [vmem:[#allocation2 + $0x58] sm:$0xf] }
 0x345   : > { %v5875_v49 = vshrl.u32 %v15309_v59, 16  ;;  %v5863_v38 = vsel %vm12393_vm14, %v5858_v14, %v5862_v61  ;;  %v10171_v35 = vcombine.low %v6216_v1, %v6219_v10  ;;  %v10188_v19 = vcombine.low %v6302_v26, %v15323_v32  ;;  %v15359_v10 = vld [vmem:[#allocation2 + $0x64] sm:$0xf] }
 0x346   : > { %v5868_v44 = vrot.slane %v5867_v8, 4  ;;  %v5878_v17 = vshll.u32 %v15309_v59, 16  ;;  %v5884_v58 = vshll.u32 %v15316_v12, 16  ;;  %v5888_v25 = vshrl.u32 %v15316_v12, 16  ;;  %v15349_v8 = vld [vmem:[#allocation2 + $0x54] sm:$0xf] }
 0x347   : > { %v5877_v23 = vrot.slane %v5875_v49, 4  ;;  %v6464_v48 = vrot.slane %v6462_v62, 5  ;;  %8947 = vmatmul.mubr.bf16.gmra.mxu0 %v10171_v35  ;;  %v6483_v46 = vshrl.u32 %v6302_v26, 16  ;;  %v5894_v31 = vshll.u32 %v5720_v13, 16 }
 0x348   : > { %v5873_v22 = vsel %vm12393_vm14, %v5868_v44, %v5872_v37  ;;  %8954 = vmatprep.mubr.bf16.mxu0 %v10188_v19  ;;  %v5880_v34 = vrot.slane %v5878_v17, 5  ;;  %v5886_v0 = vrot.slane %v5884_v58, 5  ;;  %v5890_v52 = vrot.slane %v5888_v25, 4 }
 0x349   : > { %v10155_v15 = vcombine.low %v5863_v38, %v5873_v22  ;;  %v6486_v3 = vshll.u32 %v6302_v26, 16  ;;  %v10139_v40 = vcombine.low %v15269_v28, %v15279_v20  ;;  %v6225_v61 = vrot.slane %v5720_v13, 5  ;;  %v15344_v26 = vld [vmem:[#allocation2 + $0x60] sm:$0xf]  ;;  %v5721_v13 = vld [vmem:[#allocation2 + $0x5c] sm:$0x1] }
 0x34a   : > { %v6222_v43 = vrot.slane %v15316_v12, 5  ;;  %v15337_v56 = vrot.slane %v6448_v7, 4  ;;  %v5881_v53 = vor.u32 %v5880_v34, %v5877_v23  ;;  %v5891_v9 = vor.u32 %v5890_v52, %v5886_v0  ;;  %v6121_v34 = vld [vmem:[#allocation2 + $0x54] sm:$0xe] }
 0x34b   : > { %8785 = vmatprep.mubr.bf16.mxu1 %v10155_v15  ;;  %v5896_v29 = vrot.slane %v5894_v31, 5  ;;  %v15341_v50 = vrot.slane %v6441_v45, 4  ;;  %v6472_v14 = vshrl.u32 %v15283_v33, 16  ;;  %v10092_v24 = vrot.slane %v6120_v51, 9 }
 0x34c   : > { %8786 = vmatmul.mubr.bf16.gmra.mxu1 %v10139_v40  ;;  %v6224_v5 = vrot.slane %v6222_v43, 4  ;;  %v6465_v28 = vor.u32 %v6464_v48, %v15313_v47  ;;  %v15347_v20 = vrot.slane %v6468_v18, 5  ;;  %v5882_v7 = vrot.slane %v5881_v53, 4 }
 0x34d   : > { %v5892_v62 = vrot.slane %v5891_v9, 4  ;;  %v15351_v37 = vrot.slane %v6483_v46, 4  ;;  %v15353_v1 = vrot.slane %v6486_v3, 5  ;;  %v6223_v33 = vsel %vm12332_vm13, %v10092_v24, %v6222_v43  ;;  %v15385_v24 = vld [vmem:[#allocation2 + $0x6c] sm:$0xf] }
 0x34e   : > { %v6226_v45 = vsel %vm12332_vm13, %v6224_v5, %v6225_v61  ;;  %v5887_v47 = vsel %vm12393_vm14, %v5882_v7, %v5886_v0  ;;  %v10189_v38 = vcombine.low %v15344_v26, %v15359_v10  ;;  %v5899_v35 = vshrl.u32 %v15349_v8, 16 }
 0x34f   : > { %v5897_v18 = vsel %vm12393_vm14, %v5892_v62, %v5896_v29  ;;  %v10172_v49 = vcombine.low %v6223_v33, %v6226_v45  ;;  %v5902_v19 = vshll.u32 %v15349_v8, 16  ;;  %v5908_v23 = vshll.u32 %v15339_v16, 16 }
 0x350   : > { %v10156_v44 = vcombine.low %v5887_v47, %v5897_v18  ;;  %v15370_v17 = vrot.slane %v6472_v14, 4  ;;  %v6507_v58 = vshrl.u32 %v15344_v26, 16  ;;  %v5912_v25 = vshrl.u32 %v15339_v16, 16  ;;  %v5722_v47 = vld [vmem:[#allocation2 + $0x68] sm:$0x1] }
 0x351   : > { %8955 = vmatmul.mubr.bf16.gmra.mxu0 %v10172_v49  ;;  %v5918_v48 = vshll.u32 %v5721_v13, 16  ;;  %v10140_v22 = vcombine.low %v15309_v59, %v15316_v12  ;;  %v5901_v46 = vrot.slane %v5899_v35, 4  ;;  %v5904_v31 = vrot.slane %v5902_v19, 5  ;;  %v15383_v59 = vld [vmem:[#allocation2 + $0x60] sm:$0xf] }
 0x352   : > { %8793 = vmatprep.mubr.bf16.mxu1 %v10156_v44  ;;  %8962 = vmatprep.mubr.bf16.mxu0 %v10189_v38  ;;  %v5910_v15 = vrot.slane %v5908_v23, 5  ;;  %v15376_v0 = vrot.slane %v6465_v28, 4  ;;  %v5914_v52 = vrot.slane %v5912_v25, 4  ;;  %v6232_v51 = vrot.slane %v5721_v13, 5  ;;  %v15398_v13 = vld [vmem:[#allocation2 + $0x70] sm:$0xf] }
 0x353   : > { %v6229_v3 = vrot.slane %v15339_v16, 5  ;;  %v6489_v40 = vor.u32 %v15353_v1, %v15351_v37  ;;  %v6492_v61 = vshll.u32 %v15323_v32, 16  ;;  %v6496_v43 = vshrl.u32 %v15323_v32, 16  ;;  %v15391_v37 = vld [vmem:[#allocation2 + $0x64] sm:$0xf] }
 0x354   : > { %8794 = vmatmul.mubr.bf16.gmra.mxu1 %v10140_v22  ;;  %v5905_v53 = vor.u32 %v5904_v31, %v5901_v46  ;;  %v5915_v12 = vor.u32 %v5914_v52, %v5910_v15  ;;  %v5920_v9 = vrot.slane %v5918_v48, 5  ;;  %v10093_v29 = vrot.slane %v6121_v34, 9  ;;  %v6122_v34 = vld [vmem:[#allocation2 + $0x60] sm:$0xe] }
 0x355   : > { %v6231_v14 = vrot.slane %v6229_v3, 4  ;;  %v15387_v5 = vrot.slane %v6507_v58, 4  ;;  %v6510_v28 = vshll.u32 %v15344_v26, 16  ;;  %v6516_v7 = vshll.u32 %v15359_v10, 16 }
 0x356   : > { %v5906_v62 = vrot.slane %v5905_v53, 4  ;;  %v6520_v32 = vshrl.u32 %v15359_v10, 16  ;;  %v5916_v1 = vrot.slane %v5915_v12, 4  ;;  %v6230_v33 = vsel %vm12332_vm13, %v10093_v29, %v6229_v3 }
 0x357   : > { %v6233_v45 = vsel %vm12332_vm13, %v6231_v14, %v6232_v51  ;;  %v10190_v49 = vcombine.low %v15385_v24, %v15398_v13  ;;  %v5923_v38 = vshrl.u32 %v15383_v59, 16  ;;  %v5926_v44 = vshll.u32 %v15383_v59, 16 }
 0x358   : > { %v5911_v26 = vsel %vm12393_vm14, %v5906_v62, %v5910_v15  ;;  %v10173_v18 = vcombine.low %v6230_v33, %v6233_v45  ;;  %v5921_v10 = vsel %vm12393_vm14, %v5916_v1, %v5920_v9  ;;  %v5932_v35 = vshll.u32 %v15391_v37, 16 }
 0x359   : > { %v5936_v19 = vshrl.u32 %v15391_v37, 16  ;;  %v15410_v23 = vrot.slane %v6510_v28, 5  ;;  %v10157_v58 = vcombine.low %v5911_v26, %v5921_v10  ;;  %v5925_v25 = vrot.slane %v5923_v38, 4  ;;  %v15421_v28 = vld [vmem:[#allocation2 + $0x78] sm:$0xf] }
 0x35a   : > { %8963 = vmatmul.mubr.bf16.gmra.mxu0 %v10173_v18  ;;  %v5942_v48 = vshll.u32 %v5722_v47, 16  ;;  %v10141_v22 = vcombine.low %v15349_v8, %v15339_v16  ;;  %v5928_v46 = vrot.slane %v5926_v44, 5  ;;  %v5934_v31 = vrot.slane %v5932_v35, 5  ;;  %v5723_v38 = vld [vmem:[#allocation2 + $0x74] sm:$0x1] }
 0x35b   : > { %8970 = vmatprep.mubr.bf16.mxu0 %v10190_v49  ;;  %v5938_v15 = vrot.slane %v5936_v19, 4  ;;  %v15414_v52 = vrot.slane %v6492_v61, 5  ;;  %v15416_v51 = vrot.slane %v6496_v43, 4  ;;  %8801 = vmatprep.mubr.bf16.mxu1 %v10157_v58  ;;  %v6239_v3 = vrot.slane %v5722_v47, 5  ;;  %v15427_v43 = vld [vmem:[#allocation2 + $0x6c] sm:$0xf] }
 0x35c   : > { %v6236_v53 = vrot.slane %v15391_v37, 5  ;;  %v15419_v12 = vrot.slane %v6489_v40, 4  ;;  %8802 = vmatmul.mubr.bf16.gmra.mxu1 %v10141_v22  ;;  %v5929_v9 = vor.u32 %v5928_v46, %v5925_v25  ;;  %v5944_v14 = vrot.slane %v5942_v48, 5  ;;  %v15432_v47 = vld [vmem:[#allocation2 + $0x70] sm:$0xf] }
 0x35d   : > { %v5939_v29 = vor.u32 %v5938_v15, %v5934_v31  ;;  %v15423_v16 = vrot.slane %v6516_v7, 5  ;;  %v15425_v8 = vrot.slane %v6520_v32, 4  ;;  %v10094_v61 = vrot.slane %v6122_v34, 9  ;;  %v15440_v49 = vld [vmem:[#allocation2 + $0x7c] sm:$0xf] }
 0x35e   : > { %v6238_v62 = vrot.slane %v6236_v53, 4  ;;  %v6513_v1 = vor.u32 %v15410_v23, %v15387_v5  ;;  %v6531_v40 = vshrl.u32 %v15385_v24, 16  ;;  %v5930_v33 = vrot.slane %v5929_v9, 4 }
 0x35f   : > { %v5940_v45 = vrot.slane %v5939_v29, 4  ;;  %v6534_v26 = vshll.u32 %v15385_v24, 16  ;;  %v6540_v7 = vshll.u32 %v15398_v13, 16  ;;  %v6237_v32 = vsel %vm12332_vm13, %v10094_v61, %v6236_v53  ;;  %v6123_v53 = vld [vmem:[#allocation2 + $0x6c] sm:$0xe] }
 0x360   : > { %v6240_v18 = vsel %vm12332_vm13, %v6238_v62, %v6239_v3  ;;  %v5935_v5 = vsel %vm12393_vm14, %v5930_v33, %v5934_v31  ;;  %v10191_v24 = vcombine.low %v15421_v28, %v15440_v49  ;;  %v5947_v19 = vshrl.u32 %v15427_v43, 16  ;;  %v15461_v33 = vld [vmem:[#allocation2 + $0x78] sm:$0xf] }
 0x361   : > { %v5945_v10 = vsel %vm12393_vm14, %v5940_v45, %v5944_v14  ;;  %v10174_v44 = vcombine.low %v6237_v32, %v6240_v18  ;;  %v5950_v23 = vshll.u32 %v15427_v43, 16  ;;  %v5956_v58 = vshll.u32 %v15432_v47, 16 }
 0x362   : > { %v10158_v35 = vcombine.low %v5935_v5, %v5945_v10  ;;  %v6533_v25 = vrot.slane %v6531_v40, 4  ;;  %v10142_v48 = vcombine.low %v15383_v59, %v15391_v37  ;;  %v5960_v22 = vshrl.u32 %v15432_v47, 16  ;;  %v15463_v5 = vld [vmem:[#allocation2 + $0x84] sm:$0xf] }
 0x363   : > { %8971 = vmatmul.mubr.bf16.gmra.mxu0 %v10174_v44  ;;  %v5966_v46 = vshll.u32 %v5723_v38, 16  ;;  %v6536_v31 = vrot.slane %v6534_v26, 5  ;;  %v5949_v15 = vrot.slane %v5947_v19, 4  ;;  %v5952_v34 = vrot.slane %v5950_v23, 5  ;;  %v15475_v23 = vld [vmem:[#allocation2 + $0x88] sm:$0xf] }
 0x364   : > { %8809 = vmatprep.mubr.bf16.mxu1 %v10158_v35  ;;  %8978 = vmatprep.mubr.bf16.mxu0 %v10191_v24  ;;  %v5958_v3 = vrot.slane %v5956_v58, 5  ;;  %v6555_v9 = vshrl.u32 %v15421_v28, 16  ;;  %v5962_v29 = vrot.slane %v5960_v22, 4  ;;  %v6246_v14 = vrot.slane %v5723_v38, 5  ;;  %v15467_v24 = vld [vmem:[#allocation2 + $0x7c] sm:$0xf] }
 0x365   : > { %8810 = vmatmul.mubr.bf16.gmra.mxu1 %v10142_v48  ;;  %v6243_v61 = vrot.slane %v15432_v47, 5  ;;  %v15456_v62 = vrot.slane %v6513_v1, 4  ;;  %v15458_v59 = vrot.slane %v6540_v7, 5  ;;  %v6544_v37 = vshrl.u32 %v15398_v13, 16  ;;  %v5724_v58 = vld [vmem:[#allocation2 + $0x80] sm:$0x1] }
 0x366   : > { %v5953_v40 = vor.u32 %v5952_v34, %v5949_v15  ;;  %v5963_v45 = vor.u32 %v5962_v29, %v5958_v3  ;;  %v5968_v26 = vrot.slane %v5966_v46, 5  ;;  %v10095_v32 = vrot.slane %v6123_v53, 9 }
 0x367   : > { %v6245_v18 = vrot.slane %v6243_v61, 4  ;;  %v6537_v10 = vor.u32 %v6536_v31, %v6533_v25  ;;  %v6558_v38 = vshll.u32 %v15421_v28, 16  ;;  %v6564_v44 = vshll.u32 %v15440_v49, 16 }
 0x368   : > { %v5954_v1 = vrot.slane %v5953_v40, 4  ;;  %v15469_v7 = vrot.slane %v6555_v9, 4  ;;  %v5964_v13 = vrot.slane %v5963_v45, 4  ;;  %v6244_v35 = vsel %vm12332_vm13, %v10095_v32, %v6243_v61 }
 0x369   : > { %v6247_v19 = vsel %vm12332_vm13, %v6245_v18, %v6246_v14  ;;  %v10192_v48 = vcombine.low %v15463_v5, %v15475_v23  ;;  %v5971_v22 = vshrl.u32 %v15461_v33, 16  ;;  %v5974_v31 = vshll.u32 %v15461_v33, 16 }
 0x36a   : > { %v5959_v28 = vsel %vm12393_vm14, %v5954_v1, %v5958_v3  ;;  %v10175_v25 = vcombine.low %v6244_v35, %v6247_v19  ;;  %v5969_v46 = vsel %vm12393_vm14, %v5964_v13, %v5968_v26  ;;  %v5980_v15 = vshll.u32 %v15467_v24, 16  ;;  %v6124_v26 = vld [vmem:[#allocation2 + $0x78] sm:$0xe] }
 0x36b   : > { %v5984_v34 = vshrl.u32 %v15467_v24, 16  ;;  %v15487_v53 = vrot.slane %v6558_v38, 5  ;;  %v10159_v9 = vcombine.low %v5959_v28, %v5969_v46  ;;  %v5973_v3 = vrot.slane %v5971_v22, 4 }
 0x36c   : > { %8979 = vmatmul.mubr.bf16.gmra.mxu0 %v10175_v25  ;;  %v5990_v29 = vshll.u32 %v5724_v58, 16  ;;  %v10143_v14 = vcombine.low %v15427_v43, %v15432_v47  ;;  %v5976_v61 = vrot.slane %v5974_v31, 5  ;;  %v5982_v40 = vrot.slane %v5980_v15, 5  ;;  %v15497_v25 = vld [vmem:[#allocation2 + $0x90] sm:$0xf] }
 0x36d   : > { %8986 = vmatprep.mubr.bf16.mxu0 %v10192_v48  ;;  %v5986_v45 = vrot.slane %v5984_v34, 4  ;;  %v15491_v32 = vrot.slane %v6537_v10, 4  ;;  %v15493_v18 = vrot.slane %v6544_v37, 4  ;;  %8817 = vmatprep.mubr.bf16.mxu1 %v10159_v9  ;;  %v6253_v1 = vrot.slane %v5724_v58, 5  ;;  %v15503_v48 = vld [vmem:[#allocation2 + $0x84] sm:$0xf] }
 0x36e   : > { %v6250_v38 = vrot.slane %v15467_v24, 5  ;;  %v6568_v13 = vshrl.u32 %v15440_v49, 16  ;;  %8818 = vmatmul.mubr.bf16.gmra.mxu1 %v10143_v14  ;;  %v5977_v35 = vor.u32 %v5976_v61, %v5973_v3  ;;  %v5992_v28 = vrot.slane %v5990_v29, 5  ;;  %v15507_v31 = vld [vmem:[#allocation2 + $0x88] sm:$0xf] }
 0x36f   : > { %v5987_v19 = vor.u32 %v5986_v45, %v5982_v40  ;;  %v6561_v43 = vor.u32 %v15487_v53, %v15469_v7  ;;  %v15501_v47 = vrot.slane %v6564_v44, 5  ;;  %v10096_v10 = vrot.slane %v6124_v26, 9  ;;  %v15515_v53 = vld [vmem:[#allocation2 + $0x94] sm:$0xf]  ;;  %v5725_v9 = vld [vmem:[#allocation2 + $0x8c] sm:$0x1] }
 0x370   : > { %v6252_v37 = vrot.slane %v6250_v38, 4  ;;  %v6579_v58 = vshrl.u32 %v15463_v5, 16  ;;  %v6582_v22 = vshll.u32 %v15463_v5, 16  ;;  %v5978_v49 = vrot.slane %v5977_v35, 4 }
 0x371   : > { %17522 = vst [vmem:[#allocation26_spill] sm:$0xff] %v15501_v47  ;;  %v5988_v46 = vrot.slane %v5987_v19, 4  ;;  %v6588_v15 = vshll.u32 %v15475_v23, 16  ;;  %v6592_v34 = vshrl.u32 %v15475_v23, 16  ;;  %v6251_v44 = vsel %vm12332_vm13, %v10096_v10, %v6250_v38 }
 0x372   : > { %v6254_v7 = vsel %vm12332_vm13, %v6252_v37, %v6253_v1  ;;  %v5983_v5 = vsel %vm12393_vm14, %v5978_v49, %v5982_v40  ;;  %v10193_v14 = vcombine.low %v15497_v25, %v15515_v53  ;;  %v5995_v61 = vshrl.u32 %v15503_v48, 16  ;;  %v6125_v49 = vld [vmem:[#allocation2 + $0x84] sm:$0xe] }
 0x373   : > { %v5993_v3 = vsel %vm12393_vm14, %v5988_v46, %v5992_v28  ;;  %v10176_v29 = vcombine.low %v6251_v44, %v6254_v7  ;;  %v5998_v45 = vshll.u32 %v15503_v48, 16  ;;  %v6004_v26 = vshll.u32 %v15507_v31, 16 }
 0x374   : > { %v10160_v23 = vcombine.low %v5983_v5, %v5993_v3  ;;  %v6581_v1 = vrot.slane %v6579_v58, 4  ;;  %v10144_v38 = vcombine.low %v15461_v33, %v15467_v24  ;;  %v6008_v40 = vshrl.u32 %v15507_v31, 16  ;;  %v15538_v3 = vld [vmem:[#allocation2 + $0x90] sm:$0xf] }
 0x375   : > { %8987 = vmatmul.mubr.bf16.gmra.mxu0 %v10176_v29  ;;  %v6014_v35 = vshll.u32 %v5725_v9, 16  ;;  %v6584_v19 = vrot.slane %v6582_v22, 5  ;;  %v5997_v28 = vrot.slane %v5995_v61, 4  ;;  %v6000_v10 = vrot.slane %v5998_v45, 5 }
 0x376   : > { %8825 = vmatprep.mubr.bf16.mxu1 %v10160_v23  ;;  %8994 = vmatprep.mubr.bf16.mxu0 %v10193_v14  ;;  %v6006_v37 = vrot.slane %v6004_v26, 5  ;;  %v15529_v46 = vrot.slane %v6568_v13, 4  ;;  %v6010_v44 = vrot.slane %v6008_v40, 4  ;;  %v6260_v7 = vrot.slane %v5725_v9, 5  ;;  %v6314_v13 = vld [vmem:[#allocation2 + $0x9c] sm:$0xf] }
 0x377   : > { %8826 = vmatmul.mubr.bf16.gmra.mxu1 %v10144_v38  ;;  %v6257_v58 = vrot.slane %v15507_v31, 5  ;;  %v15532_v5 = vrot.slane %v6561_v43, 4  ;;  %v15534_v33 = vrot.slane %v6588_v15, 5  ;;  %v15536_v24 = vrot.slane %v6592_v34, 4  ;;  %v15542_v43 = vld [vmem:[#allocation2 + $0x94] sm:$0xf] }
 0x378   : > { %17523 = vst [vmem:[#allocation29_spill] sm:$0xff] %v15529_v46  ;;  %v6001_v22 = vor.u32 %v6000_v10, %v5997_v28  ;;  %v6011_v29 = vor.u32 %v6010_v44, %v6006_v37  ;;  %v6016_v14 = vrot.slane %v6014_v35, 5  ;;  %v10097_v23 = vrot.slane %v6125_v49, 9  ;;  %v15549_v28 = vld [vmem:[#allocation2 + $0xa0] sm:$0xf] }
 0x379   : > { %17524 = vst [vmem:[#allocation32_spill] sm:$0xff] %v15532_v5  ;;  %17525 = vst [vmem:[#allocation45_spill] sm:$0xff] %v15534_v33  ;;  %v6259_v61 = vrot.slane %v6257_v58, 4  ;;  %v6585_v45 = vor.u32 %v6584_v19, %v6581_v1  ;;  %v6603_v26 = vshrl.u32 %v15497_v25, 16  ;;  %v6606_v9 = vshll.u32 %v15497_v25, 16 }
 0x37a   : > { %17526 = vst [vmem:[#allocation57_spill] sm:$0xff] %v15536_v24  ;;  %v6002_v38 = vrot.slane %v6001_v22, 4  ;;  %v6612_v15 = vshll.u32 %v15515_v53, 16  ;;  %v6012_v34 = vrot.slane %v6011_v29, 4  ;;  %v6258_v40 = vsel %vm12332_vm13, %v10097_v23, %v6257_v58  ;;  %v5726_v10 = vld [vmem:[#allocation2 + $0x98] sm:$0x1] }
 0x37b   : > { %v6261_v35 = vsel %vm12332_vm13, %v6259_v61, %v6260_v7  ;;  %v10194_v25 = vcombine.low %v6314_v13, %v15549_v28  ;;  %v6019_v49 = vshrl.u32 %v15538_v3, 16  ;;  %v6022_v22 = vshll.u32 %v15538_v3, 16 }
 0x37c   : > { %v6007_v1 = vsel %vm12393_vm14, %v6002_v38, %v6006_v37  ;;  %v10177_v19 = vcombine.low %v6258_v40, %v6261_v35  ;;  %v6017_v44 = vsel %vm12393_vm14, %v6012_v34, %v6016_v14  ;;  %v6028_v58 = vshll.u32 %v15542_v43, 16  ;;  %v6126_v14 = vld [vmem:[#allocation2 + $0x90] sm:$0xe] }
 0x37d   : > { %v6032_v7 = vshrl.u32 %v15542_v43, 16  ;;  %v6616_v29 = vshrl.u32 %v15515_v53, 16  ;;  %v10161_v23 = vcombine.low %v6007_v1, %v6017_v44  ;;  %v6021_v61 = vrot.slane %v6019_v49, 4 }
 0x37e   : > { %8995 = vmatmul.mubr.bf16.gmra.mxu0 %v10177_v19  ;;  %v6038_v37 = vshll.u32 %v5726_v10, 16  ;;  %v10145_v38 = vcombine.low %v15503_v48, %v15507_v31  ;;  %v6024_v40 = vrot.slane %v6022_v22, 5  ;;  %v6030_v35 = vrot.slane %v6028_v58, 5  ;;  %v15570_v22 = vld [vmem:[#allocation2 + $0xa0] sm:$0xf] }
 0x37f   : > { %9002 = vmatprep.mubr.bf16.mxu0 %v10194_v25  ;;  %v6034_v21 = vrot.slane %v6032_v7, 4  ;;  %8833 = vmatprep.mubr.bf16.mxu1 %v10161_v23  ;;  %v6627_v34 = vshrl.u32 %v6314_v13, 16  ;;  %v6630_v24 = vshll.u32 %v6314_v13, 16  ;;  %v6267_v33 = vrot.slane %v5726_v10, 5  ;;  %v6316_v25 = vld [vmem:[#allocation2 + $0xa8] sm:$0xf] }
 0x380   : > { %v6264_v5 = vrot.slane %v15542_v43, 5  ;;  %v15564_v46 = vrot.slane %v6585_v45, 4  ;;  %8834 = vmatmul.mubr.bf16.gmra.mxu1 %v10145_v38  ;;  %v6025_v53 = vor.u32 %v6024_v40, %v6021_v61  ;;  %v6040_v19 = vrot.slane %v6038_v37, 5  ;;  %v15576_v7 = vld [vmem:[#allocation2 + $0x9c] sm:$0xf] }
 0x381   : > { %v6035_v1 = vor.u32 %v6034_v21, %v6030_v35  ;;  %v15566_v49 = vrot.slane %v6603_v26, 4  ;;  %v15568_v48 = vrot.slane %v6606_v9, 5  ;;  %v10098_v31 = vrot.slane %v6126_v14, 9  ;;  %v15586_v61 = vld [vmem:[#allocation2 + $0xac] sm:$0xf] }
 0x382   : > { %17527 = vst [vmem:[#allocation33_spill] sm:$0xff] %v15564_v46  ;;  %v6266_v44 = vrot.slane %v6264_v5, 4  ;;  %v15572_v58 = vrot.slane %v6612_v15, 5  ;;  %v15574_v13 = vrot.slane %v6616_v29, 4  ;;  %v6026_v10 = vrot.slane %v6025_v53, 4 }
 0x383   : > { %v6036_v45 = vrot.slane %v6035_v1, 4  ;;  %v15578_v23 = vrot.slane %v6627_v34, 4  ;;  %v15580_v21 = vrot.slane %v6630_v24, 5  ;;  %v6265_v26 = vsel %vm12332_vm13, %v10098_v31, %v6264_v5  ;;  %v5727_v15 = vld [vmem:[#allocation2 + $0xa4] sm:$0x1] }
 0x384   : > { %17528 = vst [vmem:[#allocation34_spill] sm:$0xff] %v15572_v58  ;;  %17529 = vst [vmem:[#allocation36_spill] sm:$0xff] %v15574_v13  ;;  %v6268_v9 = vsel %vm12332_vm13, %v6266_v44, %v6267_v33  ;;  %v6031_v29 = vsel %vm12393_vm14, %v6026_v10, %v6030_v35  ;;  %v10195_v40 = vcombine.low %v6316_v25, %v15586_v61  ;;  %v6043_v14 = vshrl.u32 %v15576_v7, 16  ;;  %v15611_v13 = vld [vmem:[#allocation2 + $0xac] sm:$0xf] }
 0x385   : > { %v6041_v37 = vsel %vm12393_vm14, %v6036_v45, %v6040_v19  ;;  %v10178_v38 = vcombine.low %v6265_v26, %v6268_v9  ;;  %v6046_v5 = vshll.u32 %v15576_v7, 16  ;;  %v6052_v34 = vshll.u32 %v15570_v22, 16  ;;  %v6127_v45 = vld [vmem:[#allocation2 + $0x9c] sm:$0xe]  ;;  %v6128_v46 = vld [vmem:[#allocation2 + $0xa8] sm:$0xe] }
 0x386   : > { %v10162_v24 = vcombine.low %v6031_v29, %v6041_v37  ;;  %v6651_v33 = vshrl.u32 %v6316_v25, 16  ;;  %v10146_v53 = vcombine.low %v15538_v3, %v15542_v43  ;;  %v6056_v35 = vshrl.u32 %v15570_v22, 16 }
 0x387   : > { %9003 = vmatmul.mubr.bf16.gmra.mxu0 %v10178_v38  ;;  %v6062_v1 = vshll.u32 %v5727_v15, 16  ;;  %v6654_v19 = vshll.u32 %v6316_v25, 16  ;;  %v6045_v31 = vrot.slane %v6043_v14, 4  ;;  %v6048_v44 = vrot.slane %v6046_v5, 5 }
 0x388   : > { %8841 = vmatprep.mubr.bf16.mxu1 %v10162_v24  ;;  %9010 = vmatprep.mubr.bf16.mxu0 %v10195_v40  ;;  %v6054_v10 = vrot.slane %v6052_v34, 5  ;;  %v6609_v26 = vor.u32 %v15568_v48, %v15566_v49  ;;  %v6058_v9 = vrot.slane %v6056_v35, 4  ;;  %v6274_v29 = vrot.slane %v5727_v15, 5  ;;  %v15606_v40 = vld [vmem:[#allocation2 + $0xa8] sm:$0xf] }
 0x389   : > { %8842 = vmatmul.mubr.bf16.gmra.mxu1 %v10146_v53  ;;  %v6271_v37 = vrot.slane %v15570_v22, 5  ;;  %v6633_v3 = vor.u32 %v15580_v21, %v15578_v23  ;;  %v6636_v43 = vshll.u32 %v15549_v28, 16  ;;  %v6640_v25 = vshrl.u32 %v15549_v28, 16  ;;  %v15608_v49 = vld [vmem:[#allocation2 + $0xb4] sm:$0xf] }
 0x38a   : > { %v6049_v38 = vor.u32 %v6048_v44, %v6045_v31  ;;  %v6059_v24 = vor.u32 %v6058_v9, %v6054_v10  ;;  %v6064_v14 = vrot.slane %v6062_v1, 5  ;;  %v10099_v5 = vrot.slane %v6127_v45, 9  ;;  %v15618_v31 = vld [vmem:[#allocation2 + $0xb8] sm:$0xf]  ;;  %v5728_v44 = vld [vmem:[#allocation2 + $0xb0] sm:$0x1] }
 0x38b   : > { %v6273_v34 = vrot.slane %v6271_v37, 4  ;;  %v6653_v48 = vrot.slane %v6651_v33, 4  ;;  %v6656_v15 = vrot.slane %v6654_v19, 5  ;;  %v6660_v53 = vshll.u32 %v15586_v61, 16 }
 0x38c   : > { %v6050_v35 = vrot.slane %v6049_v38, 4  ;;  %v6664_v23 = vshrl.u32 %v15586_v61, 16  ;;  %v6060_v21 = vrot.slane %v6059_v24, 4  ;;  %v6272_v28 = vsel %vm12332_vm13, %v10099_v5, %v6271_v37 }
 0x38d   : > { %v6275_v1 = vsel %vm12332_vm13, %v6273_v34, %v6274_v29  ;;  %v10196_v45 = vcombine.low %v15608_v49, %v15618_v31  ;;  %v6067_v9 = vshrl.u32 %v15606_v40, 16  ;;  %v6070_v37 = vshll.u32 %v15606_v40, 16 }
 0x38e   : > { %v6055_v33 = vsel %vm12393_vm14, %v6050_v35, %v6054_v10  ;;  %v10179_v19 = vcombine.low %v6272_v28, %v6275_v1  ;;  %v6065_v61 = vsel %vm12393_vm14, %v6060_v21, %v6064_v14  ;;  %v6076_v38 = vshll.u32 %v15611_v13, 16 }
 0x38f   : > { %v6080_v29 = vshrl.u32 %v15611_v13, 16  ;;  %v6657_v24 = vor.u32 %v6656_v15, %v6653_v48  ;;  %v10163_v5 = vcombine.low %v6055_v33, %v6065_v61  ;;  %v6069_v34 = vrot.slane %v6067_v9, 4  ;;  %v15639_v9 = vld [vmem:[#allocation2 + $0xc0] sm:$0xf] }
 0x390   : > { %9011 = vmatmul.mubr.bf16.gmra.mxu0 %v10179_v19  ;;  %v6086_v10 = vshll.u32 %v5728_v44, 16  ;;  %v10147_v35 = vcombine.low %v15576_v7, %v15570_v22  ;;  %v6072_v28 = vrot.slane %v6070_v37, 5  ;;  %v6078_v1 = vrot.slane %v6076_v38, 5 }
 0x391   : > { %9018 = vmatprep.mubr.bf16.mxu0 %v10196_v45  ;;  %v6082_v58 = vrot.slane %v6080_v29, 4  ;;  %v15632_v14 = vrot.slane %v6609_v26, 4  ;;  %v15634_v21 = vrot.slane %v6636_v43, 5  ;;  %8849 = vmatprep.mubr.bf16.mxu1 %v10163_v5  ;;  %v6281_v47 = vrot.slane %v5728_v44, 5  ;;  %v15645_v43 = vld [vmem:[#allocation2 + $0xb4] sm:$0xf] }
 0x392   : > { %v6278_v48 = vrot.slane %v15611_v13, 5  ;;  %v15637_v15 = vrot.slane %v6640_v25, 4  ;;  %8850 = vmatmul.mubr.bf16.gmra.mxu1 %v10147_v35  ;;  %v6073_v33 = vor.u32 %v6072_v28, %v6069_v34  ;;  %v6088_v45 = vrot.slane %v6086_v10, 5  ;;  %v15651_v29 = vld [vmem:[#allocation2 + $0xb8] sm:$0xf] }
 0x393   : > { %17530 = vst [vmem:[#allocation37_spill] sm:$0xff] %v15634_v21  ;;  %v6083_v19 = vor.u32 %v6082_v58, %v6078_v1  ;;  %v15641_v22 = vrot.slane %v6633_v3, 4  ;;  %v15643_v7 = vrot.slane %v6660_v53, 5  ;;  %v10100_v26 = vrot.slane %v6128_v46, 9  ;;  %v6321_v53 = vld [vmem:[#allocation2 + $0xc4] sm:$0xf] }
 0x394   : > { %17531 = vst [vmem:[#allocation38_spill] sm:$0xff] %v15637_v15  ;;  %v6280_v61 = vrot.slane %v6278_v48, 4  ;;  %v15647_v37 = vrot.slane %v6657_v24, 4  ;;  %v15649_v44 = vrot.slane %v6664_v23, 4  ;;  %v6074_v25 = vrot.slane %v6073_v33, 4 }
 0x395   : > { %17532 = vst [vmem:[#allocation42_spill] sm:$0xff] %v15641_v22  ;;  %17533 = vst [vmem:[#allocation44_spill] sm:$0xff] %v15643_v7  ;;  %v6084_v38 = vrot.slane %v6083_v19, 4  ;;  %v6279_v3 = vsel %vm12332_vm13, %v10100_v26, %v6278_v48  ;;  %v5729_v34 = vld [vmem:[#allocation2 + $0xbc] sm:$0x1]  ;;  %v10197_v35 = vcombine.low %v15639_v9, %v6321_v53  ;;  %v6091_v19 = vshrl.u32 %v15645_v43, 16 }
 0x396   : > { %17534 = vst [vmem:[#allocation28_spill] sm:$0xff] %v15647_v37  ;;  %17535 = vst [vmem:[#allocation31_spill] sm:$0xff] %v15649_v44  ;;  %v6282_v46 = vsel %vm12332_vm13, %v6280_v61, %v6281_v47  ;;  %v6079_v23 = vsel %vm12393_vm14, %v6074_v25, %v6078_v1  ;;  %v15664_v28 = vld [vmem:[#allocation2 + $0x18] sm:$0xf]  ;;  %v6094_v48 = vshll.u32 %v15645_v43, 16  ;;  %v6100_v47 = vshll.u32 %v15651_v29, 16 }
 0x397   : > { %v6089_v24 = vsel %vm12393_vm14, %v6084_v38, %v6088_v45  ;;  %v10180_v10 = vcombine.low %v6279_v3, %v6282_v46  ;;  %v6129_v26 = vld [vmem:[#allocation2 + $0xb4] sm:$0xe]  ;;  %v10148_v1 = vcombine.low %v15606_v40, %v15611_v13  ;;  %v6104_v45 = vshrl.u32 %v15651_v29, 16  ;;  %v15673_v38 = vld [vmem:[#allocation2 + $0x1c] sm:$0xf] }
 0x398   : > { %v10164_v33 = vcombine.low %v6079_v23, %v6089_v24  ;;  %v6110_v25 = vshll.u32 %v5729_v34, 16  ;;  %v6093_v3 = vrot.slane %v6091_v19, 4  ;;  %v6096_v46 = vrot.slane %v6094_v48, 5  ;;  %v6930_v13 = vld [vmem:[#allocation2 + $0x20] sm:$0x1] }
 0x399   : > { %9019 = vmatmul.mubr.bf16.gmra.mxu0 %v10180_v10  ;;  %v6102_v53 = vrot.slane %v6100_v47, 5  ;;  %v6288_v23 = vrot.slane %v5729_v34, 5  ;;  %v6106_v24 = vrot.slane %v6104_v45, 4  ;;  %v10101_v5 = vrot.slane %v6129_v26, 9  ;;  %v6322_v44 = vld [vmem:[#allocation2 + $0x14] sm:$0x1] }
 0x39a   : > { %8857 = vmatprep.mubr.bf16.mxu1 %v10164_v33  ;;  %9026 = vmatprep.mubr.bf16.mxu0 %v10197_v35  ;;  %v6285_v61 = vrot.slane %v15651_v29, 5  ;;  %v6947_v10 = vshrl.u32 %v15664_v28, 16  ;;  %v6097_v58 = vor.u32 %v6096_v46, %v6093_v3  ;;  %v6950_v40 = vshll.u32 %v15664_v28, 16  ;;  %v6722_v22 = vld [vmem:[#allocation2 + $0xc] sm:$0xe] }
 0x39b   : > { %8858 = vmatmul.mubr.bf16.gmra.mxu1 %v10148_v1  ;;  %v6956_v37 = vshll.u32 %v15673_v38, 16  ;;  %v6960_v33 = vshrl.u32 %v15673_v38, 16  ;;  %v6107_v35 = vor.u32 %v6106_v24, %v6102_v53  ;;  %v6112_v19 = vrot.slane %v6110_v25, 5 }
 0x39c   : > { %v6287_v48 = vrot.slane %v6285_v61, 4  ;;  %v6949_v47 = vrot.slane %v6947_v10, 4  ;;  %v6098_v34 = vrot.slane %v6097_v58, 4  ;;  %v6952_v1 = vrot.slane %v6950_v40, 5  ;;  %v15686_v58 = vld [vmem:[#allocation2 + $0x24] sm:$0xf] }
 0x39d   : > { %v6958_v45 = vrot.slane %v6956_v37, 5  ;;  %v6962_v26 = vrot.slane %v6960_v33, 4  ;;  %v6108_v7 = vrot.slane %v6107_v35, 4  ;;  %v6286_v3 = vsel %vm12332_vm13, %v10101_v5, %v6285_v61  ;;  %v15692_v33 = vld [vmem:[#allocation2 + $0x28] sm:$0xf] }
 0x39e   : > { %v6289_v46 = vsel %vm12332_vm13, %v6287_v48, %v6288_v23  ;;  %v6966_v15 = vshll.u32 %v6930_v13, 16  ;;  %v6103_v24 = vsel %vm12393_vm14, %v6098_v34, %v6102_v53  ;;  %v6953_v21 = vor.u32 %v6952_v1, %v6949_v47  ;;  %v11832_v47 = vld [vmem:[#allocation2 + $0x10] sm:$0xf] }
 0x39f   : > { %v10181_v25 = vcombine.low %v6286_v3, %v6289_v46  ;;  %v6963_v10 = vor.u32 %v6962_v26, %v6958_v45  ;;  %v6113_v37 = vsel %vm12393_vm14, %v6108_v7, %v6112_v19  ;;  %v10149_v5 = vcombine.low %v15645_v43, %v15651_v29  ;;  %v6931_v43 = vld [vmem:[#allocation2 + $0x2c] sm:$0x1] }
 0x3a0   : > { %v6968_v40 = vrot.slane %v6966_v15, 5  ;;  %v6358_v61 = vshll.u32 %v6322_v44, 16  ;;  %v10165_v23 = vcombine.low %v6103_v24, %v6113_v37  ;;  %v6954_v13 = vrot.slane %v6953_v21, 4 }
 0x3a1   : > { %9027 = vmatmul.mubr.bf16.gmra.mxu0 %v10181_v25  ;;  %v6964_v35 = vrot.slane %v6963_v10, 4  ;;  %v10102_v53 = vrot.slane %v6722_v22, 9  ;;  %v6788_v34 = vrot.slane %v11832_v47, 5  ;;  %v6791_v1 = vrot.slane %v6322_v44, 5  ;;  %v6323_v10 = vld [vmem:[#allocation2 + $0x20] sm:$0x1] }
 0x3a2   : > { %v6360_v48 = vrot.slane %v6358_v61, 5  ;;  %v6971_v26 = vshrl.u32 %v15686_v58, 16  ;;  %8865 = vmatprep.mubr.bf16.mxu1 %v10165_v23  ;;  %v6959_v15 = vsel %vm12393_vm14, %v6954_v13, %v6958_v45  ;;  %v6974_v29 = vshll.u32 %v15686_v58, 16 }
 0x3a3   : > { %v6969_v7 = vsel %vm12393_vm14, %v6964_v35, %v6968_v40  ;;  %v6980_v21 = vshll.u32 %v15692_v33, 16  ;;  %8866 = vmatmul.mubr.bf16.gmra.mxu1 %v10149_v5  ;;  %v6789_v44 = vsel %vm12332_vm13, %v10102_v53, %v6788_v34  ;;  %v6790_v3 = vrot.slane %v6788_v34, 4  ;;  %v6723_v53 = vld [vmem:[#allocation2 + $0x18] sm:$0xe] }
 0x3a4   : > { %v10246_v19 = vcombine.low %v6959_v15, %v6969_v7  ;;  %v6361_v22 = vsel %vm12393_vm14, %v15093_v63, %v6360_v48  ;;  %v6973_v46 = vrot.slane %v6971_v26, 4  ;;  %v6976_v45 = vrot.slane %v6974_v29, 5  ;;  %v15712_v48 = vld [vmem:[#allocation2 + $0x30] sm:$0xf]  ;;  %v11833_v7 = vld [vmem:[#allocation2 + $0x1c] sm:$0xf] }
 0x3a5   : > { %v6982_v24 = vrot.slane %v6980_v21, 5  ;;  %v6984_v25 = vshrl.u32 %v15692_v33, 16  ;;  %v6792_v37 = vsel %vm12332_vm13, %v6790_v3, %v6791_v1  ;;  %v6990_v40 = vshll.u32 %v6931_v43, 16  ;;  %v15721_v21 = vld [vmem:[#allocation2 + $0x34] sm:$0xf] }
 0x3a6   : > { %9228 = vmatprep.mubr.bf16.mxu0 %v10246_v19  ;;  %v17313_v5 = vrot.slane %v15692_v33, 5  ;;  %v7406_v61 = vrot.slane %v6931_v43, 5  ;;  %v10230_v63 = vcombine.low %v15664_v28, %v15673_v38  ;;  %v10214_v23 = vcombine.low %v6789_v44, %v6792_v37 }
 0x3a7   : > { %v6977_v13 = vor.u32 %v6976_v45, %v6973_v46  ;;  %v6986_v35 = vrot.slane %v6984_v25, 4  ;;  %v6992_v47 = vrot.slane %v6990_v40, 5  ;;  %v17536_v1 = vsel %vm12393_vm14, %v15031_v39, %v14896_v60  ;;  %v6932_v46 = vld [vmem:[#allocation2 + $0x38] sm:$0x1]  ;;  %v11755_v39 = vld [vmem:[#allocation8 + $0x230] sm:$0xff]  }
 0x3a8   : > { %v7405_v34 = vrot.slane %v17313_v5, 4  ;;  %v10198_v26 = vcombine.low %v17536_v1, %v6361_v22  ;;  %v6382_v15 = vshll.u32 %v6323_v10, 16  ;;  %9067 = vmatprep.mubr.bf16.mxu1 %v10214_v23  ;;  %v6795_v43 = vrot.slane %v11833_v7, 5  ;;  %v6324_v23 = vld [vmem:[#allocation2 + $0x2c] sm:$0x1] }
 0x3a9   : > { %9229 = vmatmul.mubr.bf16.vlgmr.msra.gmra.mxu0 %v10230_v63  ;;  %v6978_v28 = vrot.slane %v6977_v13, 4  ;;  %v6987_v38 = vor.u32 %v6986_v35, %v6982_v24  ;;  %v6798_v29 = vrot.slane %v6323_v10, 5  ;;  %v10103_v3 = vrot.slane %v6723_v53, 9  ;;  %v11834_v35 = vld [vmem:[#allocation8 + $0x238] sm:$0xff]  }
 0x3aa   : > { %v15725_v19 = vsel %vm12332_vm13, %v7405_v34, %v7406_v61  ;;  %v6384_v44 = vrot.slane %v6382_v15, 5  ;;  %v6995_v60 = vshrl.u32 %v15712_v48, 16  ;;  %v6797_v25 = vrot.slane %v6795_v43, 4  ;;  %v6724_v34 = vld [vmem:[#allocation2 + $0x24] sm:$0xe] }
 0x3ab   : > { %v6983_v22 = vsel %vm12393_vm14, %v6978_v28, %v6982_v24  ;;  %v6988_v45 = vrot.slane %v6987_v38, 4  ;;  %v10231_v10 = vcombine.low %v15686_v58, %v15692_v33  ;;  %9068 = vmatmul.mubr.bf16.vlgmr.msra.gmra.mxu1 %v10198_v26  ;;  %v6998_v40 = vshll.u32 %v15712_v48, 16  ;;  %v11758_v38 = vld [vmem:[#allocation8 + $0x228] sm:$0xff]  }
 0x3ac   : > { %v6997_v37 = vrot.slane %v6995_v60, 4  ;;  %v7004_v61 = vshll.u32 %v15721_v21, 16  ;;  %v7008_v63 = vshrl.u32 %v15721_v21, 16  ;;  %11415 = vmatpush3.bf16.msra.mxu1 %v11834_v35  ;;  %v6796_v24 = vsel %vm12332_vm13, %v10103_v3, %v6795_v43  ;;  %v15747_v60 = vld [vmem:[#allocation2 + $0x3c] sm:$0xf] }
 0x3ad   : > { %v6993_v13 = vsel %vm12393_vm14, %v6988_v45, %v6992_v47  ;;  %v6799_v58 = vsel %vm12332_vm13, %v6797_v25, %v6798_v29  ;;  %v7014_v53 = vshll.u32 %v6932_v46, 16  ;;  %v7000_v15 = vrot.slane %v6998_v40, 5  ;;  %11416 = vmatprep.subr.bf16.mxu1 %v11755_v39  ;;  %v15749_v40 = vld [vmem:[#allocation2 + $0x40] sm:$0xf] }
 0x3ae   : > { %v10247_v1 = vcombine.low %v6983_v22, %v6993_v13  ;;  %v10215_v26 = vcombine.low %v6796_v24, %v6799_v58  ;;  %v7006_v28 = vrot.slane %v7004_v61, 5  ;;  %v7010_v7 = vrot.slane %v7008_v63, 4  ;;  %v11835_v22 = vld [vmem:[#allocation2 + $0x28] sm:$0xf]  ;;  %v11761_v24 = vld [vmem:[#allocation8 + $0x220] sm:$0xff]  }
 0x3af   : > { %v6375_v47 = vsel %vm12393_vm14, %v15098_v57, %v15108_v42  ;;  %v6379_v43 = vor.u32 %v15112_v54, %v15108_v42  ;;  %v6406_v3 = vshll.u32 %v6324_v23, 16  ;;  %v7001_v29 = vor.u32 %v7000_v15, %v6997_v37 }
 0x3b0   : > { %9236 = vmatprep.mubr.bf16.mxu0 %v10247_v1  ;;  %9075 = vmatprep.mubr.bf16.mxu1 %v10215_v26  ;;  %v10104_v46 = vrot.slane %v6724_v34, 9  ;;  %v6802_v45 = vrot.slane %v11835_v22, 5  ;;  %v6805_v25 = vrot.slane %v6324_v23, 5  ;;  %v7011_v61 = vor.u32 %v7010_v7, %v7006_v28  ;;  %v6325_v7 = vld [vmem:[#allocation2 + $0x38] sm:$0x1] }
 0x3b1   : > { %9237 = vmatmul.mubr.bf16.gmra.mxu0 %v10231_v10  ;;  %v7016_v63 = vrot.slane %v7014_v53, 5  ;;  %v6380_v13 = vrot.slane %v6379_v43, 4  ;;  %v15751_v57 = vrot.slane %v6406_v3, 5  ;;  %11417 = vmatpush3.bf16.msra.mxu1 %v11755_v39  ;;  %v7002_v42 = vrot.slane %v7001_v29, 4  ;;  %v6933_v10 = vld [vmem:[#allocation2 + $0x44] sm:$0x1] }
 0x3b2   : > { %v6803_v54 = vsel %vm12332_vm13, %v10104_v46, %v6802_v45  ;;  %v6804_v35 = vrot.slane %v6802_v45, 4  ;;  %v7019_v37 = vshrl.u32 %v15747_v60, 16  ;;  %11418 = vmatprep.subr.bf16.mxu1 %v11758_v38  ;;  %v7012_v58 = vrot.slane %v7011_v61, 4  ;;  %v6725_v46 = vld [vmem:[#allocation2 + $0x30] sm:$0xe] }
 0x3b3   : > { %v6385_v23 = vsel %vm12393_vm14, %v6380_v13, %v6384_v44  ;;  %v7022_v53 = vshll.u32 %v15747_v60, 16  ;;  %v7028_v34 = vshll.u32 %v15749_v40, 16  ;;  %v7007_v39 = vsel %vm12393_vm14, %v7002_v42, %v7006_v28 }
 0x3b4   : > { %v10199_v1 = vcombine.low %v6375_v47, %v6385_v23  ;;  %v6806_v26 = vsel %vm12332_vm13, %v6804_v35, %v6805_v25  ;;  %v7021_v15 = vrot.slane %v7019_v37, 4  ;;  %v7017_v43 = vsel %vm12393_vm14, %v7012_v58, %v7016_v63  ;;  %v11764_v25 = vld [vmem:[#allocation8 + $0x218] sm:$0xff]   ;;  %v15775_v37 = vld [vmem:[#allocation2 + $0x48] sm:$0xf] }
 0x3b5   : > { %v10216_v3 = vcombine.low %v6803_v54, %v6806_v26  ;;  %v10232_v44 = vcombine.low %v15712_v48, %v15721_v21  ;;  %v7024_v29 = vrot.slane %v7022_v53, 5  ;;  %11419 = vmatpush3.bf16.msra.mxu1 %v11758_v38  ;;  %v10248_v22 = vcombine.low %v7007_v39, %v7017_v43  ;;  %v11836_v54 = vld [vmem:[#allocation2 + $0x34] sm:$0xf] }
 0x3b6   : > { %9076 = vmatmul.mubr.bf16.gmra.mxu1 %v10199_v1  ;;  %v7030_v45 = vrot.slane %v7028_v34, 5  ;;  %v7032_v28 = vshrl.u32 %v15749_v40, 16  ;;  %v7038_v47 = vshll.u32 %v6933_v10, 16  ;;  %11420 = vmatprep.subr.bf16.mxu1 %v11761_v24  ;;  %v6399_v63 = vsel %vm12393_vm14, %v15217_v36, %v15205_v41  ;;  %v15779_v34 = vld [vmem:[#allocation2 + $0x4c] sm:$0xf] }
 0x3b7   : > { %9083 = vmatprep.mubr.bf16.mxu1 %v10216_v3  ;;  %v7025_v61 = vor.u32 %v7024_v29, %v7021_v15  ;;  %v6403_v48 = vor.u32 %v15209_v6, %v15205_v41  ;;  %v6430_v21 = vshll.u32 %v6325_v7, 16  ;;  %9244 = vmatprep.mubr.bf16.mxu0 %v10248_v22  ;;  %v10105_v42 = vrot.slane %v6725_v46, 9  ;;  %v11767_v1 = vld [vmem:[#allocation8 + $0x210] sm:$0xff]  }
 0x3b8   : > { %v7034_v38 = vrot.slane %v7032_v28, 4  ;;  %v7040_v13 = vrot.slane %v7038_v47, 5  ;;  %v6809_v35 = vrot.slane %v11836_v54, 5  ;;  %v6812_v53 = vrot.slane %v6325_v7, 5  ;;  %v6934_v7 = vld [vmem:[#allocation2 + $0x50] sm:$0x1] }
 0x3b9   : > { %9245 = vmatmul.mubr.bf16.gmra.mxu0 %v10232_v44  ;;  %v7026_v58 = vrot.slane %v7025_v61, 4  ;;  %v6404_v23 = vrot.slane %v6403_v48, 4  ;;  %v15777_v10 = vrot.slane %v6430_v21, 5  ;;  %11421 = vmatpush3.bf16.msra.mxu1 %v11761_v24  ;;  %v10233_v39 = vcombine.low %v15747_v60, %v15749_v40  ;;  %v6726_v40 = vld [vmem:[#allocation2 + $0x3c] sm:$0xe]  ;;  %v11770_v21 = vld [vmem:[#allocation8 + $0x208] sm:$0xff]  }
 0x3ba   : > { %v7035_v36 = vor.u32 %v7034_v38, %v7030_v45  ;;  %v6810_v41 = vsel %vm12332_vm13, %v10105_v42, %v6809_v35  ;;  %v6811_v6 = vrot.slane %v6809_v35, 4  ;;  %11422 = vmatprep.subr.bf16.mxu1 %v11764_v25  ;;  %v7043_v24 = vshrl.u32 %v15775_v37, 16  ;;  %v6326_v47 = vld [vmem:[#allocation2 + $0x44] sm:$0x1] }
 0x3bb   : > { %v7031_v26 = vsel %vm12393_vm14, %v7026_v58, %v7030_v45  ;;  %v6409_v15 = vsel %vm12393_vm14, %v6404_v23, %v15751_v57  ;;  %v7046_v43 = vshll.u32 %v15775_v37, 16  ;;  %v7052_v60 = vshll.u32 %v15779_v34, 16  ;;  %v11837_v23 = vld [vmem:[#allocation2 + $0x40] sm:$0xf] }
 0x3bc   : > { %v7036_v3 = vrot.slane %v7035_v36, 4  ;;  %v10200_v44 = vcombine.low %v6399_v63, %v6409_v15  ;;  %v6813_v29 = vsel %vm12332_vm13, %v6811_v6, %v6812_v53  ;;  %v7045_v22 = vrot.slane %v7043_v24, 4  ;;  %v15804_v36 = vld [vmem:[#allocation2 + $0x54] sm:$0xf] }
 0x3bd   : > { %v10217_v46 = vcombine.low %v6810_v41, %v6813_v29  ;;  %v7048_v45 = vrot.slane %v7046_v43, 5  ;;  %v7056_v28 = vshrl.u32 %v15779_v34, 16  ;;  %11423 = vmatpush3.bf16.msra.mxu1 %v11764_v25  ;;  %v7054_v61 = vrot.slane %v7052_v60, 5 }
 0x3be   : > { %v7041_v57 = vsel %vm12393_vm14, %v7036_v3, %v7040_v13  ;;  %9084 = vmatmul.mubr.bf16.gmra.mxu1 %v10200_v44  ;;  %v7062_v48 = vshll.u32 %v6934_v7, 16  ;;  %v6423_v63 = vsel %vm12393_vm14, %v15301_v30, %v15263_v27  ;;  %11424 = vmatprep.subr.bf16.mxu1 %v11767_v1  ;;  %v6427_v25 = vor.u32 %v15304_v55, %v15263_v27  ;;  %v15806_v7 = vld [vmem:[#allocation2 + $0x58] sm:$0xf] }
 0x3bf   : > { %v10249_v38 = vcombine.low %v7031_v26, %v7041_v57  ;;  %9091 = vmatprep.mubr.bf16.mxu1 %v10217_v46  ;;  %v7049_v42 = vor.u32 %v7048_v45, %v7045_v22  ;;  %v7058_v54 = vrot.slane %v7056_v28, 4  ;;  %v6454_v58 = vshll.u32 %v6326_v47, 16  ;;  %v15808_v26 = vpop.f32.mrf.mxu0  ;;  %v15813_v3 = vpop.f32.mrf.mxu1  ;;  %v11773_v44 = vld [vmem:[#allocation8 + $0x200] sm:$0xff]  }
 0x3c0   : > { %v7064_v35 = vrot.slane %v7062_v48, 5  ;;  %v10106_v13 = vrot.slane %v6726_v40, 9  ;;  %v6816_v53 = vrot.slane %v11837_v23, 5  ;;  %v6428_v30 = vrot.slane %v6427_v25, 4  ;;  %v15820_v40 = vld [vmem:[#allocation2 + $0x5c] sm:$0x1] }
 0x3c1   : > { %9252 = vmatprep.mubr.bf16.mxu0 %v10249_v38  ;;  %v7050_v41 = vrot.slane %v7049_v42, 4  ;;  %v7059_v6 = vor.u32 %v7058_v54, %v7054_v61  ;;  %v6819_v15 = vrot.slane %v6326_v47, 5  ;;  %11425 = vmatpush3.bf16.msra.mxu1 %v11767_v1  ;;  %v6688_v24 = vshrl.u32 %v15618_v31, 16  ;;  %17537 = vst [vmem:[#allocation52_spill] sm:$0xff] %v15820_v40  ;;  %v6727_v38 = vld [vmem:[#allocation2 + $0x48] sm:$0xe]  ;;  %v15830_v42 = vpop.f32.mrf.mxu0 }
 0x3c2   : > { %9253 = vmatmul.mubr.bf16.gmra.mxu0 %v10233_v39  ;;  %v6456_v27 = vrot.slane %v6454_v58, 5  ;;  %v6817_v55 = vsel %vm12332_vm13, %v10106_v13, %v6816_v53  ;;  %v6818_v43 = vrot.slane %v6816_v53, 4  ;;  %11426 = vmatprep.subr.bf16.mxu1 %v11770_v21  ;;  %v6433_v1 = vsel %vm12393_vm14, %v6428_v30, %v15777_v10  ;;  %v6327_v10 = vld [vmem:[#allocation2 + $0x50] sm:$0x1]  ;;  %v15833_v13 = vpop.f32.mrf.mxu1 }
 0x3c3   : > { %v7055_v29 = vsel %vm12393_vm14, %v7050_v41, %v7054_v61  ;;  %v7060_v60 = vrot.slane %v7059_v6, 4  ;;  %v7067_v39 = vshrl.u32 %v15804_v36, 16  ;;  %v10201_v46 = vcombine.low %v6423_v63, %v6433_v1  ;;  %v15843_v41 = vld [vmem:[#allocation2 + $0x60] sm:$0xf]  ;;  %v15845_v1 = vpop.f32.mrf.mxu0 }
 0x3c4   : > { %v6820_v22 = vsel %vm12332_vm13, %v6818_v43, %v6819_v15  ;;  %v7070_v45 = vshll.u32 %v15804_v36, 16  ;;  %v7076_v28 = vshll.u32 %v15806_v7, 16  ;;  %v7080_v48 = vshrl.u32 %v15806_v7, 16 }
 0x3c5   : > { %v7065_v47 = vsel %vm12393_vm14, %v7060_v60, %v7064_v35  ;;  %v10218_v57 = vcombine.low %v6817_v55, %v6820_v22  ;;  %v7069_v61 = vrot.slane %v7067_v39, 4  ;;  %11427 = vmatpush3.bf16.msra.mxu1 %v11770_v21  ;;  %v7086_v58 = vshll.u32 %v15820_v40, 16  ;;  %v11838_v60 = vld [vmem:[#allocation2 + $0x4c] sm:$0xf] }
 0x3c6   : > { %v10250_v63 = vcombine.low %v7055_v29, %v7065_v47  ;;  %9092 = vmatmul.mubr.bf16.gmra.mxu1 %v10201_v46  ;;  %v7072_v54 = vrot.slane %v7070_v45, 5  ;;  %v7078_v25 = vrot.slane %v7076_v28, 5  ;;  %11428 = vmatprep.subr.bf16.mxu1 %v11773_v44  ;;  %v10234_v35 = vcombine.low %v15775_v37, %v15779_v34  ;;  %v15851_v46 = vld [vmem:[#allocation2 + $0x64] sm:$0xf]  ;;  %v15854_v45 = vpop.f32.mrf.mxu1 }
 0x3c7   : > { %9099 = vmatprep.mubr.bf16.mxu1 %v10218_v57  ;;  %v7082_v23 = vrot.slane %v7080_v48, 4  ;;  %v6447_v53 = vsel %vm12393_vm14, %v15341_v50, %v15306_v4  ;;  %v6451_v21 = vor.u32 %v15337_v56, %v15306_v4  ;;  %v7088_v30 = vrot.slane %v7086_v58, 5 }
 0x3c8   : > { %9260 = vmatprep.mubr.bf16.mxu0 %v10250_v63  ;;  %v7073_v6 = vor.u32 %v7072_v54, %v7069_v61  ;;  %v6478_v15 = vshll.u32 %v6327_v10, 16  ;;  %v10107_v55 = vrot.slane %v6727_v38, 9  ;;  %v6823_v37 = vrot.slane %v11838_v60, 5  ;;  %v6936_v61 = vld [vmem:[#allocation2 + $0x68] sm:$0x1] }
 0x3c9   : > { %v7083_v43 = vor.u32 %v7082_v23, %v7078_v25  ;;  %v6452_v29 = vrot.slane %v6451_v21, 4  ;;  %v6826_v34 = vrot.slane %v6327_v10, 5  ;;  %11429 = vmatpush3.bf16.msra.mxu1 %v11773_v44  ;;  %v17538_v50 = vshrl.u32 %v15608_v49, 16  ;;  %v6728_v23 = vld [vmem:[#allocation2 + $0x54] sm:$0xe]  ;;  %v15869_v21 = vpop.f32.mrf.mxu0 }
 0x3ca   : > { %9261 = vmatmul.mubr.bf16.gmra.mxu0 %v10234_v35  ;;  %v7074_v4 = vrot.slane %v7073_v6, 4  ;;  %v6480_v56 = vrot.slane %v6478_v15, 5  ;;  %v7091_v22 = vshrl.u32 %v15843_v41, 16  ;;  %v6824_v44 = vsel %vm12332_vm13, %v10107_v55, %v6823_v37  ;;  %v6328_v55 = vld [vmem:[#allocation2 + $0x5c] sm:$0x1] }
 0x3cb   : > { %v15849_v39 = vrot.slane %v17538_v50, 4  ;;  %v7084_v28 = vrot.slane %v7083_v43, 4  ;;  %v6457_v47 = vsel %vm12393_vm14, %v6452_v29, %v6456_v27  ;;  %v6825_v57 = vrot.slane %v6823_v37, 4  ;;  %v15871_v43 = vpop.f32.mrf.mxu1 }
 0x3cc   : > { %v7079_v48 = vsel %vm12393_vm14, %v7074_v4, %v7078_v25  ;;  %v10202_v10 = vcombine.low %v6447_v53, %v6457_v47  ;;  %v7093_v38 = vrot.slane %v7091_v22, 4  ;;  %v7094_v63 = vshll.u32 %v15843_v41, 16 }
 0x3cd   : > { %v7089_v54 = vsel %vm12393_vm14, %v7084_v28, %v7088_v30  ;;  %v6827_v58 = vsel %vm12332_vm13, %v6825_v57, %v6826_v34  ;;  %v7100_v27 = vshll.u32 %v15851_v46, 16  ;;  %v7104_v35 = vshrl.u32 %v15851_v46, 16  ;;  %v15877_v34 = vld [vmem:[#allocation2 + $0x6c] sm:$0xf] }
 0x3ce   : > { %v10251_v6 = vcombine.low %v7079_v48, %v7089_v54  ;;  %9100 = vmatmul.mubr.bf16.gmra.mxu1 %v10202_v10  ;;  %v10219_v25 = vcombine.low %v6824_v44, %v6827_v58  ;;  %v7096_v53 = vrot.slane %v7094_v63, 5  ;;  %v7110_v15 = vshll.u32 %v6936_v61, 16  ;;  %v15883_v61 = vpop.f32.mrf.mxu0  ;;  %v15889_v63 = vld [vmem:[#allocation2 + $0x70] sm:$0xf] }
 0x3cf   : > { %v10235_v30 = vcombine.low %v15804_v36, %v15806_v7  ;;  %v7102_v29 = vrot.slane %v7100_v27, 5  ;;  %v7106_v60 = vrot.slane %v7104_v35, 4  ;;  %v6475_v37 = vor.u32 %v15370_v17, %v15347_v20  ;;  %v11839_v36 = vld [vmem:[#allocation2 + $0x58] sm:$0xf] }
 0x3d0   : > { %9268 = vmatprep.mubr.bf16.mxu0 %v10251_v6  ;;  %9107 = vmatprep.mubr.bf16.mxu1 %v10219_v25  ;;  %v7097_v50 = vor.u32 %v7096_v53, %v7093_v38  ;;  %v7112_v4 = vrot.slane %v7110_v15, 5  ;;  %v6471_v22 = vsel %vm12393_vm14, %v15376_v0, %v15347_v20  ;;  %v10108_v28 = vrot.slane %v6728_v23, 9  ;;  %v15892_v20 = vpop.f32.mrf.mxu1 }
 0x3d1   : > { %v7107_v47 = vor.u32 %v7106_v60, %v7102_v29  ;;  %v6476_v44 = vrot.slane %v6475_v37, 4  ;;  %v6830_v7 = vrot.slane %v11839_v36, 5  ;;  %v6833_v57 = vrot.slane %v6328_v55, 5  ;;  %v15909_v60 = vpop.f32.mrf.mxu0 }
 0x3d2   : > { %v17539_v17 = vshll.u32 %v15608_v49, 16  ;;  %9269 = vmatmul.mubr.bf16.gmra.mxu0 %v10235_v30  ;;  %v7098_v10 = vrot.slane %v7097_v50, 4  ;;  %v6502_v38 = vshll.u32 %v6328_v55, 16  ;;  %v7115_v54 = vshrl.u32 %v15877_v34, 16  ;;  %v15898_v49 = vld [vmem:[#allocation2 + $0x74] sm:$0x1] }
 0x3d3   : > { %v7108_v0 = vrot.slane %v7107_v47, 4  ;;  %v6481_v58 = vsel %vm12393_vm14, %v6476_v44, %v6480_v56  ;;  %v6831_v27 = vsel %vm12332_vm13, %v10108_v28, %v6830_v7  ;;  %v6832_v35 = vrot.slane %v6830_v7, 4  ;;  %17540 = vst [vmem:[#allocation25_spill] sm:$0xff] %v15898_v49  ;;  %v6329_v28 = vld [vmem:[#allocation2 + $0x68] sm:$0x1]  ;;  %v15912_v44 = vpop.f32.mrf.mxu1 }
 0x3d4   : > { %v15887_v48 = vrot.slane %v17539_v17, 5  ;;  %v7103_v23 = vsel %vm12393_vm14, %v7098_v10, %v7102_v29  ;;  %v10203_v6 = vcombine.low %v6471_v22, %v6481_v58  ;;  %v7117_v25 = vrot.slane %v7115_v54, 4  ;;  %v6729_v47 = vld [vmem:[#allocation2 + $0x60] sm:$0xe] }
 0x3d5   : > { %v7118_v53 = vshll.u32 %v15877_v34, 16  ;;  %v7113_v15 = vsel %vm12393_vm14, %v7108_v0, %v7112_v4  ;;  %v6834_v55 = vsel %vm12332_vm13, %v6832_v35, %v6833_v57  ;;  %v7124_v56 = vshll.u32 %v15889_v63, 16 }
 0x3d6   : > { %v7128_v30 = vshrl.u32 %v15889_v63, 16  ;;  %v10252_v37 = vcombine.low %v7103_v23, %v7113_v15  ;;  %9108 = vmatmul.mubr.bf16.gmra.mxu1 %v10203_v6  ;;  %v10220_v50 = vcombine.low %v6831_v27, %v6834_v55  ;;  %v7134_v22 = vshll.u32 %v15898_v49, 16  ;;  %v15922_v27 = vld [vmem:[#allocation2 + $0x78] sm:$0xf]  ;;  %v11840_v6 = vld [vmem:[#allocation2 + $0x64] sm:$0xf]  ;;  %v15926_v55 = vpop.f32.mrf.mxu0 }
 0x3d7   : > { %v7120_v29 = vrot.slane %v7118_v53, 5  ;;  %v17541_v4 = vshll.u32 %v15618_v31, 16  ;;  %v6504_v7 = vrot.slane %v6502_v38, 5  ;;  %v7126_v57 = vrot.slane %v7124_v56, 5  ;;  %v15924_v38 = vld [vmem:[#allocation2 + $0x7c] sm:$0xf] }
 0x3d8   : > { %v7130_v17 = vrot.slane %v7128_v30, 4  ;;  %9276 = vmatprep.mubr.bf16.mxu0 %v10252_v37  ;;  %9115 = vmatprep.mubr.bf16.mxu1 %v10220_v50  ;;  %v10236_v10 = vcombine.low %v15843_v41, %v15851_v46  ;;  %v7136_v0 = vrot.slane %v7134_v22, 5  ;;  %v6499_v58 = vor.u32 %v15416_v51, %v15414_v52  ;;  %v6337_v49 = vld [vmem:[#allocation2 + $0xc8] sm:$0x1] }
 0x3d9   : > { %v15916_v36 = vrot.slane %v17541_v4, 5  ;;  %v7121_v54 = vor.u32 %v7120_v29, %v7117_v25  ;;  %v10109_v23 = vrot.slane %v6729_v47, 9  ;;  %v6837_v53 = vrot.slane %v11840_v6, 5  ;;  %v15932_v25 = vpop.f32.mrf.mxu1  ;;  %v6938_v4 = vld [vmem:[#allocation2 + $0x80] sm:$0x1] }
 0x3da   : > { %v7131_v35 = vor.u32 %v7130_v17, %v7126_v57  ;;  %v6840_v15 = vrot.slane %v6329_v28, 5  ;;  %9277 = vmatmul.mubr.bf16.gmra.mxu0 %v10236_v10  ;;  %v6495_v41 = vsel %vm12393_vm14, %v15419_v12, %v15414_v52  ;;  %v6500_v46 = vrot.slane %v6499_v58, 4  ;;  %v15947_v58 = vpop.f32.mrf.mxu0 }
 0x3db   : > { %v7122_v56 = vrot.slane %v7121_v54, 4  ;;  %v6526_v51 = vshll.u32 %v6329_v28, 16  ;;  %v6838_v37 = vsel %vm12332_vm13, %v10109_v23, %v6837_v53  ;;  %v6839_v50 = vrot.slane %v6837_v53, 4  ;;  %v15949_v53 = vpop.f32.mrf.mxu1 }
 0x3dc   : > { %v7132_v30 = vrot.slane %v7131_v35, 4  ;;  %v7139_v29 = vshrl.u32 %v15922_v27, 16  ;;  %v6505_v47 = vsel %vm12393_vm14, %v6500_v46, %v6504_v7  ;;  %v7142_v52 = vshll.u32 %v15922_v27, 16  ;;  %v6330_v7 = vld [vmem:[#allocation2 + $0x74] sm:$0x1] }
 0x3dd   : > { %v7127_v22 = vsel %vm12393_vm14, %v7122_v56, %v7126_v57  ;;  %v7148_v12 = vshll.u32 %v15924_v38, 16  ;;  %v10204_v17 = vcombine.low %v6495_v41, %v6505_v47  ;;  %v6841_v10 = vsel %vm12332_vm13, %v6839_v50, %v6840_v15  ;;  %v6730_v41 = vld [vmem:[#allocation2 + $0x6c] sm:$0xe] }
 0x3de   : > { %v7137_v28 = vsel %vm12393_vm14, %v7132_v30, %v7136_v0  ;;  %v7141_v54 = vrot.slane %v7139_v29, 4  ;;  %v6528_v57 = vrot.slane %v6526_v51, 5  ;;  %v10221_v23 = vcombine.low %v6838_v37, %v6841_v10  ;;  %v11841_v37 = vld [vmem:[#allocation2 + $0x70] sm:$0xf]  ;;  %v15958_v29 = vld [vmem:[#allocation2 + $0x84] sm:$0xf]  ;;  %v15968_v10 = vpop.f32.mrf.mxu1 }
 0x3df   : > { %v10253_v35 = vcombine.low %v7127_v22, %v7137_v28  ;;  %v7144_v6 = vrot.slane %v7142_v52, 5  ;;  %9116 = vmatmul.mubr.bf16.gmra.mxu1 %v10204_v17  ;;  %v7150_v56 = vrot.slane %v7148_v12, 5  ;;  %v7152_v46 = vshrl.u32 %v15924_v38, 16 }
 0x3e0   : > { %v7158_v5 = vshll.u32 %v6938_v4, 16  ;;  %v6523_v0 = vor.u32 %v15425_v8, %v15423_v16  ;;  %9123 = vmatprep.mubr.bf16.mxu1 %v10221_v23  ;;  %v10237_v51 = vcombine.low %v15877_v34, %v15889_v63  ;;  %v6844_v50 = vrot.slane %v11841_v37, 5  ;;  %v15964_v52 = vpop.f32.mrf.mxu0  ;;  %v15966_v63 = vld [vmem:[#allocation2 + $0x88] sm:$0xf] }
 0x3e1   : > { %9284 = vmatprep.mubr.bf16.mxu0 %v10253_v35  ;;  %v7145_v30 = vor.u32 %v7144_v6, %v7141_v54  ;;  %v7154_v22 = vrot.slane %v7152_v46, 4  ;;  %v6519_v8 = vsel %vm12393_vm14, %v15456_v62, %v15423_v16  ;;  %v6847_v4 = vrot.slane %v6330_v7, 5  ;;  %v15972_v6 = vld [vmem:[#allocation2 + $0x8c] sm:$0x1] }
 0x3e2   : > { %v6524_v47 = vrot.slane %v6523_v0, 4  ;;  %9285 = vmatmul.mubr.bf16.gmra.mxu0 %v10237_v51  ;;  %v6550_v28 = vshll.u32 %v6330_v7, 16  ;;  %v10110_v17 = vrot.slane %v6730_v41, 9  ;;  %v6846_v34 = vrot.slane %v6844_v50, 4  ;;  %17542 = vst [vmem:[#allocation58_spill] sm:$0xff] %v15972_v6 }
 0x3e3   : > { %v7146_v12 = vrot.slane %v7145_v30, 4  ;;  %v7155_v54 = vor.u32 %v7154_v22, %v7150_v56  ;;  %v7160_v35 = vrot.slane %v7158_v5, 5  ;;  %v7163_v16 = vshrl.u32 %v15958_v29, 16  ;;  %v15983_v30 = vpop.f32.mrf.mxu0 }
 0x3e4   : > { %v6529_v23 = vsel %vm12393_vm14, %v6524_v47, %v6528_v57  ;;  %v6845_v7 = vsel %vm12332_vm13, %v10110_v17, %v6844_v50  ;;  %v6848_v46 = vsel %vm12332_vm13, %v6846_v34, %v6847_v4  ;;  %v7166_v0 = vshll.u32 %v15958_v29, 16  ;;  %v15987_v50 = vpop.f32.mrf.mxu1 }
 0x3e5   : > { %v7151_v62 = vsel %vm12393_vm14, %v7146_v12, %v7150_v56  ;;  %v7156_v41 = vrot.slane %v7155_v54, 4  ;;  %v10205_v5 = vcombine.low %v6519_v8, %v6529_v23  ;;  %v7165_v51 = vrot.slane %v7163_v16, 4  ;;  %v6331_v12 = vld [vmem:[#allocation2 + $0x80] sm:$0x1] }
 0x3e6   : > { %v7172_v57 = vshll.u32 %v15966_v63, 16  ;;  %v10222_v37 = vcombine.low %v6845_v7, %v6848_v46  ;;  %v7168_v22 = vrot.slane %v7166_v0, 5  ;;  %v7176_v47 = vshrl.u32 %v15966_v63, 16 }
 0x3e7   : > { %v7182_v56 = vshll.u32 %v15972_v6, 16  ;;  %v7161_v4 = vsel %vm12393_vm14, %v7156_v41, %v7160_v35  ;;  %9124 = vmatmul.mubr.bf16.gmra.mxu1 %v10205_v5  ;;  %v6552_v17 = vrot.slane %v6550_v28, 5  ;;  %v15993_v34 = vadd.f32 %v15830_v42, %v15808_v26  ;;  %v6731_v35 = vld [vmem:[#allocation2 + $0x78] sm:$0xe]  ;;  %v11842_v41 = vld [vmem:[#allocation2 + $0x7c] sm:$0xf]  ;;  %v15999_v5 = vpop.f32.mrf.mxu0 }
 0x3e8   : > { %v7174_v8 = vrot.slane %v7172_v57, 5  ;;  %v10254_v54 = vcombine.low %v7151_v62, %v7161_v4  ;;  %9131 = vmatprep.mubr.bf16.mxu1 %v10222_v37  ;;  %v10238_v23 = vcombine.low %v15922_v27, %v15924_v38  ;;  %v7169_v16 = vor.u32 %v7168_v22, %v7165_v51  ;;  %v16005_v27 = vpop.f32.mrf.mxu1  ;;  %v16015_v22 = vld [vmem:[#allocation2 + $0x90] sm:$0xf] }
 0x3e9   : > { %17543 = vst [vmem:[#allocation21_spill] sm:$0xff] %v15993_v34  ;;  %v7178_v7 = vrot.slane %v7176_v47, 4  ;;  %v7184_v46 = vrot.slane %v7182_v56, 5  ;;  %v6547_v0 = vor.u32 %v15493_v18, %v15458_v59  ;;  %v6574_v15 = vshll.u32 %v6331_v12, 16  ;;  %v16024_v56 = vld [vmem:[#allocation2 + $0x94] sm:$0xf] }
 0x3ea   : > { %v6851_v28 = vrot.slane %v11842_v41, 5  ;;  %9292 = vmatprep.mubr.bf16.mxu0 %v10254_v54  ;;  %v7170_v26 = vrot.slane %v7169_v16, 4  ;;  %v6854_v62 = vrot.slane %v6331_v12, 5  ;;  %v16003_v57 = vadd.f32 %v15833_v13, %v15813_v3  ;;  %17545 = vst [vmem:[#allocation22_spill] sm:$0xff] %v16024_v56  ;;  %v16031_v54 = vld [vmem:[#allocation2 + $0x98] sm:$0x1] }
 0x3eb   : > { %v7179_v42 = vor.u32 %v7178_v7, %v7174_v8  ;;  %v16009_v38 = vrot.slane %v6688_v24, 4  ;;  %9293 = vmatmul.mubr.bf16.gmra.mxu0 %v10238_v23  ;;  %v6543_v18 = vsel %vm12393_vm14, %v15491_v32, %v15458_v59  ;;  %v6548_v51 = vrot.slane %v6547_v0, 4  ;;  %17546 = vst [vmem:[#allocation54_spill] sm:$0xff] %v16031_v54  ;;  %v16040_v7 = vpop.f32.mrf.mxu1 }
 0x3ec   : > { %v6853_v37 = vrot.slane %v6851_v28, 4  ;;  %v17544_v3 = vor.u32 %v15887_v48, %v15849_v39  ;;  %v7175_v31 = vsel %vm12393_vm14, %v7170_v26, %v7174_v8  ;;  %v10111_v47 = vrot.slane %v6731_v35, 9  ;;  %v16033_v39 = vpop.f32.mrf.mxu0 }
 0x3ed   : > { %v7180_v24 = vrot.slane %v7179_v42, 4  ;;  %v6699_v12 = vshrl.u32 %v15639_v9, 16  ;;  %v6553_v59 = vsel %vm12393_vm14, %v6548_v51, %v6552_v17  ;;  %v6576_v32 = vrot.slane %v6574_v15, 5 }
 0x3ee   : > { %v16020_v13 = vrot.slane %v17544_v3, 4  ;;  %v6855_v4 = vsel %vm12332_vm13, %v6853_v37, %v6854_v62  ;;  %v10206_v8 = vcombine.low %v6543_v18, %v6553_v59  ;;  %v6852_v23 = vsel %vm12332_vm13, %v10111_v47, %v6851_v28  ;;  %v6332_v28 = vld [vmem:[#allocation2 + $0x8c] sm:$0x1]  ;;  %v17548_v37 = vld [vmem:[#allocation26_spill] sm:$0xff]  ;;  %v17549_v3 = vld [vmem:[#allocation29_spill] sm:$0xff] }
 0x3ef   : > { %v7185_v48 = vsel %vm12393_vm14, %v7180_v24, %v7184_v46  ;;  %v7187_v16 = vshrl.u32 %v16015_v22, 16  ;;  %v10223_v15 = vcombine.low %v6852_v23, %v6855_v4  ;;  %v7190_v0 = vshll.u32 %v16015_v22, 16  ;;  %v6732_v24 = vld [vmem:[#allocation2 + $0x84] sm:$0xe]  ;;  %v16056_v59 = vld [vmem:[#allocation2 + $0xc0] sm:$0xf] }
 0x3f0   : > { %v10255_v17 = vcombine.low %v7175_v31, %v7185_v48  ;;  %v7196_v35 = vshll.u32 %v16024_v56, 16  ;;  %9132 = vmatmul.mubr.bf16.gmra.mxu1 %v10206_v8  ;;  %v7200_v26 = vshrl.u32 %v16024_v56, 16  ;;  %v7206_v46 = vshll.u32 %v16031_v54, 16  ;;  %v17550_v48 = vld [vmem:[#allocation32_spill] sm:$0xff] }
 0x3f1   : > { %v7189_v41 = vrot.slane %v7187_v16, 4  ;;  %v16048_v42 = vadd.f32 %v15909_v60, %v15883_v61  ;;  %9139 = vmatprep.mubr.bf16.mxu1 %v10223_v15  ;;  %v10239_v62 = vcombine.low %v15958_v29, %v15966_v63  ;;  %v7192_v18 = vrot.slane %v7190_v0, 5  ;;  %v16054_v47 = vpop.f32.mrf.mxu0  ;;  %v11844_v16 = vld [vmem:[#allocation2 + $0x88] sm:$0xf] }
 0x3f2   : > { %9300 = vmatprep.mubr.bf16.mxu0 %v10255_v17  ;;  %v7198_v51 = vrot.slane %v7196_v35, 5  ;;  %v6571_v31 = vor.u32 %v17549_v3, %v17548_v37  ;;  %v7202_v61 = vrot.slane %v7200_v26, 4  ;;  %v7208_v60 = vrot.slane %v7206_v46, 5  ;;  %v16063_v29 = vpop.f32.mrf.mxu1 }
 0x3f3   : > { %17547 = vst [vmem:[#allocation23_spill] sm:$0xff] %v16048_v42  ;;  %v6567_v8 = vsel %vm12393_vm14, %v17550_v48, %v17548_v37  ;;  %9301 = vmatmul.mubr.bf16.gmra.mxu0 %v10239_v62  ;;  %v7193_v63 = vor.u32 %v7192_v18, %v7189_v41  ;;  %v6858_v17 = vrot.slane %v11844_v16, 5  ;;  %v6861_v15 = vrot.slane %v6332_v28, 5  ;;  %v16065_v0 = vpop.f32.mrf.mxu0  ;;  %v16075_v37 = vld [vmem:[#allocation2 + $0x9c] sm:$0xf] }
 0x3f4   : > { %v6572_v23 = vrot.slane %v6571_v31, 4  ;;  %v7203_v35 = vor.u32 %v7202_v61, %v7198_v51  ;;  %v10112_v3 = vrot.slane %v6732_v24, 9  ;;  %v16069_v26 = vadd.f32 %v15912_v44, %v15892_v20  ;;  %v16077_v62 = vld [vmem:[#allocation2 + $0xc4] sm:$0xf]  ;;  %v16082_v24 = vld [vmem:[#allocation2 + $0xa0] sm:$0xf]  ;;  %v16086_v20 = vpop.f32.mrf.mxu1 }
 0x3f5   : > { %v16073_v46 = vadd.f32 %v15947_v58, %v15926_v55  ;;  %v7194_v18 = vrot.slane %v7193_v63, 4  ;;  %v6860_v61 = vrot.slane %v6858_v17, 4  ;;  %v16084_v48 = vpop.f32.mrf.mxu0  ;;  %v6598_v58 = vshll.u32 %v6332_v28, 16 }
 0x3f6   : > { %v6577_v31 = vsel %vm12393_vm14, %v6572_v23, %v6576_v32  ;;  %v7204_v44 = vrot.slane %v7203_v35, 4  ;;  %v6859_v16 = vsel %vm12332_vm13, %v10112_v3, %v6858_v17  ;;  %v16096_v32 = vadd.f32 %v15949_v53, %v15932_v25  ;;  %v6941_v23 = vld [vmem:[#allocation2 + $0xa4] sm:$0x1] }
 0x3f7   : > { %17551 = vst [vmem:[#allocation41_spill] sm:$0xff] %v16073_v46  ;;  %v10207_v55 = vcombine.low %v6567_v8, %v6577_v31  ;;  %v7199_v41 = vsel %vm12393_vm14, %v7194_v18, %v7198_v51  ;;  %v6862_v63 = vsel %vm12332_vm13, %v6860_v61, %v6861_v15  ;;  %v7211_v4 = vshrl.u32 %v16075_v37, 16  ;;  %v16108_v53 = vpop.f32.mrf.mxu0  ;;  %v16110_v18 = vpop.f32.mrf.mxu1 }
 0x3f8   : > { %v7209_v8 = vsel %vm12393_vm14, %v7204_v44, %v7208_v60  ;;  %v10224_v28 = vcombine.low %v6859_v16, %v6862_v63  ;;  %v7214_v17 = vshll.u32 %v16075_v37, 16  ;;  %v7220_v35 = vshll.u32 %v16082_v24, 16  ;;  %v17554_v16 = vld [vmem:[#allocation57_spill] sm:$0xff] }
 0x3f9   : > { %9140 = vmatmul.mubr.bf16.gmra.mxu1 %v10207_v55  ;;  %v16105_v51 = vrot.slane %v6699_v12, 4  ;;  %v10256_v15 = vcombine.low %v7199_v41, %v7209_v8  ;;  %v7213_v3 = vrot.slane %v7211_v4, 4  ;;  %v7224_v25 = vshrl.u32 %v16082_v24, 16  ;;  %v6333_v55 = vld [vmem:[#allocation2 + $0x98] sm:$0x1] }
 0x3fa   : > { %9147 = vmatprep.mubr.bf16.mxu1 %v10224_v28  ;;  %v10240_v60 = vcombine.low %v16015_v22, %v16024_v56  ;;  %v7216_v31 = vrot.slane %v7214_v17, 5  ;;  %v7222_v61 = vrot.slane %v7220_v35, 5  ;;  %v7230_v44 = vshll.u32 %v6941_v23, 16  ;;  %v17553_v41 = vld [vmem:[#allocation45_spill] sm:$0xff]  ;;  %v6733_v8 = vld [vmem:[#allocation2 + $0x90] sm:$0xe] }
 0x3fb   : > { %9308 = vmatprep.mubr.bf16.mxu0 %v10256_v15  ;;  %v6600_v9 = vrot.slane %v6598_v58, 5  ;;  %v7226_v12 = vrot.slane %v7224_v25, 4  ;;  %v16116_v4 = vadd.f32 %v15983_v30, %v15964_v52  ;;  %v6595_v63 = vor.u32 %v17554_v16, %v17553_v41  ;;  %v17555_v17 = vld [vmem:[#allocation33_spill] sm:$0xff]  ;;  %v11846_v15 = vld [vmem:[#allocation2 + $0x94] sm:$0xf]  ;;  %v17570_v56 = vld [vmem:[#allocation38_spill] sm:$0xff] }
 0x3fc   : > { %9309 = vmatmul.mubr.bf16.gmra.mxu0 %v10240_v60  ;;  %v7217_v46 = vor.u32 %v7216_v31, %v7213_v3  ;;  %v7232_v22 = vrot.slane %v7230_v44, 5  ;;  %v6591_v23 = vsel %vm12393_vm14, %v17555_v17, %v17553_v41  ;;  %v6865_v25 = vrot.slane %v11846_v15, 5  ;;  %v16137_v31 = vld [vmem:[#allocation2 + $0xa8] sm:$0xf] }
 0x3fd   : > { %17552 = vst [vmem:[#allocation46_spill] sm:$0xff] %v16116_v4  ;;  %v7227_v58 = vor.u32 %v7226_v12, %v7222_v61  ;;  %v6596_v35 = vrot.slane %v6595_v63, 4  ;;  %v6868_v52 = vrot.slane %v6333_v55, 5  ;;  %v16127_v4 = vpop.f32.mrf.mxu1  ;;  %v10113_v42 = vrot.slane %v6733_v8, 9  ;;  %v16145_v8 = vld [vmem:[#allocation2 + $0xac] sm:$0xf] }
 0x3fe   : > { %v16125_v30 = vpop.f32.mrf.mxu0  ;;  %v7218_v16 = vrot.slane %v7217_v46, 4  ;;  %v16131_v3 = vadd.f32 %v15987_v50, %v15968_v10  ;;  %v16135_v60 = vadd.f32 %v16033_v39, %v15999_v5  ;;  %v17557_v44 = vshll.u32 %v16056_v59, 16  ;;  %17558 = vst [vmem:[#allocation56_spill] sm:$0xff] %v16145_v8  ;;  %v16153_v59 = vld [vmem:[#allocation2 + $0xb0] sm:$0x1] }
 0x3ff   : > { %v7228_v41 = vrot.slane %v7227_v58, 4  ;;  %v6601_v63 = vsel %vm12393_vm14, %v6596_v35, %v6600_v9  ;;  %v6867_v46 = vrot.slane %v6865_v25, 4  ;;  %v6622_v5 = vshll.u32 %v6333_v55, 16  ;;  %17559 = vst [vmem:[#allocation39_spill] sm:$0xff] %v16153_v59 }
 0x400   : > { %17556 = vst [vmem:[#allocation20_spill] sm:$0xff] %v16135_v60  ;;  %v16141_v12 = vrot.slane %v17557_v44, 5  ;;  %v16147_v17 = vpop.f32.mrf.mxu0  ;;  %v7223_v10 = vsel %vm12393_vm14, %v7218_v16, %v7222_v61  ;;  %v10208_v50 = vcombine.low %v6591_v23, %v6601_v63  ;;  %v6866_v39 = vsel %vm12332_vm13, %v10113_v42, %v6865_v25  ;;  %v16174_v44 = vld [vmem:[#allocation2 + $0xa4] sm:$0x1] }
 0x401   : > { %v7233_v58 = vsel %vm12393_vm14, %v7228_v41, %v7232_v22  ;;  %v6869_v9 = vsel %vm12332_vm13, %v6867_v46, %v6868_v52  ;;  %v16161_v35 = vadd.f32 %v16040_v7, %v16005_v27  ;;  %v7235_v15 = vshrl.u32 %v16137_v31, 16 }
 0x402   : > { %v16164_v61 = vpop.f32.mrf.mxu1  ;;  %v16166_v55 = vpop.f32.mrf.mxu0  ;;  %v10257_v23 = vcombine.low %v7223_v10, %v7233_v58  ;;  %9148 = vmatmul.mubr.bf16.gmra.mxu1 %v10208_v50  ;;  %v10225_v42 = vcombine.low %v6866_v39, %v6869_v9  ;;  %v7238_v25 = vshll.u32 %v16137_v31, 16  ;;  %v7244_v22 = vshll.u32 %v16145_v8, 16 }
 0x403   : > { %v10241_v52 = vcombine.low %v16075_v37, %v16082_v24  ;;  %v7237_v16 = vrot.slane %v7235_v15, 4  ;;  %v7248_v27 = vshrl.u32 %v16145_v8, 16  ;;  %v7254_v7 = vshll.u32 %v16153_v59, 16  ;;  %v6734_v24 = vld [vmem:[#allocation2 + $0x9c] sm:$0xe]  ;;  %v17562_v15 = vld [vmem:[#allocation34_spill] sm:$0xff] }
 0x404   : > { %v16176_v41 = vpop.f32.mrf.mxu1  ;;  %v16178_v63 = vpop.f32.mrf.mxu0  ;;  %v17560_v46 = vshll.u32 %v16077_v62, 16  ;;  %9316 = vmatprep.mubr.bf16.mxu0 %v10257_v23  ;;  %9155 = vmatprep.mubr.bf16.mxu1 %v10225_v42  ;;  %v7240_v50 = vrot.slane %v7238_v25, 5  ;;  %v7246_v39 = vrot.slane %v7244_v22, 5  ;;  %v16186_v37 = vadd.f32 %v16065_v0, %v16054_v47  ;;  %v11847_v22 = vld [vmem:[#allocation2 + $0xa0] sm:$0xf] }
 0x405   : > { %v6624_v58 = vrot.slane %v6622_v5, 5  ;;  %9317 = vmatmul.mubr.bf16.gmra.mxu0 %v10241_v52  ;;  %v7250_v9 = vrot.slane %v7248_v27, 4  ;;  %v6615_v28 = vsel %vm12393_vm14, %v15632_v14, %v17562_v15  ;;  %v7256_v25 = vrot.slane %v7254_v7, 5 }
 0x406   : > { %v16182_v10 = vrot.slane %v17560_v46, 5  ;;  %17561 = vst [vmem:[#allocation47_spill] sm:$0xff] %v16186_v37  ;;  %v17563_v46 = vld [vmem:[#allocation36_spill] sm:$0xff]  ;;  %v16194_v23 = vpop.f32.mrf.mxu1  ;;  %v7241_v42 = vor.u32 %v7240_v50, %v7237_v16  ;;  %v6872_v34 = vrot.slane %v11847_v22, 5  ;;  %v6875_v47 = vrot.slane %v16174_v44, 5 }
 0x407   : > { %v6619_v60 = vor.u32 %v17563_v46, %v17562_v15  ;;  %v7251_v0 = vor.u32 %v7250_v9, %v7246_v39  ;;  %v10114_v52 = vrot.slane %v6734_v24, 9  ;;  %v16199_v27 = vadd.f32 %v16086_v20, %v16063_v29  ;;  %v16201_v37 = vpop.f32.mrf.mxu0  ;;  %v16211_v9 = vld [vmem:[#allocation2 + $0xb4] sm:$0xf]  ;;  %v16218_v46 = vld [vmem:[#allocation2 + $0xb8] sm:$0xf] }
 0x408   : > { %v16203_v14 = vpop.f32.mrf.mxu1  ;;  %v6705_v15 = vor.u32 %v16141_v12, %v16105_v51  ;;  %v7242_v16 = vrot.slane %v7241_v42, 4  ;;  %v6874_v7 = vrot.slane %v6872_v34, 4  ;;  %v16209_v50 = vadd.f32 %v16108_v53, %v16084_v48  ;;  %17565 = vst [vmem:[#allocation48_spill] sm:$0xff] %v16218_v46 }
 0x409   : > { %v6620_v5 = vrot.slane %v6619_v60, 4  ;;  %v7252_v60 = vrot.slane %v7251_v0, 4  ;;  %v6646_v20 = vshll.u32 %v16174_v44, 16  ;;  %v6873_v24 = vsel %vm12332_vm13, %v10114_v52, %v6872_v34  ;;  %v16220_v51 = vpop.f32.mrf.mxu0 }
 0x40a   : > { %17564 = vst [vmem:[#allocation49_spill] sm:$0xff] %v16209_v50  ;;  %v7247_v12 = vsel %vm12393_vm14, %v7242_v16, %v7246_v39  ;;  %v6876_v53 = vsel %vm12332_vm13, %v6874_v7, %v6875_v47  ;;  %v16228_v42 = vadd.f32 %v16127_v4, %v16110_v18  ;;  %v7259_v22 = vshrl.u32 %v16211_v9, 16  ;;  %v17569_v50 = vld [vmem:[#allocation42_spill] sm:$0xff] }
 0x40b   : > { %v6625_v29 = vsel %vm12393_vm14, %v6620_v5, %v6624_v58  ;;  %v16230_v58 = vld [vmem:[#allocation2 + $0xbc] sm:$0x1]  ;;  %v7257_v34 = vsel %vm12393_vm14, %v7252_v60, %v7256_v25  ;;  %v10226_v44 = vcombine.low %v6873_v24, %v6876_v53  ;;  %v7262_v0 = vshll.u32 %v16211_v9, 16 }
 0x40c   : > { %v10209_v48 = vcombine.low %v6615_v28, %v6625_v29  ;;  %v16236_v5 = vpop.f32.mrf.mxu1  ;;  %v16238_v28 = vpop.f32.mrf.mxu0  ;;  %v17566_v39 = vshrl.u32 %v16077_v62, 16  ;;  %v10258_v18 = vcombine.low %v7247_v12, %v7257_v34  ;;  %v7268_v4 = vshll.u32 %v16218_v46, 16  ;;  %v16249_v29 = vld [vmem:[#allocation2 + $0xb0] sm:$0x1] }
 0x40d   : > { %v7272_v52 = vshrl.u32 %v16218_v46, 16  ;;  %v10242_v25 = vcombine.low %v16137_v31, %v16145_v8  ;;  %v7261_v16 = vrot.slane %v7259_v22, 4  ;;  %v7264_v7 = vrot.slane %v7262_v0, 5  ;;  %v6735_v31 = vld [vmem:[#allocation2 + $0xa8] sm:$0xe] }
 0x40e   : > { %v16242_v47 = vrot.slane %v17566_v39, 4  ;;  %9156 = vmatmul.mubr.bf16.gmra.mxu1 %v10209_v48  ;;  %v7278_v60 = vshll.u32 %v16230_v58, 16  ;;  %v16251_v24 = vpop.f32.mrf.mxu1  ;;  %v16253_v53 = vpop.f32.mrf.mxu0  ;;  %v16255_v12 = vrot.slane %v6705_v15, 4  ;;  %9324 = vmatprep.mubr.bf16.mxu0 %v10258_v18  ;;  %v7270_v48 = vrot.slane %v7268_v4, 5  ;;  %v17568_v39 = vld [vmem:[#allocation37_spill] sm:$0xff] }
 0x40f   : > { %9163 = vmatprep.mubr.bf16.mxu1 %v10226_v44  ;;  %v7274_v34 = vrot.slane %v7272_v52, 4  ;;  %v16259_v44 = vadd.f32 %v16147_v17, %v16125_v30  ;;  %v6648_v22 = vrot.slane %v6646_v20, 5  ;;  %9325 = vmatmul.mubr.bf16.gmra.mxu0 %v10242_v25  ;;  %v7265_v0 = vor.u32 %v7264_v7, %v7261_v16  ;;  %v11848_v52 = vld [vmem:[#allocation2 + $0xac] sm:$0xf] }
 0x410   : > { %v6639_v54 = vsel %vm12393_vm14, %v17569_v50, %v17568_v39  ;;  %v6643_v15 = vor.u32 %v17570_v56, %v17568_v39  ;;  %v16267_v59 = vpop.f32.mrf.mxu1  ;;  %v7280_v4 = vrot.slane %v7278_v60, 5  ;;  %v6879_v8 = vrot.slane %v11848_v52, 5  ;;  %v16278_v56 = vld [vmem:[#allocation2 + $0x44] sm:$0x1] }
 0x411   : > { %17567 = vst [vmem:[#allocation27_spill] sm:$0xff] %v16259_v44  ;;  %v7275_v18 = vor.u32 %v7274_v34, %v7270_v48  ;;  %v6882_v30 = vrot.slane %v16249_v29, 5  ;;  %v16270_v17 = vpop.f32.mrf.mxu0  ;;  %v7266_v20 = vrot.slane %v7265_v0, 4  ;;  %v10115_v16 = vrot.slane %v6735_v31, 9  ;;  %17572 = vst [vmem:[#allocation51_spill] sm:$0xff] %v16278_v56 }
 0x412   : > { %v6644_v25 = vrot.slane %v6643_v15, 4  ;;  %v16274_v7 = vadd.f32 %v16176_v41, %v16164_v61  ;;  %v16276_v50 = vpop.f32.mrf.mxu1  ;;  %v6881_v39 = vrot.slane %v6879_v8, 4  ;;  %v16283_v52 = vadd.f32 %v16178_v63, %v16166_v55  ;;  %v16285_v44 = vld [vmem:[#allocation2 + $0xc0] sm:$0xf]  ;;  %v16298_v34 = vld [vmem:[#allocation2 + $0xc8] sm:$0x1] }
 0x413   : > { %v7276_v60 = vrot.slane %v7275_v18, 4  ;;  %v16287_v0 = vpop.f32.mrf.mxu0  ;;  %v7271_v61 = vsel %vm12393_vm14, %v7266_v20, %v7270_v48  ;;  %v6670_v31 = vshll.u32 %v16249_v29, 16  ;;  %v6880_v15 = vsel %vm12332_vm13, %v10115_v16, %v6879_v8  ;;  %v16296_v18 = vld [vmem:[#allocation2 + $0xc4] sm:$0xf]  ;;  %17574 = vst [vmem:[#allocation50_spill] sm:$0xff] %v16298_v34 }
 0x414   : > { %17571 = vst [vmem:[#allocation24_spill] sm:$0xff] %v16274_v7  ;;  %17573 = vst [vmem:[#allocation30_spill] sm:$0xff] %v16283_v52  ;;  %v6649_v41 = vsel %vm12393_vm14, %v6644_v25, %v6648_v22  ;;  %v16300_v55 = vpop.f32.mrf.mxu1  ;;  %v6883_v48 = vsel %vm12332_vm13, %v6881_v39, %v6882_v30  ;;  %v16308_v22 = vadd.f32 %v16203_v14, %v16194_v23  ;;  %v7283_v25 = vshrl.u32 %v16285_v44, 16 }
 0x415   : > { %v7281_v63 = vsel %vm12393_vm14, %v7276_v60, %v7280_v4  ;;  %v10210_v52 = vcombine.low %v6639_v54, %v6649_v41  ;;  %v16310_v29 = vpop.f32.mrf.mxu0  ;;  %v10227_v20 = vcombine.low %v6880_v15, %v6883_v48  ;;  %v7286_v16 = vshll.u32 %v16285_v44, 16  ;;  %v16328_v41 = vld [vmem:[#allocation2 + $0xbc] sm:$0x1]  ;;  %v6736_v60 = vld [vmem:[#allocation2 + $0xb4] sm:$0xe] }
 0x416   : > { %17575 = vst [vmem:[#allocation53_spill] sm:$0xff] %v16308_v22  ;;  %v10259_v8 = vcombine.low %v7271_v61, %v7281_v63  ;;  %v16314_v56 = vpop.f32.mrf.mxu1  ;;  %v10243_v54 = vcombine.low %v16211_v9, %v16218_v46  ;;  %v7292_v4 = vshll.u32 %v16296_v18, 16  ;;  %v7296_v30 = vshrl.u32 %v16296_v18, 16  ;;  %v17578_v46 = vld [vmem:[#allocation31_spill] sm:$0xff] }
 0x417   : > { %9164 = vmatmul.mubr.bf16.gmra.mxu1 %v10210_v52  ;;  %v7302_v23 = vshll.u32 %v16298_v34, 16  ;;  %v16321_v14 = vpop.f32.mrf.mxu0  ;;  %v7285_v39 = vrot.slane %v7283_v25, 4  ;;  %v7288_v61 = vrot.slane %v7286_v16, 5  ;;  %v16326_v52 = vadd.f32 %v16220_v51, %v16201_v37  ;;  %v17577_v34 = vld [vmem:[#allocation44_spill] sm:$0xff]  ;;  %v11850_v51 = vld [vmem:[#allocation2 + $0xb8] sm:$0xf] }
 0x418   : > { %9332 = vmatprep.mubr.bf16.mxu0 %v10259_v8  ;;  %9171 = vmatprep.mubr.bf16.mxu1 %v10227_v20  ;;  %v16330_v9 = vpop.f32.mrf.mxu1  ;;  %v6672_v15 = vrot.slane %v6670_v31, 5  ;;  %v7294_v63 = vrot.slane %v7292_v4, 5  ;;  %v7298_v48 = vrot.slane %v7296_v30, 4  ;;  %v6667_v22 = vor.u32 %v17578_v46, %v17577_v34  ;;  %v17579_v25 = vld [vmem:[#allocation28_spill] sm:$0xff] }
 0x419   : > { %17576 = vst [vmem:[#allocation19_spill] sm:$0xff] %v16326_v52  ;;  %9333 = vmatmul.mubr.bf16.gmra.mxu0 %v10243_v54  ;;  %v7289_v8 = vor.u32 %v7288_v61, %v7285_v39  ;;  %v7304_v20 = vrot.slane %v7302_v23, 5  ;;  %v6663_v37 = vsel %vm12393_vm14, %v17579_v25, %v17577_v34  ;;  %v6886_v16 = vrot.slane %v11850_v51, 5  ;;  %v16348_v34 = vld [vmem:[#allocation2 + $0xcc] sm:$0xf] }
 0x41a   : > { %v16338_v52 = vpop.f32.mrf.mxu0  ;;  %v16340_v40 = vpop.f32.mrf.mxu1  ;;  %v7299_v31 = vor.u32 %v7298_v48, %v7294_v63  ;;  %v6668_v54 = vrot.slane %v6667_v22, 4  ;;  %v6889_v4 = vrot.slane %v16328_v41, 5  ;;  %v16345_v46 = vadd.f32 %v16251_v24, %v16236_v5  ;;  %v16359_v5 = vld [vmem:[#allocation2 + $0xd0] sm:$0xf] }
 0x41b   : > { %v7290_v23 = vrot.slane %v7289_v8, 4  ;;  %v10116_v39 = vrot.slane %v6736_v60, 9  ;;  %v6888_v61 = vrot.slane %v6886_v16, 4  ;;  %v6694_v22 = vshll.u32 %v16328_v41, 16 }
 0x41c   : > { %v16350_v25 = vpop.f32.mrf.mxu0  ;;  %v7300_v51 = vrot.slane %v7299_v31, 4  ;;  %v6673_v48 = vsel %vm12393_vm14, %v6668_v54, %v6672_v15  ;;  %v16357_v7 = vadd.f32 %v16253_v53, %v16238_v28  ;;  %v16361_v24 = vpop.f32.mrf.mxu1  ;;  %v16369_v54 = vld [vmem:[#allocation2 + $0xd4] sm:$0x1]  ;;  %v16377_v30 = vadd.f32 %v16276_v50, %v16267_v59 }
 0x41d   : > { %v7295_v60 = vsel %vm12393_vm14, %v7290_v23, %v7294_v63  ;;  %v10211_v8 = vcombine.low %v6663_v37, %v6673_v48  ;;  %v6887_v31 = vsel %vm12332_vm13, %v10116_v39, %v6886_v16  ;;  %v6890_v15 = vsel %vm12332_vm13, %v6888_v61, %v6889_v4  ;;  %v16385_v16 = vld [vmem:[%s17272_s4] ss:$0 sm:$0xff] }
 0x41e   : > { %17580 = vst [vmem:[#allocation14_spill] sm:$0xff] %v16357_v7  ;;  %v16371_v41 = vpop.f32.mrf.mxu0  ;;  %v7305_v28 = vsel %vm12393_vm14, %v7300_v51, %v7304_v20  ;;  %v10228_v53 = vcombine.low %v6887_v31, %v6890_v15  ;;  %v7307_v63 = vshrl.u32 %v16348_v34, 16  ;;  %v16380_v37 = vpop.f32.mrf.mxu1  ;;  %v7310_v23 = vshll.u32 %v16348_v34, 16  ;;  %v6737_v31 = vld [vmem:[#allocation2 + $0xc0] sm:$0xe] }
 0x41f   : > { %v10260_v4 = vcombine.low %v7295_v60, %v7305_v28  ;;  %9172 = vmatmul.mubr.bf16.gmra.mxu1 %v10211_v8  ;;  %v7316_v20 = vshll.u32 %v16359_v5, 16  ;;  %v7320_v39 = vshrl.u32 %v16359_v5, 16  ;;  %v10244_v50 = vcombine.low %v16285_v44, %v16296_v18 }
 0x420   : > { %v16390_v61 = vpop.f32.mrf.mxu0  ;;  %9179 = vmatprep.mubr.bf16.mxu1 %v10228_v53  ;;  %v7309_v51 = vrot.slane %v7307_v63, 4  ;;  %v7326_v48 = vshll.u32 %v16369_v54, 16  ;;  %v16396_v60 = vpop.f32.mrf.mxu1  ;;  %v7312_v8 = vrot.slane %v7310_v23, 5  ;;  %v16400_v7 = vadd.f32 %v16287_v0, %v16270_v17 }
 0x421   : > { %9340 = vmatprep.mubr.bf16.mxu0 %v10260_v4  ;;  %v7318_v15 = vrot.slane %v7316_v20, 5  ;;  %v7322_v28 = vrot.slane %v7320_v39, 4  ;;  %v16404_v53 = vadd.f32 %v16003_v57, %v16385_v16  ;;  %v6696_v44 = vrot.slane %v6694_v22, 5 }
 0x422   : > { %17581 = vst [vmem:[#allocation13_spill] sm:$0xff] %v16400_v7  ;;  %9341 = vmatmul.mubr.bf16.gmra.mxu0 %v10244_v50  ;;  %v7328_v63 = vrot.slane %v7326_v48, 5  ;;  %v6691_v59 = vor.u32 %v16009_v38, %v15916_v36  ;;  %v10956_v4 = vpop.f32.mrf.mxu1  ;;  %v7313_v23 = vor.u32 %v7312_v8, %v7309_v51  ;;  %v6687_v17 = vsel %vm12393_vm14, %v16020_v13, %v15916_v36 }
 0x423   : > { %17582 = vst [vmem:[#allocation15_spill] sm:$0xff] %v16404_v53  ;;  %v11070_v6 = vpop.f32.mrf.mxu0  ;;  %v7323_v20 = vor.u32 %v7322_v28, %v7318_v15  ;;  %v6893_v0 = vrot.slane %v16077_v62, 5  ;;  %v10117_v57 = vrot.slane %v6737_v31, 9  ;;  %v6896_v7 = vrot.slane %v6337_v49, 5 }
 0x424   : > { %v6692_v39 = vrot.slane %v6691_v59, 4  ;;  %v16415_v22 = vadd.f32 %v16314_v56, %v16300_v55  ;;  %v7314_v48 = vrot.slane %v7313_v23, 4  ;;  %v6718_v51 = vshll.u32 %v6337_v49, 16 }
 0x425   : > { %v11071_v50 = vpop.f32.mrf.mxu0  ;;  %v10958_v38 = vpop.f32.mrf.mxu1  ;;  %v7324_v53 = vrot.slane %v7323_v20, 4  ;;  %v6895_v8 = vrot.slane %v6893_v0, 4  ;;  %v10915_v28 = vadd.f32 %v15871_v43, %v15854_v45  ;;  %v6894_v13 = vsel %vm12332_vm13, %v10117_v57, %v6893_v0 }
 0x426   : > { %v6697_v36 = vsel %vm12393_vm14, %v6692_v39, %v6696_v44  ;;  %v16425_v62 = vadd.f32 %v16321_v14, %v16310_v29  ;;  %v7319_v59 = vsel %vm12393_vm14, %v7314_v48, %v7318_v15  ;;  %v16435_v23 = vadd.f32 %v16340_v40, %v16330_v9  ;;  %v7331_v39 = vld [vmem:[#allocation2 + $0x24] sm:$0xe] }
 0x427   : > { %v11073_v56 = vpop.f32.mrf.mxu0  ;;  %v10959_v55 = vpop.f32.mrf.mxu1  ;;  %v7329_v49 = vsel %vm12393_vm14, %v7324_v53, %v7328_v63  ;;  %v10212_v31 = vcombine.low %v6687_v17, %v6697_v36  ;;  %v6897_v45 = vsel %vm12332_vm13, %v6895_v8, %v6896_v7  ;;  %v16439_v29 = vadd.f32 %v16350_v25, %v16338_v52  ;;  %v7330_v63 = vld [vmem:[#allocation2 + $0x18] sm:$0xe]  ;;  %v11851_v17 = vld [vmem:[#allocation2 + $0x1c] sm:$0xf]  ;;  %v11852_v52 = vld [vmem:[#allocation2 + $0x20] sm:$0x1] }
 0x428   : > { %v10261_v43 = vcombine.low %v7319_v59, %v7329_v49  ;;  %v10229_v44 = vcombine.low %v6894_v13, %v6897_v45  ;;  %v6720_v15 = vrot.slane %v6718_v51, 5  ;;  %v10245_v53 = vcombine.low %v16348_v34, %v16359_v5 }
 0x429   : > { %v11074_v14 = vpop.f32.mrf.mxu0  ;;  %v10961_v20 = vpop.f32.mrf.mxu1  ;;  %9180 = vmatmul.mubr.bf16.gmra.mxu1 %v10212_v31  ;;  %v6715_v7 = vor.u32 %v16242_v47, %v16182_v10  ;;  %v7396_v0 = vrot.slane %v11851_v17, 5  ;;  %v16447_v40 = vadd.f32 %v15869_v21, %v15845_v1  ;;  %v7399_v9 = vrot.slane %v11852_v52, 5 }
 0x42a   : > { %9348 = vmatprep.mubr.bf16.mxu0 %v10261_v43  ;;  %9187 = vmatprep.mubr.bf16.mxu1 %v10229_v44  ;;  %v10954_v25 = vadd.f32 %v16380_v37, %v16361_v24  ;;  %v16453_v34 = vadd.f32 %v16390_v61, %v16371_v41  ;;  %v16456_v57 = vadd.f32 %v10915_v28, %v16385_v16  ;;  %v10118_v24 = vrot.slane %v7330_v63, 9  ;;  %v17585_v63 = vld [vmem:[#allocation53_spill] sm:$0xff] }
 0x42b   : > { %v10962_v47 = vpop.f32.mrf.mxu1  ;;  %9349 = vmatmul.mubr.bf16.gmra.mxu0 %v10245_v53  ;;  %v6716_v48 = vrot.slane %v6715_v7, 4  ;;  %v7398_v51 = vrot.slane %v7396_v0, 4  ;;  %v10957_v1 = vadd.f32 %v10956_v4, %v16396_v60  ;;  %v6711_v8 = vsel %vm12393_vm14, %v16255_v12, %v16182_v10 }
 0x42c   : > { %v11076_v21 = vpop.f32.mrf.mxu0  ;;  %v16463_v37 = vadd.f32 %v11071_v50, %v11070_v6  ;;  %v10119_v41 = vrot.slane %v7331_v39, 9  ;;  %v16467_v61 = vadd.f32 %v16069_v26, %v16385_v16  ;;  %v16471_v28 = vadd.f32 %v16096_v32, %v16385_v16  ;;  %v11862_v39 = vld [vmem:[#allocation2 + $0x7c] sm:$0xf] }
 0x42d   : > { %v6721_v60 = vsel %vm12393_vm14, %v6716_v48, %v6720_v15  ;;  %v7400_v4 = vsel %vm12332_vm13, %v7398_v51, %v7399_v9  ;;  %v16479_v6 = vadd.f32 %v16131_v3, %v16385_v16  ;;  %v16483_v10 = vadd.f32 %v16161_v35, %v16385_v16  ;;  %v11853_v3 = vld [vmem:[#allocation2 + $0x34] sm:$0xf]  ;;  %v7333_v9 = vld [vmem:[#allocation2 + $0x3c] sm:$0xe] }
 0x42e   : > { %v11077_v36 = vpop.f32.mrf.mxu0  ;;  %v7397_v26 = vsel %vm12332_vm13, %v10118_v24, %v7396_v0  ;;  %v17583_v32 = vrot.slane %v15692_v33, 5  ;;  %v10964_v12 = vpop.f32.mrf.mxu1  ;;  %v10213_v50 = vcombine.low %v6711_v8, %v6721_v60  ;;  %v7410_v59 = vrot.slane %v11853_v3, 5  ;;  %v7334_v24 = vld [vmem:[#allocation2 + $0x48] sm:$0xe] }
 0x42f   : > { %v10960_v49 = vadd.f32 %v10959_v55, %v10958_v38  ;;  %v10262_v35 = vcombine.low %v7397_v26, %v7400_v4  ;;  %v16495_v45 = vadd.f32 %v11074_v14, %v11073_v56  ;;  %v10963_v43 = vadd.f32 %v10962_v47, %v10961_v20  ;;  %v7332_v38 = vld [vmem:[#allocation2 + $0x30] sm:$0xe]  ;;  %v11854_v55 = vld [vmem:[#allocation2 + $0x38] sm:$0x1]  ;;  %v11856_v26 = vld [vmem:[#allocation2 + $0x4c] sm:$0xf] }
 0x430   : > { %v16491_v2 = vsel %vm12332_vm13, %v10119_v41, %v17583_v32  ;;  %v11079_v31 = vpop.f32.mrf.mxu0  ;;  %v16497_v44 = vadd.f32 %v11077_v36, %v11076_v21  ;;  %v10965_v33 = vpop.f32.mrf.mxu1  ;;  %v16501_v15 = vadd.f32 %v16199_v27, %v16385_v16  ;;  %v16505_v53 = vadd.f32 %v16228_v42, %v16385_v16  ;;  %v17584_v14 = vld [vmem:[#allocation24_spill] sm:$0xff] }
 0x431   : > { %v10263_v13 = vcombine.low %v16491_v2, %v15725_v19  ;;  %9188 = vmatmul.mubr.bf16.gmra.mxu1 %v10213_v50  ;;  %v7413_v7 = vrot.slane %v11854_v55, 5  ;;  %v16510_v20 = vadd.f32 %v17584_v14, %v16385_v16  ;;  %v16514_v17 = vadd.f32 %v17585_v63, %v16385_v16  ;;  %v7335_v63 = vld [vmem:[#allocation2 + $0x54] sm:$0xe] }
 0x432   : > { %v11080_v56 = vpop.f32.mrf.mxu0  ;;  %v16518_v27 = vadd.f32 %v16345_v46, %v16385_v16  ;;  %v16522_v42 = vadd.f32 %v16377_v30, %v16385_v16  ;;  %11430 = vmatprep.mubr.bf16.mxu1 %v10262_v35  ;;  %v10967_v0 = vpop.f32.mrf.mxu1  ;;  %v7412_v52 = vrot.slane %v7410_v59, 4  ;;  %v10966_v47 = vadd.f32 %v10965_v33, %v10964_v12  ;;  %v11855_v30 = vld [vmem:[#allocation2 + $0x40] sm:$0xf] }
 0x433   : > { %v16525_v48 = vadd.f32 %v11080_v56, %v11079_v31  ;;  %v16529_v51 = vadd.f32 %v16415_v22, %v16385_v16  ;;  %v16533_v46 = vadd.f32 %v16435_v23, %v16385_v16  ;;  %v10120_v21 = vrot.slane %v7332_v38, 9  ;;  %v11857_v31 = vld [vmem:[#allocation2 + $0x58] sm:$0xf]  ;;  %v11858_v38 = vld [vmem:[#allocation2 + $0x50] sm:$0x1] }
 0x434   : > { %v7417_v8 = vrot.slane %v11855_v30, 5  ;;  %v10968_v60 = vpop.f32.mrf.mxu1  ;;  %v16536_v4 = vadd.f32 %v10954_v25, %v16385_v16  ;;  %v7414_v36 = vsel %vm12332_vm13, %v7412_v52, %v7413_v7  ;;  %v7424_v32 = vrot.slane %v11856_v26, 5  ;;  %v7336_v30 = vld [vmem:[#allocation2 + $0x60] sm:$0xe] }
 0x435   : > { %v11082_v41 = vpop.f32.mrf.mxu0  ;;  %v10969_v22 = vadd.f32 %v10968_v60, %v10967_v0  ;;  %v16541_v2 = vadd.f32 %v10957_v1, %v16385_v16  ;;  %v7411_v23 = vsel %vm12332_vm13, %v10120_v21, %v7410_v59  ;;  %v10121_v12 = vrot.slane %v7333_v9, 9  ;;  %v11859_v0 = vld [vmem:[#allocation2 + $0x64] sm:$0xf]  ;;  %v11860_v60 = vld [vmem:[#allocation2 + $0x70] sm:$0xf] }
 0x436   : > { %v7431_v35 = vrot.slane %v11857_v31, 5  ;;  %v16546_v25 = vadd.f32 %v10960_v49, %v16385_v16  ;;  %v10122_v33 = vrot.slane %v7334_v24, 9  ;;  %v7427_v55 = vrot.slane %v11858_v38, 5  ;;  %v11861_v31 = vld [vmem:[#allocation2 + $0x68] sm:$0x1] }
 0x437   : > { %v11083_v50 = vpop.f32.mrf.mxu0  ;;  %v10970_v3 = vpop.f32.mrf.mxu1  ;;  %v10264_v56 = vcombine.low %v7411_v23, %v7414_v36  ;;  %v16551_v1 = vadd.f32 %v10963_v43, %v16385_v16  ;;  %v7419_v14 = vrot.slane %v7417_v8, 4  ;;  %v7438_v52 = vrot.slane %v11859_v0, 5  ;;  %v17587_v36 = vld [vmem:[#allocation51_spill] sm:$0xff] }
 0x438   : > { %v16548_v7 = vadd.f32 %v11083_v50, %v11082_v41  ;;  %v7418_v49 = vsel %vm12332_vm13, %v10121_v12, %v7417_v8  ;;  %v7426_v21 = vrot.slane %v7424_v32, 4  ;;  %v7445_v41 = vrot.slane %v11860_v60, 5  ;;  %v17590_v60 = vld [vmem:[#allocation52_spill] sm:$0xff] }
 0x439   : > { %v11085_v59 = vpop.f32.mrf.mxu0  ;;  %v10971_v9 = vpop.f32.mrf.mxu1  ;;  %11431 = vmatmul.mubr.bf16.vlgmr.msra.gmra.mxu1 %v10263_v13  ;;  %v17588_v26 = vrot.slane %v17587_v36, 5  ;;  %v7425_v23 = vsel %vm12332_vm13, %v10122_v33, %v7424_v32  ;;  %v7433_v50 = vrot.slane %v7431_v35, 4  ;;  %v7441_v13 = vrot.slane %v11861_v31, 5  ;;  %v7338_v31 = vld [vmem:[#allocation2 + $0x78] sm:$0xe] }
 0x43a   : > { %17586 = vst [vmem:[#allocation16_spill] sm:$0xff] %v16548_v7  ;;  %v10972_v24 = vadd.f32 %v10971_v9, %v10970_v3  ;;  %11434 = vmatprep.mubr.bf16.mxu1 %v10264_v56  ;;  %v7428_v8 = vsel %vm12332_vm13, %v7426_v21, %v7427_v55  ;;  %v16564_v12 = vadd.f32 %v10966_v47, %v16385_v16  ;;  %v10123_v3 = vrot.slane %v7335_v63, 9  ;;  %v7337_v9 = vld [vmem:[#allocation2 + $0x6c] sm:$0xe]  ;;  %v17600_v7 = vld [vmem:[#allocation48_spill] sm:$0xff] }
 0x43b   : > { %v7421_v43 = vsel %vm12332_vm13, %v7419_v14, %v17588_v26  ;;  %v11086_v38 = vpop.f32.mrf.mxu0  ;;  %v10973_v0 = vpop.f32.mrf.mxu1  ;;  %v17591_v14 = vrot.slane %v17590_v60, 5  ;;  %v10124_v33 = vrot.slane %v7336_v30, 9  ;;  %v7440_v36 = vrot.slane %v7438_v52, 4  ;;  %v11863_v30 = vld [vmem:[#allocation2 + $0x80] sm:$0x1] }
 0x43c   : > { %v16566_v56 = vadd.f32 %v11086_v38, %v11085_v59  ;;  %v7452_v19 = vrot.slane %v11862_v39, 5  ;;  %v10265_v55 = vcombine.low %v7418_v49, %v7421_v43  ;;  %v16576_v47 = vsel %vm12332_vm13, %v10123_v3, %v7431_v35  ;;  %v17592_v35 = vld [vmem:[#allocation25_spill] sm:$0xff] }
 0x43d   : > { %v16572_v32 = vsel %vm12332_vm13, %v7433_v50, %v17591_v14  ;;  %v10974_v26 = vpop.f32.mrf.mxu1  ;;  %v7447_v21 = vrot.slane %v7445_v41, 4  ;;  %v10266_v38 = vcombine.low %v7425_v23, %v7428_v8  ;;  %v16580_v60 = vsel %vm12332_vm13, %v7440_v36, %v7441_v13 }
 0x43e   : > { %17589 = vst [vmem:[#allocation35_spill] sm:$0xff] %v16566_v56  ;;  %v11088_v63 = vpop.f32.mrf.mxu0  ;;  %v10975_v59 = vadd.f32 %v10974_v26, %v10973_v0  ;;  %v10125_v50 = vrot.slane %v7337_v9, 9  ;;  %v7455_v14 = vrot.slane %v11863_v30, 5  ;;  %v16583_v56 = vadd.f32 %v10969_v22, %v16385_v16  ;;  %v7343_v30 = vld [vmem:[#allocation2 + $0xb4] sm:$0xe] }
 0x43f   : > { %v10267_v39 = vcombine.low %v16576_v47, %v16572_v32  ;;  %v17593_v43 = vrot.slane %v17592_v35, 5  ;;  %v10126_v23 = vrot.slane %v7338_v31, 9  ;;  %v7439_v13 = vsel %vm12332_vm13, %v10124_v33, %v7438_v52  ;;  %v7342_v32 = vld [vmem:[#allocation2 + $0xa8] sm:$0xe]  ;;  %v17595_v52 = vld [vmem:[#allocation56_spill] sm:$0xff] }
 0x440   : > { %v11089_v49 = vpop.f32.mrf.mxu0  ;;  %v10976_v3 = vpop.f32.mrf.mxu1  ;;  %v16599_v22 = vsel %vm12332_vm13, %v10125_v50, %v7445_v41  ;;  %v7454_v9 = vrot.slane %v7452_v19, 4  ;;  %v10268_v36 = vcombine.low %v7439_v13, %v16580_v60  ;;  %v16603_v26 = vadd.f32 %v10972_v24, %v16385_v16  ;;  %v17596_v60 = vld [vmem:[#allocation39_spill] sm:$0xff] }
 0x441   : > { %v16591_v0 = vsel %vm12332_vm13, %v7447_v21, %v17593_v43  ;;  %v16595_v8 = vadd.f32 %v11089_v49, %v11088_v63  ;;  %11435 = vmatmul.mubr.bf16.gmra.mxu1 %v10265_v55  ;;  %v16607_v31 = vsel %vm12332_vm13, %v10126_v23, %v7452_v19  ;;  %v7480_v33 = vrot.slane %v17595_v52, 5  ;;  %v16616_v21 = vld [vmem:[#allocation2 + $0x88] sm:$0xf]  ;;  %v7344_v52 = vld [vmem:[#allocation2 + $0xc0] sm:$0xe] }
 0x442   : > { %v11091_v47 = vpop.f32.mrf.mxu0  ;;  %11438 = vmatprep.mubr.bf16.mxu1 %v10266_v38  ;;  %v16614_v63 = vsel %vm12332_vm13, %v7454_v9, %v7455_v14  ;;  %v10977_v55 = vpop.f32.mrf.mxu1  ;;  %v7483_v50 = vrot.slane %v17596_v60, 5  ;;  %v10130_v13 = vrot.slane %v7342_v32, 9  ;;  %v16623_v41 = vadd.f32 %v10975_v59, %v16385_v16  ;;  %v7345_v23 = vld [vmem:[#allocation2 + $0xcc] sm:$0xe] }
 0x443   : > { %17594 = vst [vmem:[#allocation55_spill] sm:$0xff] %v16595_v8  ;;  %v10978_v19 = vadd.f32 %v10977_v55, %v10976_v3  ;;  %v7482_v8 = vrot.slane %v7480_v33, 4  ;;  %v7487_v24 = vrot.slane %v17600_v7, 5  ;;  %v10131_v55 = vrot.slane %v7343_v30, 9 }
 0x444   : > { %v11092_v49 = vpop.f32.mrf.mxu0  ;;  %v10979_v9 = vpop.f32.mrf.mxu1  ;;  %v16632_v3 = vsel %vm12332_vm13, %v10130_v13, %v7480_v33  ;;  %v7494_v32 = vrot.slane %v16296_v18, 5  ;;  %v10132_v38 = vrot.slane %v7344_v52, 9  ;;  %v17602_v35 = vrot.slane %v16230_v58, 5  ;;  %v17604_v58 = vld [vmem:[#allocation15_spill] sm:$0xff]  ;;  %v17605_v33 = vld [vmem:[#allocation21_spill] sm:$0xff] }
 0x445   : > { %v16625_v14 = vadd.f32 %v11092_v49, %v11091_v47  ;;  %v16636_v59 = vadd.f32 %v10978_v19, %v16385_v16  ;;  %v16640_v43 = vsel %vm12332_vm13, %v7482_v8, %v7483_v50  ;;  %v7489_v7 = vrot.slane %v7487_v24, 4  ;;  %v17603_v8 = vld [vmem:[#allocation50_spill] sm:$0xff] }
 0x446   : > { %v10980_v49 = vpop.f32.mrf.mxu1  ;;  %17601 = vst [vmem:[#allocation59_spill] sm:$0xff] %v16640_v43  ;;  %v16646_v30 = vsel %vm12332_vm13, %v10131_v55, %v7487_v24  ;;  %v7496_v18 = vrot.slane %v7494_v32, 4  ;;  %v7497_v50 = vrot.slane %v17603_v8, 5  ;;  %v10133_v52 = vrot.slane %v7345_v23, 9 }
 0x447   : > { %17599 = vst [vmem:[#allocation40_spill] sm:$0xff] %v16625_v14  ;;  %v11094_v47 = vpop.f32.mrf.mxu0  ;;  %v10981_v60 = vadd.f32 %v10980_v49, %v10979_v9  ;;  %v16652_v14 = vsel %vm12332_vm13, %v7489_v7, %v17602_v35  ;;  %v7501_v9 = vrot.slane %v16359_v5, 5  ;;  %v16662_v55 = vsel %vm12332_vm13, %v10132_v38, %v7494_v32 }
 0x448   : > { %v10275_v24 = vcombine.low %v16646_v30, %v16652_v14  ;;  %v16666_v43 = vadd.f32 %v17605_v33, %v17604_v58  ;;  %v16670_v5 = vsel %vm12332_vm13, %v7496_v18, %v7497_v50  ;;  %v16678_v38 = vadd.f32 %v16447_v40, %v16456_v57  ;;  %v17607_v18 = vld [vmem:[#allocation41_spill] sm:$0xff]  ;;  %v17609_v57 = vld [vmem:[#allocation46_spill] sm:$0xff]  ;;  %v17611_v58 = vld [vmem:[#allocation47_spill] sm:$0xff] }
 0x449   : > { %v11095_v13 = vpop.f32.mrf.mxu0  ;;  %v10982_v19 = vpop.f32.mrf.mxu1  ;;  %11439 = vmatmul.mubr.bf16.gmra.mxu1 %v10267_v39  ;;  %v16674_v39 = vsel %vm12332_vm13, %v10133_v52, %v7501_v9  ;;  %v7503_v23 = vrot.slane %v7501_v9, 4  ;;  %v17608_v52 = vrot.slane %v16369_v54, 5  ;;  %v17610_v9 = vld [vmem:[#allocation20_spill] sm:$0xff] }
 0x44a   : > { %v16656_v49 = vadd.f32 %v11095_v13, %v11094_v47  ;;  %11442 = vmatprep.mubr.bf16.mxu1 %v10268_v36  ;;  %v10276_v47 = vcombine.low %v16662_v55, %v16670_v5  ;;  %v17606_v36 = vld [vmem:[#allocation23_spill] sm:$0xff]  ;;  %v16688_v13 = vadd.f32 %v17607_v18, %v16471_v28  ;;  %v16706_v28 = vadd.f32 %v17611_v58, %v16501_v15 }
 0x44b   : > { %v11097_v35 = vpop.f32.mrf.mxu0  ;;  %v10983_v7 = vpop.f32.mrf.mxu1  ;;  %v16684_v33 = vadd.f32 %v17606_v36, %v16467_v61  ;;  %v16694_v40 = vsel %vm12332_vm13, %v7503_v23, %v17608_v52  ;;  %v16702_v61 = vadd.f32 %v17610_v9, %v16483_v10  ;;  %v17612_v23 = vld [vmem:[#allocation49_spill] sm:$0xff]  ;;  %v17613_v52 = vld [vmem:[#allocation27_spill] sm:$0xff] }
 0x44c   : > { %v10984_v32 = vadd.f32 %v10983_v7, %v10982_v19  ;;  %v16698_v19 = vadd.f32 %v17609_v57, %v16479_v6  ;;  %v8839_v7 = vadd.f32 %v10981_v60, %v16385_v16  ;;  %v16715_v18 = vadd.f32 %v17612_v23, %v16505_v53  ;;  %v17614_v57 = vld [vmem:[#allocation30_spill] sm:$0xff]  ;;  %v17615_v60 = vld [vmem:[#allocation19_spill] sm:$0xff]  ;;  %v17617_v23 = vld [vmem:[#allocation13_spill] sm:$0xff] }
 0x44d   : > { %v11098_v8 = vpop.f32.mrf.mxu0  ;;  %v10985_v50 = vpop.f32.mrf.mxu1  ;;  %v16719_v10 = vadd.f32 %v17613_v52, %v16510_v20  ;;  %v16723_v15 = vadd.f32 %v17614_v57, %v16514_v17  ;;  %v16735_v54 = vadd.f32 %v17617_v23, %v16529_v51  ;;  %v16739_v20 = vadd.f32 %v16425_v62, %v16533_v46  ;;  %v7339_v46 = vld [vmem:[#allocation2 + $0x84] sm:$0xe] }
 0x44e   : > { %v16709_v36 = vadd.f32 %v11098_v8, %v11097_v35  ;;  %v16727_v35 = vadd.f32 %v17615_v60, %v16518_v27  ;;  %v17616_v8 = vld [vmem:[#allocation14_spill] sm:$0xff]  ;;  %v16743_v17 = vadd.f32 %v16439_v29, %v16536_v4  ;;  %v16747_v27 = vadd.f32 %v16453_v34, %v16541_v2  ;;  %v17624_v52 = vld [vmem:[#allocation40_spill] sm:$0xff] }
 0x44f   : > { %v10986_v6 = vpop.f32.mrf.mxu1  ;;  %v16731_v9 = vadd.f32 %v17616_v8, %v16522_v42  ;;  %v16751_v42 = vadd.f32 %v16463_v37, %v16546_v25  ;;  %v16755_v51 = vadd.f32 %v16495_v45, %v16551_v1  ;;  %v16759_v62 = vadd.f32 %v16497_v44, %v16564_v12  ;;  %v17620_v45 = vld [vmem:[#allocation16_spill] sm:$0xff]  ;;  %v17621_v44 = vld [vmem:[#allocation35_spill] sm:$0xff]  ;;  %v17625_v57 = vld [vmem:[#allocation22_spill] sm:$0xff] }
 0x450   : > { %v11100_v58 = vpop.f32.mrf.mxu0  ;;  %v10987_v53 = vadd.f32 %v10986_v6, %v10985_v50  ;;  %v17618_v29 = vcombine.low %v16599_v22, %v16591_v0  ;;  %v17619_v34 = vrot.slane %v16616_v21, 5  ;;  %v16768_v37 = vadd.f32 %v16525_v48, %v16583_v56  ;;  %v7340_v0 = vld [vmem:[#allocation2 + $0x90] sm:$0xe]  ;;  %v17623_v48 = vld [vmem:[#allocation55_spill] sm:$0xff] }
 0x451   : > { %v16772_v25 = vadd.f32 %v17620_v45, %v16603_v26  ;;  %v16776_v1 = vadd.f32 %v17621_v44, %v16623_v41  ;;  %v17622_v12 = vcombine.low %v16607_v31, %v16614_v63  ;;  %v8844_v22 = vadd.f32 %v10984_v32, %v16385_v16 }
 0x452   : > { %11443 = vmatmul.mubr.bf16.gmra.mxu1 %v17618_v29  ;;  %v7461_v4 = vrot.slane %v17619_v34, 4  ;;  %v11101_v2 = vpop.f32.mrf.mxu0  ;;  %v10988_v6 = vpop.f32.mrf.mxu1  ;;  %v16784_v56 = vadd.f32 %v17623_v48, %v16636_v59  ;;  %v16787_v26 = vadd.f32 %v17624_v52, %v8839_v7  ;;  %v17626_v60 = vrot.slane %v17625_v57, 5  ;;  %v17627_v29 = vld [vmem:[#allocation58_spill] sm:$0xff] }
 0x453   : > { %11446 = vmatprep.mubr.bf16.mxu1 %v17622_v12  ;;  %v11102_v50 = vadd.f32 %v11101_v2, %v11100_v58  ;;  %v10127_v23 = vrot.slane %v7339_v46, 9  ;;  %v17628_v31 = vrot.slane %v17627_v29, 5  ;;  %v10128_v58 = vrot.slane %v7340_v0, 9  ;;  %v17629_v34 = vld [vmem:[#allocation54_spill] sm:$0xff] }
 0x454   : > { %v7468_v41 = vrot.slane %v17626_v60, 4  ;;  %v11103_v8 = vpop.f32.mrf.mxu0  ;;  %v10989_v32 = vpop.f32.mrf.mxu1  ;;  %v17630_v2 = vrot.slane %v17629_v34, 5  ;;  %v17631_v44 = vrot.slane %v16616_v21, 5  ;;  %v11865_v46 = vld [vmem:[#allocation2 + $0xa0] sm:$0xf]  ;;  %v17632_v29 = vrot.slane %v17625_v57, 5 }
 0x455   : > { %v7463_v63 = vsel %vm12332_vm13, %v7461_v4, %v17628_v31  ;;  %v10990_v45 = vadd.f32 %v10989_v32, %v10988_v6  ;;  %v7473_v48 = vrot.slane %v11865_v46, 5  ;;  %v16804_v4 = vadd.f32 %v16656_v49, %v8844_v22  ;;  %v11866_v31 = vld [vmem:[#allocation2 + $0xa4] sm:$0x1] }
 0x456   : > { %v7470_v59 = vsel %vm12332_vm13, %v7468_v41, %v17630_v2  ;;  %v11104_v7 = vpop.f32.mrf.mxu0  ;;  %v7460_v12 = vsel %vm12332_vm13, %v10127_v23, %v17631_v44  ;;  %v10991_v60 = vpop.f32.mrf.mxu1  ;;  %v7467_v41 = vsel %vm12332_vm13, %v10128_v58, %v17632_v29  ;;  %v8847_v6 = vadd.f32 %v10987_v53, %v16385_v16  ;;  %v7341_v2 = vld [vmem:[#allocation2 + $0x9c] sm:$0xe] }
 0x457   : > { %v11105_v52 = vadd.f32 %v11104_v7, %v11103_v8  ;;  %v10271_v0 = vcombine.low %v7460_v12, %v7463_v63  ;;  %v7476_v21 = vrot.slane %v11866_v31, 5  ;;  %v10272_v32 = vcombine.low %v7467_v41, %v7470_v59 }
 0x458   : > { %v10992_v23 = vpop.f32.mrf.mxu1  ;;  %v7475_v7 = vrot.slane %v7473_v48, 4  ;;  %v8852_v63 = vadd.f32 %v10990_v45, %v16385_v16  ;;  %v16813_v44 = vadd.f32 %v16709_v36, %v8847_v6  ;;  %v10129_v58 = vrot.slane %v7341_v2, 9 }
 0x459   : > { %v11106_v34 = vpop.f32.mrf.mxu0  ;;  %v10993_v8 = vadd.f32 %v10992_v23, %v10991_v60  ;;  %v17635_v55 = vcombine.low %v16674_v39, %v16694_v40 }
 0x45a   : > { %11447 = vmatmul.mubr.bf16.gmra.mxu1 %v10271_v0  ;;  %v7477_v53 = vsel %vm12332_vm13, %v7475_v7, %v7476_v21  ;;  %v7474_v60 = vsel %vm12332_vm13, %v10129_v58, %v7473_v48  ;;  %v17633_v21 = vld [vmem:[#allocation59_spill] sm:$0xff] }
 0x45b   : > { %11450 = vmatprep.mubr.bf16.mxu1 %v10272_v32  ;;  %v11107_v49 = vpop.f32.mrf.mxu0  ;;  %v10994_v22 = vpop.f32.mrf.mxu1  ;;  %v10273_v41 = vcombine.low %v7474_v60, %v7477_v53  ;;  %v16819_v32 = vadd.f32 %v11102_v50, %v8852_v63  ;;  %v8855_v45 = vadd.f32 %v10993_v8, %v16385_v16  ;;  %v17634_v23 = vcombine.low %v16632_v3, %v17633_v21 }
 0x45c   : > { %v11108_v57 = vadd.f32 %v11107_v49, %v11106_v34 }
 0x45d   : > { %v11109_v59 = vpop.f32.mrf.mxu0  ;;  %v10995_v12 = vpop.f32.mrf.mxu1  ;;  %v16825_v48 = vadd.f32 %v11105_v52, %v8855_v45 }
 0x45e   : > { %v10996_v46 = vadd.f32 %v10995_v12, %v10994_v22 }
 0x45f   : > { %v11110_v0 = vpop.f32.mrf.mxu0  ;;  %v10997_v29 = vpop.f32.mrf.mxu1 }
 0x460   : > { %v11111_v31 = vadd.f32 %v11110_v0, %v11109_v59  ;;  %v8860_v49 = vadd.f32 %v10996_v46, %v16385_v16 }
 0x461   : > { %v10998_v36 = vpop.f32.mrf.mxu1  ;;  %v11112_v6 = vpop.f32.mrf.mxu0 }
 0x462   : > { %11451 = vmatmul.mubr.bf16.gmra.mxu1 %v10273_v41  ;;  %v10999_v34 = vadd.f32 %v10998_v36, %v10997_v29  ;;  %v16831_v3 = vadd.f32 %v11108_v57, %v8860_v49 }
 0x463   : > { %11454 = vmatprep.mubr.bf16.mxu1 %v17634_v23  ;;  %v11113_v2 = vpop.f32.mrf.mxu0  ;;  %v11000_v11 = vpop.f32.mrf.mxu1 }
 0x464   : > { %v11114_v7 = vadd.f32 %v11113_v2, %v11112_v6  ;;  %v8863_v52 = vadd.f32 %v10999_v34, %v16385_v16 }
 0x465   : > { %v11115_v22 = vpop.f32.mrf.mxu0  ;;  %v11001_v50 = vpop.f32.mrf.mxu1 }
 0x466   : > { %v11002_v63 = vadd.f32 %v11001_v50, %v11000_v11  ;;  %v16838_v14 = vadd.f32 %v11111_v31, %v8863_v52 }
 0x467   : > { %v11116_v58 = vpop.f32.mrf.mxu0  ;;  %v11003_v53 = vpop.f32.mrf.mxu1 }
 0x468   : > { %v11117_v8 = vadd.f32 %v11116_v58, %v11115_v22  ;;  %v8868_v45 = vadd.f32 %v11002_v63, %v16385_v16 }
 0x469   : > { %v11246_v59 = vpop.f32.mrf.mxu0  ;;  %v11004_v12 = vpop.f32.mrf.mxu1 }
 0x46a   : > { %11455 = vmatmul.mubr.bf16.gmra.mxu1 %v10275_v24  ;;  %v11005_v46 = vadd.f32 %v11004_v12, %v11003_v53  ;;  %v16847_v23 = vadd.f32 %v11114_v7, %v8868_v45 }
 0x46b   : > { %11458 = vmatprep.mubr.bf16.mxu1 %v10276_v47  ;;  %v11247_v60 = vpop.f32.mrf.mxu0  ;;  %v11134_v29 = vpop.f32.mrf.mxu1 }
 0x46c   : > { %v11248_v0 = vadd.f32 %v11247_v60, %v11246_v59  ;;  %v8871_v34 = vadd.f32 %v11005_v46, %v16385_v16  ;;  %17636 = vst [vmem:[#allocation43_spill] sm:$0xff] %v16847_v23 }
 0x46d   : > { %v11249_v41 = vpop.f32.mrf.mxu0  ;;  %v11135_v36 = vpop.f32.mrf.mxu1 }
 0x46e   : > { %v11136_v30 = vadd.f32 %v11135_v36, %v11134_v29  ;;  %v16854_v50 = vadd.f32 %v11117_v8, %v8871_v34 }
 0x46f   : > { %v11250_v24 = vpop.f32.mrf.mxu0  ;;  %v11137_v6 = vpop.f32.mrf.mxu1 }
 0x470   : > { %v11251_v57 = vadd.f32 %v11250_v24, %v11249_v41  ;;  %v9070_v5 = vadd.f32 %v11136_v30, %v16666_v43  ;;  %17637 = vst [vmem:[#allocation17_spill] sm:$0xff] %v16854_v50 }
 0x471   : > { %v16844_v47 = vpop.f32.mrf.mxu0  ;;  %v11138_v21 = vpop.f32.mrf.mxu1 }
 0x472   : > { %11459 = vmatmul.mubr.bf16.gmra.mxu1 %v17635_v55  ;;  %v11139_v2 = vadd.f32 %v11138_v21, %v11137_v6  ;;  %v16867_v12 = vadd.f32 %v11248_v0, %v9070_v5 }
 0x473   : > { %v16849_v31 = vpop.f32.mrf.mxu0 }
 0x474   : > { %v9073_v11 = vadd.f32 %v11139_v2, %v16678_v38 }
 0x475   : > { %v16852_v49 = vpop.f32.mrf.mxu0 }
 0x476   : > { %v11140_v22 = vpop.f32.mrf.mxu1 }
 0x477   : > { %v16856_v39 = vpop.f32.mrf.mxu0 }
 0x478   : > { %v11141_v43 = vpop.f32.mrf.mxu1 }
 0x479   : > { %v11142_v40 = vadd.f32 %v11141_v43, %v11140_v22  ;;  %v16858_v63 = vpop.f32.mrf.mxu0 }
 0x47a   : > { %v11143_v16 = vpop.f32.mrf.mxu1 }
 0x47b   : > { %v16861_v7 = vadd.f32 %v11142_v40, %v16684_v33  ;;  %v16863_v58 = vpop.f32.mrf.mxu0  ;;  %v16876_v33 = vadd.f32 %v11251_v57, %v9073_v11 }
 0x47c   : > { %v11144_v53 = vpop.f32.mrf.mxu1 }
 0x47d   : > { %v11145_v59 = vadd.f32 %v11144_v53, %v11143_v16  ;;  %v16865_v38 = vpop.f32.mrf.mxu0 }
 0x47e   : > { %v11146_v52 = vpop.f32.mrf.mxu1 }
 0x47f   : > { %v16870_v8 = vadd.f32 %v11145_v59, %v16688_v13  ;;  %v16872_v46 = vpop.f32.mrf.mxu0 }
 0x480   : > { %v11147_v60 = vpop.f32.mrf.mxu1 }
 0x481   : > { %v11148_v29 = vadd.f32 %v11147_v60, %v11146_v52 }
 0x482   : > { %v11149_v41 = vpop.f32.mrf.mxu1  ;;  %v16874_v45 = vpop.f32.mrf.mxu0 }
 0x483   : > { %v16879_v36 = vadd.f32 %v11148_v29, %v16698_v19 }
 0x484   : > { %v11150_v30 = vpop.f32.mrf.mxu1  ;;  %v16881_v24 = vpop.f32.mrf.mxu0 }
 0x485   : > { %v11151_v0 = vadd.f32 %v11150_v30, %v11149_v41 }
 0x486   : > { %v11152_v6 = vpop.f32.mrf.mxu1  ;;  %v16883_v55 = vpop.f32.mrf.mxu0 }
 0x487   : > { %v16886_v13 = vadd.f32 %v11151_v0, %v16702_v61 }
 0x488   : > { %v11153_v5 = vpop.f32.mrf.mxu1  ;;  %v16888_v34 = vpop.f32.mrf.mxu0 }
 0x489   : > { %v11154_v21 = vadd.f32 %v11153_v5, %v11152_v6 }
 0x48a   : > { %v11155_v2 = vpop.f32.mrf.mxu1  ;;  %v16890_v57 = vpop.f32.mrf.mxu0 }
 0x48b   : > { %v16893_v19 = vadd.f32 %v11154_v21, %v16706_v28 }
 0x48c   : > { %v11156_v11 = vpop.f32.mrf.mxu1  ;;  %v16895_v22 = vpop.f32.mrf.mxu0 }
 0x48d   : > { %v11157_v43 = vadd.f32 %v11156_v11, %v11155_v2 }
 0x48e   : > { %v11158_v40 = vpop.f32.mrf.mxu1  ;;  %v16897_v16 = vpop.f32.mrf.mxu0 }
 0x48f   : > { %v16900_v61 = vadd.f32 %v11157_v43, %v16715_v18 }
 0x490   : > { %v11159_v53 = vpop.f32.mrf.mxu1  ;;  %v16902_v59 = vpop.f32.mrf.mxu0 }
 0x491   : > { %v11160_v52 = vadd.f32 %v11159_v53, %v11158_v40 }
 0x492   : > { %v11161_v60 = vpop.f32.mrf.mxu1  ;;  %v16904_v29 = vpop.f32.mrf.mxu0 }
 0x493   : > { %v16907_v28 = vadd.f32 %v11160_v52, %v16719_v10 }
 0x494   : > { %v11162_v41 = vpop.f32.mrf.mxu1  ;;  %v16909_v30 = vpop.f32.mrf.mxu0 }
 0x495   : > { %v11163_v0 = vadd.f32 %v11162_v41, %v11161_v60 }
 0x496   : > { %v11164_v6 = vpop.f32.mrf.mxu1  ;;  %v16911_v5 = vpop.f32.mrf.mxu0 }
 0x497   : > { %v16914_v18 = vadd.f32 %v11163_v0, %v16723_v15 }
 0x498   : > { %v11165_v21 = vpop.f32.mrf.mxu1  ;;  %v16916_v2 = vpop.f32.mrf.mxu0 }
 0x499   : > { %17638 = vst [vmem:[#allocation18_spill] sm:$0xff] %v16914_v18  ;;  %v11166_v11 = vadd.f32 %v11165_v21, %v11164_v6 }
 0x49a   : > { %v11167_v43 = vpop.f32.mrf.mxu1  ;;  %v16918_v40 = vpop.f32.mrf.mxu0 }
 0x49b   : > { %17639 = vst [vmem:[#allocation26_spill] sm:$0xff] %v16918_v40  ;;  %v16921_v10 = vadd.f32 %v11166_v11, %v16727_v35 }
 0x49c   : > { %v11168_v53 = vpop.f32.mrf.mxu1  ;;  %v16923_v52 = vpop.f32.mrf.mxu0 }
 0x49d   : > { %17640 = vst [vmem:[#allocation29_spill] sm:$0xff] %v16923_v52  ;;  %v11169_v60 = vadd.f32 %v11168_v53, %v11167_v43 }
 0x49e   : > { %v16925_v41 = vpop.f32.mrf.mxu0 }
 0x49f   : > { %17641 = vst [vmem:[#allocation32_spill] sm:$0xff] %v16925_v41  ;;  %v16928_v50 = vadd.f32 %v11169_v60, %v16731_v9  ;;  %v11170_v15 = vpop.f32.mrf.mxu1 }
 0x4a0   : > { %v16930_v0 = vpop.f32.mrf.mxu0 }
 0x4a1   : > { %17642 = vst [vmem:[#allocation45_spill] sm:$0xff] %v16930_v0  ;;  %v11171_v23 = vpop.f32.mrf.mxu1 }
 0x4a2   : > { %v11172_v6 = vadd.f32 %v11171_v23, %v11170_v15  ;;  %v16932_v18 = vpop.f32.mrf.mxu0 }
 0x4a3   : > { %v11173_v21 = vpop.f32.mrf.mxu1  ;;  %17643 = vst [vmem:[#allocation57_spill] sm:$0xff] %v16932_v18 }
 0x4a4   : > { %v16935_v35 = vadd.f32 %v11172_v6, %v16735_v54  ;;  %v16937_v52 = vpop.f32.mrf.mxu0 }
 0x4a5   : > { %v11174_v11 = vpop.f32.mrf.mxu1 }
 0x4a6   : > { %17644 = vst [vmem:[#allocation33_spill] sm:$0xff] %v16935_v35  ;;  %v11175_v40 = vadd.f32 %v11174_v11, %v11173_v21  ;;  %v16942_v41 = vpop.f32.mrf.mxu0 }
 0x4a7   : > { %v11176_v43 = vpop.f32.mrf.mxu1 }
 0x4a8   : > { %v16940_v53 = vadd.f32 %v11175_v40, %v16739_v20  ;;  %v16947_v54 = vpop.f32.mrf.mxu0 }
 0x4a9   : > { %v11177_v9 = vpop.f32.mrf.mxu1 }
 0x4aa   : > { %17645 = vst [vmem:[#allocation34_spill] sm:$0xff] %v16940_v53  ;;  %v11178_v60 = vadd.f32 %v11177_v9, %v11176_v43 }
 0x4ab   : > { %v11179_v0 = vpop.f32.mrf.mxu1  ;;  %v16952_v35 = vpop.f32.mrf.mxu0 }
 0x4ac   : > { %v16945_v23 = vadd.f32 %v11178_v60, %v16743_v17  ;;  %17647 = vst [vmem:[#allocation37_spill] sm:$0xff] %v16952_v35 }
 0x4ad   : > { %v11180_v15 = vpop.f32.mrf.mxu1  ;;  %v16957_v53 = vpop.f32.mrf.mxu0 }
 0x4ae   : > { %v11181_v18 = vadd.f32 %v11180_v15, %v11179_v0 }
 0x4b0   : > { %v16950_v6 = vadd.f32 %v11181_v18, %v16747_v27  ;;  %v11182_v21 = vpop.f32.mrf.mxu1  ;;  %v16962_v27 = vpop.f32.mrf.mxu0 }
 0x4b1   : > { %17650 = vst [vmem:[#allocation44_spill] sm:$0xff] %v16962_v27 }
 0x4b2   : > { %17646 = vst [vmem:[#allocation36_spill] sm:$0xff] %v16950_v6  ;;  %v11183_v11 = vpop.f32.mrf.mxu1 }
 0x4b3   : > { %v11184_v20 = vadd.f32 %v11183_v11, %v11182_v21  ;;  %v16967_v11 = vpop.f32.mrf.mxu0 }
 0x4b4   : > { %v11185_v40 = vpop.f32.mrf.mxu1  ;;  %17651 = vst [vmem:[#allocation31_spill] sm:$0xff] %v16967_v11 }
 0x4b5   : > { %v16955_v43 = vadd.f32 %v11184_v20, %v16751_v42 }
 0x4b6   : > { %v11186_v9 = vpop.f32.mrf.mxu1 }
 0x4b7   : > { %17648 = vst [vmem:[#allocation42_spill] sm:$0xff] %v16955_v43  ;;  %v11187_v17 = vadd.f32 %v11186_v9, %v11185_v40  ;;  %v16972_v9 = vpop.f32.mrf.mxu0 }
 0x4b9   : > { %v11188_v60 = vpop.f32.mrf.mxu1  ;;  %v16960_v0 = vadd.f32 %v11187_v17, %v16755_v51  ;;  %v16974_v43 = vpop.f32.mrf.mxu0 }
 0x4bb   : > { %17649 = vst [vmem:[#allocation38_spill] sm:$0xff] %v16960_v0  ;;  %v11189_v15 = vpop.f32.mrf.mxu1 }
 0x4bc   : > { %v11190_v18 = vadd.f32 %v11189_v15, %v11188_v60 }
 0x4bd   : > { %v11191_v6 = vpop.f32.mrf.mxu1 }
 0x4be   : > { %v16965_v35 = vadd.f32 %v11190_v18, %v16759_v62  ;;  %v16979_v18 = vpop.f32.mrf.mxu0 }
 0x4bf   : > { %v11192_v21 = vpop.f32.mrf.mxu1 }
 0x4c0   : > { %v11193_v42 = vadd.f32 %v11192_v21, %v11191_v6 }
 0x4c2   : > { %v16970_v20 = vadd.f32 %v11193_v42, %v16768_v37  ;;  %v11194_v40 = vpop.f32.mrf.mxu1  ;;  %v16984_v42 = vpop.f32.mrf.mxu0 }
 0x4c4   : > { %17652 = vst [vmem:[#allocation28_spill] sm:$0xff] %v16970_v20  ;;  %v11195_v51 = vpop.f32.mrf.mxu1  ;;  %v16989_v27 = vpop.f32.mrf.mxu0 }
 0x4c5   : > { %v11196_v17 = vadd.f32 %v11195_v51, %v11194_v40 }
 0x4c6   : > { %v11197_v0 = vpop.f32.mrf.mxu1 }
 0x4c7   : > { %v16977_v60 = vadd.f32 %v11196_v17, %v16772_v25 }
 0x4c8   : > { %v11198_v62 = vpop.f32.mrf.mxu1 }
 0x4c9   : > { %17653 = vst [vmem:[#allocation24_spill] sm:$0xff] %v16977_v60  ;;  %v11199_v15 = vadd.f32 %v11198_v62, %v11197_v0  ;;  %v16994_v62 = vpop.f32.mrf.mxu0 }
 0x4cb   : > { %v16982_v6 = vadd.f32 %v11199_v15, %v16776_v1  ;;  %v16996_v60 = vpop.f32.mrf.mxu0 }
 0x4cc   : > { %17657 = vst [vmem:[#allocation25_spill] sm:$0xff] %v16996_v60 }
 0x4cd   : > { %17654 = vst [vmem:[#allocation53_spill] sm:$0xff] %v16982_v6 }
 0x4ce   : > { %v11200_v37 = vpop.f32.mrf.mxu1 }
 0x4d0   : > { %v11201_v21 = vpop.f32.mrf.mxu1 }
 0x4d1   : > { %v11202_v20 = vadd.f32 %v11201_v21, %v11200_v37  ;;  %v17001_v21 = vpop.f32.mrf.mxu0 }
 0x4d2   : > { %v11203_v11 = vpop.f32.mrf.mxu1 }
 0x4d3   : > { %v16987_v40 = vadd.f32 %v11202_v20, %v16784_v56 }
 0x4d4   : > { %v11204_v51 = vpop.f32.mrf.mxu1 }
 0x4d5   : > { %17655 = vst [vmem:[#allocation51_spill] sm:$0xff] %v16987_v40  ;;  %v11205_v25 = vadd.f32 %v11204_v51, %v11203_v11 }
 0x4d7   : > { %v16992_v0 = vadd.f32 %v11205_v25, %v16787_v26  ;;  %v11206_v17 = vpop.f32.mrf.mxu1 }
 0x4d9   : > { %17656 = vst [vmem:[#allocation52_spill] sm:$0xff] %v16992_v0  ;;  %v11207_v1 = vpop.f32.mrf.mxu1  ;;  %v17006_v0 = vpop.f32.mrf.mxu0 }
 0x4da   : > { %v11208_v15 = vadd.f32 %v11207_v1, %v11206_v17 }
 0x4db   : > { %v11209_v6 = vpop.f32.mrf.mxu1 }
 0x4dc   : > { %v16999_v37 = vadd.f32 %v11208_v15, %v16804_v4  ;;  %v17011_v4 = vpop.f32.mrf.mxu0 }
 0x4dd   : > { %v11210_v56 = vpop.f32.mrf.mxu1 }
 0x4de   : > { %17658 = vst [vmem:[#allocation56_spill] sm:$0xff] %v16999_v37  ;;  %v11211_v20 = vadd.f32 %v11210_v56, %v11209_v6  ;;  %v17016_v56 = vpop.f32.mrf.mxu0 }
 0x4df   : > { %v11212_v26 = vpop.f32.mrf.mxu1 }
 0x4e0   : > { %v17004_v11 = vadd.f32 %v11211_v20, %v16813_v44 }
 0x4e1   : > { %v11213_v51 = vpop.f32.mrf.mxu1 }
 0x4e2   : > { %17659 = vst [vmem:[#allocation39_spill] sm:$0xff] %v17004_v11  ;;  %v11214_v25 = vadd.f32 %v11213_v51, %v11212_v26  ;;  %v17021_v51 = vpop.f32.mrf.mxu0 }
 0x4e3   : > { %v11215_v40 = vpop.f32.mrf.mxu1 }
 0x4e4   : > { %v17009_v17 = vadd.f32 %v11214_v25, %v16819_v32 }
 0x4e5   : > { %v11216_v1 = vpop.f32.mrf.mxu1 }
 0x4e6   : > { %v11217_v60 = vadd.f32 %v11216_v1, %v11215_v40 }
 0x4e8   : > { %v17014_v6 = vadd.f32 %v11217_v60, %v16825_v48  ;;  %v17028_v48 = vpop.f32.mrf.mxu0 }
 0x4e9   : > { %v11218_v15 = vpop.f32.mrf.mxu1 }
 0x4ea   : > { %17660 = vst [vmem:[#allocation48_spill] sm:$0xff] %v17014_v6 }
 0x4eb   : > { %v11219_v44 = vpop.f32.mrf.mxu1 }
 0x4ec   : > { %v11220_v20 = vadd.f32 %v11219_v44, %v11218_v15  ;;  %v17036_v15 = vpop.f32.mrf.mxu0 }
 0x4ed   : > { %v11221_v11 = vpop.f32.mrf.mxu1 }
 0x4ee   : > { %v17019_v26 = vadd.f32 %v11220_v20, %v16831_v3  ;;  %v11254_v3 = vadd.f32 %v16849_v31, %v16844_v47 }
 0x4ef   : > { %v11222_v32 = vpop.f32.mrf.mxu1 }
 0x4f0   : > { %17661 = vst [vmem:[#allocation50_spill] sm:$0xff] %v17019_v26  ;;  %v11223_v25 = vadd.f32 %v11222_v32, %v11221_v11  ;;  %v9239_v11 = vadd.f32 %v11254_v3, %v16861_v7  ;;  %v11867_v26 = vld [vmem:[%s12222_s30 + $0x10] sm:$0xff] }
 0x4f1   : > { %v17023_v40 = vpop.f32.mrf.mxu1 }
 0x4f2   : > { %v17026_v1 = vadd.f32 %v11223_v25, %v16838_v14  ;;  %v11257_v14 = vadd.f32 %v16856_v39, %v16852_v49  ;;  %v17043_v25 = vpop.f32.mrf.mxu0  ;;  %v11868_v49 = vld [vmem:[%s12222_s30] sm:$0xff] }
 0x4f3   : > { %v17030_v60 = vpop.f32.mrf.mxu1 }
 0x4f4   : > { %17662 = vst [vmem:[#allocation15_spill] sm:$0xff] %v17026_v1  ;;  %v9242_v31 = vadd.f32 %v11257_v14, %v16870_v8  ;;  %v11260_v8 = vadd.f32 %v16863_v58, %v16858_v63 }
 0x4f5   : > { %v17032_v6 = vpop.f32.mrf.mxu1 }
 0x4f6   : > { %17663 = vst [vmem:[#allocation21_spill] sm:$0xff] %v17032_v6  ;;  %v9247_v63 = vadd.f32 %v11260_v8, %v16879_v36  ;;  %v11872_v36 = vld [vmem:[%s12222_s30 + $0x20] sm:$0xff] }
 0x4f7   : > { %v17038_v44 = vpop.f32.mrf.mxu1 }
 0x4f8   : > { %17664 = vst [vmem:[#allocation23_spill] sm:$0xff] %v17038_v44  ;;  %v11266_v44 = vadd.f32 %v16881_v24, %v16874_v45  ;;  %v11869_v45 = vld [vmem:[%s12222_s30 + $0x18] sm:$0xff] }
 0x4f9   : > { %v11432_v20 = vpop.f32.mrf.mxu1 }
 0x4fa   : > { %v9400_v32 = vadd.f32 %v11432_v20, %v9239_v11  ;;  %v9255_v3 = vadd.f32 %v11266_v44, %v16893_v19  ;;  %v11871_v19 = vld [vmem:[%s12222_s30 + $0x30] sm:$0xff] }
 0x4fb   : > { %v9391_v1 = vpop.f32.mrf.mxu1 }
 0x4fc   : > { %v9520_v6 = vadd.f32 %v11867_v26, %v9400_v32  ;;  %v9392_v47 = vadd.f32 %v9391_v1, %v16867_v12  ;;  %v17056_v26 = vpop.f32.mrf.mxu0 }
 0x4fd   : > { %v11433_v37 = vpop.f32.mrf.mxu1 }
 0x4fe   : > { %9552 = vst [vmem:[%s17052_s28 + $0x10] sm:$0xff] %v9520_v6  ;;  %v9518_v39 = vadd.f32 %v11868_v49, %v9392_v47  ;;  %v9403_v7 = vadd.f32 %v11433_v37, %v9242_v31  ;;  %v11269_v6 = vadd.f32 %v16888_v34, %v16883_v55  ;;  %v11870_v37 = vld [vmem:[%s12222_s30 + $0x8] sm:$0xff]  ;;  %v17069_v58 = vpop.f32.mrf.mxu0  ;;  %v11278_v31 = vadd.f32 %v16909_v30, %v16904_v29 }
 0x4ff   : > { %v9394_v12 = vpop.f32.mrf.mxu1 }
 0x500   : > { %9550 = vst [vmem:[%s17052_s28] sm:$0xff] %v9518_v39  ;;  %v9521_v24 = vadd.f32 %v11869_v45, %v9403_v7  ;;  %v9395_v1 = vadd.f32 %v9394_v12, %v16876_v33  ;;  %v11263_v33 = vadd.f32 %v16872_v46, %v16865_v38  ;;  %v9258_v34 = vadd.f32 %v11269_v6, %v16900_v61  ;;  %v17081_v46 = vpop.f32.mrf.mxu0  ;;  %v11873_v61 = vld [vmem:[%s12222_s30 + $0x38] sm:$0xff] }
 0x501   : > { %v11436_v11 = vpop.f32.mrf.mxu1  ;;  %v11272_v12 = vadd.f32 %v16895_v22, %v16890_v57  ;;  %v9271_v30 = vadd.f32 %v11278_v31, %v16921_v10  ;;  %v11275_v6 = vadd.f32 %v16902_v59, %v16897_v16  ;;  %v11875_v10 = vld [vmem:[%s12222_s30 + $0x50] sm:$0xff] }
 0x502   : > { %9553 = vst [vmem:[%s17052_s28 + $0x18] sm:$0xff] %v9521_v24  ;;  %v9519_v20 = vadd.f32 %v11870_v37, %v9395_v1  ;;  %v9416_v14 = vadd.f32 %v11436_v11, %v9255_v3  ;;  %v9250_v38 = vadd.f32 %v11263_v33, %v16886_v13  ;;  %v11281_v24 = vadd.f32 %v16916_v2, %v16911_v5  ;;  %v11874_v13 = vld [vmem:[%s12222_s30 + $0x28] sm:$0xff]  ;;  %v17093_v22 = vpop.f32.mrf.mxu0 }
 0x503   : > { %v9407_v32 = vpop.f32.mrf.mxu1  ;;  %v9263_v57 = vadd.f32 %v11272_v12, %v16907_v28  ;;  %v11876_v28 = vld [vmem:[%s12222_s30 + $0x40] sm:$0xff] }
 0x504   : > { %9551 = vst [vmem:[%s17052_s28 + $0x8] sm:$0xff] %v9519_v20  ;;  %v9524_v44 = vadd.f32 %v11871_v19, %v9416_v14  ;;  %v9408_v55 = vadd.f32 %v9407_v32, %v9247_v63  ;;  %v9274_v2 = vadd.f32 %v11281_v24, %v16928_v50  ;;  %v17665_v14 = vld [vmem:[#allocation57_spill] sm:$0xff]  ;;  %v17666_v19 = vld [vmem:[#allocation18_spill] sm:$0xff]  ;;  %v17105_v59 = vpop.f32.mrf.mxu0  ;;  %v11877_v50 = vld [vmem:[%s12222_s30 + $0x58] sm:$0xff] }
 0x505   : > { %v11437_v47 = vpop.f32.mrf.mxu1  ;;  %v11290_v63 = vadd.f32 %v16937_v52, %v17665_v14  ;;  %v9266_v16 = vadd.f32 %v11275_v6, %v17666_v19  ;;  %v17671_v24 = vld [vmem:[#allocation45_spill] sm:$0xff] }
 0x506   : > { %9556 = vst [vmem:[%s17052_s28 + $0x30] sm:$0xff] %v9524_v44  ;;  %v9522_v49 = vadd.f32 %v11872_v36, %v9408_v55  ;;  %v9419_v39 = vadd.f32 %v11437_v47, %v9258_v34  ;;  %v17667_v55 = vld [vmem:[#allocation26_spill] sm:$0xff]  ;;  %v17668_v34 = vld [vmem:[#allocation29_spill] sm:$0xff] }
 0x507   : > { %v9410_v7 = vpop.f32.mrf.mxu1  ;;  %v11284_v47 = vadd.f32 %v17668_v34, %v17667_v55  ;;  %v9287_v36 = vadd.f32 %v11290_v63, %v16945_v23  ;;  %v11879_v23 = vld [vmem:[%s12222_s30 + $0x70] sm:$0xff]  ;;  %v11880_v6 = vld [vmem:[%s12222_s30 + $0x60] sm:$0xff] }
 0x508   : > { %9554 = vst [vmem:[%s17052_s28 + $0x20] sm:$0xff] %v9522_v49  ;;  %v9525_v8 = vadd.f32 %v11873_v61, %v9419_v39  ;;  %v9411_v29 = vadd.f32 %v9410_v7, %v9250_v38  ;;  %v11293_v39 = vadd.f32 %v16947_v54, %v16942_v41  ;;  %v11878_v38 = vld [vmem:[%s12222_s30 + $0x48] sm:$0xff]  ;;  %v17669_v61 = vld [vmem:[#allocation33_spill] sm:$0xff]  ;;  %v17672_v54 = vld [vmem:[#allocation36_spill] sm:$0xff] }
 0x509   : > { %v11440_v45 = vpop.f32.mrf.mxu1  ;;  %v17674_v63 = vld [vmem:[#allocation37_spill] sm:$0xff] }
 0x50a   : > { %9557 = vst [vmem:[%s17052_s28 + $0x38] sm:$0xff] %v9525_v8  ;;  %v9523_v1 = vadd.f32 %v11874_v13, %v9411_v29  ;;  %v9432_v3 = vadd.f32 %v11440_v45, %v9271_v30  ;;  %v9279_v8 = vadd.f32 %v11284_v47, %v17669_v61  ;;  %v17117_v29 = vpop.f32.mrf.mxu0  ;;  %v17670_v45 = vld [vmem:[#allocation32_spill] sm:$0xff]  ;;  %v17675_v47 = vld [vmem:[#allocation42_spill] sm:$0xff]  ;;  %v11884_v61 = vld [vmem:[%s12222_s30 + $0x80] sm:$0xff] }
 0x50b   : > { %v9423_v11 = vpop.f32.mrf.mxu1  ;;  %v11287_v13 = vadd.f32 %v17671_v24, %v17670_v45  ;;  %v17679_v45 = vld [vmem:[#allocation38_spill] sm:$0xff] }
 0x50c   : > { %9555 = vst [vmem:[%s17052_s28 + $0x28] sm:$0xff] %v9523_v1  ;;  %v9528_v37 = vadd.f32 %v11875_v10, %v9432_v3  ;;  %v9424_v5 = vadd.f32 %v9423_v11, %v9263_v57  ;;  %v9290_v3 = vadd.f32 %v11293_v39, %v17672_v54  ;;  %v11302_v11 = vadd.f32 %v16974_v43, %v16972_v9 }
 0x50d   : > { %v11441_v20 = vpop.f32.mrf.mxu1 }
 0x50e   : > { %9560 = vst [vmem:[%s17052_s28 + $0x50] sm:$0xff] %v9528_v37  ;;  %v9526_v32 = vadd.f32 %v11876_v28, %v9424_v5  ;;  %v9435_v33 = vadd.f32 %v11441_v20, %v9274_v2  ;;  %v17673_v5 = vld [vmem:[#allocation34_spill] sm:$0xff]  ;;  %v17129_v20 = vpop.f32.mrf.mxu0  ;;  %v11296_v28 = vadd.f32 %v16957_v53, %v17674_v63  ;;  %v9303_v9 = vadd.f32 %v11302_v11, %v16965_v35  ;;  %v11883_v35 = vld [vmem:[%s12222_s30 + $0x90] sm:$0xff] }
 0x50f   : > { %v9426_v44 = vpop.f32.mrf.mxu1  ;;  %v9282_v2 = vadd.f32 %v11287_v13, %v17673_v5  ;;  %v11317_v11 = vadd.f32 %v17021_v51, %v17016_v56  ;;  %v17681_v5 = vld [vmem:[#allocation24_spill] sm:$0xff] }
 0x510   : > { %9558 = vst [vmem:[%s17052_s28 + $0x40] sm:$0xff] %v9526_v32  ;;  %v9529_v31 = vadd.f32 %v11877_v50, %v9435_v33  ;;  %v9427_v52 = vadd.f32 %v9426_v44, %v9266_v16  ;;  %v11881_v32 = vld [vmem:[%s12222_s30 + $0x78] sm:$0xff]  ;;  %v11305_v16 = vadd.f32 %v16984_v42, %v16979_v18  ;;  %v11882_v44 = vld [vmem:[%s12222_s30 + $0x68] sm:$0xff]  ;;  %v9295_v53 = vadd.f32 %v11296_v28, %v17675_v47  ;;  %v17141_v50 = vpop.f32.mrf.mxu0  ;;  %v11887_v28 = vld [vmem:[%s12222_s30 + $0xb0] sm:$0xff] }
 0x511   : > { %v17678_v42 = vld [vmem:[#allocation28_spill] sm:$0xff] }
 0x512   : > { %v11444_v49 = vpop.f32.mrf.mxu1  ;;  %9561 = vst [vmem:[%s17052_s28 + $0x58] sm:$0xff] %v9529_v31  ;;  %v9527_v7 = vadd.f32 %v11878_v38, %v9427_v52  ;;  %v17676_v52 = vld [vmem:[#allocation44_spill] sm:$0xff]  ;;  %v9306_v38 = vadd.f32 %v11305_v16, %v17678_v42  ;;  %v17153_v13 = vpop.f32.mrf.mxu0 }
 0x513   : > { %v9448_v12 = vadd.f32 %v11444_v49, %v9287_v36  ;;  %v17677_v36 = vld [vmem:[#allocation31_spill] sm:$0xff]  ;;  %v17683_v56 = vld [vmem:[#allocation52_spill] sm:$0xff] }
 0x514   : > { %v9439_v30 = vpop.f32.mrf.mxu1  ;;  %9559 = vst [vmem:[%s17052_s28 + $0x48] sm:$0xff] %v9527_v7  ;;  %v11299_v49 = vadd.f32 %v17677_v36, %v17676_v52  ;;  %v9322_v51 = vadd.f32 %v11317_v11, %v17683_v56  ;;  %v11889_v52 = vld [vmem:[%s12222_s30 + $0xb8] sm:$0xff]  ;;  %v17691_v11 = vld [vmem:[#allocation17_spill] sm:$0xff]  ;;  %v11895_v56 = vld [vmem:[%s12222_s30 + $0xf0] sm:$0xff] }
 0x515   : > { %v9532_v1 = vadd.f32 %v11879_v23, %v9448_v12  ;;  %v9440_v41 = vadd.f32 %v9439_v30, %v9279_v8  ;;  %v11314_v12 = vadd.f32 %v17011_v4, %v17006_v0  ;;  %v17680_v4 = vld [vmem:[#allocation51_spill] sm:$0xff] }
 0x516   : > { %v11445_v57 = vpop.f32.mrf.mxu1  ;;  %v9298_v24 = vadd.f32 %v11299_v49, %v17679_v45  ;;  %v11329_v49 = vadd.f32 %v17105_v59, %v17093_v22  ;;  %v17689_v22 = vld [vmem:[#allocation23_spill] sm:$0xff] }
 0x517   : > { %9564 = vst [vmem:[%s17052_s28 + $0x70] sm:$0xff] %v9532_v1  ;;  %v9530_v10 = vadd.f32 %v11880_v6, %v9440_v41  ;;  %v9451_v37 = vadd.f32 %v11445_v57, %v9290_v3  ;;  %v11308_v1 = vadd.f32 %v16994_v62, %v16989_v27  ;;  %v11885_v41 = vld [vmem:[%s12222_s30 + $0x98] sm:$0xff]  ;;  %v9319_v3 = vadd.f32 %v11314_v12, %v17680_v4  ;;  %v11886_v6 = vld [vmem:[%s12222_s30 + $0x88] sm:$0xff]  ;;  %v11336_v62 = vpop.f32.mrf.mxu0 }
 0x518   : > { %v9442_v14 = vpop.f32.mrf.mxu1  ;;  %v11332_v4 = vadd.f32 %v17129_v20, %v17117_v29  ;;  %v17692_v20 = vld [vmem:[#allocation50_spill] sm:$0xff] }
 0x519   : > { %9562 = vst [vmem:[%s17052_s28 + $0x60] sm:$0xff] %v9530_v10  ;;  %v9533_v33 = vadd.f32 %v11881_v32, %v9451_v37  ;;  %v9443_v43 = vadd.f32 %v9442_v14, %v9282_v2  ;;  %v9311_v27 = vadd.f32 %v11308_v1, %v17681_v5  ;;  %v17682_v14 = vld [vmem:[#allocation25_spill] sm:$0xff]  ;;  %v11337_v47 = vpop.f32.mrf.mxu0 }
 0x51a   : > { %v11448_v19 = vpop.f32.mrf.mxu1  ;;  %v11311_v63 = vadd.f32 %v17001_v21, %v17682_v14  ;;  %v11338_v1 = vadd.f32 %v11337_v47, %v11336_v62  ;;  %v11894_v14 = vld [vmem:[%s12222_s30 + $0xc8] sm:$0xff] }
 0x51b   : > { %9565 = vst [vmem:[%s17052_s28 + $0x78] sm:$0xff] %v9533_v33  ;;  %v9531_v55 = vadd.f32 %v11882_v44, %v9443_v43  ;;  %v9464_v34 = vadd.f32 %v11448_v19, %v9303_v9  ;;  %v11326_v9 = vadd.f32 %v17081_v46, %v17069_v58  ;;  %v11888_v19 = vld [vmem:[%s12222_s30 + $0xa0] sm:$0xff]  ;;  %v11339_v42 = vpop.f32.mrf.mxu0 }
 0x51c   : > { %v9455_v31 = vpop.f32.mrf.mxu1 }
 0x51d   : > { %9563 = vst [vmem:[%s17052_s28 + $0x68] sm:$0xff] %v9531_v55  ;;  %v9536_v39 = vadd.f32 %v11883_v35, %v9464_v34  ;;  %v9456_v18 = vadd.f32 %v9455_v31, %v9295_v53  ;;  %v17684_v55 = vld [vmem:[#allocation53_spill] sm:$0xff]  ;;  %v11320_v34 = vadd.f32 %v17036_v15, %v17028_v48  ;;  %v11226_v31 = vadd.f32 %v17030_v60, %v17023_v40 }
 0x51e   : > { %v11449_v7 = vpop.f32.mrf.mxu1  ;;  %v9314_v21 = vadd.f32 %v11311_v63, %v17684_v55  ;;  %v9335_v46 = vadd.f32 %v11326_v9, %v17009_v17  ;;  %v11323_v60 = vadd.f32 %v17056_v26, %v17043_v25  ;;  %v17687_v17 = vld [vmem:[#allocation43_spill] sm:$0xff]  ;;  %v11892_v25 = vld [vmem:[%s12222_s30 + $0xc0] sm:$0xff] }
 0x51f   : > { %9568 = vst [vmem:[%s17052_s28 + $0x90] sm:$0xff] %v9536_v39  ;;  %v9534_v8 = vadd.f32 %v11884_v61, %v9456_v18  ;;  %v9467_v30 = vadd.f32 %v11449_v7, %v9306_v38  ;;  %v11890_v39 = vld [vmem:[%s12222_s30 + $0xa8] sm:$0xff]  ;;  %v17685_v18 = vld [vmem:[#allocation56_spill] sm:$0xff]  ;;  %v9190_v61 = vadd.f32 %v11226_v31, %v17687_v17 }
 0x520   : > { %v9458_v23 = vpop.f32.mrf.mxu1  ;;  %v9327_v40 = vadd.f32 %v11320_v34, %v17685_v18  ;;  %v17686_v7 = vld [vmem:[#allocation48_spill] sm:$0xff]  ;;  %v11898_v31 = vld [vmem:[%s12222_s30 + $0xe8] sm:$0xff] }
 0x521   : > { %9566 = vst [vmem:[%s17052_s28 + $0x80] sm:$0xff] %v9534_v8  ;;  %v9537_v54 = vadd.f32 %v11885_v41, %v9467_v30  ;;  %v9459_v0 = vadd.f32 %v9458_v23, %v9298_v24  ;;  %v9338_v12 = vadd.f32 %v11329_v49, %v17686_v7  ;;  %v17688_v8 = vld [vmem:[#allocation21_spill] sm:$0xff]  ;;  %v11891_v30 = vld [vmem:[%s12222_s30 + $0xd0] sm:$0xff] }
 0x522   : > { %v11452_v57 = vpop.f32.mrf.mxu1  ;;  %v11229_v59 = vadd.f32 %v17689_v22, %v17688_v8 }
 0x523   : > { %9569 = vst [vmem:[%s17052_s28 + $0x98] sm:$0xff] %v9537_v54  ;;  %v9535_v10 = vadd.f32 %v11886_v6, %v9459_v0  ;;  %v9480_v37 = vadd.f32 %v11452_v57, %v9319_v3  ;;  %v17690_v54 = vld [vmem:[#allocation39_spill] sm:$0xff]  ;;  %v11340_v3 = vpop.f32.mrf.mxu0 }
 0x524   : > { %v9471_v2 = vpop.f32.mrf.mxu1  ;;  %v9330_v0 = vadd.f32 %v11323_v60, %v17690_v54  ;;  %v9193_v6 = vadd.f32 %v11229_v59, %v17691_v11 }
 0x525   : > { %9567 = vst [vmem:[%s17052_s28 + $0x88] sm:$0xff] %v9535_v10  ;;  %v9540_v32 = vadd.f32 %v11887_v28, %v9480_v37  ;;  %v9472_v33 = vadd.f32 %v9471_v2, %v9311_v27  ;;  %v11893_v10 = vld [vmem:[%s12222_s30 + $0xd8] sm:$0xff]  ;;  %v9351_v27 = vadd.f32 %v11338_v1, %v9190_v61  ;;  %v11341_v2 = vadd.f32 %v11340_v3, %v11339_v42 }
 0x526   : > { %v11453_v43 = vpop.f32.mrf.mxu1  ;;  %v9343_v28 = vadd.f32 %v11332_v4, %v17692_v20 }
 0x527   : > { %9572 = vst [vmem:[%s17052_s28 + $0xb0] sm:$0xff] %v9540_v32  ;;  %v9538_v16 = vadd.f32 %v11888_v19, %v9472_v33  ;;  %v9483_v44 = vadd.f32 %v11453_v43, %v9322_v51  ;;  %v11335_v33 = vadd.f32 %v17153_v13, %v17141_v50  ;;  %v9354_v9 = vadd.f32 %v11341_v2, %v9193_v6  ;;  %v11897_v13 = vld [vmem:[%s12222_s30 + $0xf8] sm:$0xff] }
 0x528   : > { %v9474_v53 = vpop.f32.mrf.mxu1 }
 0x529   : > { %9570 = vst [vmem:[%s17052_s28 + $0xa0] sm:$0xff] %v9538_v16  ;;  %v9541_v36 = vadd.f32 %v11889_v52, %v9483_v44  ;;  %v9475_v58 = vadd.f32 %v9474_v53, %v9314_v21  ;;  %v11896_v16 = vld [vmem:[%s12222_s30 + $0xe0] sm:$0xff]  ;;  %v17693_v21 = vld [vmem:[#allocation15_spill] sm:$0xff] }
 0x52a   : > { %v11456_v35 = vpop.f32.mrf.mxu1  ;;  %v9346_v34 = vadd.f32 %v11335_v33, %v17693_v21 }
 0x52b   : > { %9573 = vst [vmem:[%s17052_s28 + $0xb8] sm:$0xff] %v9541_v36  ;;  %v9539_v48 = vadd.f32 %v11890_v39, %v9475_v58  ;;  %v9496_v15 = vadd.f32 %v11456_v35, %v9335_v46 }
 0x52c   : > { %v9487_v38 = vpop.f32.mrf.mxu1 }
 0x52d   : > { %9571 = vst [vmem:[%s17052_s28 + $0xa8] sm:$0xff] %v9539_v48  ;;  %v9544_v45 = vadd.f32 %v11891_v30, %v9496_v15  ;;  %v9488_v24 = vadd.f32 %v9487_v38, %v9327_v40 }
 0x52e   : > { %v11457_v23 = vpop.f32.mrf.mxu1 }
 0x52f   : > { %9576 = vst [vmem:[%s17052_s28 + $0xd0] sm:$0xff] %v9544_v45  ;;  %v9542_v26 = vadd.f32 %v11892_v25, %v9488_v24  ;;  %v9499_v41 = vadd.f32 %v11457_v23, %v9338_v12 }
 0x530   : > { %v9490_v57 = vpop.f32.mrf.mxu1 }
 0x531   : > { %9574 = vst [vmem:[%s17052_s28 + $0xc0] sm:$0xff] %v9542_v26  ;;  %v9545_v37 = vadd.f32 %v11893_v10, %v9499_v41  ;;  %v9491_v5 = vadd.f32 %v9490_v57, %v9330_v0 }
 0x532   : > { %v11460_v62 = vpop.f32.mrf.mxu1 }
 0x533   : > { %9577 = vst [vmem:[%s17052_s28 + $0xd8] sm:$0xff] %v9545_v37  ;;  %v9543_v63 = vadd.f32 %v11894_v14, %v9491_v5  ;;  %v9512_v29 = vadd.f32 %v11460_v62, %v9351_v27 }
 0x534   : > { %v9503_v32 = vpop.f32.mrf.mxu1 }
 0x535   : > { %9575 = vst [vmem:[%s17052_s28 + $0xc8] sm:$0xff] %v9543_v63  ;;  %v9548_v51 = vadd.f32 %v11895_v56, %v9512_v29  ;;  %v9504_v43 = vadd.f32 %v9503_v32, %v9343_v28 }
 0x536   : > { %v11461_v19 = vpop.f32.mrf.mxu1 }
 0x537   : > { %9580 = vst [vmem:[%s17052_s28 + $0xf0] sm:$0xff] %v9548_v51  ;;  %v9546_v44 = vadd.f32 %v11896_v16, %v9504_v43  ;;  %v9515_v55 = vadd.f32 %v11461_v19, %v9354_v9 }
 0x538   : > { %v9506_v50 = vpop.f32.mrf.mxu1 }
 0x539   : > { %9578 = vst [vmem:[%s17052_s28 + $0xe0] sm:$0xff] %v9546_v44  ;;  %v9549_v47 = vadd.f32 %v11897_v13, %v9515_v55  ;;  %v9507_v53 = vadd.f32 %v9506_v50, %v9346_v34 }
 0x53b   : > { %9581 = vst [vmem:[%s17052_s28 + $0xf8] sm:$0xff] %v9549_v47  ;;  %v9547_v52 = vadd.f32 %v11898_v31, %v9507_v53 }
 0x53d   : > { %9579 = vst [vmem:[%s17052_s28 + $0xe8] sm:$0xff] %v9547_v52 }
 0x53e   : > { %11992 = shalt.err (!%p11989_p9)
}
 0x53f   : > { %s11993_s30 = scalar_lea.hbm %s17220_s14, 4096  ;;  %s11997_s11 = scalar_lea.hbm %s17273_s5, 8192 }
 0x540   : > { %p11994_p13 = scmp.ne.s32.totalorder %s17220_s14, %s11993_s30  ;;  %p11998_p4 = scmp.lt.s32.totalorder %s17220_s14, %s17273_s5 }
 0x541   : > { %p11999_p8 = scmp.lt.s32.totalorder %s11997_s11, %s11993_s30 }
 0x542   : > { %p11995_p5 = pnand %p11994_p13, %p17694_p10 }
 0x543   : > { %p12000_p3 = por %p11999_p8, %p11998_p4 }
 0x544   : > { %p11996_p0 = pneg %p11995_p5 }
 0x546   : > { %p12001_p11 = pnand %p12000_p3, %p11996_p0 }
 0x548   : > { %12004 = shalt.err (!%p12001_p11)
}
 0x549   : > { %s12057_s6 = smov 128   ;;  %s12058_s9 = smov 8  }
 0x54a   : > { %11472 = dma.vmem_to_hbm [thread:$0]  (%p17694_p10), %s17222_s7, 4096, %s17220_s14, %s9583_s22, %s12057_s6, %s12057_s6, %s12058_s9  }
 0x54b PF: > { %s9611_s13 = sand.u32 1, %s12035_s18   ;;  %p17695_p1 = scmp.ne.s32.totalorder %s17328_s25, 0 }
 0x54c   : > { %p17696_p2 = scmp.ge.s32.totalorder %s12047_s21, 2  ;;  %s9612_s17 = scalar_lea.sflag [#allocation5], %s9611_s13 }
 0x54e   : > { %p11486_p6 = pnand %p17696_p2, %p17695_p1 }
 0x550   : > { %p11487_p12 = pneg %p11486_p6 }
 0x552   : > { %12030 = dma.done.wait (%p11487_p12), %s9612_s17, 4096  }
 0x553   : > { %12032 = vsyncadd (%p11487_p12), %s9612_s17, 4294963200  ;;  %p19_p7 = scmp.ge.s32.totalorder %s12161_s15, 4   ;;  %s17697_s18 = smov %s12039_s19 }
 0x554   : > { %s17698_s19 = smov %s12043_s20  ;;  %s17699_s20 = smov %s12177_s27 }
 0x555   : > { %s17700_s21 = smov %s12161_s15  ;;  %21 = sbr.rel (!%p19_p7) target bundleno = 6 (0x6), region = 96 }
 0x55a   :  { %9617 = vsyncpa [#allocation4], 1 }
 0x55b   :  { %9619 = vsyncpa [#allocation4 + $0x1], 1 }
 0x55c   :  { %9620 = vsyncpa [#allocation7], 1 }
 0x55d   :  { %9621 = vsyncpa [#allocation5], 1 }
 0x55e   :  { %9623 = vsyncpa [#allocation5 + $0x1], 1 }

</bundles_post_ra>
